<compile_context>
chip_gen: v7x
topology: tpu7x:2x2x1
jax: 0.10.0
libtpu: 0.0.40
codegen_flags: <defaults>
</compile_context>

<pallas_src>
import math

import jax
import jax.numpy as jnp
from jax import lax
from jax.experimental import pallas as pl
from jax.experimental.pallas import tpu as pltpu

# ----- small shapes consistent with the module (embedding_dim kept a multiple of 128) -----
B = 2          # batch
S_IMG = 8      # image tokens: x.view(B, 8, embedding_dim)
E = 128        # embedding_dim (lane-dense)
H = 8          # num_heads
HD = E // H    # head_dim
L_TXT = 17     # text_len
T_TXT = 1      # text tokens (forced to 1 by the module's einsum shapes)
FFN = 256      # encoder feed-forward dim
HID = 128      # classifier hidden dim
C = 4          # num_classes
LN_EPS = 1e-5


def _layer_norm(x, gamma, beta):
    mu = jnp.mean(x, axis=-1, keepdims=True)
    xc = x - mu
    var = jnp.mean(xc * xc, axis=-1, keepdims=True)
    return xc * lax.rsqrt(var + LN_EPS) * gamma + beta


# --------------------------------------------------------------------------------------
# Kernel 1: text_fc + TransformerEncoderLayer + MHCA linear projections (no grid).
# --------------------------------------------------------------------------------------
def _encode_project_kernel(
    text_ref, img_ref,
    tfc_w_ref, tfc_b_ref,
    qkv_w_ref, qkv_b_ref, attn_ow_ref, attn_ob_ref, ln1_ref,
    ff1_w_ref, ff1_b_ref, ff2_w_ref, ff2_b_ref, ln2_ref,
    mh_w_ref, mh_b_ref,
    tenc_out_ref, ik_out_ref, iv_out_ref, tk_out_ref, tv_out_ref,
):
    f32 = jnp.float32

    # ---- text_fc: (B, L) @ (L, E) + b ----
    t = jnp.dot(text_ref[...], tfc_w_ref[...], preferred_element_type=f32) + tfc_b_ref[...]

    # ---- nn.TransformerEncoderLayer (batch_first=False => self-attention over the batch axis) ----
    nb = t.shape[0]
    qkv = jnp.dot(t, qkv_w_ref[...], preferred_element_type=f32) + qkv_b_ref[...]
    q = qkv[:, 0 * E:1 * E]
    k = qkv[:, 1 * E:2 * E]
    v = qkv[:, 2 * E:3 * E]
    scale = 1.0 / math.sqrt(HD)

    attn = jnp.zeros_like(t)
    for h in range(H):
        sl = slice(h * HD, (h + 1) * HD)
        qh, kh, vh = q[:, sl], k[:, sl], v[:, sl]
        # scores over the (tiny) sequence axis, online softmax, VPU only.
        s_j = [jnp.sum(qh * kh[j:j + 1, :], axis=-1, keepdims=True) * scale for j in range(nb)]
        m = s_j[0]
        for j in range(1, nb):
            m = jnp.maximum(m, s_j[j])
        p_j = [jnp.exp(sj - m) for sj in s_j]
        l = p_j[0]
        for j in range(1, nb):
            l = l + p_j[j]
        oh = jnp.zeros_like(vh)
        for j in range(nb):
            oh = oh + p_j[j] * vh[j:j + 1, :]
        oh = oh / l
        # out_proj accumulated head-slab by head-slab (no lane-splitting reshape).
        attn = attn + jnp.dot(oh, attn_ow_ref[h * HD:(h + 1) * HD, :], preferred_element_type=f32)
    attn = attn + attn_ob_ref[...]

    h1 = _layer_norm(t + attn, ln1_ref[0:1, :], ln1_ref[1:2, :])
    ff = jnp.maximum(jnp.dot(h1, ff1_w_ref[...], preferred_element_type=f32) + ff1_b_ref[...], 0.0)
    ff = jnp.dot(ff, ff2_w_ref[...], preferred_element_type=f32) + ff2_b_ref[...]
    tenc = _layer_norm(h1 + ff, ln2_ref[0:1, :], ln2_ref[1:2, :])        # (B, E) == text_encod (T == 1)

    # ---- MHCA input projections (lane-dense E) ----
    img = img_ref[...]                                                   # (B*S, E)
    ik = jnp.dot(img, mh_w_ref[0], preferred_element_type=f32) + mh_b_ref[0:1, :]
    iv = jnp.dot(img, mh_w_ref[1], preferred_element_type=f32) + mh_b_ref[1:2, :]
    tk = jnp.dot(tenc, mh_w_ref[2], preferred_element_type=f32) + mh_b_ref[2:3, :]
    tv = jnp.dot(tenc, mh_w_ref[3], preferred_element_type=f32) + mh_b_ref[3:4, :]

    tenc_out_ref[...] = tenc
    ik_out_ref[...] = ik
    iv_out_ref[...] = iv
    tk_out_ref[...] = tk
    tv_out_ref[...] = tv


# --------------------------------------------------------------------------------------
# Kernel 2: head-wise cross attention + fc_out + classifier head (grid over batch).
# Text-side tensors arrive un-broadcast (1, 1, H, HD) and are broadcast over the S
# image tokens by VPU numpy-broadcasting inside the kernel (no XLA broadcast glue).
# --------------------------------------------------------------------------------------
def _cross_attn_head_kernel(
    th_ref, ikh_ref, ivh_ref, imgh_ref, tkh_ref, tvh_ref,
    fco_w_ref, fco_b_ref, w1_ref, b1_ref, w2_ref, b2_ref,
    out_ref,
):
    f32 = jnp.float32
    scale = 1.0 / math.sqrt(HD)

    th = th_ref[0]          # (1, H, HD) text-encoder heads (query of img attention)
    ikh = ikh_ref[0]        # (S, H, HD) img->text keys heads
    ivh = ivh_ref[0]        # (S, H, HD) img->text values heads
    imgh = imgh_ref[0]      # (S, H, HD) raw image feature heads (query of text attention)
    tkh = tkh_ref[0]        # (1, H, HD) text->img keys heads
    tvh = tvh_ref[0]        # (1, H, HD) text->img values heads

    def attend(q_heads, k_heads, v_heads):
        # attention over the head axis (8x8), exactly as written in the PyTorch module;
        # online softmax with VPU broadcast/reduce (no padded MXU matmuls, no reshapes).
        # Broadcasting handles the token axis when q (or k/v) has a leading dim of 1.
        s_k = [jnp.sum(q_heads * k_heads[:, kk:kk + 1, :], axis=-1, keepdims=True) * scale
               for kk in range(H)]                                        # each (S, H, 1)
        m = s_k[0]
        for kk in range(1, H):
            m = jnp.maximum(m, s_k[kk])
        p_k = [jnp.exp(sk - m) for sk in s_k]
        l = p_k[0]
        for kk in range(1, H):
            l = l + p_k[kk]
        o = p_k[0] * v_heads[:, 0:1, :]
        for kk in range(1, H):
            o = o + p_k[kk] * v_heads[:, kk:kk + 1, :]
        return o / l                                                      # (S, H, HD)

    o_img = attend(th, ikh, ivh)        # img_out heads   (S, H, HD)
    o_txt = attend(imgh, tkh, tvh)      # text_out heads  (S, H, HD)

    # fc_out per token; heads merged through static weight slabs (no lane-split reshape).
    img_tok = jnp.zeros((S_IMG, E), f32) + fco_b_ref[...]
    txt_tok = jnp.zeros((S_IMG, E), f32) + fco_b_ref[...]
    for h in range(H):
        w_slab = fco_w_ref[h * HD:(h + 1) * HD, :]                        # (HD, E)
        img_tok = img_tok + jnp.dot(o_img[:, h, :], w_slab, preferred_element_type=f32)
        txt_tok = txt_tok + jnp.dot(o_txt[:, h, :], w_slab, preferred_element_type=f32)

    # classifier head on the flattened [img tokens ; text tokens] vector (out.view(B, -1)),
    # accumulated token-slab by token-slab.  Dropout layers are eval-mode identities.
    hvec = jnp.zeros((1, HID), f32) + b1_ref[...]
    for c in range(S_IMG):
        hvec = hvec + jnp.dot(img_tok[c:c + 1, :], w1_ref[c], preferred_element_type=f32)
    for c in range(S_IMG):
        hvec = hvec + jnp.dot(txt_tok[c:c + 1, :], w1_ref[S_IMG + c], preferred_element_type=f32)
    hvec = jnp.maximum(hvec, 0.0)
    logits = jnp.dot(hvec, w2_ref[...], preferred_element_type=f32) + b2_ref[...]      # (1, C)
    out_ref[0] = logits


# --------------------------------------------------------------------------------------
# Wrapper
# --------------------------------------------------------------------------------------
def patchnet_forward(img_feat, text, params):
    """img_feat: (B, 8, E) backbone features, text: (B, 1, text_len) -> logits (B, C)."""
    # TODO(synk): the ResNet50 backbone (pretrained torchvision weights) has no
    # self-contained Pallas equivalent; this forward starts from the features PatchNet
    # reshapes to (B, 8, embedding_dim).
    b, s, e = img_feat.shape
    text2d = text.reshape(b, L_TXT)
    img2d = img_feat.reshape(b * s, e)

    out_shapes = (
        jax.ShapeDtypeStruct((b, e), jnp.float32),        # text_encod
        jax.ShapeDtypeStruct((b * s, e), jnp.float32),    # img_to_text keys
        jax.ShapeDtypeStruct((b * s, e), jnp.float32),    # img_to_text values
        jax.ShapeDtypeStruct((b, e), jnp.float32),        # text_to_img keys
        jax.ShapeDtypeStruct((b, e), jnp.float32),        # text_to_img values
    )
    k1_args = (text2d, img2d,
               params['tfc_w'], params['tfc_b'],
               params['qkv_w'], params['qkv_b'],
               params['attn_ow'], params['attn_ob'], params['ln1'],
               params['ff1_w'], params['ff1_b'], params['ff2_w'], params['ff2_b'], params['ln2'],
               params['mh_w'], params['mh_b'])
    k1_cost = pl.CostEstimate(
        flops=int(2 * (b * L_TXT * e + b * e * 3 * e + b * e * e + 2 * b * e * FFN
                       + 2 * b * s * e * e + 2 * b * e * e)),
        transcendentals=int(H * b * b + 4 * b * e),
        bytes_accessed=int(4 * (sum(a.size for a in k1_args)
                                + sum(math.prod(o.shape) for o in out_shapes))),
    )
    tenc, ik, iv, tk, tv = pl.pallas_call(
        _encode_project_kernel,
        out_shape=out_shapes,
        cost_estimate=k1_cost,
    )(*k1_args)

    # Head split glue: ONLY free row-major reshapes (bitcasts).  Text-side tensors stay
    # un-broadcast; kernel 2 broadcasts them over the S image tokens on the VPU.
    th = tenc.reshape(b, 1, H, HD)
    ikh = ik.reshape(b, s, H, HD)
    ivh = iv.reshape(b, s, H, HD)
    imgh = img_feat.reshape(b, s, H, HD)
    tkh = tk.reshape(b, 1, H, HD)
    tvh = tv.reshape(b, 1, H, HD)

    tok_spec = pl.BlockSpec((1, s, H, HD), lambda i: (i, 0, 0, 0))
    vec_spec = pl.BlockSpec((1, 1, H, HD), lambda i: (i, 0, 0, 0))
    full2 = lambda arr: pl.BlockSpec(arr.shape, lambda i: (0, 0))
    full3 = lambda arr: pl.BlockSpec(arr.shape, lambda i: (0, 0, 0))

    k2_args = (th, ikh, ivh, imgh, tkh, tvh,
               params['mh_ow'], params['mh_ob'],
               params['w1'], params['b1'], params['w2'], params['b2'])
    k2_cost = pl.CostEstimate(
        flops=int(b * (2 * 2 * s * H * H * HD * 2 + 2 * H * s * HD * e * 2
                       + 2 * s * e * HID * 2 + 2 * HID * C)),
        transcendentals=int(2 * b * s * H * H),
        bytes_accessed=int(4 * (sum(a.size for a in k2_args) + b * C)),
    )
    logits3 = pl.pallas_call(
        _cross_attn_head_kernel,
        out_shape=jax.ShapeDtypeStruct((b, 1, C), jnp.float32),
        grid=(b,),
        in_specs=[vec_spec, tok_spec, tok_spec, tok_spec, vec_spec, vec_spec] + [
            full2(params['mh_ow']), full2(params['mh_ob']),
            full3(params['w1']), full2(params['b1']),
            full2(params['w2']), full2(params['b2']),
        ],
        out_specs=pl.BlockSpec((1, 1, C), lambda i: (i, 0, 0)),
        compiler_params=pltpu.CompilerParams(dimension_semantics=("parallel",)),
        cost_estimate=k2_cost,
    )(*k2_args)

    return logits3.reshape(b, C)


# --------------------------------------------------------------------------------------
# Pure-JAX reference (mirrors the PyTorch forward op-by-op)
# --------------------------------------------------------------------------------------
def patchnet_reference(img_feat, text, params):
    b, s, e = img_feat.shape
    t = jnp.einsum('btl,le->bte', text, params['tfc_w']) + params['tfc_b']    # (B, 1, E)

    # TransformerEncoderLayer with batch_first=False: sequence axis == batch axis.
    x = t[:, 0, :]
    qkv = x @ params['qkv_w'] + params['qkv_b']
    q, k, v = qkv[:, :E], qkv[:, E:2 * E], qkv[:, 2 * E:]
    qh, kh, vh = (a.reshape(b, H, HD) for a in (q, k, v))
    s_att = jnp.einsum('ihd,jhd->hij', qh, kh) / math.sqrt(HD)
    a_att = jax.nn.softmax(s_att, axis=-1)
    o = jnp.einsum('hij,jhd->ihd', a_att, vh).reshape(b, E)
    attn = o @ params['attn_ow'] + params['attn_ob']

    def ln(x_, g, bt):
        mu = jnp.mean(x_, -1, keepdims=True)
        var = jnp.mean((x_ - mu) ** 2, -1, keepdims=True)
        return (x_ - mu) / jnp.sqrt(var + LN_EPS) * g + bt

    h1 = ln(x + attn, params['ln1'][0:1], params['ln1'][1:2])
    ff = jax.nn.relu(h1 @ params['ff1_w'] + params['ff1_b']) @ params['ff2_w'] + params['ff2_b']
    tenc = ln(h1 + ff, params['ln2'][0:1], params['ln2'][1:2])                # (B, E)
    text_encod = tenc[:, None, :]                                             # (B, 1, E)

    # MultiHeadCrossAttention
    img2d = img_feat.reshape(b * s, e)
    ik = (img2d @ params['mh_w'][0] + params['mh_b'][0]).reshape(b, s, H, HD)
    iv = (img2d @ params['mh_w'][1] + params['mh_b'][1]).reshape(b, s, H, HD)
    tk = (tenc @ params['mh_w'][2] + params['mh_b'][2]).reshape(b, 1, H, HD)
    tv = (tenc @ params['mh_w'][3] + params['mh_b'][3]).reshape(b, 1, H, HD)
    text_keys = jnp.broadcast_to(text_encod, (b, s, e)).reshape(b, s, H, HD)
    img_keys = img_feat.reshape(b, s, H, HD)
    scale = 1.0 / math.sqrt(HD)
    img_att = jax.nn.softmax(jnp.einsum('bnqd,bnkd->bnqk', text_keys, ik) * scale, axis=-1)
    txt_att = jax.nn.softmax(
        jnp.einsum('bnqd,bnkd->bnqk', img_keys, jnp.broadcast_to(tk, (b, s, H, HD))) * scale, axis=-1)
    img_out = jnp.einsum('bnql,bnld->bnqd', img_att, iv).reshape(b, s, e)
    txt_out = jnp.einsum('bnql,bnld->bnqd', txt_att, jnp.broadcast_to(tv, (b, s, H, HD))).reshape(b, s, e)
    out = jnp.concatenate([img_out, txt_out], axis=1)                          # (B, 16, E)
    out = out @ params['mh_ow'] + params['mh_ob']

    flat = out.reshape(b, 2 * s * e)
    w1_flat = params['w1'].reshape(2 * s * e, HID)
    hcls = jax.nn.relu(flat @ w1_flat + params['b1'])
    return hcls @ params['w2'] + params['b2']


if __name__ == "__main__":
    key = jax.random.PRNGKey(0)
    keys = jax.random.split(key, 20)

    def nrm(k, shape, scale):
        return jax.random.normal(k, shape, dtype=jnp.float32) * scale

    ones_zeros = jnp.concatenate([jnp.ones((1, E), jnp.float32),
                                  jnp.zeros((1, E), jnp.float32)], axis=0)
    params = {
        'tfc_w': nrm(keys[0], (L_TXT, E), 0.1),
        'tfc_b': nrm(keys[1], (1, E), 0.05),
        'qkv_w': nrm(keys[2], (E, 3 * E), 0.05),
        'qkv_b': nrm(keys[3], (1, 3 * E), 0.02),
        'attn_ow': nrm(keys[4], (E, E), 0.05),
        'attn_ob': nrm(keys[5], (1, E), 0.02),
        'ln1': ones_zeros,
        'ff1_w': nrm(keys[6], (E, FFN), 0.05),
        'ff1_b': nrm(keys[7], (1, FFN), 0.02),
        'ff2_w': nrm(keys[8], (FFN, E), 0.05),
        'ff2_b': nrm(keys[9], (1, E), 0.02),
        'ln2': ones_zeros,
        'mh_w': nrm(keys[10], (4, E, E), 0.05),
        'mh_b': nrm(keys[11], (4, E), 0.02),
        'mh_ow': nrm(keys[12], (E, E), 0.05),
        'mh_ob': nrm(keys[13], (1, E), 0.02),
        'w1': nrm(keys[14], (2 * S_IMG, E, HID), 0.03),   # fc[0] weight, token-major slabs
        'b1': nrm(keys[15], (1, HID), 0.02),
        'w2': nrm(keys[16], (HID, C), 0.05),
        'b2': nrm(keys[17], (1, C), 0.02),
    }

    img_feat = jax.random.normal(keys[18], (B, S_IMG, E), dtype=jnp.float32)  # backbone features
    text = jax.random.normal(keys[19], (B, T_TXT, L_TXT), dtype=jnp.float32)

    fwd = jax.jit(patchnet_forward)
    out = jax.block_until_ready(fwd(img_feat, text, params))

    ref = patchnet_reference(img_feat, text, params)
    assert out.shape == (B, C)
    assert bool(jnp.all(jnp.isfinite(out)))
    assert jnp.allclose(out, ref, atol=1e-2, rtol=1e-2), (out, ref)

    print("KERNEL_OK")
</pallas_src>

<mosaic_0001>
module attributes {stable_mosaic.version = 11 : i64} {
  func.func @_encode_project_kernel(%arg0: memref<2x17xf32, #tpu.memory_space<vmem>>, %arg1: memref<16x128xf32, #tpu.memory_space<vmem>>, %arg2: memref<17x128xf32, #tpu.memory_space<vmem>>, %arg3: memref<1x128xf32, #tpu.memory_space<vmem>>, %arg4: memref<128x384xf32, #tpu.memory_space<vmem>>, %arg5: memref<1x384xf32, #tpu.memory_space<vmem>>, %arg6: memref<128x128xf32, #tpu.memory_space<vmem>>, %arg7: memref<1x128xf32, #tpu.memory_space<vmem>>, %arg8: memref<2x128xf32, #tpu.memory_space<vmem>>, %arg9: memref<128x256xf32, #tpu.memory_space<vmem>>, %arg10: memref<1x256xf32, #tpu.memory_space<vmem>>, %arg11: memref<256x128xf32, #tpu.memory_space<vmem>>, %arg12: memref<1x128xf32, #tpu.memory_space<vmem>>, %arg13: memref<2x128xf32, #tpu.memory_space<vmem>>, %arg14: memref<4x128x128xf32, #tpu.memory_space<vmem>>, %arg15: memref<4x128xf32, #tpu.memory_space<vmem>>, %arg16: memref<2x128xf32, #tpu.memory_space<vmem>>, %arg17: memref<16x128xf32, #tpu.memory_space<vmem>>, %arg18: memref<16x128xf32, #tpu.memory_space<vmem>>, %arg19: memref<2x128xf32, #tpu.memory_space<vmem>>, %arg20: memref<2x128xf32, #tpu.memory_space<vmem>>) attributes {dimension_semantics = [], scalar_prefetch = 0 : i64, scratch_operands = 0 : i64, tpu.core_type = #tpu.core_type<tc>} {
    %c0 = arith.constant 0 : index
    %c0_0 = arith.constant 0 : index
    %0 = vector.load %arg0[%c0, %c0_0] : memref<2x17xf32, #tpu.memory_space<vmem>>, vector<2x17xf32>
    %c0_1 = arith.constant 0 : index
    %c0_2 = arith.constant 0 : index
    %1 = vector.load %arg2[%c0_1, %c0_2] : memref<17x128xf32, #tpu.memory_space<vmem>>, vector<17x128xf32>
    %cst = arith.constant dense<0.000000e+00> : vector<2x128xf32>
    %2 = tpu.matmul %0, %1, %cst {dimension_numbers = #tpu.dot_dimension_numbers<[1], [0], [0], [1], [0, 0, 1, 1], [], []>} : vector<2x17xf32>, vector<17x128xf32>, vector<2x128xf32> -> vector<2x128xf32>
    %c0_3 = arith.constant 0 : index
    %c0_4 = arith.constant 0 : index
    %3 = vector.load %arg3[%c0_3, %c0_4] : memref<1x128xf32, #tpu.memory_space<vmem>>, vector<1x128xf32>
    %4 = vector.broadcast %3 : vector<1x128xf32> to vector<2x128xf32>
    %5 = arith.addf %2, %4 : vector<2x128xf32>
    %c0_5 = arith.constant 0 : index
    %c0_6 = arith.constant 0 : index
    %6 = vector.load %arg4[%c0_5, %c0_6] : memref<128x384xf32, #tpu.memory_space<vmem>>, vector<128x384xf32>
    %cst_7 = arith.constant dense<0.000000e+00> : vector<2x384xf32>
    %7 = tpu.matmul %5, %6, %cst_7 {dimension_numbers = #tpu.dot_dimension_numbers<[1], [0], [0], [1], [0, 0, 1, 1], [], []>} : vector<2x128xf32>, vector<128x384xf32>, vector<2x384xf32> -> vector<2x384xf32>
    %c0_8 = arith.constant 0 : index
    %c0_9 = arith.constant 0 : index
    %8 = vector.load %arg5[%c0_8, %c0_9] : memref<1x384xf32, #tpu.memory_space<vmem>>, vector<1x384xf32>
    %9 = vector.broadcast %8 : vector<1x384xf32> to vector<2x384xf32>
    %10 = arith.addf %7, %9 : vector<2x384xf32>
    %11 = vector.extract_strided_slice %10 {offsets = [0, 0], sizes = [2, 128], strides = [1, 1]} : vector<2x384xf32> to vector<2x128xf32>
    %12 = vector.extract_strided_slice %10 {offsets = [0, 128], sizes = [2, 128], strides = [1, 1]} : vector<2x384xf32> to vector<2x128xf32>
    %13 = vector.extract_strided_slice %10 {offsets = [0, 256], sizes = [2, 128], strides = [1, 1]} : vector<2x384xf32> to vector<2x128xf32>
    %cst_10 = arith.constant 0.000000e+00 : f32
    %14 = vector.broadcast %cst_10 : f32 to vector<2x128xf32>
    %15 = vector.extract_strided_slice %11 {offsets = [0, 0], sizes = [2, 16], strides = [1, 1]} : vector<2x128xf32> to vector<2x16xf32>
    %16 = vector.extract_strided_slice %12 {offsets = [0, 0], sizes = [2, 16], strides = [1, 1]} : vector<2x128xf32> to vector<2x16xf32>
    %17 = vector.extract_strided_slice %13 {offsets = [0, 0], sizes = [2, 16], strides = [1, 1]} : vector<2x128xf32> to vector<2x16xf32>
    %18 = vector.extract_strided_slice %16 {offsets = [0, 0], sizes = [1, 16], strides = [1, 1]} : vector<2x16xf32> to vector<1x16xf32>
    %19 = vector.broadcast %18 : vector<1x16xf32> to vector<2x16xf32>
    %20 = arith.mulf %15, %19 : vector<2x16xf32>
    %cst_11 = arith.constant dense<0.000000e+00> : vector<2xf32>
    %21 = vector.multi_reduction <add>, %20, %cst_11 [1] : vector<2x16xf32> to vector<2xf32>
    %22 = vector.shape_cast %21 : vector<2xf32> to vector<2x1xf32>
    %cst_12 = arith.constant 2.500000e-01 : f32
    %23 = vector.broadcast %cst_12 : f32 to vector<2x1xf32>
    %24 = arith.mulf %22, %23 : vector<2x1xf32>
    %25 = vector.extract_strided_slice %16 {offsets = [1, 0], sizes = [1, 16], strides = [1, 1]} : vector<2x16xf32> to vector<1x16xf32>
    %26 = vector.broadcast %25 : vector<1x16xf32> to vector<2x16xf32>
    %27 = arith.mulf %15, %26 : vector<2x16xf32>
    %cst_13 = arith.constant dense<0.000000e+00> : vector<2xf32>
    %28 = vector.multi_reduction <add>, %27, %cst_13 [1] : vector<2x16xf32> to vector<2xf32>
    %29 = vector.shape_cast %28 : vector<2xf32> to vector<2x1xf32>
    %cst_14 = arith.constant 2.500000e-01 : f32
    %30 = vector.broadcast %cst_14 : f32 to vector<2x1xf32>
    %31 = arith.mulf %29, %30 : vector<2x1xf32>
    %32 = arith.maximumf %24, %31 : vector<2x1xf32>
    %33 = arith.subf %24, %32 : vector<2x1xf32>
    %34 = math.exp %33 : vector<2x1xf32>
    %35 = arith.subf %31, %32 : vector<2x1xf32>
    %36 = math.exp %35 : vector<2x1xf32>
    %37 = arith.addf %34, %36 : vector<2x1xf32>
    %cst_15 = arith.constant 0.000000e+00 : f32
    %38 = vector.broadcast %cst_15 : f32 to vector<2x16xf32>
    %39 = vector.extract_strided_slice %17 {offsets = [0, 0], sizes = [1, 16], strides = [1, 1]} : vector<2x16xf32> to vector<1x16xf32>
    %40 = vector.broadcast %34 : vector<2x1xf32> to vector<2x16xf32>
    %41 = vector.broadcast %39 : vector<1x16xf32> to vector<2x16xf32>
    %42 = arith.mulf %40, %41 : vector<2x16xf32>
    %43 = arith.addf %38, %42 : vector<2x16xf32>
    %44 = vector.extract_strided_slice %17 {offsets = [1, 0], sizes = [1, 16], strides = [1, 1]} : vector<2x16xf32> to vector<1x16xf32>
    %45 = vector.broadcast %36 : vector<2x1xf32> to vector<2x16xf32>
    %46 = vector.broadcast %44 : vector<1x16xf32> to vector<2x16xf32>
    %47 = arith.mulf %45, %46 : vector<2x16xf32>
    %48 = arith.addf %43, %47 : vector<2x16xf32>
    %49 = vector.broadcast %37 : vector<2x1xf32> to vector<2x16xf32>
    %50 = arith.divf %48, %49 : vector<2x16xf32>
    %c0_16 = arith.constant 0 : index
    %c0_17 = arith.constant 0 : index
    %51 = vector.load %arg6[%c0_16, %c0_17] : memref<128x128xf32, #tpu.memory_space<vmem>>, vector<16x128xf32>
    %cst_18 = arith.constant dense<0.000000e+00> : vector<2x128xf32>
    %52 = tpu.matmul %50, %51, %cst_18 {dimension_numbers = #tpu.dot_dimension_numbers<[1], [0], [0], [1], [0, 0, 1, 1], [], []>} : vector<2x16xf32>, vector<16x128xf32>, vector<2x128xf32> -> vector<2x128xf32>
    %53 = arith.addf %14, %52 : vector<2x128xf32>
    %54 = vector.extract_strided_slice %11 {offsets = [0, 16], sizes = [2, 16], strides = [1, 1]} : vector<2x128xf32> to vector<2x16xf32>
    %55 = vector.extract_strided_slice %12 {offsets = [0, 16], sizes = [2, 16], strides = [1, 1]} : vector<2x128xf32> to vector<2x16xf32>
    %56 = vector.extract_strided_slice %13 {offsets = [0, 16], sizes = [2, 16], strides = [1, 1]} : vector<2x128xf32> to vector<2x16xf32>
    %57 = vector.extract_strided_slice %55 {offsets = [0, 0], sizes = [1, 16], strides = [1, 1]} : vector<2x16xf32> to vector<1x16xf32>
    %58 = vector.broadcast %57 : vector<1x16xf32> to vector<2x16xf32>
    %59 = arith.mulf %54, %58 : vector<2x16xf32>
    %cst_19 = arith.constant dense<0.000000e+00> : vector<2xf32>
    %60 = vector.multi_reduction <add>, %59, %cst_19 [1] : vector<2x16xf32> to vector<2xf32>
    %61 = vector.shape_cast %60 : vector<2xf32> to vector<2x1xf32>
    %cst_20 = arith.constant 2.500000e-01 : f32
    %62 = vector.broadcast %cst_20 : f32 to vector<2x1xf32>
    %63 = arith.mulf %61, %62 : vector<2x1xf32>
    %64 = vector.extract_strided_slice %55 {offsets = [1, 0], sizes = [1, 16], strides = [1, 1]} : vector<2x16xf32> to vector<1x16xf32>
    %65 = vector.broadcast %64 : vector<1x16xf32> to vector<2x16xf32>
    %66 = arith.mulf %54, %65 : vector<2x16xf32>
    %cst_21 = arith.constant dense<0.000000e+00> : vector<2xf32>
    %67 = vector.multi_reduction <add>, %66, %cst_21 [1] : vector<2x16xf32> to vector<2xf32>
    %68 = vector.shape_cast %67 : vector<2xf32> to vector<2x1xf32>
    %cst_22 = arith.constant 2.500000e-01 : f32
    %69 = vector.broadcast %cst_22 : f32 to vector<2x1xf32>
    %70 = arith.mulf %68, %69 : vector<2x1xf32>
    %71 = arith.maximumf %63, %70 : vector<2x1xf32>
    %72 = arith.subf %63, %71 : vector<2x1xf32>
    %73 = math.exp %72 : vector<2x1xf32>
    %74 = arith.subf %70, %71 : vector<2x1xf32>
    %75 = math.exp %74 : vector<2x1xf32>
    %76 = arith.addf %73, %75 : vector<2x1xf32>
    %cst_23 = arith.constant 0.000000e+00 : f32
    %77 = vector.broadcast %cst_23 : f32 to vector<2x16xf32>
    %78 = vector.extract_strided_slice %56 {offsets = [0, 0], sizes = [1, 16], strides = [1, 1]} : vector<2x16xf32> to vector<1x16xf32>
    %79 = vector.broadcast %73 : vector<2x1xf32> to vector<2x16xf32>
    %80 = vector.broadcast %78 : vector<1x16xf32> to vector<2x16xf32>
    %81 = arith.mulf %79, %80 : vector<2x16xf32>
    %82 = arith.addf %77, %81 : vector<2x16xf32>
    %83 = vector.extract_strided_slice %56 {offsets = [1, 0], sizes = [1, 16], strides = [1, 1]} : vector<2x16xf32> to vector<1x16xf32>
    %84 = vector.broadcast %75 : vector<2x1xf32> to vector<2x16xf32>
    %85 = vector.broadcast %83 : vector<1x16xf32> to vector<2x16xf32>
    %86 = arith.mulf %84, %85 : vector<2x16xf32>
    %87 = arith.addf %82, %86 : vector<2x16xf32>
    %88 = vector.broadcast %76 : vector<2x1xf32> to vector<2x16xf32>
    %89 = arith.divf %87, %88 : vector<2x16xf32>
    %c16 = arith.constant 16 : index
    %c0_24 = arith.constant 0 : index
    %90 = vector.load %arg6[%c16, %c0_24] : memref<128x128xf32, #tpu.memory_space<vmem>>, vector<16x128xf32>
    %cst_25 = arith.constant dense<0.000000e+00> : vector<2x128xf32>
    %91 = tpu.matmul %89, %90, %cst_25 {dimension_numbers = #tpu.dot_dimension_numbers<[1], [0], [0], [1], [0, 0, 1, 1], [], []>} : vector<2x16xf32>, vector<16x128xf32>, vector<2x128xf32> -> vector<2x128xf32>
    %92 = arith.addf %53, %91 : vector<2x128xf32>
    %93 = vector.extract_strided_slice %11 {offsets = [0, 32], sizes = [2, 16], strides = [1, 1]} : vector<2x128xf32> to vector<2x16xf32>
    %94 = vector.extract_strided_slice %12 {offsets = [0, 32], sizes = [2, 16], strides = [1, 1]} : vector<2x128xf32> to vector<2x16xf32>
    %95 = vector.extract_strided_slice %13 {offsets = [0, 32], sizes = [2, 16], strides = [1, 1]} : vector<2x128xf32> to vector<2x16xf32>
    %96 = vector.extract_strided_slice %94 {offsets = [0, 0], sizes = [1, 16], strides = [1, 1]} : vector<2x16xf32> to vector<1x16xf32>
    %97 = vector.broadcast %96 : vector<1x16xf32> to vector<2x16xf32>
    %98 = arith.mulf %93, %97 : vector<2x16xf32>
    %cst_26 = arith.constant dense<0.000000e+00> : vector<2xf32>
    %99 = vector.multi_reduction <add>, %98, %cst_26 [1] : vector<2x16xf32> to vector<2xf32>
    %100 = vector.shape_cast %99 : vector<2xf32> to vector<2x1xf32>
    %cst_27 = arith.constant 2.500000e-01 : f32
    %101 = vector.broadcast %cst_27 : f32 to vector<2x1xf32>
    %102 = arith.mulf %100, %101 : vector<2x1xf32>
    %103 = vector.extract_strided_slice %94 {offsets = [1, 0], sizes = [1, 16], strides = [1, 1]} : vector<2x16xf32> to vector<1x16xf32>
    %104 = vector.broadcast %103 : vector<1x16xf32> to vector<2x16xf32>
    %105 = arith.mulf %93, %104 : vector<2x16xf32>
    %cst_28 = arith.constant dense<0.000000e+00> : vector<2xf32>
    %106 = vector.multi_reduction <add>, %105, %cst_28 [1] : vector<2x16xf32> to vector<2xf32>
    %107 = vector.shape_cast %106 : vector<2xf32> to vector<2x1xf32>
    %cst_29 = arith.constant 2.500000e-01 : f32
    %108 = vector.broadcast %cst_29 : f32 to vector<2x1xf32>
    %109 = arith.mulf %107, %108 : vector<2x1xf32>
    %110 = arith.maximumf %102, %109 : vector<2x1xf32>
    %111 = arith.subf %102, %110 : vector<2x1xf32>
    %112 = math.exp %111 : vector<2x1xf32>
    %113 = arith.subf %109, %110 : vector<2x1xf32>
    %114 = math.exp %113 : vector<2x1xf32>
    %115 = arith.addf %112, %114 : vector<2x1xf32>
    %cst_30 = arith.constant 0.000000e+00 : f32
    %116 = vector.broadcast %cst_30 : f32 to vector<2x16xf32>
    %117 = vector.extract_strided_slice %95 {offsets = [0, 0], sizes = [1, 16], strides = [1, 1]} : vector<2x16xf32> to vector<1x16xf32>
    %118 = vector.broadcast %112 : vector<2x1xf32> to vector<2x16xf32>
    %119 = vector.broadcast %117 : vector<1x16xf32> to vector<2x16xf32>
    %120 = arith.mulf %118, %119 : vector<2x16xf32>
    %121 = arith.addf %116, %120 : vector<2x16xf32>
    %122 = vector.extract_strided_slice %95 {offsets = [1, 0], sizes = [1, 16], strides = [1, 1]} : vector<2x16xf32> to vector<1x16xf32>
    %123 = vector.broadcast %114 : vector<2x1xf32> to vector<2x16xf32>
    %124 = vector.broadcast %122 : vector<1x16xf32> to vector<2x16xf32>
    %125 = arith.mulf %123, %124 : vector<2x16xf32>
    %126 = arith.addf %121, %125 : vector<2x16xf32>
    %127 = vector.broadcast %115 : vector<2x1xf32> to vector<2x16xf32>
    %128 = arith.divf %126, %127 : vector<2x16xf32>
    %c32 = arith.constant 32 : index
    %c0_31 = arith.constant 0 : index
    %129 = vector.load %arg6[%c32, %c0_31] : memref<128x128xf32, #tpu.memory_space<vmem>>, vector<16x128xf32>
    %cst_32 = arith.constant dense<0.000000e+00> : vector<2x128xf32>
    %130 = tpu.matmul %128, %129, %cst_32 {dimension_numbers = #tpu.dot_dimension_numbers<[1], [0], [0], [1], [0, 0, 1, 1], [], []>} : vector<2x16xf32>, vector<16x128xf32>, vector<2x128xf32> -> vector<2x128xf32>
    %131 = arith.addf %92, %130 : vector<2x128xf32>
    %132 = vector.extract_strided_slice %11 {offsets = [0, 48], sizes = [2, 16], strides = [1, 1]} : vector<2x128xf32> to vector<2x16xf32>
    %133 = vector.extract_strided_slice %12 {offsets = [0, 48], sizes = [2, 16], strides = [1, 1]} : vector<2x128xf32> to vector<2x16xf32>
    %134 = vector.extract_strided_slice %13 {offsets = [0, 48], sizes = [2, 16], strides = [1, 1]} : vector<2x128xf32> to vector<2x16xf32>
    %135 = vector.extract_strided_slice %133 {offsets = [0, 0], sizes = [1, 16], strides = [1, 1]} : vector<2x16xf32> to vector<1x16xf32>
    %136 = vector.broadcast %135 : vector<1x16xf32> to vector<2x16xf32>
    %137 = arith.mulf %132, %136 : vector<2x16xf32>
    %cst_33 = arith.constant dense<0.000000e+00> : vector<2xf32>
    %138 = vector.multi_reduction <add>, %137, %cst_33 [1] : vector<2x16xf32> to vector<2xf32>
    %139 = vector.shape_cast %138 : vector<2xf32> to vector<2x1xf32>
    %cst_34 = arith.constant 2.500000e-01 : f32
    %140 = vector.broadcast %cst_34 : f32 to vector<2x1xf32>
    %141 = arith.mulf %139, %140 : vector<2x1xf32>
    %142 = vector.extract_strided_slice %133 {offsets = [1, 0], sizes = [1, 16], strides = [1, 1]} : vector<2x16xf32> to vector<1x16xf32>
    %143 = vector.broadcast %142 : vector<1x16xf32> to vector<2x16xf32>
    %144 = arith.mulf %132, %143 : vector<2x16xf32>
    %cst_35 = arith.constant dense<0.000000e+00> : vector<2xf32>
    %145 = vector.multi_reduction <add>, %144, %cst_35 [1] : vector<2x16xf32> to vector<2xf32>
    %146 = vector.shape_cast %145 : vector<2xf32> to vector<2x1xf32>
    %cst_36 = arith.constant 2.500000e-01 : f32
    %147 = vector.broadcast %cst_36 : f32 to vector<2x1xf32>
    %148 = arith.mulf %146, %147 : vector<2x1xf32>
    %149 = arith.maximumf %141, %148 : vector<2x1xf32>
    %150 = arith.subf %141, %149 : vector<2x1xf32>
    %151 = math.exp %150 : vector<2x1xf32>
    %152 = arith.subf %148, %149 : vector<2x1xf32>
    %153 = math.exp %152 : vector<2x1xf32>
    %154 = arith.addf %151, %153 : vector<2x1xf32>
    %cst_37 = arith.constant 0.000000e+00 : f32
    %155 = vector.broadcast %cst_37 : f32 to vector<2x16xf32>
    %156 = vector.extract_strided_slice %134 {offsets = [0, 0], sizes = [1, 16], strides = [1, 1]} : vector<2x16xf32> to vector<1x16xf32>
    %157 = vector.broadcast %151 : vector<2x1xf32> to vector<2x16xf32>
    %158 = vector.broadcast %156 : vector<1x16xf32> to vector<2x16xf32>
    %159 = arith.mulf %157, %158 : vector<2x16xf32>
    %160 = arith.addf %155, %159 : vector<2x16xf32>
    %161 = vector.extract_strided_slice %134 {offsets = [1, 0], sizes = [1, 16], strides = [1, 1]} : vector<2x16xf32> to vector<1x16xf32>
    %162 = vector.broadcast %153 : vector<2x1xf32> to vector<2x16xf32>
    %163 = vector.broadcast %161 : vector<1x16xf32> to vector<2x16xf32>
    %164 = arith.mulf %162, %163 : vector<2x16xf32>
    %165 = arith.addf %160, %164 : vector<2x16xf32>
    %166 = vector.broadcast %154 : vector<2x1xf32> to vector<2x16xf32>
    %167 = arith.divf %165, %166 : vector<2x16xf32>
    %c48 = arith.constant 48 : index
    %c0_38 = arith.constant 0 : index
    %168 = vector.load %arg6[%c48, %c0_38] : memref<128x128xf32, #tpu.memory_space<vmem>>, vector<16x128xf32>
    %cst_39 = arith.constant dense<0.000000e+00> : vector<2x128xf32>
    %169 = tpu.matmul %167, %168, %cst_39 {dimension_numbers = #tpu.dot_dimension_numbers<[1], [0], [0], [1], [0, 0, 1, 1], [], []>} : vector<2x16xf32>, vector<16x128xf32>, vector<2x128xf32> -> vector<2x128xf32>
    %170 = arith.addf %131, %169 : vector<2x128xf32>
    %171 = vector.extract_strided_slice %11 {offsets = [0, 64], sizes = [2, 16], strides = [1, 1]} : vector<2x128xf32> to vector<2x16xf32>
    %172 = vector.extract_strided_slice %12 {offsets = [0, 64], sizes = [2, 16], strides = [1, 1]} : vector<2x128xf32> to vector<2x16xf32>
    %173 = vector.extract_strided_slice %13 {offsets = [0, 64], sizes = [2, 16], strides = [1, 1]} : vector<2x128xf32> to vector<2x16xf32>
    %174 = vector.extract_strided_slice %172 {offsets = [0, 0], sizes = [1, 16], strides = [1, 1]} : vector<2x16xf32> to vector<1x16xf32>
    %175 = vector.broadcast %174 : vector<1x16xf32> to vector<2x16xf32>
    %176 = arith.mulf %171, %175 : vector<2x16xf32>
    %cst_40 = arith.constant dense<0.000000e+00> : vector<2xf32>
    %177 = vector.multi_reduction <add>, %176, %cst_40 [1] : vector<2x16xf32> to vector<2xf32>
    %178 = vector.shape_cast %177 : vector<2xf32> to vector<2x1xf32>
    %cst_41 = arith.constant 2.500000e-01 : f32
    %179 = vector.broadcast %cst_41 : f32 to vector<2x1xf32>
    %180 = arith.mulf %178, %179 : vector<2x1xf32>
    %181 = vector.extract_strided_slice %172 {offsets = [1, 0], sizes = [1, 16], strides = [1, 1]} : vector<2x16xf32> to vector<1x16xf32>
    %182 = vector.broadcast %181 : vector<1x16xf32> to vector<2x16xf32>
    %183 = arith.mulf %171, %182 : vector<2x16xf32>
    %cst_42 = arith.constant dense<0.000000e+00> : vector<2xf32>
    %184 = vector.multi_reduction <add>, %183, %cst_42 [1] : vector<2x16xf32> to vector<2xf32>
    %185 = vector.shape_cast %184 : vector<2xf32> to vector<2x1xf32>
    %cst_43 = arith.constant 2.500000e-01 : f32
    %186 = vector.broadcast %cst_43 : f32 to vector<2x1xf32>
    %187 = arith.mulf %185, %186 : vector<2x1xf32>
    %188 = arith.maximumf %180, %187 : vector<2x1xf32>
    %189 = arith.subf %180, %188 : vector<2x1xf32>
    %190 = math.exp %189 : vector<2x1xf32>
    %191 = arith.subf %187, %188 : vector<2x1xf32>
    %192 = math.exp %191 : vector<2x1xf32>
    %193 = arith.addf %190, %192 : vector<2x1xf32>
    %cst_44 = arith.constant 0.000000e+00 : f32
    %194 = vector.broadcast %cst_44 : f32 to vector<2x16xf32>
    %195 = vector.extract_strided_slice %173 {offsets = [0, 0], sizes = [1, 16], strides = [1, 1]} : vector<2x16xf32> to vector<1x16xf32>
    %196 = vector.broadcast %190 : vector<2x1xf32> to vector<2x16xf32>
    %197 = vector.broadcast %195 : vector<1x16xf32> to vector<2x16xf32>
    %198 = arith.mulf %196, %197 : vector<2x16xf32>
    %199 = arith.addf %194, %198 : vector<2x16xf32>
    %200 = vector.extract_strided_slice %173 {offsets = [1, 0], sizes = [1, 16], strides = [1, 1]} : vector<2x16xf32> to vector<1x16xf32>
    %201 = vector.broadcast %192 : vector<2x1xf32> to vector<2x16xf32>
    %202 = vector.broadcast %200 : vector<1x16xf32> to vector<2x16xf32>
    %203 = arith.mulf %201, %202 : vector<2x16xf32>
    %204 = arith.addf %199, %203 : vector<2x16xf32>
    %205 = vector.broadcast %193 : vector<2x1xf32> to vector<2x16xf32>
    %206 = arith.divf %204, %205 : vector<2x16xf32>
    %c64 = arith.constant 64 : index
    %c0_45 = arith.constant 0 : index
    %207 = vector.load %arg6[%c64, %c0_45] : memref<128x128xf32, #tpu.memory_space<vmem>>, vector<16x128xf32>
    %cst_46 = arith.constant dense<0.000000e+00> : vector<2x128xf32>
    %208 = tpu.matmul %206, %207, %cst_46 {dimension_numbers = #tpu.dot_dimension_numbers<[1], [0], [0], [1], [0, 0, 1, 1], [], []>} : vector<2x16xf32>, vector<16x128xf32>, vector<2x128xf32> -> vector<2x128xf32>
    %209 = arith.addf %170, %208 : vector<2x128xf32>
    %210 = vector.extract_strided_slice %11 {offsets = [0, 80], sizes = [2, 16], strides = [1, 1]} : vector<2x128xf32> to vector<2x16xf32>
    %211 = vector.extract_strided_slice %12 {offsets = [0, 80], sizes = [2, 16], strides = [1, 1]} : vector<2x128xf32> to vector<2x16xf32>
    %212 = vector.extract_strided_slice %13 {offsets = [0, 80], sizes = [2, 16], strides = [1, 1]} : vector<2x128xf32> to vector<2x16xf32>
    %213 = vector.extract_strided_slice %211 {offsets = [0, 0], sizes = [1, 16], strides = [1, 1]} : vector<2x16xf32> to vector<1x16xf32>
    %214 = vector.broadcast %213 : vector<1x16xf32> to vector<2x16xf32>
    %215 = arith.mulf %210, %214 : vector<2x16xf32>
    %cst_47 = arith.constant dense<0.000000e+00> : vector<2xf32>
    %216 = vector.multi_reduction <add>, %215, %cst_47 [1] : vector<2x16xf32> to vector<2xf32>
    %217 = vector.shape_cast %216 : vector<2xf32> to vector<2x1xf32>
    %cst_48 = arith.constant 2.500000e-01 : f32
    %218 = vector.broadcast %cst_48 : f32 to vector<2x1xf32>
    %219 = arith.mulf %217, %218 : vector<2x1xf32>
    %220 = vector.extract_strided_slice %211 {offsets = [1, 0], sizes = [1, 16], strides = [1, 1]} : vector<2x16xf32> to vector<1x16xf32>
    %221 = vector.broadcast %220 : vector<1x16xf32> to vector<2x16xf32>
    %222 = arith.mulf %210, %221 : vector<2x16xf32>
    %cst_49 = arith.constant dense<0.000000e+00> : vector<2xf32>
    %223 = vector.multi_reduction <add>, %222, %cst_49 [1] : vector<2x16xf32> to vector<2xf32>
    %224 = vector.shape_cast %223 : vector<2xf32> to vector<2x1xf32>
    %cst_50 = arith.constant 2.500000e-01 : f32
    %225 = vector.broadcast %cst_50 : f32 to vector<2x1xf32>
    %226 = arith.mulf %224, %225 : vector<2x1xf32>
    %227 = arith.maximumf %219, %226 : vector<2x1xf32>
    %228 = arith.subf %219, %227 : vector<2x1xf32>
    %229 = math.exp %228 : vector<2x1xf32>
    %230 = arith.subf %226, %227 : vector<2x1xf32>
    %231 = math.exp %230 : vector<2x1xf32>
    %232 = arith.addf %229, %231 : vector<2x1xf32>
    %cst_51 = arith.constant 0.000000e+00 : f32
    %233 = vector.broadcast %cst_51 : f32 to vector<2x16xf32>
    %234 = vector.extract_strided_slice %212 {offsets = [0, 0], sizes = [1, 16], strides = [1, 1]} : vector<2x16xf32> to vector<1x16xf32>
    %235 = vector.broadcast %229 : vector<2x1xf32> to vector<2x16xf32>
    %236 = vector.broadcast %234 : vector<1x16xf32> to vector<2x16xf32>
    %237 = arith.mulf %235, %236 : vector<2x16xf32>
    %238 = arith.addf %233, %237 : vector<2x16xf32>
    %239 = vector.extract_strided_slice %212 {offsets = [1, 0], sizes = [1, 16], strides = [1, 1]} : vector<2x16xf32> to vector<1x16xf32>
    %240 = vector.broadcast %231 : vector<2x1xf32> to vector<2x16xf32>
    %241 = vector.broadcast %239 : vector<1x16xf32> to vector<2x16xf32>
    %242 = arith.mulf %240, %241 : vector<2x16xf32>
    %243 = arith.addf %238, %242 : vector<2x16xf32>
    %244 = vector.broadcast %232 : vector<2x1xf32> to vector<2x16xf32>
    %245 = arith.divf %243, %244 : vector<2x16xf32>
    %c80 = arith.constant 80 : index
    %c0_52 = arith.constant 0 : index
    %246 = vector.load %arg6[%c80, %c0_52] : memref<128x128xf32, #tpu.memory_space<vmem>>, vector<16x128xf32>
    %cst_53 = arith.constant dense<0.000000e+00> : vector<2x128xf32>
    %247 = tpu.matmul %245, %246, %cst_53 {dimension_numbers = #tpu.dot_dimension_numbers<[1], [0], [0], [1], [0, 0, 1, 1], [], []>} : vector<2x16xf32>, vector<16x128xf32>, vector<2x128xf32> -> vector<2x128xf32>
    %248 = arith.addf %209, %247 : vector<2x128xf32>
    %249 = vector.extract_strided_slice %11 {offsets = [0, 96], sizes = [2, 16], strides = [1, 1]} : vector<2x128xf32> to vector<2x16xf32>
    %250 = vector.extract_strided_slice %12 {offsets = [0, 96], sizes = [2, 16], strides = [1, 1]} : vector<2x128xf32> to vector<2x16xf32>
    %251 = vector.extract_strided_slice %13 {offsets = [0, 96], sizes = [2, 16], strides = [1, 1]} : vector<2x128xf32> to vector<2x16xf32>
    %252 = vector.extract_strided_slice %250 {offsets = [0, 0], sizes = [1, 16], strides = [1, 1]} : vector<2x16xf32> to vector<1x16xf32>
    %253 = vector.broadcast %252 : vector<1x16xf32> to vector<2x16xf32>
    %254 = arith.mulf %249, %253 : vector<2x16xf32>
    %cst_54 = arith.constant dense<0.000000e+00> : vector<2xf32>
    %255 = vector.multi_reduction <add>, %254, %cst_54 [1] : vector<2x16xf32> to vector<2xf32>
    %256 = vector.shape_cast %255 : vector<2xf32> to vector<2x1xf32>
    %cst_55 = arith.constant 2.500000e-01 : f32
    %257 = vector.broadcast %cst_55 : f32 to vector<2x1xf32>
    %258 = arith.mulf %256, %257 : vector<2x1xf32>
    %259 = vector.extract_strided_slice %250 {offsets = [1, 0], sizes = [1, 16], strides = [1, 1]} : vector<2x16xf32> to vector<1x16xf32>
    %260 = vector.broadcast %259 : vector<1x16xf32> to vector<2x16xf32>
    %261 = arith.mulf %249, %260 : vector<2x16xf32>
    %cst_56 = arith.constant dense<0.000000e+00> : vector<2xf32>
    %262 = vector.multi_reduction <add>, %261, %cst_56 [1] : vector<2x16xf32> to vector<2xf32>
    %263 = vector.shape_cast %262 : vector<2xf32> to vector<2x1xf32>
    %cst_57 = arith.constant 2.500000e-01 : f32
    %264 = vector.broadcast %cst_57 : f32 to vector<2x1xf32>
    %265 = arith.mulf %263, %264 : vector<2x1xf32>
    %266 = arith.maximumf %258, %265 : vector<2x1xf32>
    %267 = arith.subf %258, %266 : vector<2x1xf32>
    %268 = math.exp %267 : vector<2x1xf32>
    %269 = arith.subf %265, %266 : vector<2x1xf32>
    %270 = math.exp %269 : vector<2x1xf32>
    %271 = arith.addf %268, %270 : vector<2x1xf32>
    %cst_58 = arith.constant 0.000000e+00 : f32
    %272 = vector.broadcast %cst_58 : f32 to vector<2x16xf32>
    %273 = vector.extract_strided_slice %251 {offsets = [0, 0], sizes = [1, 16], strides = [1, 1]} : vector<2x16xf32> to vector<1x16xf32>
    %274 = vector.broadcast %268 : vector<2x1xf32> to vector<2x16xf32>
    %275 = vector.broadcast %273 : vector<1x16xf32> to vector<2x16xf32>
    %276 = arith.mulf %274, %275 : vector<2x16xf32>
    %277 = arith.addf %272, %276 : vector<2x16xf32>
    %278 = vector.extract_strided_slice %251 {offsets = [1, 0], sizes = [1, 16], strides = [1, 1]} : vector<2x16xf32> to vector<1x16xf32>
    %279 = vector.broadcast %270 : vector<2x1xf32> to vector<2x16xf32>
    %280 = vector.broadcast %278 : vector<1x16xf32> to vector<2x16xf32>
    %281 = arith.mulf %279, %280 : vector<2x16xf32>
    %282 = arith.addf %277, %281 : vector<2x16xf32>
    %283 = vector.broadcast %271 : vector<2x1xf32> to vector<2x16xf32>
    %284 = arith.divf %282, %283 : vector<2x16xf32>
    %c96 = arith.constant 96 : index
    %c0_59 = arith.constant 0 : index
    %285 = vector.load %arg6[%c96, %c0_59] : memref<128x128xf32, #tpu.memory_space<vmem>>, vector<16x128xf32>
    %cst_60 = arith.constant dense<0.000000e+00> : vector<2x128xf32>
    %286 = tpu.matmul %284, %285, %cst_60 {dimension_numbers = #tpu.dot_dimension_numbers<[1], [0], [0], [1], [0, 0, 1, 1], [], []>} : vector<2x16xf32>, vector<16x128xf32>, vector<2x128xf32> -> vector<2x128xf32>
    %287 = arith.addf %248, %286 : vector<2x128xf32>
    %288 = vector.extract_strided_slice %11 {offsets = [0, 112], sizes = [2, 16], strides = [1, 1]} : vector<2x128xf32> to vector<2x16xf32>
    %289 = vector.extract_strided_slice %12 {offsets = [0, 112], sizes = [2, 16], strides = [1, 1]} : vector<2x128xf32> to vector<2x16xf32>
    %290 = vector.extract_strided_slice %13 {offsets = [0, 112], sizes = [2, 16], strides = [1, 1]} : vector<2x128xf32> to vector<2x16xf32>
    %291 = vector.extract_strided_slice %289 {offsets = [0, 0], sizes = [1, 16], strides = [1, 1]} : vector<2x16xf32> to vector<1x16xf32>
    %292 = vector.broadcast %291 : vector<1x16xf32> to vector<2x16xf32>
    %293 = arith.mulf %288, %292 : vector<2x16xf32>
    %cst_61 = arith.constant dense<0.000000e+00> : vector<2xf32>
    %294 = vector.multi_reduction <add>, %293, %cst_61 [1] : vector<2x16xf32> to vector<2xf32>
    %295 = vector.shape_cast %294 : vector<2xf32> to vector<2x1xf32>
    %cst_62 = arith.constant 2.500000e-01 : f32
    %296 = vector.broadcast %cst_62 : f32 to vector<2x1xf32>
    %297 = arith.mulf %295, %296 : vector<2x1xf32>
    %298 = vector.extract_strided_slice %289 {offsets = [1, 0], sizes = [1, 16], strides = [1, 1]} : vector<2x16xf32> to vector<1x16xf32>
    %299 = vector.broadcast %298 : vector<1x16xf32> to vector<2x16xf32>
    %300 = arith.mulf %288, %299 : vector<2x16xf32>
    %cst_63 = arith.constant dense<0.000000e+00> : vector<2xf32>
    %301 = vector.multi_reduction <add>, %300, %cst_63 [1] : vector<2x16xf32> to vector<2xf32>
    %302 = vector.shape_cast %301 : vector<2xf32> to vector<2x1xf32>
    %cst_64 = arith.constant 2.500000e-01 : f32
    %303 = vector.broadcast %cst_64 : f32 to vector<2x1xf32>
    %304 = arith.mulf %302, %303 : vector<2x1xf32>
    %305 = arith.maximumf %297, %304 : vector<2x1xf32>
    %306 = arith.subf %297, %305 : vector<2x1xf32>
    %307 = math.exp %306 : vector<2x1xf32>
    %308 = arith.subf %304, %305 : vector<2x1xf32>
    %309 = math.exp %308 : vector<2x1xf32>
    %310 = arith.addf %307, %309 : vector<2x1xf32>
    %cst_65 = arith.constant 0.000000e+00 : f32
    %311 = vector.broadcast %cst_65 : f32 to vector<2x16xf32>
    %312 = vector.extract_strided_slice %290 {offsets = [0, 0], sizes = [1, 16], strides = [1, 1]} : vector<2x16xf32> to vector<1x16xf32>
    %313 = vector.broadcast %307 : vector<2x1xf32> to vector<2x16xf32>
    %314 = vector.broadcast %312 : vector<1x16xf32> to vector<2x16xf32>
    %315 = arith.mulf %313, %314 : vector<2x16xf32>
    %316 = arith.addf %311, %315 : vector<2x16xf32>
    %317 = vector.extract_strided_slice %290 {offsets = [1, 0], sizes = [1, 16], strides = [1, 1]} : vector<2x16xf32> to vector<1x16xf32>
    %318 = vector.broadcast %309 : vector<2x1xf32> to vector<2x16xf32>
    %319 = vector.broadcast %317 : vector<1x16xf32> to vector<2x16xf32>
    %320 = arith.mulf %318, %319 : vector<2x16xf32>
    %321 = arith.addf %316, %320 : vector<2x16xf32>
    %322 = vector.broadcast %310 : vector<2x1xf32> to vector<2x16xf32>
    %323 = arith.divf %321, %322 : vector<2x16xf32>
    %c112 = arith.constant 112 : index
    %c0_66 = arith.constant 0 : index
    %324 = vector.load %arg6[%c112, %c0_66] : memref<128x128xf32, #tpu.memory_space<vmem>>, vector<16x128xf32>
    %cst_67 = arith.constant dense<0.000000e+00> : vector<2x128xf32>
    %325 = tpu.matmul %323, %324, %cst_67 {dimension_numbers = #tpu.dot_dimension_numbers<[1], [0], [0], [1], [0, 0, 1, 1], [], []>} : vector<2x16xf32>, vector<16x128xf32>, vector<2x128xf32> -> vector<2x128xf32>
    %326 = arith.addf %287, %325 : vector<2x128xf32>
    %c0_68 = arith.constant 0 : index
    %c0_69 = arith.constant 0 : index
    %327 = vector.load %arg7[%c0_68, %c0_69] : memref<1x128xf32, #tpu.memory_space<vmem>>, vector<1x128xf32>
    %328 = vector.broadcast %327 : vector<1x128xf32> to vector<2x128xf32>
    %329 = arith.addf %326, %328 : vector<2x128xf32>
    %330 = arith.addf %5, %329 : vector<2x128xf32>
    %c0_70 = arith.constant 0 : index
    %c0_71 = arith.constant 0 : index
    %331 = vector.load %arg8[%c0_70, %c0_71] : memref<2x128xf32, #tpu.memory_space<vmem>>, vector<1x128xf32>
    %c1 = arith.constant 1 : index
    %c0_72 = arith.constant 0 : index
    %332 = vector.load %arg8[%c1, %c0_72] : memref<2x128xf32, #tpu.memory_space<vmem>>, vector<1x128xf32>
    %cst_73 = arith.constant dense<0.000000e+00> : vector<2xf32>
    %333 = vector.multi_reduction <add>, %330, %cst_73 [1] : vector<2x128xf32> to vector<2xf32>
    %334 = vector.shape_cast %333 : vector<2xf32> to vector<2x1xf32>
    %cst_74 = arith.constant 1.280000e+02 : f32
    %335 = vector.broadcast %cst_74 : f32 to vector<2x1xf32>
    %336 = arith.divf %334, %335 : vector<2x1xf32>
    %337 = vector.broadcast %336 : vector<2x1xf32> to vector<2x128xf32>
    %338 = arith.subf %330, %337 : vector<2x128xf32>
    %339 = arith.mulf %338, %338 : vector<2x128xf32>
    %cst_75 = arith.constant dense<0.000000e+00> : vector<2xf32>
    %340 = vector.multi_reduction <add>, %339, %cst_75 [1] : vector<2x128xf32> to vector<2xf32>
    %341 = vector.shape_cast %340 : vector<2xf32> to vector<2x1xf32>
    %cst_76 = arith.constant 1.280000e+02 : f32
    %342 = vector.broadcast %cst_76 : f32 to vector<2x1xf32>
    %343 = arith.divf %341, %342 : vector<2x1xf32>
    %cst_77 = arith.constant 9.99999974E-6 : f32
    %344 = vector.broadcast %cst_77 : f32 to vector<2x1xf32>
    %345 = arith.addf %343, %344 : vector<2x1xf32>
    %346 = math.rsqrt %345 : vector<2x1xf32>
    %347 = vector.broadcast %346 : vector<2x1xf32> to vector<2x128xf32>
    %348 = arith.mulf %338, %347 : vector<2x128xf32>
    %349 = vector.broadcast %331 : vector<1x128xf32> to vector<2x128xf32>
    %350 = arith.mulf %348, %349 : vector<2x128xf32>
    %351 = vector.broadcast %332 : vector<1x128xf32> to vector<2x128xf32>
    %352 = arith.addf %350, %351 : vector<2x128xf32>
    %c0_78 = arith.constant 0 : index
    %c0_79 = arith.constant 0 : index
    %353 = vector.load %arg9[%c0_78, %c0_79] : memref<128x256xf32, #tpu.memory_space<vmem>>, vector<128x256xf32>
    %cst_80 = arith.constant dense<0.000000e+00> : vector<2x256xf32>
    %354 = tpu.matmul %352, %353, %cst_80 {dimension_numbers = #tpu.dot_dimension_numbers<[1], [0], [0], [1], [0, 0, 1, 1], [], []>} : vector<2x128xf32>, vector<128x256xf32>, vector<2x256xf32> -> vector<2x256xf32>
    %c0_81 = arith.constant 0 : index
    %c0_82 = arith.constant 0 : index
    %355 = vector.load %arg10[%c0_81, %c0_82] : memref<1x256xf32, #tpu.memory_space<vmem>>, vector<1x256xf32>
    %356 = vector.broadcast %355 : vector<1x256xf32> to vector<2x256xf32>
    %357 = arith.addf %354, %356 : vector<2x256xf32>
    %cst_83 = arith.constant 0.000000e+00 : f32
    %358 = vector.broadcast %cst_83 : f32 to vector<2x256xf32>
    %359 = arith.maximumf %357, %358 : vector<2x256xf32>
    %c0_84 = arith.constant 0 : index
    %c0_85 = arith.constant 0 : index
    %360 = vector.load %arg11[%c0_84, %c0_85] : memref<256x128xf32, #tpu.memory_space<vmem>>, vector<256x128xf32>
    %cst_86 = arith.constant dense<0.000000e+00> : vector<2x128xf32>
    %361 = tpu.matmul %359, %360, %cst_86 {dimension_numbers = #tpu.dot_dimension_numbers<[1], [0], [0], [1], [0, 0, 1, 1], [], []>} : vector<2x256xf32>, vector<256x128xf32>, vector<2x128xf32> -> vector<2x128xf32>
    %c0_87 = arith.constant 0 : index
    %c0_88 = arith.constant 0 : index
    %362 = vector.load %arg12[%c0_87, %c0_88] : memref<1x128xf32, #tpu.memory_space<vmem>>, vector<1x128xf32>
    %363 = vector.broadcast %362 : vector<1x128xf32> to vector<2x128xf32>
    %364 = arith.addf %361, %363 : vector<2x128xf32>
    %365 = arith.addf %352, %364 : vector<2x128xf32>
    %c0_89 = arith.constant 0 : index
    %c0_90 = arith.constant 0 : index
    %366 = vector.load %arg13[%c0_89, %c0_90] : memref<2x128xf32, #tpu.memory_space<vmem>>, vector<1x128xf32>
    %c1_91 = arith.constant 1 : index
    %c0_92 = arith.constant 0 : index
    %367 = vector.load %arg13[%c1_91, %c0_92] : memref<2x128xf32, #tpu.memory_space<vmem>>, vector<1x128xf32>
    %cst_93 = arith.constant dense<0.000000e+00> : vector<2xf32>
    %368 = vector.multi_reduction <add>, %365, %cst_93 [1] : vector<2x128xf32> to vector<2xf32>
    %369 = vector.shape_cast %368 : vector<2xf32> to vector<2x1xf32>
    %cst_94 = arith.constant 1.280000e+02 : f32
    %370 = vector.broadcast %cst_94 : f32 to vector<2x1xf32>
    %371 = arith.divf %369, %370 : vector<2x1xf32>
    %372 = vector.broadcast %371 : vector<2x1xf32> to vector<2x128xf32>
    %373 = arith.subf %365, %372 : vector<2x128xf32>
    %374 = arith.mulf %373, %373 : vector<2x128xf32>
    %cst_95 = arith.constant dense<0.000000e+00> : vector<2xf32>
    %375 = vector.multi_reduction <add>, %374, %cst_95 [1] : vector<2x128xf32> to vector<2xf32>
    %376 = vector.shape_cast %375 : vector<2xf32> to vector<2x1xf32>
    %cst_96 = arith.constant 1.280000e+02 : f32
    %377 = vector.broadcast %cst_96 : f32 to vector<2x1xf32>
    %378 = arith.divf %376, %377 : vector<2x1xf32>
    %cst_97 = arith.constant 9.99999974E-6 : f32
    %379 = vector.broadcast %cst_97 : f32 to vector<2x1xf32>
    %380 = arith.addf %378, %379 : vector<2x1xf32>
    %381 = math.rsqrt %380 : vector<2x1xf32>
    %382 = vector.broadcast %381 : vector<2x1xf32> to vector<2x128xf32>
    %383 = arith.mulf %373, %382 : vector<2x128xf32>
    %384 = vector.broadcast %366 : vector<1x128xf32> to vector<2x128xf32>
    %385 = arith.mulf %383, %384 : vector<2x128xf32>
    %386 = vector.broadcast %367 : vector<1x128xf32> to vector<2x128xf32>
    %387 = arith.addf %385, %386 : vector<2x128xf32>
    %c0_98 = arith.constant 0 : index
    %c0_99 = arith.constant 0 : index
    %388 = vector.load %arg1[%c0_98, %c0_99] : memref<16x128xf32, #tpu.memory_space<vmem>>, vector<16x128xf32>
    %c0_100 = arith.constant 0 : index
    %c0_101 = arith.constant 0 : index
    %c0_102 = arith.constant 0 : index
    %389 = vector.load %arg14[%c0_100, %c0_101, %c0_102] : memref<4x128x128xf32, #tpu.memory_space<vmem>>, vector<1x128x128xf32>
    %390 = vector.shape_cast %389 : vector<1x128x128xf32> to vector<128x128xf32>
    %cst_103 = arith.constant dense<0.000000e+00> : vector<16x128xf32>
    %391 = tpu.matmul %388, %390, %cst_103 {dimension_numbers = #tpu.dot_dimension_numbers<[1], [0], [0], [1], [0, 0, 1, 1], [], []>} : vector<16x128xf32>, vector<128x128xf32>, vector<16x128xf32> -> vector<16x128xf32>
    %c0_104 = arith.constant 0 : index
    %c0_105 = arith.constant 0 : index
    %392 = vector.load %arg15[%c0_104, %c0_105] : memref<4x128xf32, #tpu.memory_space<vmem>>, vector<1x128xf32>
    %393 = vector.broadcast %392 : vector<1x128xf32> to vector<16x128xf32>
    %394 = arith.addf %391, %393 : vector<16x128xf32>
    %c1_106 = arith.constant 1 : index
    %c0_107 = arith.constant 0 : index
    %c0_108 = arith.constant 0 : index
    %395 = vector.load %arg14[%c1_106, %c0_107, %c0_108] : memref<4x128x128xf32, #tpu.memory_space<vmem>>, vector<1x128x128xf32>
    %396 = vector.shape_cast %395 : vector<1x128x128xf32> to vector<128x128xf32>
    %cst_109 = arith.constant dense<0.000000e+00> : vector<16x128xf32>
    %397 = tpu.matmul %388, %396, %cst_109 {dimension_numbers = #tpu.dot_dimension_numbers<[1], [0], [0], [1], [0, 0, 1, 1], [], []>} : vector<16x128xf32>, vector<128x128xf32>, vector<16x128xf32> -> vector<16x128xf32>
    %c1_110 = arith.constant 1 : index
    %c0_111 = arith.constant 0 : index
    %398 = vector.load %arg15[%c1_110, %c0_111] : memref<4x128xf32, #tpu.memory_space<vmem>>, vector<1x128xf32>
    %399 = vector.broadcast %398 : vector<1x128xf32> to vector<16x128xf32>
    %400 = arith.addf %397, %399 : vector<16x128xf32>
    %c2 = arith.constant 2 : index
    %c0_112 = arith.constant 0 : index
    %c0_113 = arith.constant 0 : index
    %401 = vector.load %arg14[%c2, %c0_112, %c0_113] : memref<4x128x128xf32, #tpu.memory_space<vmem>>, vector<1x128x128xf32>
    %402 = vector.shape_cast %401 : vector<1x128x128xf32> to vector<128x128xf32>
    %cst_114 = arith.constant dense<0.000000e+00> : vector<2x128xf32>
    %403 = tpu.matmul %387, %402, %cst_114 {dimension_numbers = #tpu.dot_dimension_numbers<[1], [0], [0], [1], [0, 0, 1, 1], [], []>} : vector<2x128xf32>, vector<128x128xf32>, vector<2x128xf32> -> vector<2x128xf32>
    %c2_115 = arith.constant 2 : index
    %c0_116 = arith.constant 0 : index
    %404 = vector.load %arg15[%c2_115, %c0_116] : memref<4x128xf32, #tpu.memory_space<vmem>>, vector<1x128xf32>
    %405 = vector.broadcast %404 : vector<1x128xf32> to vector<2x128xf32>
    %406 = arith.addf %403, %405 : vector<2x128xf32>
    %c3 = arith.constant 3 : index
    %c0_117 = arith.constant 0 : index
    %c0_118 = arith.constant 0 : index
    %407 = vector.load %arg14[%c3, %c0_117, %c0_118] : memref<4x128x128xf32, #tpu.memory_space<vmem>>, vector<1x128x128xf32>
    %408 = vector.shape_cast %407 : vector<1x128x128xf32> to vector<128x128xf32>
    %cst_119 = arith.constant dense<0.000000e+00> : vector<2x128xf32>
    %409 = tpu.matmul %387, %408, %cst_119 {dimension_numbers = #tpu.dot_dimension_numbers<[1], [0], [0], [1], [0, 0, 1, 1], [], []>} : vector<2x128xf32>, vector<128x128xf32>, vector<2x128xf32> -> vector<2x128xf32>
    %c3_120 = arith.constant 3 : index
    %c0_121 = arith.constant 0 : index
    %410 = vector.load %arg15[%c3_120, %c0_121] : memref<4x128xf32, #tpu.memory_space<vmem>>, vector<1x128xf32>
    %411 = vector.broadcast %410 : vector<1x128xf32> to vector<2x128xf32>
    %412 = arith.addf %409, %411 : vector<2x128xf32>
    %c0_122 = arith.constant 0 : index
    %c0_123 = arith.constant 0 : index
    %413 = vector.load %arg16[%c0_122, %c0_123] : memref<2x128xf32, #tpu.memory_space<vmem>>, vector<2x128xf32>
    tpu.vector_store %arg16[%c0_122, %c0_123], %387 {strides = array<i32>} : memref<2x128xf32, #tpu.memory_space<vmem>>, vector<2x128xf32>,
    %c0_124 = arith.constant 0 : index
    %c0_125 = arith.constant 0 : index
    %414 = vector.load %arg17[%c0_124, %c0_125] : memref<16x128xf32, #tpu.memory_space<vmem>>, vector<16x128xf32>
    tpu.vector_store %arg17[%c0_124, %c0_125], %394 {strides = array<i32>} : memref<16x128xf32, #tpu.memory_space<vmem>>, vector<16x128xf32>,
    %c0_126 = arith.constant 0 : index
    %c0_127 = arith.constant 0 : index
    %415 = vector.load %arg18[%c0_126, %c0_127] : memref<16x128xf32, #tpu.memory_space<vmem>>, vector<16x128xf32>
    tpu.vector_store %arg18[%c0_126, %c0_127], %400 {strides = array<i32>} : memref<16x128xf32, #tpu.memory_space<vmem>>, vector<16x128xf32>,
    %c0_128 = arith.constant 0 : index
    %c0_129 = arith.constant 0 : index
    %416 = vector.load %arg19[%c0_128, %c0_129] : memref<2x128xf32, #tpu.memory_space<vmem>>, vector<2x128xf32>
    tpu.vector_store %arg19[%c0_128, %c0_129], %406 {strides = array<i32>} : memref<2x128xf32, #tpu.memory_space<vmem>>, vector<2x128xf32>,
    %c0_130 = arith.constant 0 : index
    %c0_131 = arith.constant 0 : index
    %417 = vector.load %arg20[%c0_130, %c0_131] : memref<2x128xf32, #tpu.memory_space<vmem>>, vector<2x128xf32>
    tpu.vector_store %arg20[%c0_130, %c0_131], %412 {strides = array<i32>} : memref<2x128xf32, #tpu.memory_space<vmem>>, vector<2x128xf32>,
    return
  }
}

module attributes {stable_mosaic.version = 11 : i64} {
  func.func @_cross_attn_head_kernel(%arg0: i32, %arg1: memref<1x1x8x16xf32, #tpu.memory_space<vmem>>, %arg2: memref<1x8x8x16xf32, #tpu.memory_space<vmem>>, %arg3: memref<1x8x8x16xf32, #tpu.memory_space<vmem>>, %arg4: memref<1x8x8x16xf32, #tpu.memory_space<vmem>>, %arg5: memref<1x1x8x16xf32, #tpu.memory_space<vmem>>, %arg6: memref<1x1x8x16xf32, #tpu.memory_space<vmem>>, %arg7: memref<128x128xf32, #tpu.memory_space<vmem>>, %arg8: memref<1x128xf32, #tpu.memory_space<vmem>>, %arg9: memref<16x128x128xf32, #tpu.memory_space<vmem>>, %arg10: memref<1x128xf32, #tpu.memory_space<vmem>>, %arg11: memref<128x4xf32, #tpu.memory_space<vmem>>, %arg12: memref<1x4xf32, #tpu.memory_space<vmem>>, %arg13: memref<1x1x4xf32, #tpu.memory_space<vmem>>) attributes {dimension_semantics = [#tpu.dimension_semantics<parallel>], iteration_bounds = array<i64: 2>, scalar_prefetch = 0 : i64, scratch_operands = 0 : i64, tpu.core_type = #tpu.core_type<tc>, window_params = [{transform_indices = @transform_0, window_bounds = array<i64: 1, 1, 8, 16>}, {transform_indices = @transform_1, window_bounds = array<i64: 1, 8, 8, 16>}, {transform_indices = @transform_2, window_bounds = array<i64: 1, 8, 8, 16>}, {transform_indices = @transform_3, window_bounds = array<i64: 1, 8, 8, 16>}, {transform_indices = @transform_4, window_bounds = array<i64: 1, 1, 8, 16>}, {transform_indices = @transform_5, window_bounds = array<i64: 1, 1, 8, 16>}, {pipeline_mode = #tpu.pipeline_mode<synchronous>, transform_indices = @transform_6, window_bounds = array<i64: 128, 128>}, {pipeline_mode = #tpu.pipeline_mode<synchronous>, transform_indices = @transform_7, window_bounds = array<i64: 1, 128>}, {pipeline_mode = #tpu.pipeline_mode<synchronous>, transform_indices = @transform_8, window_bounds = array<i64: 16, 128, 128>}, {pipeline_mode = #tpu.pipeline_mode<synchronous>, transform_indices = @transform_9, window_bounds = array<i64: 1, 128>}, {pipeline_mode = #tpu.pipeline_mode<synchronous>, transform_indices = @transform_10, window_bounds = array<i64: 128, 4>}, {pipeline_mode = #tpu.pipeline_mode<synchronous>, transform_indices = @transform_11, window_bounds = array<i64: 1, 4>}, {transform_indices = @transform_12, window_bounds = array<i64: 1, 1, 4>}]} {
    %c0 = arith.constant 0 : index
    %c0_0 = arith.constant 0 : index
    %c0_1 = arith.constant 0 : index
    %c0_2 = arith.constant 0 : index
    %0 = vector.load %arg1[%c0, %c0_0, %c0_1, %c0_2] : memref<1x1x8x16xf32, #tpu.memory_space<vmem>>, vector<1x1x8x16xf32>
    %1 = vector.shape_cast %0 : vector<1x1x8x16xf32> to vector<1x8x16xf32>
    %c0_3 = arith.constant 0 : index
    %c0_4 = arith.constant 0 : index
    %c0_5 = arith.constant 0 : index
    %c0_6 = arith.constant 0 : index
    %2 = vector.load %arg2[%c0_3, %c0_4, %c0_5, %c0_6] : memref<1x8x8x16xf32, #tpu.memory_space<vmem>>, vector<1x8x8x16xf32>
    %3 = vector.shape_cast %2 : vector<1x8x8x16xf32> to vector<8x8x16xf32>
    %c0_7 = arith.constant 0 : index
    %c0_8 = arith.constant 0 : index
    %c0_9 = arith.constant 0 : index
    %c0_10 = arith.constant 0 : index
    %4 = vector.load %arg3[%c0_7, %c0_8, %c0_9, %c0_10] : memref<1x8x8x16xf32, #tpu.memory_space<vmem>>, vector<1x8x8x16xf32>
    %5 = vector.shape_cast %4 : vector<1x8x8x16xf32> to vector<8x8x16xf32>
    %c0_11 = arith.constant 0 : index
    %c0_12 = arith.constant 0 : index
    %c0_13 = arith.constant 0 : index
    %c0_14 = arith.constant 0 : index
    %6 = vector.load %arg4[%c0_11, %c0_12, %c0_13, %c0_14] : memref<1x8x8x16xf32, #tpu.memory_space<vmem>>, vector<1x8x8x16xf32>
    %7 = vector.shape_cast %6 : vector<1x8x8x16xf32> to vector<8x8x16xf32>
    %c0_15 = arith.constant 0 : index
    %c0_16 = arith.constant 0 : index
    %c0_17 = arith.constant 0 : index
    %c0_18 = arith.constant 0 : index
    %8 = vector.load %arg5[%c0_15, %c0_16, %c0_17, %c0_18] : memref<1x1x8x16xf32, #tpu.memory_space<vmem>>, vector<1x1x8x16xf32>
    %9 = vector.shape_cast %8 : vector<1x1x8x16xf32> to vector<1x8x16xf32>
    %c0_19 = arith.constant 0 : index
    %c0_20 = arith.constant 0 : index
    %c0_21 = arith.constant 0 : index
    %c0_22 = arith.constant 0 : index
    %10 = vector.load %arg6[%c0_19, %c0_20, %c0_21, %c0_22] : memref<1x1x8x16xf32, #tpu.memory_space<vmem>>, vector<1x1x8x16xf32>
    %11 = vector.shape_cast %10 : vector<1x1x8x16xf32> to vector<1x8x16xf32>
    %12 = vector.extract_strided_slice %3 {offsets = [0, 0, 0], sizes = [8, 1, 16], strides = [1, 1, 1]} : vector<8x8x16xf32> to vector<8x1x16xf32>
    %13 = vector.broadcast %1 : vector<1x8x16xf32> to vector<8x8x16xf32>
    %14 = vector.broadcast %12 : vector<8x1x16xf32> to vector<8x8x16xf32>
    %15 = arith.mulf %13, %14 : vector<8x8x16xf32>
    %cst = arith.constant dense<0.000000e+00> : vector<8x8xf32>
    %16 = vector.multi_reduction <add>, %15, %cst [2] : vector<8x8x16xf32> to vector<8x8xf32>
    %17 = vector.shape_cast %16 : vector<8x8xf32> to vector<8x8x1xf32>
    %cst_23 = arith.constant 2.500000e-01 : f32
    %18 = vector.broadcast %cst_23 : f32 to vector<8x8x1xf32>
    %19 = arith.mulf %17, %18 : vector<8x8x1xf32>
    %20 = vector.extract_strided_slice %3 {offsets = [0, 1, 0], sizes = [8, 1, 16], strides = [1, 1, 1]} : vector<8x8x16xf32> to vector<8x1x16xf32>
    %21 = vector.broadcast %1 : vector<1x8x16xf32> to vector<8x8x16xf32>
    %22 = vector.broadcast %20 : vector<8x1x16xf32> to vector<8x8x16xf32>
    %23 = arith.mulf %21, %22 : vector<8x8x16xf32>
    %cst_24 = arith.constant dense<0.000000e+00> : vector<8x8xf32>
    %24 = vector.multi_reduction <add>, %23, %cst_24 [2] : vector<8x8x16xf32> to vector<8x8xf32>
    %25 = vector.shape_cast %24 : vector<8x8xf32> to vector<8x8x1xf32>
    %cst_25 = arith.constant 2.500000e-01 : f32
    %26 = vector.broadcast %cst_25 : f32 to vector<8x8x1xf32>
    %27 = arith.mulf %25, %26 : vector<8x8x1xf32>
    %28 = vector.extract_strided_slice %3 {offsets = [0, 2, 0], sizes = [8, 1, 16], strides = [1, 1, 1]} : vector<8x8x16xf32> to vector<8x1x16xf32>
    %29 = vector.broadcast %1 : vector<1x8x16xf32> to vector<8x8x16xf32>
    %30 = vector.broadcast %28 : vector<8x1x16xf32> to vector<8x8x16xf32>
    %31 = arith.mulf %29, %30 : vector<8x8x16xf32>
    %cst_26 = arith.constant dense<0.000000e+00> : vector<8x8xf32>
    %32 = vector.multi_reduction <add>, %31, %cst_26 [2] : vector<8x8x16xf32> to vector<8x8xf32>
    %33 = vector.shape_cast %32 : vector<8x8xf32> to vector<8x8x1xf32>
    %cst_27 = arith.constant 2.500000e-01 : f32
    %34 = vector.broadcast %cst_27 : f32 to vector<8x8x1xf32>
    %35 = arith.mulf %33, %34 : vector<8x8x1xf32>
    %36 = vector.extract_strided_slice %3 {offsets = [0, 3, 0], sizes = [8, 1, 16], strides = [1, 1, 1]} : vector<8x8x16xf32> to vector<8x1x16xf32>
    %37 = vector.broadcast %1 : vector<1x8x16xf32> to vector<8x8x16xf32>
    %38 = vector.broadcast %36 : vector<8x1x16xf32> to vector<8x8x16xf32>
    %39 = arith.mulf %37, %38 : vector<8x8x16xf32>
    %cst_28 = arith.constant dense<0.000000e+00> : vector<8x8xf32>
    %40 = vector.multi_reduction <add>, %39, %cst_28 [2] : vector<8x8x16xf32> to vector<8x8xf32>
    %41 = vector.shape_cast %40 : vector<8x8xf32> to vector<8x8x1xf32>
    %cst_29 = arith.constant 2.500000e-01 : f32
    %42 = vector.broadcast %cst_29 : f32 to vector<8x8x1xf32>
    %43 = arith.mulf %41, %42 : vector<8x8x1xf32>
    %44 = vector.extract_strided_slice %3 {offsets = [0, 4, 0], sizes = [8, 1, 16], strides = [1, 1, 1]} : vector<8x8x16xf32> to vector<8x1x16xf32>
    %45 = vector.broadcast %1 : vector<1x8x16xf32> to vector<8x8x16xf32>
    %46 = vector.broadcast %44 : vector<8x1x16xf32> to vector<8x8x16xf32>
    %47 = arith.mulf %45, %46 : vector<8x8x16xf32>
    %cst_30 = arith.constant dense<0.000000e+00> : vector<8x8xf32>
    %48 = vector.multi_reduction <add>, %47, %cst_30 [2] : vector<8x8x16xf32> to vector<8x8xf32>
    %49 = vector.shape_cast %48 : vector<8x8xf32> to vector<8x8x1xf32>
    %cst_31 = arith.constant 2.500000e-01 : f32
    %50 = vector.broadcast %cst_31 : f32 to vector<8x8x1xf32>
    %51 = arith.mulf %49, %50 : vector<8x8x1xf32>
    %52 = vector.extract_strided_slice %3 {offsets = [0, 5, 0], sizes = [8, 1, 16], strides = [1, 1, 1]} : vector<8x8x16xf32> to vector<8x1x16xf32>
    %53 = vector.broadcast %1 : vector<1x8x16xf32> to vector<8x8x16xf32>
    %54 = vector.broadcast %52 : vector<8x1x16xf32> to vector<8x8x16xf32>
    %55 = arith.mulf %53, %54 : vector<8x8x16xf32>
    %cst_32 = arith.constant dense<0.000000e+00> : vector<8x8xf32>
    %56 = vector.multi_reduction <add>, %55, %cst_32 [2] : vector<8x8x16xf32> to vector<8x8xf32>
    %57 = vector.shape_cast %56 : vector<8x8xf32> to vector<8x8x1xf32>
    %cst_33 = arith.constant 2.500000e-01 : f32
    %58 = vector.broadcast %cst_33 : f32 to vector<8x8x1xf32>
    %59 = arith.mulf %57, %58 : vector<8x8x1xf32>
    %60 = vector.extract_strided_slice %3 {offsets = [0, 6, 0], sizes = [8, 1, 16], strides = [1, 1, 1]} : vector<8x8x16xf32> to vector<8x1x16xf32>
    %61 = vector.broadcast %1 : vector<1x8x16xf32> to vector<8x8x16xf32>
    %62 = vector.broadcast %60 : vector<8x1x16xf32> to vector<8x8x16xf32>
    %63 = arith.mulf %61, %62 : vector<8x8x16xf32>
    %cst_34 = arith.constant dense<0.000000e+00> : vector<8x8xf32>
    %64 = vector.multi_reduction <add>, %63, %cst_34 [2] : vector<8x8x16xf32> to vector<8x8xf32>
    %65 = vector.shape_cast %64 : vector<8x8xf32> to vector<8x8x1xf32>
    %cst_35 = arith.constant 2.500000e-01 : f32
    %66 = vector.broadcast %cst_35 : f32 to vector<8x8x1xf32>
    %67 = arith.mulf %65, %66 : vector<8x8x1xf32>
    %68 = vector.extract_strided_slice %3 {offsets = [0, 7, 0], sizes = [8, 1, 16], strides = [1, 1, 1]} : vector<8x8x16xf32> to vector<8x1x16xf32>
    %69 = vector.broadcast %1 : vector<1x8x16xf32> to vector<8x8x16xf32>
    %70 = vector.broadcast %68 : vector<8x1x16xf32> to vector<8x8x16xf32>
    %71 = arith.mulf %69, %70 : vector<8x8x16xf32>
    %cst_36 = arith.constant dense<0.000000e+00> : vector<8x8xf32>
    %72 = vector.multi_reduction <add>, %71, %cst_36 [2] : vector<8x8x16xf32> to vector<8x8xf32>
    %73 = vector.shape_cast %72 : vector<8x8xf32> to vector<8x8x1xf32>
    %cst_37 = arith.constant 2.500000e-01 : f32
    %74 = vector.broadcast %cst_37 : f32 to vector<8x8x1xf32>
    %75 = arith.mulf %73, %74 : vector<8x8x1xf32>
    %76 = arith.maximumf %19, %27 : vector<8x8x1xf32>
    %77 = arith.maximumf %76, %35 : vector<8x8x1xf32>
    %78 = arith.maximumf %77, %43 : vector<8x8x1xf32>
    %79 = arith.maximumf %78, %51 : vector<8x8x1xf32>
    %80 = arith.maximumf %79, %59 : vector<8x8x1xf32>
    %81 = arith.maximumf %80, %67 : vector<8x8x1xf32>
    %82 = arith.maximumf %81, %75 : vector<8x8x1xf32>
    %83 = arith.subf %19, %82 : vector<8x8x1xf32>
    %84 = math.exp %83 : vector<8x8x1xf32>
    %85 = arith.subf %27, %82 : vector<8x8x1xf32>
    %86 = math.exp %85 : vector<8x8x1xf32>
    %87 = arith.subf %35, %82 : vector<8x8x1xf32>
    %88 = math.exp %87 : vector<8x8x1xf32>
    %89 = arith.subf %43, %82 : vector<8x8x1xf32>
    %90 = math.exp %89 : vector<8x8x1xf32>
    %91 = arith.subf %51, %82 : vector<8x8x1xf32>
    %92 = math.exp %91 : vector<8x8x1xf32>
    %93 = arith.subf %59, %82 : vector<8x8x1xf32>
    %94 = math.exp %93 : vector<8x8x1xf32>
    %95 = arith.subf %67, %82 : vector<8x8x1xf32>
    %96 = math.exp %95 : vector<8x8x1xf32>
    %97 = arith.subf %75, %82 : vector<8x8x1xf32>
    %98 = math.exp %97 : vector<8x8x1xf32>
    %99 = arith.addf %84, %86 : vector<8x8x1xf32>
    %100 = arith.addf %99, %88 : vector<8x8x1xf32>
    %101 = arith.addf %100, %90 : vector<8x8x1xf32>
    %102 = arith.addf %101, %92 : vector<8x8x1xf32>
    %103 = arith.addf %102, %94 : vector<8x8x1xf32>
    %104 = arith.addf %103, %96 : vector<8x8x1xf32>
    %105 = arith.addf %104, %98 : vector<8x8x1xf32>
    %106 = vector.extract_strided_slice %5 {offsets = [0, 0, 0], sizes = [8, 1, 16], strides = [1, 1, 1]} : vector<8x8x16xf32> to vector<8x1x16xf32>
    %107 = vector.broadcast %84 : vector<8x8x1xf32> to vector<8x8x16xf32>
    %108 = vector.broadcast %106 : vector<8x1x16xf32> to vector<8x8x16xf32>
    %109 = arith.mulf %107, %108 : vector<8x8x16xf32>
    %110 = vector.extract_strided_slice %5 {offsets = [0, 1, 0], sizes = [8, 1, 16], strides = [1, 1, 1]} : vector<8x8x16xf32> to vector<8x1x16xf32>
    %111 = vector.broadcast %86 : vector<8x8x1xf32> to vector<8x8x16xf32>
    %112 = vector.broadcast %110 : vector<8x1x16xf32> to vector<8x8x16xf32>
    %113 = arith.mulf %111, %112 : vector<8x8x16xf32>
    %114 = arith.addf %109, %113 : vector<8x8x16xf32>
    %115 = vector.extract_strided_slice %5 {offsets = [0, 2, 0], sizes = [8, 1, 16], strides = [1, 1, 1]} : vector<8x8x16xf32> to vector<8x1x16xf32>
    %116 = vector.broadcast %88 : vector<8x8x1xf32> to vector<8x8x16xf32>
    %117 = vector.broadcast %115 : vector<8x1x16xf32> to vector<8x8x16xf32>
    %118 = arith.mulf %116, %117 : vector<8x8x16xf32>
    %119 = arith.addf %114, %118 : vector<8x8x16xf32>
    %120 = vector.extract_strided_slice %5 {offsets = [0, 3, 0], sizes = [8, 1, 16], strides = [1, 1, 1]} : vector<8x8x16xf32> to vector<8x1x16xf32>
    %121 = vector.broadcast %90 : vector<8x8x1xf32> to vector<8x8x16xf32>
    %122 = vector.broadcast %120 : vector<8x1x16xf32> to vector<8x8x16xf32>
    %123 = arith.mulf %121, %122 : vector<8x8x16xf32>
    %124 = arith.addf %119, %123 : vector<8x8x16xf32>
    %125 = vector.extract_strided_slice %5 {offsets = [0, 4, 0], sizes = [8, 1, 16], strides = [1, 1, 1]} : vector<8x8x16xf32> to vector<8x1x16xf32>
    %126 = vector.broadcast %92 : vector<8x8x1xf32> to vector<8x8x16xf32>
    %127 = vector.broadcast %125 : vector<8x1x16xf32> to vector<8x8x16xf32>
    %128 = arith.mulf %126, %127 : vector<8x8x16xf32>
    %129 = arith.addf %124, %128 : vector<8x8x16xf32>
    %130 = vector.extract_strided_slice %5 {offsets = [0, 5, 0], sizes = [8, 1, 16], strides = [1, 1, 1]} : vector<8x8x16xf32> to vector<8x1x16xf32>
    %131 = vector.broadcast %94 : vector<8x8x1xf32> to vector<8x8x16xf32>
    %132 = vector.broadcast %130 : vector<8x1x16xf32> to vector<8x8x16xf32>
    %133 = arith.mulf %131, %132 : vector<8x8x16xf32>
    %134 = arith.addf %129, %133 : vector<8x8x16xf32>
    %135 = vector.extract_strided_slice %5 {offsets = [0, 6, 0], sizes = [8, 1, 16], strides = [1, 1, 1]} : vector<8x8x16xf32> to vector<8x1x16xf32>
    %136 = vector.broadcast %96 : vector<8x8x1xf32> to vector<8x8x16xf32>
    %137 = vector.broadcast %135 : vector<8x1x16xf32> to vector<8x8x16xf32>
    %138 = arith.mulf %136, %137 : vector<8x8x16xf32>
    %139 = arith.addf %134, %138 : vector<8x8x16xf32>
    %140 = vector.extract_strided_slice %5 {offsets = [0, 7, 0], sizes = [8, 1, 16], strides = [1, 1, 1]} : vector<8x8x16xf32> to vector<8x1x16xf32>
    %141 = vector.broadcast %98 : vector<8x8x1xf32> to vector<8x8x16xf32>
    %142 = vector.broadcast %140 : vector<8x1x16xf32> to vector<8x8x16xf32>
    %143 = arith.mulf %141, %142 : vector<8x8x16xf32>
    %144 = arith.addf %139, %143 : vector<8x8x16xf32>
    %145 = vector.broadcast %105 : vector<8x8x1xf32> to vector<8x8x16xf32>
    %146 = arith.divf %144, %145 : vector<8x8x16xf32>
    %147 = vector.extract_strided_slice %9 {offsets = [0, 0, 0], sizes = [1, 1, 16], strides = [1, 1, 1]} : vector<1x8x16xf32> to vector<1x1x16xf32>
    %148 = vector.broadcast %147 : vector<1x1x16xf32> to vector<8x8x16xf32>
    %149 = arith.mulf %7, %148 : vector<8x8x16xf32>
    %cst_38 = arith.constant dense<0.000000e+00> : vector<8x8xf32>
    %150 = vector.multi_reduction <add>, %149, %cst_38 [2] : vector<8x8x16xf32> to vector<8x8xf32>
    %151 = vector.shape_cast %150 : vector<8x8xf32> to vector<8x8x1xf32>
    %cst_39 = arith.constant 2.500000e-01 : f32
    %152 = vector.broadcast %cst_39 : f32 to vector<8x8x1xf32>
    %153 = arith.mulf %151, %152 : vector<8x8x1xf32>
    %154 = vector.extract_strided_slice %9 {offsets = [0, 1, 0], sizes = [1, 1, 16], strides = [1, 1, 1]} : vector<1x8x16xf32> to vector<1x1x16xf32>
    %155 = vector.broadcast %154 : vector<1x1x16xf32> to vector<8x8x16xf32>
    %156 = arith.mulf %7, %155 : vector<8x8x16xf32>
    %cst_40 = arith.constant dense<0.000000e+00> : vector<8x8xf32>
    %157 = vector.multi_reduction <add>, %156, %cst_40 [2] : vector<8x8x16xf32> to vector<8x8xf32>
    %158 = vector.shape_cast %157 : vector<8x8xf32> to vector<8x8x1xf32>
    %cst_41 = arith.constant 2.500000e-01 : f32
    %159 = vector.broadcast %cst_41 : f32 to vector<8x8x1xf32>
    %160 = arith.mulf %158, %159 : vector<8x8x1xf32>
    %161 = vector.extract_strided_slice %9 {offsets = [0, 2, 0], sizes = [1, 1, 16], strides = [1, 1, 1]} : vector<1x8x16xf32> to vector<1x1x16xf32>
    %162 = vector.broadcast %161 : vector<1x1x16xf32> to vector<8x8x16xf32>
    %163 = arith.mulf %7, %162 : vector<8x8x16xf32>
    %cst_42 = arith.constant dense<0.000000e+00> : vector<8x8xf32>
    %164 = vector.multi_reduction <add>, %163, %cst_42 [2] : vector<8x8x16xf32> to vector<8x8xf32>
    %165 = vector.shape_cast %164 : vector<8x8xf32> to vector<8x8x1xf32>
    %cst_43 = arith.constant 2.500000e-01 : f32
    %166 = vector.broadcast %cst_43 : f32 to vector<8x8x1xf32>
    %167 = arith.mulf %165, %166 : vector<8x8x1xf32>
    %168 = vector.extract_strided_slice %9 {offsets = [0, 3, 0], sizes = [1, 1, 16], strides = [1, 1, 1]} : vector<1x8x16xf32> to vector<1x1x16xf32>
    %169 = vector.broadcast %168 : vector<1x1x16xf32> to vector<8x8x16xf32>
    %170 = arith.mulf %7, %169 : vector<8x8x16xf32>
    %cst_44 = arith.constant dense<0.000000e+00> : vector<8x8xf32>
    %171 = vector.multi_reduction <add>, %170, %cst_44 [2] : vector<8x8x16xf32> to vector<8x8xf32>
    %172 = vector.shape_cast %171 : vector<8x8xf32> to vector<8x8x1xf32>
    %cst_45 = arith.constant 2.500000e-01 : f32
    %173 = vector.broadcast %cst_45 : f32 to vector<8x8x1xf32>
    %174 = arith.mulf %172, %173 : vector<8x8x1xf32>
    %175 = vector.extract_strided_slice %9 {offsets = [0, 4, 0], sizes = [1, 1, 16], strides = [1, 1, 1]} : vector<1x8x16xf32> to vector<1x1x16xf32>
    %176 = vector.broadcast %175 : vector<1x1x16xf32> to vector<8x8x16xf32>
    %177 = arith.mulf %7, %176 : vector<8x8x16xf32>
    %cst_46 = arith.constant dense<0.000000e+00> : vector<8x8xf32>
    %178 = vector.multi_reduction <add>, %177, %cst_46 [2] : vector<8x8x16xf32> to vector<8x8xf32>
    %179 = vector.shape_cast %178 : vector<8x8xf32> to vector<8x8x1xf32>
    %cst_47 = arith.constant 2.500000e-01 : f32
    %180 = vector.broadcast %cst_47 : f32 to vector<8x8x1xf32>
    %181 = arith.mulf %179, %180 : vector<8x8x1xf32>
    %182 = vector.extract_strided_slice %9 {offsets = [0, 5, 0], sizes = [1, 1, 16], strides = [1, 1, 1]} : vector<1x8x16xf32> to vector<1x1x16xf32>
    %183 = vector.broadcast %182 : vector<1x1x16xf32> to vector<8x8x16xf32>
    %184 = arith.mulf %7, %183 : vector<8x8x16xf32>
    %cst_48 = arith.constant dense<0.000000e+00> : vector<8x8xf32>
    %185 = vector.multi_reduction <add>, %184, %cst_48 [2] : vector<8x8x16xf32> to vector<8x8xf32>
    %186 = vector.shape_cast %185 : vector<8x8xf32> to vector<8x8x1xf32>
    %cst_49 = arith.constant 2.500000e-01 : f32
    %187 = vector.broadcast %cst_49 : f32 to vector<8x8x1xf32>
    %188 = arith.mulf %186, %187 : vector<8x8x1xf32>
    %189 = vector.extract_strided_slice %9 {offsets = [0, 6, 0], sizes = [1, 1, 16], strides = [1, 1, 1]} : vector<1x8x16xf32> to vector<1x1x16xf32>
    %190 = vector.broadcast %189 : vector<1x1x16xf32> to vector<8x8x16xf32>
    %191 = arith.mulf %7, %190 : vector<8x8x16xf32>
    %cst_50 = arith.constant dense<0.000000e+00> : vector<8x8xf32>
    %192 = vector.multi_reduction <add>, %191, %cst_50 [2] : vector<8x8x16xf32> to vector<8x8xf32>
    %193 = vector.shape_cast %192 : vector<8x8xf32> to vector<8x8x1xf32>
    %cst_51 = arith.constant 2.500000e-01 : f32
    %194 = vector.broadcast %cst_51 : f32 to vector<8x8x1xf32>
    %195 = arith.mulf %193, %194 : vector<8x8x1xf32>
    %196 = vector.extract_strided_slice %9 {offsets = [0, 7, 0], sizes = [1, 1, 16], strides = [1, 1, 1]} : vector<1x8x16xf32> to vector<1x1x16xf32>
    %197 = vector.broadcast %196 : vector<1x1x16xf32> to vector<8x8x16xf32>
    %198 = arith.mulf %7, %197 : vector<8x8x16xf32>
    %cst_52 = arith.constant dense<0.000000e+00> : vector<8x8xf32>
    %199 = vector.multi_reduction <add>, %198, %cst_52 [2] : vector<8x8x16xf32> to vector<8x8xf32>
    %200 = vector.shape_cast %199 : vector<8x8xf32> to vector<8x8x1xf32>
    %cst_53 = arith.constant 2.500000e-01 : f32
    %201 = vector.broadcast %cst_53 : f32 to vector<8x8x1xf32>
    %202 = arith.mulf %200, %201 : vector<8x8x1xf32>
    %203 = arith.maximumf %153, %160 : vector<8x8x1xf32>
    %204 = arith.maximumf %203, %167 : vector<8x8x1xf32>
    %205 = arith.maximumf %204, %174 : vector<8x8x1xf32>
    %206 = arith.maximumf %205, %181 : vector<8x8x1xf32>
    %207 = arith.maximumf %206, %188 : vector<8x8x1xf32>
    %208 = arith.maximumf %207, %195 : vector<8x8x1xf32>
    %209 = arith.maximumf %208, %202 : vector<8x8x1xf32>
    %210 = arith.subf %153, %209 : vector<8x8x1xf32>
    %211 = math.exp %210 : vector<8x8x1xf32>
    %212 = arith.subf %160, %209 : vector<8x8x1xf32>
    %213 = math.exp %212 : vector<8x8x1xf32>
    %214 = arith.subf %167, %209 : vector<8x8x1xf32>
    %215 = math.exp %214 : vector<8x8x1xf32>
    %216 = arith.subf %174, %209 : vector<8x8x1xf32>
    %217 = math.exp %216 : vector<8x8x1xf32>
    %218 = arith.subf %181, %209 : vector<8x8x1xf32>
    %219 = math.exp %218 : vector<8x8x1xf32>
    %220 = arith.subf %188, %209 : vector<8x8x1xf32>
    %221 = math.exp %220 : vector<8x8x1xf32>
    %222 = arith.subf %195, %209 : vector<8x8x1xf32>
    %223 = math.exp %222 : vector<8x8x1xf32>
    %224 = arith.subf %202, %209 : vector<8x8x1xf32>
    %225 = math.exp %224 : vector<8x8x1xf32>
    %226 = arith.addf %211, %213 : vector<8x8x1xf32>
    %227 = arith.addf %226, %215 : vector<8x8x1xf32>
    %228 = arith.addf %227, %217 : vector<8x8x1xf32>
    %229 = arith.addf %228, %219 : vector<8x8x1xf32>
    %230 = arith.addf %229, %221 : vector<8x8x1xf32>
    %231 = arith.addf %230, %223 : vector<8x8x1xf32>
    %232 = arith.addf %231, %225 : vector<8x8x1xf32>
    %233 = vector.extract_strided_slice %11 {offsets = [0, 0, 0], sizes = [1, 1, 16], strides = [1, 1, 1]} : vector<1x8x16xf32> to vector<1x1x16xf32>
    %234 = vector.broadcast %211 : vector<8x8x1xf32> to vector<8x8x16xf32>
    %235 = vector.broadcast %233 : vector<1x1x16xf32> to vector<8x8x16xf32>
    %236 = arith.mulf %234, %235 : vector<8x8x16xf32>
    %237 = vector.extract_strided_slice %11 {offsets = [0, 1, 0], sizes = [1, 1, 16], strides = [1, 1, 1]} : vector<1x8x16xf32> to vector<1x1x16xf32>
    %238 = vector.broadcast %213 : vector<8x8x1xf32> to vector<8x8x16xf32>
    %239 = vector.broadcast %237 : vector<1x1x16xf32> to vector<8x8x16xf32>
    %240 = arith.mulf %238, %239 : vector<8x8x16xf32>
    %241 = arith.addf %236, %240 : vector<8x8x16xf32>
    %242 = vector.extract_strided_slice %11 {offsets = [0, 2, 0], sizes = [1, 1, 16], strides = [1, 1, 1]} : vector<1x8x16xf32> to vector<1x1x16xf32>
    %243 = vector.broadcast %215 : vector<8x8x1xf32> to vector<8x8x16xf32>
    %244 = vector.broadcast %242 : vector<1x1x16xf32> to vector<8x8x16xf32>
    %245 = arith.mulf %243, %244 : vector<8x8x16xf32>
    %246 = arith.addf %241, %245 : vector<8x8x16xf32>
    %247 = vector.extract_strided_slice %11 {offsets = [0, 3, 0], sizes = [1, 1, 16], strides = [1, 1, 1]} : vector<1x8x16xf32> to vector<1x1x16xf32>
    %248 = vector.broadcast %217 : vector<8x8x1xf32> to vector<8x8x16xf32>
    %249 = vector.broadcast %247 : vector<1x1x16xf32> to vector<8x8x16xf32>
    %250 = arith.mulf %248, %249 : vector<8x8x16xf32>
    %251 = arith.addf %246, %250 : vector<8x8x16xf32>
    %252 = vector.extract_strided_slice %11 {offsets = [0, 4, 0], sizes = [1, 1, 16], strides = [1, 1, 1]} : vector<1x8x16xf32> to vector<1x1x16xf32>
    %253 = vector.broadcast %219 : vector<8x8x1xf32> to vector<8x8x16xf32>
    %254 = vector.broadcast %252 : vector<1x1x16xf32> to vector<8x8x16xf32>
    %255 = arith.mulf %253, %254 : vector<8x8x16xf32>
    %256 = arith.addf %251, %255 : vector<8x8x16xf32>
    %257 = vector.extract_strided_slice %11 {offsets = [0, 5, 0], sizes = [1, 1, 16], strides = [1, 1, 1]} : vector<1x8x16xf32> to vector<1x1x16xf32>
    %258 = vector.broadcast %221 : vector<8x8x1xf32> to vector<8x8x16xf32>
    %259 = vector.broadcast %257 : vector<1x1x16xf32> to vector<8x8x16xf32>
    %260 = arith.mulf %258, %259 : vector<8x8x16xf32>
    %261 = arith.addf %256, %260 : vector<8x8x16xf32>
    %262 = vector.extract_strided_slice %11 {offsets = [0, 6, 0], sizes = [1, 1, 16], strides = [1, 1, 1]} : vector<1x8x16xf32> to vector<1x1x16xf32>
    %263 = vector.broadcast %223 : vector<8x8x1xf32> to vector<8x8x16xf32>
    %264 = vector.broadcast %262 : vector<1x1x16xf32> to vector<8x8x16xf32>
    %265 = arith.mulf %263, %264 : vector<8x8x16xf32>
    %266 = arith.addf %261, %265 : vector<8x8x16xf32>
    %267 = vector.extract_strided_slice %11 {offsets = [0, 7, 0], sizes = [1, 1, 16], strides = [1, 1, 1]} : vector<1x8x16xf32> to vector<1x1x16xf32>
    %268 = vector.broadcast %225 : vector<8x8x1xf32> to vector<8x8x16xf32>
    %269 = vector.broadcast %267 : vector<1x1x16xf32> to vector<8x8x16xf32>
    %270 = arith.mulf %268, %269 : vector<8x8x16xf32>
    %271 = arith.addf %266, %270 : vector<8x8x16xf32>
    %272 = vector.broadcast %232 : vector<8x8x1xf32> to vector<8x8x16xf32>
    %273 = arith.divf %271, %272 : vector<8x8x16xf32>
    %cst_54 = arith.constant 0.000000e+00 : f32
    %274 = vector.broadcast %cst_54 : f32 to vector<8x128xf32>
    %c0_55 = arith.constant 0 : index
    %c0_56 = arith.constant 0 : index
    %275 = vector.load %arg8[%c0_55, %c0_56] : memref<1x128xf32, #tpu.memory_space<vmem>>, vector<1x128xf32>
    %276 = vector.broadcast %275 : vector<1x128xf32> to vector<8x128xf32>
    %277 = arith.addf %274, %276 : vector<8x128xf32>
    %cst_57 = arith.constant 0.000000e+00 : f32
    %278 = vector.broadcast %cst_57 : f32 to vector<8x128xf32>
    %c0_58 = arith.constant 0 : index
    %c0_59 = arith.constant 0 : index
    %279 = vector.load %arg8[%c0_58, %c0_59] : memref<1x128xf32, #tpu.memory_space<vmem>>, vector<1x128xf32>
    %280 = vector.broadcast %279 : vector<1x128xf32> to vector<8x128xf32>
    %281 = arith.addf %278, %280 : vector<8x128xf32>
    %c0_60 = arith.constant 0 : index
    %c0_61 = arith.constant 0 : index
    %282 = vector.load %arg7[%c0_60, %c0_61] : memref<128x128xf32, #tpu.memory_space<vmem>>, vector<16x128xf32>
    %283 = vector.extract_strided_slice %146 {offsets = [0, 0, 0], sizes = [8, 1, 16], strides = [1, 1, 1]} : vector<8x8x16xf32> to vector<8x1x16xf32>
    %284 = vector.shape_cast %283 : vector<8x1x16xf32> to vector<8x16xf32>
    %cst_62 = arith.constant dense<0.000000e+00> : vector<8x128xf32>
    %285 = tpu.matmul %284, %282, %cst_62 {dimension_numbers = #tpu.dot_dimension_numbers<[1], [0], [0], [1], [0, 0, 1, 1], [], []>} : vector<8x16xf32>, vector<16x128xf32>, vector<8x128xf32> -> vector<8x128xf32>
    %286 = arith.addf %277, %285 : vector<8x128xf32>
    %287 = vector.extract_strided_slice %273 {offsets = [0, 0, 0], sizes = [8, 1, 16], strides = [1, 1, 1]} : vector<8x8x16xf32> to vector<8x1x16xf32>
    %288 = vector.shape_cast %287 : vector<8x1x16xf32> to vector<8x16xf32>
    %cst_63 = arith.constant dense<0.000000e+00> : vector<8x128xf32>
    %289 = tpu.matmul %288, %282, %cst_63 {dimension_numbers = #tpu.dot_dimension_numbers<[1], [0], [0], [1], [0, 0, 1, 1], [], []>} : vector<8x16xf32>, vector<16x128xf32>, vector<8x128xf32> -> vector<8x128xf32>
    %290 = arith.addf %281, %289 : vector<8x128xf32>
    %c16 = arith.constant 16 : index
    %c0_64 = arith.constant 0 : index
    %291 = vector.load %arg7[%c16, %c0_64] : memref<128x128xf32, #tpu.memory_space<vmem>>, vector<16x128xf32>
    %292 = vector.extract_strided_slice %146 {offsets = [0, 1, 0], sizes = [8, 1, 16], strides = [1, 1, 1]} : vector<8x8x16xf32> to vector<8x1x16xf32>
    %293 = vector.shape_cast %292 : vector<8x1x16xf32> to vector<8x16xf32>
    %cst_65 = arith.constant dense<0.000000e+00> : vector<8x128xf32>
    %294 = tpu.matmul %293, %291, %cst_65 {dimension_numbers = #tpu.dot_dimension_numbers<[1], [0], [0], [1], [0, 0, 1, 1], [], []>} : vector<8x16xf32>, vector<16x128xf32>, vector<8x128xf32> -> vector<8x128xf32>
    %295 = arith.addf %286, %294 : vector<8x128xf32>
    %296 = vector.extract_strided_slice %273 {offsets = [0, 1, 0], sizes = [8, 1, 16], strides = [1, 1, 1]} : vector<8x8x16xf32> to vector<8x1x16xf32>
    %297 = vector.shape_cast %296 : vector<8x1x16xf32> to vector<8x16xf32>
    %cst_66 = arith.constant dense<0.000000e+00> : vector<8x128xf32>
    %298 = tpu.matmul %297, %291, %cst_66 {dimension_numbers = #tpu.dot_dimension_numbers<[1], [0], [0], [1], [0, 0, 1, 1], [], []>} : vector<8x16xf32>, vector<16x128xf32>, vector<8x128xf32> -> vector<8x128xf32>
    %299 = arith.addf %290, %298 : vector<8x128xf32>
    %c32 = arith.constant 32 : index
    %c0_67 = arith.constant 0 : index
    %300 = vector.load %arg7[%c32, %c0_67] : memref<128x128xf32, #tpu.memory_space<vmem>>, vector<16x128xf32>
    %301 = vector.extract_strided_slice %146 {offsets = [0, 2, 0], sizes = [8, 1, 16], strides = [1, 1, 1]} : vector<8x8x16xf32> to vector<8x1x16xf32>
    %302 = vector.shape_cast %301 : vector<8x1x16xf32> to vector<8x16xf32>
    %cst_68 = arith.constant dense<0.000000e+00> : vector<8x128xf32>
    %303 = tpu.matmul %302, %300, %cst_68 {dimension_numbers = #tpu.dot_dimension_numbers<[1], [0], [0], [1], [0, 0, 1, 1], [], []>} : vector<8x16xf32>, vector<16x128xf32>, vector<8x128xf32> -> vector<8x128xf32>
    %304 = arith.addf %295, %303 : vector<8x128xf32>
    %305 = vector.extract_strided_slice %273 {offsets = [0, 2, 0], sizes = [8, 1, 16], strides = [1, 1, 1]} : vector<8x8x16xf32> to vector<8x1x16xf32>
    %306 = vector.shape_cast %305 : vector<8x1x16xf32> to vector<8x16xf32>
    %cst_69 = arith.constant dense<0.000000e+00> : vector<8x128xf32>
    %307 = tpu.matmul %306, %300, %cst_69 {dimension_numbers = #tpu.dot_dimension_numbers<[1], [0], [0], [1], [0, 0, 1, 1], [], []>} : vector<8x16xf32>, vector<16x128xf32>, vector<8x128xf32> -> vector<8x128xf32>
    %308 = arith.addf %299, %307 : vector<8x128xf32>
    %c48 = arith.constant 48 : index
    %c0_70 = arith.constant 0 : index
    %309 = vector.load %arg7[%c48, %c0_70] : memref<128x128xf32, #tpu.memory_space<vmem>>, vector<16x128xf32>
    %310 = vector.extract_strided_slice %146 {offsets = [0, 3, 0], sizes = [8, 1, 16], strides = [1, 1, 1]} : vector<8x8x16xf32> to vector<8x1x16xf32>
    %311 = vector.shape_cast %310 : vector<8x1x16xf32> to vector<8x16xf32>
    %cst_71 = arith.constant dense<0.000000e+00> : vector<8x128xf32>
    %312 = tpu.matmul %311, %309, %cst_71 {dimension_numbers = #tpu.dot_dimension_numbers<[1], [0], [0], [1], [0, 0, 1, 1], [], []>} : vector<8x16xf32>, vector<16x128xf32>, vector<8x128xf32> -> vector<8x128xf32>
    %313 = arith.addf %304, %312 : vector<8x128xf32>
    %314 = vector.extract_strided_slice %273 {offsets = [0, 3, 0], sizes = [8, 1, 16], strides = [1, 1, 1]} : vector<8x8x16xf32> to vector<8x1x16xf32>
    %315 = vector.shape_cast %314 : vector<8x1x16xf32> to vector<8x16xf32>
    %cst_72 = arith.constant dense<0.000000e+00> : vector<8x128xf32>
    %316 = tpu.matmul %315, %309, %cst_72 {dimension_numbers = #tpu.dot_dimension_numbers<[1], [0], [0], [1], [0, 0, 1, 1], [], []>} : vector<8x16xf32>, vector<16x128xf32>, vector<8x128xf32> -> vector<8x128xf32>
    %317 = arith.addf %308, %316 : vector<8x128xf32>
    %c64 = arith.constant 64 : index
    %c0_73 = arith.constant 0 : index
    %318 = vector.load %arg7[%c64, %c0_73] : memref<128x128xf32, #tpu.memory_space<vmem>>, vector<16x128xf32>
    %319 = vector.extract_strided_slice %146 {offsets = [0, 4, 0], sizes = [8, 1, 16], strides = [1, 1, 1]} : vector<8x8x16xf32> to vector<8x1x16xf32>
    %320 = vector.shape_cast %319 : vector<8x1x16xf32> to vector<8x16xf32>
    %cst_74 = arith.constant dense<0.000000e+00> : vector<8x128xf32>
    %321 = tpu.matmul %320, %318, %cst_74 {dimension_numbers = #tpu.dot_dimension_numbers<[1], [0], [0], [1], [0, 0, 1, 1], [], []>} : vector<8x16xf32>, vector<16x128xf32>, vector<8x128xf32> -> vector<8x128xf32>
    %322 = arith.addf %313, %321 : vector<8x128xf32>
    %323 = vector.extract_strided_slice %273 {offsets = [0, 4, 0], sizes = [8, 1, 16], strides = [1, 1, 1]} : vector<8x8x16xf32> to vector<8x1x16xf32>
    %324 = vector.shape_cast %323 : vector<8x1x16xf32> to vector<8x16xf32>
    %cst_75 = arith.constant dense<0.000000e+00> : vector<8x128xf32>
    %325 = tpu.matmul %324, %318, %cst_75 {dimension_numbers = #tpu.dot_dimension_numbers<[1], [0], [0], [1], [0, 0, 1, 1], [], []>} : vector<8x16xf32>, vector<16x128xf32>, vector<8x128xf32> -> vector<8x128xf32>
    %326 = arith.addf %317, %325 : vector<8x128xf32>
    %c80 = arith.constant 80 : index
    %c0_76 = arith.constant 0 : index
    %327 = vector.load %arg7[%c80, %c0_76] : memref<128x128xf32, #tpu.memory_space<vmem>>, vector<16x128xf32>
    %328 = vector.extract_strided_slice %146 {offsets = [0, 5, 0], sizes = [8, 1, 16], strides = [1, 1, 1]} : vector<8x8x16xf32> to vector<8x1x16xf32>
    %329 = vector.shape_cast %328 : vector<8x1x16xf32> to vector<8x16xf32>
    %cst_77 = arith.constant dense<0.000000e+00> : vector<8x128xf32>
    %330 = tpu.matmul %329, %327, %cst_77 {dimension_numbers = #tpu.dot_dimension_numbers<[1], [0], [0], [1], [0, 0, 1, 1], [], []>} : vector<8x16xf32>, vector<16x128xf32>, vector<8x128xf32> -> vector<8x128xf32>
    %331 = arith.addf %322, %330 : vector<8x128xf32>
    %332 = vector.extract_strided_slice %273 {offsets = [0, 5, 0], sizes = [8, 1, 16], strides = [1, 1, 1]} : vector<8x8x16xf32> to vector<8x1x16xf32>
    %333 = vector.shape_cast %332 : vector<8x1x16xf32> to vector<8x16xf32>
    %cst_78 = arith.constant dense<0.000000e+00> : vector<8x128xf32>
    %334 = tpu.matmul %333, %327, %cst_78 {dimension_numbers = #tpu.dot_dimension_numbers<[1], [0], [0], [1], [0, 0, 1, 1], [], []>} : vector<8x16xf32>, vector<16x128xf32>, vector<8x128xf32> -> vector<8x128xf32>
    %335 = arith.addf %326, %334 : vector<8x128xf32>
    %c96 = arith.constant 96 : index
    %c0_79 = arith.constant 0 : index
    %336 = vector.load %arg7[%c96, %c0_79] : memref<128x128xf32, #tpu.memory_space<vmem>>, vector<16x128xf32>
    %337 = vector.extract_strided_slice %146 {offsets = [0, 6, 0], sizes = [8, 1, 16], strides = [1, 1, 1]} : vector<8x8x16xf32> to vector<8x1x16xf32>
    %338 = vector.shape_cast %337 : vector<8x1x16xf32> to vector<8x16xf32>
    %cst_80 = arith.constant dense<0.000000e+00> : vector<8x128xf32>
    %339 = tpu.matmul %338, %336, %cst_80 {dimension_numbers = #tpu.dot_dimension_numbers<[1], [0], [0], [1], [0, 0, 1, 1], [], []>} : vector<8x16xf32>, vector<16x128xf32>, vector<8x128xf32> -> vector<8x128xf32>
    %340 = arith.addf %331, %339 : vector<8x128xf32>
    %341 = vector.extract_strided_slice %273 {offsets = [0, 6, 0], sizes = [8, 1, 16], strides = [1, 1, 1]} : vector<8x8x16xf32> to vector<8x1x16xf32>
    %342 = vector.shape_cast %341 : vector<8x1x16xf32> to vector<8x16xf32>
    %cst_81 = arith.constant dense<0.000000e+00> : vector<8x128xf32>
    %343 = tpu.matmul %342, %336, %cst_81 {dimension_numbers = #tpu.dot_dimension_numbers<[1], [0], [0], [1], [0, 0, 1, 1], [], []>} : vector<8x16xf32>, vector<16x128xf32>, vector<8x128xf32> -> vector<8x128xf32>
    %344 = arith.addf %335, %343 : vector<8x128xf32>
    %c112 = arith.constant 112 : index
    %c0_82 = arith.constant 0 : index
    %345 = vector.load %arg7[%c112, %c0_82] : memref<128x128xf32, #tpu.memory_space<vmem>>, vector<16x128xf32>
    %346 = vector.extract_strided_slice %146 {offsets = [0, 7, 0], sizes = [8, 1, 16], strides = [1, 1, 1]} : vector<8x8x16xf32> to vector<8x1x16xf32>
    %347 = vector.shape_cast %346 : vector<8x1x16xf32> to vector<8x16xf32>
    %cst_83 = arith.constant dense<0.000000e+00> : vector<8x128xf32>
    %348 = tpu.matmul %347, %345, %cst_83 {dimension_numbers = #tpu.dot_dimension_numbers<[1], [0], [0], [1], [0, 0, 1, 1], [], []>} : vector<8x16xf32>, vector<16x128xf32>, vector<8x128xf32> -> vector<8x128xf32>
    %349 = arith.addf %340, %348 : vector<8x128xf32>
    %350 = vector.extract_strided_slice %273 {offsets = [0, 7, 0], sizes = [8, 1, 16], strides = [1, 1, 1]} : vector<8x8x16xf32> to vector<8x1x16xf32>
    %351 = vector.shape_cast %350 : vector<8x1x16xf32> to vector<8x16xf32>
    %cst_84 = arith.constant dense<0.000000e+00> : vector<8x128xf32>
    %352 = tpu.matmul %351, %345, %cst_84 {dimension_numbers = #tpu.dot_dimension_numbers<[1], [0], [0], [1], [0, 0, 1, 1], [], []>} : vector<8x16xf32>, vector<16x128xf32>, vector<8x128xf32> -> vector<8x128xf32>
    %353 = arith.addf %344, %352 : vector<8x128xf32>
    %cst_85 = arith.constant 0.000000e+00 : f32
    %354 = vector.broadcast %cst_85 : f32 to vector<1x128xf32>
    %c0_86 = arith.constant 0 : index
    %c0_87 = arith.constant 0 : index
    %355 = vector.load %arg10[%c0_86, %c0_87] : memref<1x128xf32, #tpu.memory_space<vmem>>, vector<1x128xf32>
    %356 = arith.addf %354, %355 : vector<1x128xf32>
    %357 = vector.extract_strided_slice %349 {offsets = [0, 0], sizes = [1, 128], strides = [1, 1]} : vector<8x128xf32> to vector<1x128xf32>
    %c0_88 = arith.constant 0 : index
    %c0_89 = arith.constant 0 : index
    %c0_90 = arith.constant 0 : index
    %358 = vector.load %arg9[%c0_88, %c0_89, %c0_90] : memref<16x128x128xf32, #tpu.memory_space<vmem>>, vector<1x128x128xf32>
    %359 = vector.shape_cast %358 : vector<1x128x128xf32> to vector<128x128xf32>
    %cst_91 = arith.constant dense<0.000000e+00> : vector<1x128xf32>
    %360 = tpu.matmul %357, %359, %cst_91 {dimension_numbers = #tpu.dot_dimension_numbers<[1], [0], [0], [1], [0, 0, 1, 1], [], []>} : vector<1x128xf32>, vector<128x128xf32>, vector<1x128xf32> -> vector<1x128xf32>
    %361 = arith.addf %356, %360 : vector<1x128xf32>
    %362 = vector.extract_strided_slice %349 {offsets = [1, 0], sizes = [1, 128], strides = [1, 1]} : vector<8x128xf32> to vector<1x128xf32>
    %c1 = arith.constant 1 : index
    %c0_92 = arith.constant 0 : index
    %c0_93 = arith.constant 0 : index
    %363 = vector.load %arg9[%c1, %c0_92, %c0_93] : memref<16x128x128xf32, #tpu.memory_space<vmem>>, vector<1x128x128xf32>
    %364 = vector.shape_cast %363 : vector<1x128x128xf32> to vector<128x128xf32>
    %cst_94 = arith.constant dense<0.000000e+00> : vector<1x128xf32>
    %365 = tpu.matmul %362, %364, %cst_94 {dimension_numbers = #tpu.dot_dimension_numbers<[1], [0], [0], [1], [0, 0, 1, 1], [], []>} : vector<1x128xf32>, vector<128x128xf32>, vector<1x128xf32> -> vector<1x128xf32>
    %366 = arith.addf %361, %365 : vector<1x128xf32>
    %367 = vector.extract_strided_slice %349 {offsets = [2, 0], sizes = [1, 128], strides = [1, 1]} : vector<8x128xf32> to vector<1x128xf32>
    %c2 = arith.constant 2 : index
    %c0_95 = arith.constant 0 : index
    %c0_96 = arith.constant 0 : index
    %368 = vector.load %arg9[%c2, %c0_95, %c0_96] : memref<16x128x128xf32, #tpu.memory_space<vmem>>, vector<1x128x128xf32>
    %369 = vector.shape_cast %368 : vector<1x128x128xf32> to vector<128x128xf32>
    %cst_97 = arith.constant dense<0.000000e+00> : vector<1x128xf32>
    %370 = tpu.matmul %367, %369, %cst_97 {dimension_numbers = #tpu.dot_dimension_numbers<[1], [0], [0], [1], [0, 0, 1, 1], [], []>} : vector<1x128xf32>, vector<128x128xf32>, vector<1x128xf32> -> vector<1x128xf32>
    %371 = arith.addf %366, %370 : vector<1x128xf32>
    %372 = vector.extract_strided_slice %349 {offsets = [3, 0], sizes = [1, 128], strides = [1, 1]} : vector<8x128xf32> to vector<1x128xf32>
    %c3 = arith.constant 3 : index
    %c0_98 = arith.constant 0 : index
    %c0_99 = arith.constant 0 : index
    %373 = vector.load %arg9[%c3, %c0_98, %c0_99] : memref<16x128x128xf32, #tpu.memory_space<vmem>>, vector<1x128x128xf32>
    %374 = vector.shape_cast %373 : vector<1x128x128xf32> to vector<128x128xf32>
    %cst_100 = arith.constant dense<0.000000e+00> : vector<1x128xf32>
    %375 = tpu.matmul %372, %374, %cst_100 {dimension_numbers = #tpu.dot_dimension_numbers<[1], [0], [0], [1], [0, 0, 1, 1], [], []>} : vector<1x128xf32>, vector<128x128xf32>, vector<1x128xf32> -> vector<1x128xf32>
    %376 = arith.addf %371, %375 : vector<1x128xf32>
    %377 = vector.extract_strided_slice %349 {offsets = [4, 0], sizes = [1, 128], strides = [1, 1]} : vector<8x128xf32> to vector<1x128xf32>
    %c4 = arith.constant 4 : index
    %c0_101 = arith.constant 0 : index
    %c0_102 = arith.constant 0 : index
    %378 = vector.load %arg9[%c4, %c0_101, %c0_102] : memref<16x128x128xf32, #tpu.memory_space<vmem>>, vector<1x128x128xf32>
    %379 = vector.shape_cast %378 : vector<1x128x128xf32> to vector<128x128xf32>
    %cst_103 = arith.constant dense<0.000000e+00> : vector<1x128xf32>
    %380 = tpu.matmul %377, %379, %cst_103 {dimension_numbers = #tpu.dot_dimension_numbers<[1], [0], [0], [1], [0, 0, 1, 1], [], []>} : vector<1x128xf32>, vector<128x128xf32>, vector<1x128xf32> -> vector<1x128xf32>
    %381 = arith.addf %376, %380 : vector<1x128xf32>
    %382 = vector.extract_strided_slice %349 {offsets = [5, 0], sizes = [1, 128], strides = [1, 1]} : vector<8x128xf32> to vector<1x128xf32>
    %c5 = arith.constant 5 : index
    %c0_104 = arith.constant 0 : index
    %c0_105 = arith.constant 0 : index
    %383 = vector.load %arg9[%c5, %c0_104, %c0_105] : memref<16x128x128xf32, #tpu.memory_space<vmem>>, vector<1x128x128xf32>
    %384 = vector.shape_cast %383 : vector<1x128x128xf32> to vector<128x128xf32>
    %cst_106 = arith.constant dense<0.000000e+00> : vector<1x128xf32>
    %385 = tpu.matmul %382, %384, %cst_106 {dimension_numbers = #tpu.dot_dimension_numbers<[1], [0], [0], [1], [0, 0, 1, 1], [], []>} : vector<1x128xf32>, vector<128x128xf32>, vector<1x128xf32> -> vector<1x128xf32>
    %386 = arith.addf %381, %385 : vector<1x128xf32>
    %387 = vector.extract_strided_slice %349 {offsets = [6, 0], sizes = [1, 128], strides = [1, 1]} : vector<8x128xf32> to vector<1x128xf32>
    %c6 = arith.constant 6 : index
    %c0_107 = arith.constant 0 : index
    %c0_108 = arith.constant 0 : index
    %388 = vector.load %arg9[%c6, %c0_107, %c0_108] : memref<16x128x128xf32, #tpu.memory_space<vmem>>, vector<1x128x128xf32>
    %389 = vector.shape_cast %388 : vector<1x128x128xf32> to vector<128x128xf32>
    %cst_109 = arith.constant dense<0.000000e+00> : vector<1x128xf32>
    %390 = tpu.matmul %387, %389, %cst_109 {dimension_numbers = #tpu.dot_dimension_numbers<[1], [0], [0], [1], [0, 0, 1, 1], [], []>} : vector<1x128xf32>, vector<128x128xf32>, vector<1x128xf32> -> vector<1x128xf32>
    %391 = arith.addf %386, %390 : vector<1x128xf32>
    %392 = vector.extract_strided_slice %349 {offsets = [7, 0], sizes = [1, 128], strides = [1, 1]} : vector<8x128xf32> to vector<1x128xf32>
    %c7 = arith.constant 7 : index
    %c0_110 = arith.constant 0 : index
    %c0_111 = arith.constant 0 : index
    %393 = vector.load %arg9[%c7, %c0_110, %c0_111] : memref<16x128x128xf32, #tpu.memory_space<vmem>>, vector<1x128x128xf32>
    %394 = vector.shape_cast %393 : vector<1x128x128xf32> to vector<128x128xf32>
    %cst_112 = arith.constant dense<0.000000e+00> : vector<1x128xf32>
    %395 = tpu.matmul %392, %394, %cst_112 {dimension_numbers = #tpu.dot_dimension_numbers<[1], [0], [0], [1], [0, 0, 1, 1], [], []>} : vector<1x128xf32>, vector<128x128xf32>, vector<1x128xf32> -> vector<1x128xf32>
    %396 = arith.addf %391, %395 : vector<1x128xf32>
    %397 = vector.extract_strided_slice %353 {offsets = [0, 0], sizes = [1, 128], strides = [1, 1]} : vector<8x128xf32> to vector<1x128xf32>
    %c8 = arith.constant 8 : index
    %c0_113 = arith.constant 0 : index
    %c0_114 = arith.constant 0 : index
    %398 = vector.load %arg9[%c8, %c0_113, %c0_114] : memref<16x128x128xf32, #tpu.memory_space<vmem>>, vector<1x128x128xf32>
    %399 = vector.shape_cast %398 : vector<1x128x128xf32> to vector<128x128xf32>
    %cst_115 = arith.constant dense<0.000000e+00> : vector<1x128xf32>
    %400 = tpu.matmul %397, %399, %cst_115 {dimension_numbers = #tpu.dot_dimension_numbers<[1], [0], [0], [1], [0, 0, 1, 1], [], []>} : vector<1x128xf32>, vector<128x128xf32>, vector<1x128xf32> -> vector<1x128xf32>
    %401 = arith.addf %396, %400 : vector<1x128xf32>
    %402 = vector.extract_strided_slice %353 {offsets = [1, 0], sizes = [1, 128], strides = [1, 1]} : vector<8x128xf32> to vector<1x128xf32>
    %c9 = arith.constant 9 : index
    %c0_116 = arith.constant 0 : index
    %c0_117 = arith.constant 0 : index
    %403 = vector.load %arg9[%c9, %c0_116, %c0_117] : memref<16x128x128xf32, #tpu.memory_space<vmem>>, vector<1x128x128xf32>
    %404 = vector.shape_cast %403 : vector<1x128x128xf32> to vector<128x128xf32>
    %cst_118 = arith.constant dense<0.000000e+00> : vector<1x128xf32>
    %405 = tpu.matmul %402, %404, %cst_118 {dimension_numbers = #tpu.dot_dimension_numbers<[1], [0], [0], [1], [0, 0, 1, 1], [], []>} : vector<1x128xf32>, vector<128x128xf32>, vector<1x128xf32> -> vector<1x128xf32>
    %406 = arith.addf %401, %405 : vector<1x128xf32>
    %407 = vector.extract_strided_slice %353 {offsets = [2, 0], sizes = [1, 128], strides = [1, 1]} : vector<8x128xf32> to vector<1x128xf32>
    %c10 = arith.constant 10 : index
    %c0_119 = arith.constant 0 : index
    %c0_120 = arith.constant 0 : index
    %408 = vector.load %arg9[%c10, %c0_119, %c0_120] : memref<16x128x128xf32, #tpu.memory_space<vmem>>, vector<1x128x128xf32>
    %409 = vector.shape_cast %408 : vector<1x128x128xf32> to vector<128x128xf32>
    %cst_121 = arith.constant dense<0.000000e+00> : vector<1x128xf32>
    %410 = tpu.matmul %407, %409, %cst_121 {dimension_numbers = #tpu.dot_dimension_numbers<[1], [0], [0], [1], [0, 0, 1, 1], [], []>} : vector<1x128xf32>, vector<128x128xf32>, vector<1x128xf32> -> vector<1x128xf32>
    %411 = arith.addf %406, %410 : vector<1x128xf32>
    %412 = vector.extract_strided_slice %353 {offsets = [3, 0], sizes = [1, 128], strides = [1, 1]} : vector<8x128xf32> to vector<1x128xf32>
    %c11 = arith.constant 11 : index
    %c0_122 = arith.constant 0 : index
    %c0_123 = arith.constant 0 : index
    %413 = vector.load %arg9[%c11, %c0_122, %c0_123] : memref<16x128x128xf32, #tpu.memory_space<vmem>>, vector<1x128x128xf32>
    %414 = vector.shape_cast %413 : vector<1x128x128xf32> to vector<128x128xf32>
    %cst_124 = arith.constant dense<0.000000e+00> : vector<1x128xf32>
    %415 = tpu.matmul %412, %414, %cst_124 {dimension_numbers = #tpu.dot_dimension_numbers<[1], [0], [0], [1], [0, 0, 1, 1], [], []>} : vector<1x128xf32>, vector<128x128xf32>, vector<1x128xf32> -> vector<1x128xf32>
    %416 = arith.addf %411, %415 : vector<1x128xf32>
    %417 = vector.extract_strided_slice %353 {offsets = [4, 0], sizes = [1, 128], strides = [1, 1]} : vector<8x128xf32> to vector<1x128xf32>
    %c12 = arith.constant 12 : index
    %c0_125 = arith.constant 0 : index
    %c0_126 = arith.constant 0 : index
    %418 = vector.load %arg9[%c12, %c0_125, %c0_126] : memref<16x128x128xf32, #tpu.memory_space<vmem>>, vector<1x128x128xf32>
    %419 = vector.shape_cast %418 : vector<1x128x128xf32> to vector<128x128xf32>
    %cst_127 = arith.constant dense<0.000000e+00> : vector<1x128xf32>
    %420 = tpu.matmul %417, %419, %cst_127 {dimension_numbers = #tpu.dot_dimension_numbers<[1], [0], [0], [1], [0, 0, 1, 1], [], []>} : vector<1x128xf32>, vector<128x128xf32>, vector<1x128xf32> -> vector<1x128xf32>
    %421 = arith.addf %416, %420 : vector<1x128xf32>
    %422 = vector.extract_strided_slice %353 {offsets = [5, 0], sizes = [1, 128], strides = [1, 1]} : vector<8x128xf32> to vector<1x128xf32>
    %c13 = arith.constant 13 : index
    %c0_128 = arith.constant 0 : index
    %c0_129 = arith.constant 0 : index
    %423 = vector.load %arg9[%c13, %c0_128, %c0_129] : memref<16x128x128xf32, #tpu.memory_space<vmem>>, vector<1x128x128xf32>
    %424 = vector.shape_cast %423 : vector<1x128x128xf32> to vector<128x128xf32>
    %cst_130 = arith.constant dense<0.000000e+00> : vector<1x128xf32>
    %425 = tpu.matmul %422, %424, %cst_130 {dimension_numbers = #tpu.dot_dimension_numbers<[1], [0], [0], [1], [0, 0, 1, 1], [], []>} : vector<1x128xf32>, vector<128x128xf32>, vector<1x128xf32> -> vector<1x128xf32>
    %426 = arith.addf %421, %425 : vector<1x128xf32>
    %427 = vector.extract_strided_slice %353 {offsets = [6, 0], sizes = [1, 128], strides = [1, 1]} : vector<8x128xf32> to vector<1x128xf32>
    %c14 = arith.constant 14 : index
    %c0_131 = arith.constant 0 : index
    %c0_132 = arith.constant 0 : index
    %428 = vector.load %arg9[%c14, %c0_131, %c0_132] : memref<16x128x128xf32, #tpu.memory_space<vmem>>, vector<1x128x128xf32>
    %429 = vector.shape_cast %428 : vector<1x128x128xf32> to vector<128x128xf32>
    %cst_133 = arith.constant dense<0.000000e+00> : vector<1x128xf32>
    %430 = tpu.matmul %427, %429, %cst_133 {dimension_numbers = #tpu.dot_dimension_numbers<[1], [0], [0], [1], [0, 0, 1, 1], [], []>} : vector<1x128xf32>, vector<128x128xf32>, vector<1x128xf32> -> vector<1x128xf32>
    %431 = arith.addf %426, %430 : vector<1x128xf32>
    %432 = vector.extract_strided_slice %353 {offsets = [7, 0], sizes = [1, 128], strides = [1, 1]} : vector<8x128xf32> to vector<1x128xf32>
    %c15 = arith.constant 15 : index
    %c0_134 = arith.constant 0 : index
    %c0_135 = arith.constant 0 : index
    %433 = vector.load %arg9[%c15, %c0_134, %c0_135] : memref<16x128x128xf32, #tpu.memory_space<vmem>>, vector<1x128x128xf32>
    %434 = vector.shape_cast %433 : vector<1x128x128xf32> to vector<128x128xf32>
    %cst_136 = arith.constant dense<0.000000e+00> : vector<1x128xf32>
    %435 = tpu.matmul %432, %434, %cst_136 {dimension_numbers = #tpu.dot_dimension_numbers<[1], [0], [0], [1], [0, 0, 1, 1], [], []>} : vector<1x128xf32>, vector<128x128xf32>, vector<1x128xf32> -> vector<1x128xf32>
    %436 = arith.addf %431, %435 : vector<1x128xf32>
    %cst_137 = arith.constant 0.000000e+00 : f32
    %437 = vector.broadcast %cst_137 : f32 to vector<1x128xf32>
    %438 = arith.maximumf %436, %437 : vector<1x128xf32>
    %c0_138 = arith.constant 0 : index
    %c0_139 = arith.constant 0 : index
    %439 = vector.load %arg11[%c0_138, %c0_139] : memref<128x4xf32, #tpu.memory_space<vmem>>, vector<128x4xf32>
    %cst_140 = arith.constant dense<0.000000e+00> : vector<1x4xf32>
    %440 = tpu.matmul %438, %439, %cst_140 {dimension_numbers = #tpu.dot_dimension_numbers<[1], [0], [0], [1], [0, 0, 1, 1], [], []>} : vector<1x128xf32>, vector<128x4xf32>, vector<1x4xf32> -> vector<1x4xf32>
    %c0_141 = arith.constant 0 : index
    %c0_142 = arith.constant 0 : index
    %441 = vector.load %arg12[%c0_141, %c0_142] : memref<1x4xf32, #tpu.memory_space<vmem>>, vector<1x4xf32>
    %442 = arith.addf %440, %441 : vector<1x4xf32>
    %c0_143 = arith.constant 0 : index
    %c0_144 = arith.constant 0 : index
    %c0_145 = arith.constant 0 : index
    %443 = vector.load %arg13[%c0_143, %c0_144, %c0_145] : memref<1x1x4xf32, #tpu.memory_space<vmem>>, vector<1x1x4xf32>
    %444 = vector.shape_cast %443 : vector<1x1x4xf32> to vector<1x4xf32>
    %445 = vector.shape_cast %442 : vector<1x4xf32> to vector<1x1x4xf32>
    tpu.vector_store %arg13[%c0_143, %c0_144, %c0_145], %445 {strides = array<i32>} : memref<1x1x4xf32, #tpu.memory_space<vmem>>, vector<1x1x4xf32>,
    return
  }
  func.func @transform_0(%arg0: i32) -> (i32, i32, i32, i32) {
    %c0_i32 = arith.constant 0 : i32
    %c0_i32_0 = arith.constant 0 : i32
    %c0_i32_1 = arith.constant 0 : i32
    %c0_i32_2 = arith.constant 0 : i32
    return %arg0, %c0_i32, %c0_i32_0, %c0_i32_1 : i32, i32, i32, i32
  }
  func.func @transform_1(%arg0: i32) -> (i32, i32, i32, i32) {
    %c0_i32 = arith.constant 0 : i32
    %c0_i32_0 = arith.constant 0 : i32
    %c0_i32_1 = arith.constant 0 : i32
    %c0_i32_2 = arith.constant 0 : i32
    return %arg0, %c0_i32, %c0_i32_0, %c0_i32_1 : i32, i32, i32, i32
  }
  func.func @transform_2(%arg0: i32) -> (i32, i32, i32, i32) {
    %c0_i32 = arith.constant 0 : i32
    %c0_i32_0 = arith.constant 0 : i32
    %c0_i32_1 = arith.constant 0 : i32
    %c0_i32_2 = arith.constant 0 : i32
    return %arg0, %c0_i32, %c0_i32_0, %c0_i32_1 : i32, i32, i32, i32
  }
  func.func @transform_3(%arg0: i32) -> (i32, i32, i32, i32) {
    %c0_i32 = arith.constant 0 : i32
    %c0_i32_0 = arith.constant 0 : i32
    %c0_i32_1 = arith.constant 0 : i32
    %c0_i32_2 = arith.constant 0 : i32
    return %arg0, %c0_i32, %c0_i32_0, %c0_i32_1 : i32, i32, i32, i32
  }
  func.func @transform_4(%arg0: i32) -> (i32, i32, i32, i32) {
    %c0_i32 = arith.constant 0 : i32
    %c0_i32_0 = arith.constant 0 : i32
    %c0_i32_1 = arith.constant 0 : i32
    %c0_i32_2 = arith.constant 0 : i32
    return %arg0, %c0_i32, %c0_i32_0, %c0_i32_1 : i32, i32, i32, i32
  }
  func.func @transform_5(%arg0: i32) -> (i32, i32, i32, i32) {
    %c0_i32 = arith.constant 0 : i32
    %c0_i32_0 = arith.constant 0 : i32
    %c0_i32_1 = arith.constant 0 : i32
    %c0_i32_2 = arith.constant 0 : i32
    return %arg0, %c0_i32, %c0_i32_0, %c0_i32_1 : i32, i32, i32, i32
  }
  func.func @transform_6(%arg0: i32) -> (i32, i32) {
    %c0_i32 = arith.constant 0 : i32
    %c0_i32_0 = arith.constant 0 : i32
    %c0_i32_1 = arith.constant 0 : i32
    return %c0_i32, %c0_i32_0 : i32, i32
  }
  func.func @transform_7(%arg0: i32) -> (i32, i32) {
    %c0_i32 = arith.constant 0 : i32
    %c0_i32_0 = arith.constant 0 : i32
    %c0_i32_1 = arith.constant 0 : i32
    return %c0_i32, %c0_i32_0 : i32, i32
  }
  func.func @transform_8(%arg0: i32) -> (i32, i32, i32) {
    %c0_i32 = arith.constant 0 : i32
    %c0_i32_0 = arith.constant 0 : i32
    %c0_i32_1 = arith.constant 0 : i32
    %c0_i32_2 = arith.constant 0 : i32
    return %c0_i32, %c0_i32_0, %c0_i32_1 : i32, i32, i32
  }
  func.func @transform_9(%arg0: i32) -> (i32, i32) {
    %c0_i32 = arith.constant 0 : i32
    %c0_i32_0 = arith.constant 0 : i32
    %c0_i32_1 = arith.constant 0 : i32
    return %c0_i32, %c0_i32_0 : i32, i32
  }
  func.func @transform_10(%arg0: i32) -> (i32, i32) {
    %c0_i32 = arith.constant 0 : i32
    %c0_i32_0 = arith.constant 0 : i32
    %c0_i32_1 = arith.constant 0 : i32
    return %c0_i32, %c0_i32_0 : i32, i32
  }
  func.func @transform_11(%arg0: i32) -> (i32, i32) {
    %c0_i32 = arith.constant 0 : i32
    %c0_i32_0 = arith.constant 0 : i32
    %c0_i32_1 = arith.constant 0 : i32
    return %c0_i32, %c0_i32_0 : i32, i32
  }
  func.func @transform_12(%arg0: i32) -> (i32, i32, i32) {
    %c0_i32 = arith.constant 0 : i32
    %c0_i32_0 = arith.constant 0 : i32
    %c0_i32_1 = arith.constant 0 : i32
    return %arg0, %c0_i32, %c0_i32_0 : i32, i32, i32
  }
}

</mosaic_0001>

<bundles_post_ra>
// kernel: patchnet_forward.2
= control target key start
LH: loop header
LB: loop body
LE: loop exit
PB: predicated region body
PF: predicated region fallthrough
CT: control target
= control target key end

     0   :  { %s3754_s0 = inlined_call_operand.hbm [shape: f32[2,17], index: 0, kind: input, shape index: {}]   ;;  %s3755_s1 = inlined_call_operand.vmem [shape: f32[16,128], index: 1, kind: input, shape index: {}]   ;;  %s3756_s2 = inlined_call_operand.hbm [shape: f32[17,128], index: 2, kind: input, shape index: {}]   ;;  %s3757_s3 = inlined_call_operand.hbm [shape: f32[1,128], index: 3, kind: input, shape index: {}]   ;;  %s3758_s4 = inlined_call_operand.hbm [shape: f32[128,384], index: 4, kind: input, shape index: {}]   ;;  %s3759_s5 = inlined_call_operand.hbm [shape: f32[1,384], index: 5, kind: input, shape index: {}]   ;;  %s3760_s6 = inlined_call_operand.hbm [shape: f32[128,128], index: 6, kind: input, shape index: {}]   ;;  %s3761_s7 = inlined_call_operand.hbm [shape: f32[1,128], index: 7, kind: input, shape index: {}]   ;;  %s3762_s8 = inlined_call_operand.hbm [shape: f32[2,128], index: 8, kind: input, shape index: {}]   ;;  %s3763_s9 = inlined_call_operand.hbm [shape: f32[128,256], index: 9, kind: input, shape index: {}]   ;;  %s3764_s10 = inlined_call_operand.hbm [shape: f32[1,256], index: 10, kind: input, shape index: {}]   ;;  %s3765_s11 = inlined_call_operand.hbm [shape: f32[256,128], index: 11, kind: input, shape index: {}]   ;;  %s3766_s12 = inlined_call_operand.hbm [shape: f32[1,128], index: 12, kind: input, shape index: {}]   ;;  %s3767_s13 = inlined_call_operand.hbm [shape: f32[2,128], index: 13, kind: input, shape index: {}]   ;;  %s3768_s14 = inlined_call_operand.hbm [shape: f32[4,128,128], index: 14, kind: input, shape index: {}]   ;;  %s3769_s15 = inlined_call_operand.hbm [shape: f32[4,128], index: 15, kind: input, shape index: {}]   ;;  %s3770_s16 = inlined_call_operand.vmem [shape: f32[2,128], index: 16, kind: output, shape index: {0}]   ;;  %s3771_s17 = inlined_call_operand.vmem [shape: f32[16,128], index: 17, kind: output, shape index: {1}]   ;;  %s3772_s18 = inlined_call_operand.vmem [shape: f32[16,128], index: 18, kind: output, shape index: {2}]   ;;  %s3773_s19 = inlined_call_operand.vmem [shape: f32[2,128], index: 19, kind: output, shape index: {3}]   ;;  %s3774_s20 = inlined_call_operand.vmem [shape: f32[2,128], index: 20, kind: output, shape index: {4}]  }
   0x1   :  { %3784 = sst [smem:[#allocation33_spill]] %s3754_s0 }
   0x2   :  { %3785 = sst [smem:[#allocation34_spill]] %s3755_s1 }
   0x3   :  { %3786 = sst [smem:[#allocation35_spill]] %s3756_s2 }
   0x4   :  { %3787 = sst [smem:[#allocation36_spill]] %s3757_s3 }
   0x5   :  { %3788 = sst [smem:[#allocation37_spill]] %s3758_s4 }
   0x6   :  { %3789 = sst [smem:[#allocation38_spill]] %s3773_s19 }
   0x7   :  { %3790 = sst [smem:[#allocation39_spill]] %s3774_s20 }
   0x8   :  { %26 = vsyncpa [#allocation3], 0 }
   0x9   :  { %27 = vsyncpa [#allocation5], 0 }
   0xa   :  { %28 = vsyncpa [#allocation8], 0 }
   0xb   :  { %29 = vsyncpa [#allocation11], 0 }
   0xc   :  { %30 = vsyncpa [#allocation14], 0 }
   0xd   :  { %31 = vsyncpa [#allocation17], 0 }
   0xe   :  { %32 = vsyncpa [#allocation20], 0 }
   0xf   :  { %33 = vsyncpa [#allocation23], 0  ;;  %s3198_s1 = smov [#allocation4]   ;;  %s3791_s2 = sld [smem:[#allocation35_spill]] }
  0x10   :  { %s51_s22 = sshll.u32 %s3198_s1, 4  ;;  %s52_s22 = int_to_ptr.vmem [resolvable:$true] %s51_s22 }
  0x15   :  { %s2852_s25 = scalar_lea.hbm %s3791_s2, 384 }
  0x16   :  { %p2853_p0 = scmp.ne.s32.totalorder %s3791_s2, %s2852_s25  ;;  %p2856_p1 = scmp.lt.u32.totalorder %s2852_s25, %s3791_s2 }
  0x18   :  { %p2858_p2 = pnand %p2856_p1, %p2853_p0 }
  0x1a   :  { %2861 = shalt.err (!%p2858_p2)
}
  0x1b   :  { %s2862_s4 = scalar_lea.vmem %s52_s22, 384  ;;  %p2867_p4 = scmp.lt.s32.totalorder %s52_s22, %s52_s22 }
  0x1c   :  { %p2863_p3 = scmp.ne.s32.totalorder %s52_s22, %s2862_s4  ;;  %p2868_p5 = scmp.lt.s32.totalorder %s2862_s4, %s2862_s4 }
  0x1e   :  { %p2869_p6 = por %p2868_p5, %p2867_p4 }
  0x20   :  { %p2870_p7 = pnand %p2869_p6, %p2863_p3 }
  0x22   :  { %2873 = shalt.err (!%p2870_p7)
}
  0x23   :  { %s3780_s29 = smov 128   ;;  %s3782_s30 = smov 8  }
  0x24   :  { %57 = dma.hbm_to_vmem [thread:$0]  %s3791_s2, 384, %s52_s22, [#allocation5], %s3780_s29, %s3780_s29, %s3782_s30  }
  0x25   :  { %s3201_s1 = smov [#allocation7]   ;;  %s3792_s3 = sld [smem:[#allocation37_spill]] }
  0x26   :  { %s73_s23 = sshll.u32 %s3201_s1, 4  ;;  %s74_s23 = int_to_ptr.vmem [resolvable:$true] %s73_s23 }
  0x2b   :  { %s2874_s26 = scalar_lea.hbm %s3792_s3, 6144 }
  0x2c   :  { %p2875_p8 = scmp.ne.s32.totalorder %s3792_s3, %s2874_s26  ;;  %p2878_p9 = scmp.lt.u32.totalorder %s2874_s26, %s3792_s3 }
  0x2e   :  { %p2880_p10 = pnand %p2878_p9, %p2875_p8 }
  0x30   :  { %2883 = shalt.err (!%p2880_p10)
}
  0x31   :  { %s2884_s19 = scalar_lea.vmem %s74_s23, 6144  ;;  %p2889_p12 = scmp.lt.s32.totalorder %s74_s23, %s74_s23 }
  0x32   :  { %p2885_p11 = scmp.ne.s32.totalorder %s74_s23, %s2884_s19  ;;  %p2890_p13 = scmp.lt.s32.totalorder %s2884_s19, %s2884_s19 }
  0x34   :  { %p2891_p0 = por %p2890_p13, %p2889_p12 }
  0x36   :  { %p2892_p1 = pnand %p2891_p0, %p2885_p11 }
  0x38   :  { %2895 = shalt.err (!%p2892_p1)
}
  0x39   :  { %s3202_s22 = smov 384   ;;  %s3203_s2 = smov 24  }
  0x3a   :  { %79 = dma.hbm_to_vmem [thread:$0]  %s3792_s3, 6144, %s74_s23, [#allocation8], %s3202_s22, %s3202_s22, %s3203_s2  }
  0x3b   :  { %s3204_s1 = smov [#allocation10]   ;;  %s3205_s25 = smov [#allocation13]  }
  0x3c   :  { %s95_s24 = sshll.u32 %s3204_s1, 4  ;;  %s118_s20 = sshll.u32 %s3205_s25, 4  ;;  %s96_s24 = int_to_ptr.vmem [resolvable:$true] %s95_s24  ;;  %s119_s20 = int_to_ptr.vmem [resolvable:$true] %s118_s20 }
  0x3d   :  { %s2896_s28 = scalar_lea.hbm %s3760_s6, 2048 }
  0x3e   :  { %p2897_p2 = scmp.ne.s32.totalorder %s3760_s6, %s2896_s28  ;;  %p2900_p3 = scmp.lt.u32.totalorder %s2896_s28, %s3760_s6 }
  0x40   :  { %p2902_p4 = pnand %p2900_p3, %p2897_p2 }
  0x42   :  { %2905 = shalt.err (!%p2902_p4)
}
  0x43   :  { %s2906_s23 = scalar_lea.vmem %s96_s24, 2048  ;;  %p2911_p6 = scmp.lt.s32.totalorder %s96_s24, %s96_s24 }
  0x44   :  { %p2907_p5 = scmp.ne.s32.totalorder %s96_s24, %s2906_s23  ;;  %p2912_p7 = scmp.lt.s32.totalorder %s2906_s23, %s2906_s23 }
  0x46   :  { %p2913_p8 = por %p2912_p7, %p2911_p6 }
  0x48   :  { %p2914_p9 = pnand %p2913_p8, %p2907_p5 }
  0x4a   :  { %2917 = shalt.err (!%p2914_p9)
}
  0x4b   :  { %s3793_s3 = smov 8   ;;  %s3794_s22 = smov 128  }
  0x4c   :  { %101 = dma.hbm_to_vmem [thread:$0]  %s3760_s6, 2048, %s96_s24, [#allocation11], %s3794_s22, %s3794_s22, %s3793_s3  }
  0x4d   :  { %s2918_s29 = scalar_lea.hbm %s3762_s8, 32 }
  0x4e   :  { %p2919_p10 = scmp.ne.s32.totalorder %s3762_s8, %s2918_s29  ;;  %p2922_p11 = scmp.lt.u32.totalorder %s2918_s29, %s3762_s8 }
  0x50   :  { %p2924_p12 = pnand %p2922_p11, %p2919_p10 }
  0x52   :  { %2927 = shalt.err (!%p2924_p12)
}
  0x53   :  { %s2928_s28 = scalar_lea.vmem %s119_s20, 32  ;;  %p2933_p0 = scmp.lt.s32.totalorder %s119_s20, %s119_s20 }
  0x54   :  { %p2929_p13 = scmp.ne.s32.totalorder %s119_s20, %s2928_s28  ;;  %p2934_p1 = scmp.lt.s32.totalorder %s2928_s28, %s2928_s28 }
  0x56   :  { %p2935_p2 = por %p2934_p1, %p2933_p0 }
  0x58   :  { %p2936_p3 = pnand %p2935_p2, %p2929_p13 }
  0x5a   :  { %2939 = shalt.err (!%p2936_p3)
}
  0x5b   :  { %121 = dma.hbm_to_vmem [thread:$0]  %s3762_s8, 32, %s119_s20, [#allocation14]  }
  0x5c   :  { %s3206_s19 = smov [#allocation16]   ;;  %s3207_s23 = smov [#allocation19]  }
  0x5d   :  { %s140_s4 = sshll.u32 %s3206_s19, 4  ;;  %s162_s2 = sshll.u32 %s3207_s23, 4  ;;  %s141_s4 = int_to_ptr.vmem [resolvable:$true] %s140_s4  ;;  %s163_s2 = int_to_ptr.vmem [resolvable:$true] %s162_s2 }
  0x5e   :  { %s2940_s1 = scalar_lea.hbm %s3764_s10, 32 }
  0x5f   :  { %p2941_p4 = scmp.ne.s32.totalorder %s3764_s10, %s2940_s1  ;;  %p2944_p5 = scmp.lt.u32.totalorder %s2940_s1, %s3764_s10 }
  0x61   :  { %p2946_p6 = pnand %p2944_p5, %p2941_p4 }
  0x63   :  { %2949 = shalt.err (!%p2946_p6)
}
  0x64   :  { %s2950_s8 = scalar_lea.vmem %s141_s4, 32  ;;  %p2955_p8 = scmp.lt.s32.totalorder %s141_s4, %s141_s4 }
  0x65   :  { %p2951_p7 = scmp.ne.s32.totalorder %s141_s4, %s2950_s8  ;;  %p2956_p9 = scmp.lt.s32.totalorder %s2950_s8, %s2950_s8 }
  0x67   :  { %p2957_p10 = por %p2956_p9, %p2955_p8 }
  0x69   :  { %p2958_p11 = pnand %p2957_p10, %p2951_p7 }
  0x6b   :  { %2961 = shalt.err (!%p2958_p11)
}
  0x6c   :  { %143 = dma.hbm_to_vmem [thread:$0]  %s3764_s10, 32, %s141_s4, [#allocation17]  }
  0x6d   :  { %s2962_s24 = scalar_lea.hbm %s3766_s12, 16 }
  0x6e   :  { %p2963_p12 = scmp.ne.s32.totalorder %s3766_s12, %s2962_s24  ;;  %p2966_p13 = scmp.lt.u32.totalorder %s2962_s24, %s3766_s12 }
  0x70   :  { %p2968_p0 = pnand %p2966_p13, %p2963_p12 }
  0x72   :  { %2971 = shalt.err (!%p2968_p0)
}
  0x73   :  { %s2972_s1 = scalar_lea.vmem %s163_s2, 16  ;;  %s2976_s29 = scalar_lea.vmem %s163_s2, 32 }
  0x74   :  { %p2973_p1 = scmp.ne.s32.totalorder %s163_s2, %s2972_s1  ;;  %p2977_p2 = scmp.lt.s32.totalorder %s163_s2, %s163_s2 }
  0x75   :  { %p2978_p3 = scmp.lt.s32.totalorder %s2976_s29, %s2972_s1 }
  0x77   :  { %p2979_p4 = por %p2978_p3, %p2977_p2 }
  0x79   :  { %p2980_p5 = pnand %p2979_p4, %p2973_p1 }
  0x7b   :  { %2983 = shalt.err (!%p2980_p5)
}
  0x7c   :  { %165 = dma.hbm_to_vmem [thread:$0]  %s3766_s12, 16, %s163_s2, [#allocation20]  }
  0x7d   :  { %s3208_s30 = smov [#allocation22]   ;;  %s3209_s26 = smov [#allocation2]  }
  0x7e   :  { %s181_s25 = sshll.u32 %s3208_s30, 4  ;;  %s40_s8 = sshll.u32 %s3209_s26, 4  ;;  %s182_s25 = int_to_ptr.vmem [resolvable:$true] %s181_s25  ;;  %s41_s8 = int_to_ptr.vmem [resolvable:$true] %s40_s8 }
  0x7f   :  { %s2984_s28 = scalar_lea.hbm %s3768_s14, 8192 }
  0x80   :  { %p2985_p6 = scmp.ne.s32.totalorder %s3768_s14, %s2984_s28  ;;  %p2988_p7 = scmp.lt.u32.totalorder %s2984_s28, %s3768_s14 }
  0x82   :  { %p2990_p8 = pnand %p2988_p7, %p2985_p6 }
  0x84   :  { %2993 = shalt.err (!%p2990_p8)
}
  0x85   :  { %s2994_s12 = scalar_lea.vmem %s182_s25, 8192  ;;  %p2999_p10 = scmp.lt.s32.totalorder %s182_s25, %s182_s25 }
  0x86   :  { %p2995_p9 = scmp.ne.s32.totalorder %s182_s25, %s2994_s12  ;;  %p3000_p11 = scmp.lt.s32.totalorder %s2994_s12, %s2994_s12 }
  0x88   :  { %p3001_p12 = por %p3000_p11, %p2999_p10 }
  0x8a   :  { %p3002_p13 = pnand %p3001_p12, %p2995_p9 }
  0x8c   :  { %3005 = shalt.err (!%p3002_p13)
}
  0x8d   :  { %187 = dma.hbm_to_vmem [thread:$0]  %s3768_s14, 8192, %s182_s25, [#allocation23], %s3794_s22, %s3794_s22, %s3793_s3  }
  0x8e   :  { %s3795_s29 = sld [smem:[#allocation33_spill]] }
  0x94   :  { %s3006_s10 = scalar_lea.hbm %s3795_s29, 32 }
  0x95   :  { %p3007_p0 = scmp.ne.s32.totalorder %s3795_s29, %s3006_s10  ;;  %p3010_p1 = scmp.lt.u32.totalorder %s3006_s10, %s3795_s29 }
  0x97   :  { %p3012_p2 = pnand %p3010_p1, %p3007_p0 }
  0x99   :  { %3015 = shalt.err (!%p3012_p2)
}
  0x9a   :  { %s3016_s27 = scalar_lea.vmem %s41_s8, 32  ;;  %p3021_p4 = scmp.lt.s32.totalorder %s41_s8, %s41_s8 }
  0x9b   :  { %p3017_p3 = scmp.ne.s32.totalorder %s41_s8, %s3016_s27  ;;  %p3022_p5 = scmp.lt.s32.totalorder %s3016_s27, %s3016_s27 }
  0x9d   :  { %p3023_p6 = por %p3022_p5, %p3021_p4 }
  0x9f   :  { %p3024_p7 = pnand %p3023_p6, %p3017_p3 }
  0xa1   :  { %3027 = shalt.err (!%p3024_p7)
}
  0xa2   :  { %43 = dma.hbm_to_vmem [thread:$0]  %s3795_s29, 32, %s41_s8, [#allocation3]  }
  0xa3   :  { %s3210_s28 = smov [#allocation6]   ;;  %s3211_s24 = smov [#allocation9]  }
  0xa4   :  { %s64_s6 = sshll.u32 %s3210_s28, 4  ;;  %s86_s19 = sshll.u32 %s3211_s24, 4  ;;  %s65_s6 = int_to_ptr.vmem [resolvable:$true] %s64_s6  ;;  %s87_s19 = int_to_ptr.vmem [resolvable:$true] %s86_s19 }
  0xa5   :  { %s3796_s2 = sld [smem:[#allocation36_spill]] }
  0xab   :  { %s3028_s0 = scalar_lea.hbm %s3796_s2, 16 }
  0xac   :  { %p3029_p8 = scmp.ne.s32.totalorder %s3796_s2, %s3028_s0  ;;  %p3032_p9 = scmp.lt.u32.totalorder %s3028_s0, %s3796_s2 }
  0xae   :  { %p3034_p10 = pnand %p3032_p9, %p3029_p8 }
  0xb0   :  { %3037 = shalt.err (!%p3034_p10)
}
  0xb1   :  { %s3038_s8 = scalar_lea.vmem %s65_s6, 16  ;;  %s3042_s29 = scalar_lea.vmem %s65_s6, 32 }
  0xb2   :  { %p3039_p11 = scmp.ne.s32.totalorder %s65_s6, %s3038_s8  ;;  %p3043_p12 = scmp.lt.s32.totalorder %s65_s6, %s65_s6 }
  0xb3   :  { %p3044_p13 = scmp.lt.s32.totalorder %s3042_s29, %s3038_s8 }
  0xb5   :  { %p3045_p0 = por %p3044_p13, %p3043_p12 }
  0xb7   :  { %p3046_p1 = pnand %p3045_p0, %p3039_p11 }
  0xb9   :  { %3049 = shalt.err (!%p3046_p1)
}
  0xba   :  { %67 = dma.hbm_to_vmem [thread:$0]  %s3796_s2, 16, %s65_s6, [#allocation5]  }
  0xbb   :  { %s3050_s14 = scalar_lea.hbm %s3759_s5, 48 }
  0xbc   :  { %p3051_p2 = scmp.ne.s32.totalorder %s3759_s5, %s3050_s14  ;;  %p3054_p3 = scmp.lt.u32.totalorder %s3050_s14, %s3759_s5 }
  0xbe   :  { %p3056_p4 = pnand %p3054_p3, %p3051_p2 }
  0xc0   :  { %3059 = shalt.err (!%p3056_p4)
}
  0xc1   :  { %s3060_s12 = scalar_lea.vmem %s87_s19, 48  ;;  %s3064_s0 = scalar_lea.vmem %s87_s19, 64 }
  0xc2   :  { %p3061_p5 = scmp.ne.s32.totalorder %s87_s19, %s3060_s12  ;;  %p3065_p6 = scmp.lt.s32.totalorder %s87_s19, %s87_s19 }
  0xc3   :  { %p3066_p7 = scmp.lt.s32.totalorder %s3064_s0, %s3060_s12 }
  0xc5   :  { %p3067_p8 = por %p3066_p7, %p3065_p6 }
  0xc7   :  { %p3068_p9 = pnand %p3067_p8, %p3061_p5 }
  0xc9   :  { %3071 = shalt.err (!%p3068_p9)
}
  0xca   :  { %89 = dma.hbm_to_vmem [thread:$0]  %s3759_s5, 48, %s87_s19, [#allocation8]  }
  0xcb   :  { %s3212_s21 = smov [#allocation12]   ;;  %s3213_s10 = smov [#allocation15]  }
  0xcc   :  { %s108_s1 = sshll.u32 %s3212_s21, 4  ;;  %s127_s4 = sshll.u32 %s3213_s10, 4  ;;  %s109_s1 = int_to_ptr.vmem [resolvable:$true] %s108_s1  ;;  %s3462_s4 = int_to_ptr.vmem [resolvable:$true] %s127_s4 }
  0xcd   :  { %s3072_s30 = scalar_lea.hbm %s3761_s7, 16 }
  0xce   :  { %p3073_p10 = scmp.ne.s32.totalorder %s3761_s7, %s3072_s30  ;;  %p3076_p11 = scmp.lt.u32.totalorder %s3072_s30, %s3761_s7 }
  0xd0   :  { %p3078_p12 = pnand %p3076_p11, %p3073_p10 }
  0xd2   :  { %3081 = shalt.err (!%p3078_p12)
}
  0xd3   :  { %s3082_s5 = scalar_lea.vmem %s109_s1, 16  ;;  %s3086_s19 = scalar_lea.vmem %s109_s1, 32 }
  0xd4   :  { %p3083_p13 = scmp.ne.s32.totalorder %s109_s1, %s3082_s5  ;;  %p3087_p0 = scmp.lt.s32.totalorder %s109_s1, %s109_s1 }
  0xd5   :  { %p3088_p1 = scmp.lt.s32.totalorder %s3086_s19, %s3082_s5 }
  0xd7   :  { %p3089_p2 = por %p3088_p1, %p3087_p0 }
  0xd9   :  { %p3090_p3 = pnand %p3089_p2, %p3083_p13 }
  0xdb   :  { %3093 = shalt.err (!%p3090_p3)
}
  0xdc   :  { %111 = dma.hbm_to_vmem [thread:$0]  %s3761_s7, 16, %s109_s1, [#allocation11]  }
  0xdd   :  { %s3094_s12 = scalar_lea.hbm %s3763_s9, 4096 }
  0xde   :  { %p3095_p4 = scmp.ne.s32.totalorder %s3763_s9, %s3094_s12  ;;  %p3098_p5 = scmp.lt.u32.totalorder %s3094_s12, %s3763_s9 }
  0xe0   :  { %p3100_p6 = pnand %p3098_p5, %p3095_p4 }
  0xe2   :  { %3103 = shalt.err (!%p3100_p6)
}
  0xe3   :  { %s3104_s10 = scalar_lea.vmem %s3462_s4, 4096  ;;  %p3109_p8 = scmp.lt.s32.totalorder %s3462_s4, %s3462_s4 }
  0xe4   :  { %p3105_p7 = scmp.ne.s32.totalorder %s3462_s4, %s3104_s10  ;;  %p3110_p9 = scmp.lt.s32.totalorder %s3104_s10, %s3104_s10 }
  0xe6   :  { %p3111_p10 = por %p3110_p9, %p3109_p8 }
  0xe8   :  { %p3112_p11 = pnand %p3111_p10, %p3105_p7 }
  0xea   :  { %3115 = shalt.err (!%p3112_p11)
}
  0xeb   :  { %s3214_s7 = smov 256   ;;  %s3215_s1 = smov 16  }
  0xec   :  { %133 = dma.hbm_to_vmem [thread:$0]  %s3763_s9, 4096, %s3462_s4, [#allocation14], %s3214_s7, %s3214_s7, %s3215_s1  }
  0xed   :  { %s3216_s30 = smov [#allocation18]   ;;  %s3217_s20 = smov [#allocation21]  }
  0xee   :  { %s149_s26 = sshll.u32 %s3216_s30, 4  ;;  %s172_s27 = sshll.u32 %s3217_s20, 4  ;;  %s150_s26 = int_to_ptr.vmem [resolvable:$true] %s149_s26  ;;  %s173_s27 = int_to_ptr.vmem [resolvable:$true] %s172_s27 }
  0xef   :  { %s3116_s19 = scalar_lea.hbm %s3765_s11, 4096 }
  0xf0   :  { %p3117_p12 = scmp.ne.s32.totalorder %s3765_s11, %s3116_s19  ;;  %p3120_p13 = scmp.lt.u32.totalorder %s3116_s19, %s3765_s11 }
  0xf2   :  { %p3122_p0 = pnand %p3120_p13, %p3117_p12 }
  0xf4   :  { %3125 = shalt.err (!%p3122_p0)
}
  0xf5   :  { %s3126_s9 = scalar_lea.vmem %s150_s26, 4096  ;;  %p3131_p2 = scmp.lt.s32.totalorder %s150_s26, %s150_s26 }
  0xf6   :  { %p3127_p1 = scmp.ne.s32.totalorder %s150_s26, %s3126_s9  ;;  %p3132_p3 = scmp.lt.s32.totalorder %s3126_s9, %s3126_s9 }
  0xf8   :  { %p3133_p4 = por %p3132_p3, %p3131_p2 }
  0xfa   :  { %p3134_p5 = pnand %p3133_p4, %p3127_p1 }
  0xfc   :  { %3137 = shalt.err (!%p3134_p5)
}
  0xfd   :  { %155 = dma.hbm_to_vmem [thread:$0]  %s3765_s11, 4096, %s150_s26, [#allocation17], %s3794_s22, %s3794_s22, %s3793_s3  }
  0xfe   :  { %s3138_s2 = scalar_lea.hbm %s3767_s13, 32 }
  0xff   :  { %p3139_p6 = scmp.ne.s32.totalorder %s3767_s13, %s3138_s2  ;;  %p3142_p7 = scmp.lt.u32.totalorder %s3138_s2, %s3767_s13 }
 0x101   :  { %p3144_p8 = pnand %p3142_p7, %p3139_p6 }
 0x103   :  { %3147 = shalt.err (!%p3144_p8)
}
 0x104   :  { %s3148_s29 = scalar_lea.vmem %s173_s27, 32  ;;  %p3153_p10 = scmp.lt.s32.totalorder %s173_s27, %s173_s27 }
 0x105   :  { %p3149_p9 = scmp.ne.s32.totalorder %s173_s27, %s3148_s29  ;;  %p3154_p11 = scmp.lt.s32.totalorder %s3148_s29, %s3148_s29 }
 0x107   :  { %p3155_p12 = por %p3154_p11, %p3153_p10 }
 0x109   :  { %p3156_p13 = pnand %p3155_p12, %p3149_p9 }
 0x10b   :  { %3159 = shalt.err (!%p3156_p13)
}
 0x10c   :  { %175 = dma.hbm_to_vmem [thread:$0]  %s3767_s13, 32, %s173_s27, [#allocation20]  }
 0x10d   :  { %s3218_s22 = smov [#allocation24]   ;;  %s3160_s14 = scalar_lea.hbm %s3769_s15, 64 }
 0x10e   :  { %s194_s30 = sshll.u32 %s3218_s22, 4  ;;  %p3161_p0 = scmp.ne.s32.totalorder %s3769_s15, %s3160_s14  ;;  %s195_s30 = int_to_ptr.vmem [resolvable:$true] %s194_s30 }
 0x10f   :  { %p3164_p1 = scmp.lt.u32.totalorder %s3160_s14, %s3769_s15 }
 0x111   :  { %p3166_p2 = pnand %p3164_p1, %p3161_p0 }
 0x113   :  { %3169 = shalt.err (!%p3166_p2)
}
 0x114   :  { %s3170_s24 = scalar_lea.vmem %s195_s30, 64  ;;  %p3175_p4 = scmp.lt.s32.totalorder %s195_s30, %s195_s30 }
 0x115   :  { %p3171_p3 = scmp.ne.s32.totalorder %s195_s30, %s3170_s24  ;;  %p3176_p5 = scmp.lt.s32.totalorder %s3170_s24, %s3170_s24 }
 0x117   :  { %p3177_p6 = por %p3176_p5, %p3175_p4 }
 0x119   :  { %p3178_p7 = pnand %p3177_p6, %p3171_p3 }
 0x11b   :  { %3181 = shalt.err (!%p3178_p7)
}
 0x11c   :  { %197 = dma.hbm_to_vmem [thread:$0]  %s3769_s15, 64, %s195_s30, [#allocation23]  }
 0x11d   :  { %3182 = dma.done.wait [#allocation3], 32  }
 0x11e   :  { %3183 = vsyncadd [#allocation3], 4294967264 }
 0x11f   :  { %3184 = dma.done.wait [#allocation5], 400  }
 0x120   :  { %3185 = vsyncadd [#allocation5], 4294966896 }
 0x121   :  { %3186 = dma.done.wait [#allocation8], 6192  }
 0x122   :  { %3187 = vsyncadd [#allocation8], 4294961104 }
 0x123   :  { %3188 = dma.done.wait [#allocation11], 2064  }
 0x124   :  { %3189 = vsyncadd [#allocation11], 4294965232 }
 0x125   :  { %3190 = dma.done.wait [#allocation14], 4128  }
 0x126   :  { %3191 = vsyncadd [#allocation14], 4294963168 }
 0x127   :  { %3192 = dma.done.wait [#allocation17], 4128  }
 0x128   :  { %3193 = vsyncadd [#allocation17], 4294963168 }
 0x129   :  { %3194 = dma.done.wait [#allocation20], 48  }
 0x12a   :  { %3195 = vsyncadd [#allocation20], 4294967248 }
 0x12b   :  { %3196 = dma.done.wait [#allocation23], 8256  }
 0x12c   :  { %3197 = vsyncadd [#allocation23], 4294959040  ;;  %v3219_v0 = vmov 0.0|0.0   ;;  %vm3220_vm0 = vmmov 0   ;;  %v3221_v1 = vmov 0.0   ;;  %v244_v2 = vld [vmem:[#allocation4] sm:$0xff] }
 0x12d   :  { %2511 = vmatprep.subr.bf16.mxu0 %v3219_v0  ;;  %2277 = vmatprep.mubr.msk.f32.mxu0 %vm3220_vm0, %v3221_v1  ;;  %v245_v3 = vld [vmem:[#allocation4 + $0x8] sm:$0xff]  ;;  %v336_v6 = vld [vmem:[#allocation7 + $0x20] sm:$0xff]  ;;  %v246_v7 = vld [vmem:[#allocation4 + $0x10] sm:$0x1]  ;;  %vm258_vm1 = vcmask 1040384   ;;  %vm254_vm2 = vcmask 138240  }
 0x12e   :  { %461 = vmatprep.mubr.f32.mxu1 %v3221_v1  ;;  %v2512_v4 = vpack.c.bf16 %v245_v3, %v244_v2  ;;  %v333_v5 = vld [vmem:[#allocation7 + $0x8] sm:$0xff]  ;;  %v332_v9 = vld [vmem:[#allocation7] sm:$0xff]  ;;  %v335_v10 = vld [vmem:[#allocation7 + $0x18] sm:$0xff]  ;;  %s3222_s15 = smov 96   ;;  %s3223_s23 = smov 112   ;;  %vm543_vm3 = vcmask 123904  }
 0x12f   :  { %v2514_v8 = vpack.c.bf16 %v336_v6, %v333_v5  ;;  %v334_v11 = vld [vmem:[#allocation7 + $0x10] sm:$0xff]  ;;  %v2516_v12 = vpack.c.bf16 %v335_v10, %v332_v9  ;;  %v337_v13 = vld [vmem:[#allocation7 + $0x28] sm:$0xff]  ;;  %v339_v14 = vld [vmem:[#allocation7 + $0x38] sm:$0xff]  ;;  %s3224_s9 = smov 80   ;;  %s3225_s4 = smov 64   ;;  %vm616_vm4 = vcmask 130048  }
 0x130   :  { %2513 = vmatpush3.bf16.msra.mxu0 %v2512_v4  ;;  %v342_v15 = vld [vmem:[#allocation7 + $0x50] sm:$0xff]  ;;  %v243_v16 = vld [vmem:[#allocation2] sm:$0x3]  ;;  %v341_v19 = vld [vmem:[#allocation7 + $0x48] sm:$0xff]  ;;  %v2547_v20 = vpack.c.bf16 %v337_v13, %v334_v11  ;;  %s3226_s12 = smov 48   ;;  %s3227_s0 = smov 32  }
 0x131   :  { %2275 = vmatprep.subr.mxu0 %v3221_v1  ;;  %2515 = vmatprep.subr.bf16.mxu1 %v2514_v8  ;;  %v2518_v17 = vpack.c.bf16 %v342_v15, %v339_v14  ;;  %v338_v18 = vld [vmem:[#allocation7 + $0x30] sm:$0xff]  ;;  %v340_v22 = vld [vmem:[#allocation7 + $0x40] sm:$0xff]  ;;  %v345_v23 = vld [vmem:[#allocation7 + $0x68] sm:$0xff]  ;;  %vm1409_vm5 = vcmask 1041408   ;;  %s3797_s2 = sld [smem:[#allocation34_spill]]  ;;  %s3798_s5 = sld [smem:[#allocation38_spill]] }
 0x132   :  { %2517 = vmatpush1.bf16.msra.mxu1 %v2516_v12  ;;  %v2520_v21 = vpack.c.bf16 %v341_v19, %v338_v18  ;;  %v348_v24 = vld [vmem:[#allocation7 + $0x80] sm:$0xff]  ;;  %v343_v25 = vld [vmem:[#allocation7 + $0x58] sm:$0xff]  ;;  %v354_v30 = vld [vmem:[#allocation7 + $0xb0] sm:$0xff]  ;;  %s3799_s28 = sld [smem:[#allocation39_spill]] }
 0x133   :  { %2519 = vmatprep.subr.bf16.mxu1 %v2518_v17  ;;  %v2522_v26 = vpack.c.bf16 %v348_v24, %v345_v23  ;;  %v344_v27 = vld [vmem:[#allocation7 + $0x60] sm:$0xff]  ;;  %v347_v28 = vld [vmem:[#allocation7 + $0x78] sm:$0xff]  ;;  %v2550_v31 = vpack.c.bf16 %v343_v25, %v340_v22  ;;  %v346_v33 = vld [vmem:[#allocation7 + $0x70] sm:$0xff] }
 0x134   :  { %2276 = vmatpush3.msk.msra.mxu0 %vm258_vm1, %v246_v7  ;;  %v351_v29 = vld [vmem:[#allocation7 + $0x98] sm:$0xff]  ;;  %v2524_v32 = vpack.c.bf16 %v347_v28, %v344_v27  ;;  %v349_v34 = vld [vmem:[#allocation7 + $0x88] sm:$0xff]  ;;  %v350_v36 = vld [vmem:[#allocation7 + $0x90] sm:$0xff] }
 0x135   :  { %2278 = vmatmul.mubr.msk.f32.vlgmr.msra.gmra.mrb[0].mxu0 %vm254_vm2, %v243_v16  ;;  %2546 = vmatprep.subr.bf16.mxu0 %v3219_v0  ;;  %v2526_v35 = vpack.c.bf16 %v354_v30, %v351_v29  ;;  %v353_v37 = vld [vmem:[#allocation7 + $0xa8] sm:$0xff]  ;;  %v360_v39 = vld [vmem:[#allocation7 + $0xe0] sm:$0xff]  ;;  %v2553_v40 = vpack.c.bf16 %v349_v34, %v346_v33  ;;  %v355_v43 = vld [vmem:[#allocation7 + $0xb8] sm:$0xff] }
 0x136   :  { %2548 = vmatpush3.bf16.msra.mxu0 %v2547_v20  ;;  %2521 = vmatpush1.bf16.msra.mxu1 %v2520_v21  ;;  %v357_v38 = vld [vmem:[#allocation7 + $0xc8] sm:$0xff]  ;;  %v2528_v41 = vpack.c.bf16 %v353_v37, %v350_v36  ;;  %v352_v42 = vld [vmem:[#allocation7 + $0xa0] sm:$0xff]  ;;  %v359_v46 = vld [vmem:[#allocation7 + $0xd8] sm:$0xff]  ;;  %v382_v21 = vlaneseq }
 0x137   :  { %2549 = vmatprep.subr.bf16.mxu0 %v3219_v0  ;;  %2523 = vmatprep.subr.bf16.mxu1 %v2522_v26  ;;  %v2530_v44 = vpack.c.bf16 %v360_v39, %v357_v38  ;;  %v356_v45 = vld [vmem:[#allocation7 + $0xc0] sm:$0xff]  ;;  %v363_v47 = vld [vmem:[#allocation7 + $0xf8] sm:$0xff]  ;;  %v366_v48 = vld [vmem:[#allocation7 + $0x110] sm:$0xff]  ;;  %v2556_v49 = vpack.c.bf16 %v355_v43, %v352_v42 }
 0x138   :  { %2312 = vmatprep.mubr.msk.f32.mxu0 %vm3220_vm0, %v3221_v1  ;;  %v2532_v50 = vpack.c.bf16 %v359_v46, %v356_v45  ;;  %v358_v51 = vld [vmem:[#allocation7 + $0xd0] sm:$0xff]  ;;  %v361_v52 = vld [vmem:[#allocation7 + $0xe8] sm:$0xff]  ;;  %v2534_v53 = vpack.c.bf16 %v366_v48, %v363_v47  ;;  %v372_v57 = vld [vmem:[#allocation7 + $0x140] sm:$0xff]  ;;  %v3559_v22 = vshrl.u32 %v382_v21, 7 }
 0x139   :  { %v362_v54 = vld [vmem:[#allocation7 + $0xf0] sm:$0xff]  ;;  %v365_v55 = vld [vmem:[#allocation7 + $0x108] sm:$0xff]  ;;  %v2559_v58 = vpack.c.bf16 %v361_v52, %v358_v51  ;;  %v364_v60 = vld [vmem:[#allocation7 + $0x100] sm:$0xff] }
 0x13a   :  { %2551 = vmatpush3.bf16.msra.mxu0 %v2550_v31  ;;  %2525 = vmatpush1.bf16.msra.mxu1 %v2524_v32  ;;  %v369_v56 = vld [vmem:[#allocation7 + $0x128] sm:$0xff]  ;;  %v2536_v59 = vpack.c.bf16 %v365_v55, %v362_v54  ;;  %v367_v61 = vld [vmem:[#allocation7 + $0x118] sm:$0xff]  ;;  %v368_v63 = vld [vmem:[#allocation7 + $0x120] sm:$0xff]  ;;  %v3562_v23 = vsub.s32 1, %v3559_v22  ;;  %v3567_v25 = vsub.s32 0, %v3559_v22 }
 0x13b   :  { %2552 = vmatprep.subr.bf16.mxu0 %v3219_v0  ;;  %2527 = vmatprep.subr.bf16.mxu1 %v2526_v35  ;;  %v2538_v62 = vpack.c.bf16 %v372_v57, %v369_v56  ;;  %v371_v2 = vld [vmem:[#allocation7 + $0x138] sm:$0xff]  ;;  %v378_v4 = vld [vmem:[#allocation7 + $0x170] sm:$0xff]  ;;  %v2562_v5 = vpack.c.bf16 %v367_v61, %v364_v60  ;;  %v373_v8 = vld [vmem:[#allocation7 + $0x148] sm:$0xff] }
 0x13c   :  { %v375_v3 = vld [vmem:[#allocation7 + $0x158] sm:$0xff]  ;;  %v2540_v6 = vpack.c.bf16 %v371_v2, %v368_v63  ;;  %v370_v7 = vld [vmem:[#allocation7 + $0x130] sm:$0xff]  ;;  %v377_v12 = vld [vmem:[#allocation7 + $0x168] sm:$0xff] }
 0x13d   :  { %v2542_v9 = vpack.c.bf16 %v378_v4, %v375_v3  ;;  %v2565_v10 = vpack.c.bf16 %v373_v8, %v370_v7  ;;  %v374_v11 = vld [vmem:[#allocation7 + $0x150] sm:$0xff]  ;;  %v376_v13 = vld [vmem:[#allocation7 + $0x160] sm:$0xff]  ;;  %v379_v15 = vld [vmem:[#allocation7 + $0x178] sm:$0xff] }
 0x13e   :  { %2554 = vmatpush3.bf16.msra.mxu0 %v2553_v40  ;;  %2529 = vmatpush1.bf16.msra.mxu1 %v2528_v41  ;;  %v2544_v14 = vpack.c.bf16 %v377_v12, %v374_v11  ;;  %v2568_v16 = vpack.c.bf16 %v379_v15, %v376_v13  ;;  %v2100_v17 = vld [vmem:[#allocation6] ss:$0 sm:$0xff]  ;;  %v3564_v24 = vld [vmem:[#allocation9] sm:$0x7] }
 0x13f   :  { %2555 = vmatprep.subr.bf16.mxu0 %v3219_v0  ;;  %2531 = vmatprep.subr.bf16.mxu1 %v2530_v44  ;;  %v389_v26 = vrot.slane %v3564_v24, %v3562_v23  ;;  %v385_v27 = vrot.slane %v3564_v24, %v3567_v25  ;;  %v612_v7 = vld [vmem:[#allocation10 + $0x18] sm:$0xff] }
 0x142   :  { %2557 = vmatpush3.bf16.msra.mxu0 %v2556_v49  ;;  %2533 = vmatpush1.bf16.msra.mxu1 %v2532_v50 }
 0x143   :  { %2558 = vmatprep.subr.bf16.mxu0 %v3219_v0  ;;  %2535 = vmatprep.subr.bf16.mxu1 %v2534_v53 }
 0x146   :  { %2560 = vmatpush3.bf16.msra.mxu0 %v2559_v58  ;;  %2537 = vmatpush1.bf16.msra.mxu1 %v2536_v59 }
 0x147   :  { %2561 = vmatprep.subr.bf16.mxu0 %v3219_v0  ;;  %2539 = vmatprep.subr.bf16.mxu1 %v2538_v62 }
 0x14a   :  { %2563 = vmatpush3.bf16.msra.mxu0 %v2562_v5  ;;  %2541 = vmatpush1.bf16.msra.mxu1 %v2540_v6  ;;  %v611_v6 = vld [vmem:[#allocation10 + $0x10] sm:$0xff] }
 0x14b   :  { %2564 = vmatprep.subr.bf16.mxu0 %v3219_v0  ;;  %2543 = vmatprep.subr.bf16.mxu1 %v2542_v9  ;;  %v2571_v8 = vpack.c.bf16 %v612_v7, %v611_v6 }
 0x14e   :  { %2566 = vmatpush3.bf16.msra.mxu0 %v2565_v10  ;;  %2545 = vmatpush1.bf16.msra.mxu1 %v2544_v14 }
 0x14f   :  { %2567 = vmatprep.subr.bf16.mxu0 %v3219_v0  ;;  %2570 = vmatprep.subr.bf16.mxu1 %v3219_v0 }
 0x152   :  { %2569 = vmatpush3.bf16.msra.mxu0 %v2568_v16 }
 0x153   :  { %2576 = vmatprep.subr.bf16.mxu0 %v3219_v0 }
 0x208   :  { %v328_v18 = vpop.f32.mrb[0].mxu0 }
 0x209   :  { %v3551_v19 = vadd.f32 %v2100_v17, %v328_v18  ;;  %v2279_v20 = vpop.f32.mrb[1].mxu0 }
 0x20b   :  { %462 = vmatmul.mubr.f32.vlgmr.msra.gmra.mrb[0].mxu1 %v3551_v19  ;;  %2313 = vmatmul.mubr.f32.vlgmr.msra.gmra.mrb[2].mxu0 %v3551_v19 }
 0x20c   :  { %2319 = vmatprep.mubr.msk.f32.mxu1 %vm3220_vm0, %v3221_v1  ;;  %2333 = vmatprep.mubr.msk.f32.mxu0 %vm3220_vm0, %v3221_v1 }
 0x20d   :  { %2572 = vmatpush3.bf16.msra.mxu1 %v2571_v8 }
 0x20e   :  { %2573 = vmatprep.subr.bf16.mxu1 %v3219_v0 }
 0x2de   :  { %v463_v28 = vpop.f32.mrb[0].mxu1  ;;  %v3573_v29 = vpop.f32.mrb[2].mxu0 }
 0x2df   :  { %v465_v30 = vpop.f32.mrb[1].mxu1  ;;  %v2314_v31 = vpop.f32.mrb[3].mxu0  ;;  %v464_v33 = vadd.f32 %v463_v28, %v385_v27 }
 0x2e0   :  { %v466_v32 = vadd.f32 %v465_v30, %v389_v26 }
 0x2e2   :  { %v541_v34 = vrot.slane %v466_v32, %v3567_v25  ;;  %v551_v35 = vrot.slane %v466_v32, %v3562_v23 }
 0x2e4   :  { %v3577_v36 = vmul.f32 %v541_v34, %v464_v33  ;;  %v3579_v37 = vmul.f32 %v551_v35, %v464_v33 }
 0x2e6   :  { %762 = vrot.lane.b32.xlu1 %v3577_v36, %s3222_s15  ;;  %582 = vrot.lane.b32.xlu0 %v3577_v36, %s3223_s23  ;;  %v544_v4 = vsel %vm543_vm3, %v3577_v36, 0.0  ;;  %v553_v5 = vsel %vm543_vm3, %v3579_v37, 0.0 }
 0x2ea   :  { %769 = vrot.lane.b32.xlu1 %v3579_v37, %s3222_s15  ;;  %590 = vrot.lane.b32.xlu0 %v3579_v37, %s3223_s23 }
 0x2ee   :  { %875 = vrot.lane.b32.xlu1 %v3579_v37, %s3224_s9  ;;  %868 = vrot.lane.b32.xlu0 %v3577_v36, %s3224_s9 }
 0x2f2   :  { %981 = vrot.lane.b32.xlu1 %v3579_v37, %s3225_s4  ;;  %974 = vrot.lane.b32.xlu0 %v3577_v36, %s3225_s4 }
 0x2f6   :  { %1087 = vrot.lane.b32.xlu1 %v3579_v37, %s3226_s12  ;;  %1080 = vrot.lane.b32.xlu0 %v3577_v36, %s3226_s12 }
 0x2fa   :  { %1193 = vrot.lane.b32.xlu1 %v3579_v37, %s3227_s0  ;;  %1186 = vrot.lane.b32.xlu0 %v3577_v36, %s3227_s0 }
 0x2fe   :  { %1299 = vrot.lane.b32.xlu1 %v3579_v37, %s3215_s1  ;;  %1292 = vrot.lane.b32.xlu0 %v3577_v36, %s3215_s1 }
 0x358   :  { %v763_v38 = vpop.permute.xlu1 %762  ;;  %v583_v39 = vpop.permute.xlu0 %582 }
 0x359   :  { %v585_v40 = vsel %vm543_vm3, %v583_v39, 0.0  ;;  %v765_v43 = vsel %vm543_vm3, %v763_v38, 0.0  ;;  %v392_v38 = vsub.s32 2, %v3559_v22 }
 0x35a   :  { %586 = vadd.xlane.f32.xlu0 %v585_v40 }
 0x35c   :  { %v770_v41 = vpop.permute.xlu1 %769  ;;  %v591_v42 = vpop.permute.xlu0 %590 }
 0x35d   :  { %v593_v44 = vsel %vm543_vm3, %v591_v42, 0.0  ;;  %v772_v47 = vsel %vm543_vm3, %v770_v41, 0.0 }
 0x35e   :  { %766 = vadd.xlane.f32.xlu0 %v765_v43  ;;  %594 = vadd.xlane.f32.xlu1 %v593_v44 }
 0x360   :  { %v876_v45 = vpop.permute.xlu1 %875  ;;  %v869_v46 = vpop.permute.xlu0 %868 }
 0x361   :  { %v871_v48 = vsel %vm543_vm3, %v869_v46, 0.0  ;;  %v878_v51 = vsel %vm543_vm3, %v876_v45, 0.0 }
 0x362   :  { %773 = vadd.xlane.f32.xlu0 %v772_v47  ;;  %872 = vadd.xlane.f32.xlu1 %v871_v48  ;;  %v393_v47 = vrot.slane %v3564_v24, %v392_v38 }
 0x364   :  { %v982_v49 = vpop.permute.xlu1 %981  ;;  %v975_v50 = vpop.permute.xlu0 %974 }
 0x365   :  { %v977_v52 = vsel %vm543_vm3, %v975_v50, 0.0  ;;  %v984_v55 = vsel %vm543_vm3, %v982_v49, 0.0 }
 0x366   :  { %879 = vadd.xlane.f32.xlu0 %v878_v51  ;;  %978 = vadd.xlane.f32.xlu1 %v977_v52 }
 0x368   :  { %v1088_v53 = vpop.permute.xlu1 %1087  ;;  %v1081_v54 = vpop.permute.xlu0 %1080 }
 0x369   :  { %v1083_v56 = vsel %vm543_vm3, %v1081_v54, 0.0  ;;  %v1090_v59 = vsel %vm543_vm3, %v1088_v53, 0.0 }
 0x36a   :  { %985 = vadd.xlane.f32.xlu0 %v984_v55  ;;  %1084 = vadd.xlane.f32.xlu1 %v1083_v56 }
 0x36c   :  { %v1194_v57 = vpop.permute.xlu1 %1193  ;;  %v1187_v58 = vpop.permute.xlu0 %1186 }
 0x36d   :  { %v1189_v60 = vsel %vm543_vm3, %v1187_v58, 0.0  ;;  %v1196_v62 = vsel %vm543_vm3, %v1194_v57, 0.0 }
 0x36e   :  { %1091 = vadd.xlane.f32.xlu0 %v1090_v59  ;;  %1190 = vadd.xlane.f32.xlu1 %v1189_v60  ;;  %v535_v60 = vadd.f32 %v3573_v29, %v393_v47  ;;  %v790_v29 = vld [vmem:[#allocation10 + $0x20] sm:$0xff] }
 0x370   :  { %v1293_v61 = vpop.permute.xlu0 %1292  ;;  %v1300_v2 = vpop.permute.xlu1 %1299 }
 0x371   :  { %v1295_v63 = vsel %vm543_vm3, %v1293_v61, 0.0  ;;  %v1302_v3 = vsel %vm543_vm3, %v1300_v2, 0.0 }
 0x372   :  { %1197 = vadd.xlane.f32.xlu0 %v1196_v62  ;;  %1296 = vadd.xlane.f32.xlu1 %v1295_v63 }
 0x376   :  { %1303 = vadd.xlane.f32.xlu0 %v1302_v3  ;;  %545 = vadd.xlane.f32.xlu1 %v544_v4 }
 0x37a   :  { %554 = vadd.xlane.f32.xlu0 %v553_v5 }
 0x3e7   :  { %v587_v9 = vpop.xlane.xlu0 %586 }
 0x3e8   :  { %v588_v12 = vmul.f32 0.25, %v587_v9  ;;  %v3632_v9 = vrot.slane %v535_v60, %v3567_v25 }
 0x3eb   :  { %v595_v10 = vpop.xlane.xlu1 %594  ;;  %v767_v11 = vpop.xlane.xlu0 %766 }
 0x3ec   :  { %v596_v13 = vmul.f32 0.25, %v595_v10  ;;  %v768_v20 = vmul.f32 0.25, %v767_v11 }
 0x3ee   :  { %v597_v14 = vmax.f32 %v588_v12, %v596_v13 }
 0x3ef   :  { %v873_v15 = vpop.xlane.xlu1 %872  ;;  %v774_v16 = vpop.xlane.xlu0 %773 }
 0x3f0   :  { %v598_v17 = vsub.f32 %v588_v12, %v597_v14  ;;  %v601_v18 = vsub.f32 %v596_v13, %v597_v14  ;;  %v775_v21 = vmul.f32 0.25, %v774_v16  ;;  %v874_v34 = vmul.f32 0.25, %v873_v15  ;;  %v791_v12 = vld [vmem:[#allocation10 + $0x28] sm:$0xff] }
 0x3f1   :  { %v3635_v16 = vrot.slane %v535_v60, %v3562_v23 }
 0x3f2   :  { %v599_v26 = vmul.f32 1.442695, %v598_v17  ;;  %v602_v27 = vmul.f32 1.442695, %v601_v18  ;;  %v776_v28 = vmax.f32 %v768_v20, %v775_v21 }
 0x3f3   :  { %v979_v30 = vpop.xlane.xlu1 %978  ;;  %v880_v31 = vpop.xlane.xlu0 %879 }
 0x3f4   :  { %2800 = vpow2.f32 %v599_v26  ;;  %v777_v32 = vsub.f32 %v768_v20, %v776_v28  ;;  %v780_v33 = vsub.f32 %v775_v21, %v776_v28  ;;  %v881_v35 = vmul.f32 0.25, %v880_v31 }
 0x3f5   :  { %2802 = vpow2.f32 %v602_v27  ;;  %v980_v42 = vmul.f32 0.25, %v979_v30  ;;  %v2577_v26 = vpack.c.bf16 %v791_v12, %v790_v29 }
 0x3f6   :  { %v778_v36 = vmul.f32 1.442695, %v777_v32  ;;  %v781_v37 = vmul.f32 1.442695, %v780_v33  ;;  %v882_v39 = vmax.f32 %v874_v34, %v881_v35 }
 0x3f7   :  { %v1085_v40 = vpop.xlane.xlu1 %1084  ;;  %v986_v41 = vpop.xlane.xlu0 %985  ;;  %2578 = vmatpush3.bf16.msra.mxu0 %v2577_v26 }
 0x3f8   :  { %2804 = vpow2.f32 %v778_v36  ;;  %v987_v43 = vmul.f32 0.25, %v986_v41  ;;  %v883_v44 = vsub.f32 %v874_v34, %v882_v39  ;;  %v886_v45 = vsub.f32 %v881_v35, %v882_v39  ;;  %2582 = vmatprep.subr.bf16.mxu0 %v3219_v0 }
 0x3f9   :  { %2806 = vpow2.f32 %v781_v37  ;;  %v1086_v52 = vmul.f32 0.25, %v1085_v40 }
 0x3fa   :  { %v988_v46 = vmax.f32 %v980_v42, %v987_v43  ;;  %v884_v48 = vmul.f32 1.442695, %v883_v44  ;;  %v887_v49 = vmul.f32 1.442695, %v886_v45 }
 0x3fb   :  { %v1191_v50 = vpop.xlane.xlu1 %1190  ;;  %v1092_v51 = vpop.xlane.xlu0 %1091 }
 0x3fc   :  { %v989_v53 = vsub.f32 %v980_v42, %v988_v46  ;;  %v992_v54 = vsub.f32 %v987_v43, %v988_v46  ;;  %v1093_v22 = vmul.f32 0.25, %v1092_v51  ;;  %2808 = vpow2.f32 %v884_v48 }
 0x3fd   :  { %2810 = vpow2.f32 %v887_v49  ;;  %v1192_v3 = vmul.f32 0.25, %v1191_v50 }
 0x3fe   :  { %v2801_v55 = vpop.eup %2800  ;;  %v990_v56 = vmul.f32 1.442695, %v989_v53  ;;  %v993_v57 = vmul.f32 1.442695, %v992_v54  ;;  %v1094_v58 = vmax.f32 %v1086_v52, %v1093_v22 }
 0x3ff   :  { %v2803_v59 = vpop.eup %2802  ;;  %v1297_v61 = vpop.xlane.xlu1 %1296  ;;  %v605_v32 = vmul.f32 %v2801_v55, %v3632_v9 }
 0x400   :  { %v1198_v62 = vpop.xlane.xlu0 %1197  ;;  %v604_v24 = vadd.f32 %v2803_v59, %v2801_v55  ;;  %2812 = vpow2.f32 %v990_v56  ;;  %v1095_v63 = vsub.f32 %v1086_v52, %v1094_v58  ;;  %v1098_v2 = vsub.f32 %v1093_v22, %v1094_v58 }
 0x401   :  { %2814 = vpow2.f32 %v993_v57  ;;  %v1199_v4 = vmul.f32 0.25, %v1198_v62  ;;  %v1298_v14 = vmul.f32 0.25, %v1297_v61  ;;  %v607_v33 = vmul.f32 %v2803_v59, %v3635_v16 }
 0x402   :  { %v2805_v5 = vpop.eup %2804  ;;  %v1096_v6 = vmul.f32 1.442695, %v1095_v63  ;;  %v1099_v7 = vmul.f32 1.442695, %v1098_v2  ;;  %2816 = vrcp.f32 %v604_v24 }
 0x403   :  { %v2807_v8 = vpop.eup %2806  ;;  %v1200_v10 = vmax.f32 %v1192_v3, %v1199_v4  ;;  %v546_v20 = vpop.xlane.xlu1 %545  ;;  %v608_v45 = vadd.f32 %v607_v33, %v605_v32  ;;  %v784_v46 = vmul.f32 %v2805_v5, %v3632_v9 }
 0x404   :  { %v1304_v11 = vpop.xlane.xlu0 %1303  ;;  %v783_v13 = vadd.f32 %v2807_v8, %v2805_v5  ;;  %2818 = vpow2.f32 %v1096_v6  ;;  %v547_v37 = vmul.f32 0.25, %v546_v20  ;;  %v786_v47 = vmul.f32 %v2807_v8, %v3635_v16 }
 0x405   :  { %v1305_v15 = vmul.f32 0.25, %v1304_v11  ;;  %2820 = vpow2.f32 %v1099_v7  ;;  %v1201_v17 = vsub.f32 %v1192_v3, %v1200_v10  ;;  %v1204_v18 = vsub.f32 %v1199_v4, %v1200_v10 }
 0x406   :  { %2822 = vrcp.f32 %v783_v13  ;;  %v2809_v27 = vpop.eup %2808  ;;  %v787_v56 = vadd.f32 %v786_v47, %v784_v46  ;;  %v1002_v46 = vld [vmem:[#allocation10 + $0x40] sm:$0xff]  ;;  %v1003_v47 = vld [vmem:[#allocation10 + $0x48] sm:$0xff] }
 0x407   :  { %v1306_v21 = vmax.f32 %v1298_v14, %v1305_v15  ;;  %v1202_v28 = vmul.f32 1.442695, %v1201_v17  ;;  %v1205_v30 = vmul.f32 1.442695, %v1204_v18  ;;  %v2811_v34 = vpop.eup %2810  ;;  %v890_v59 = vmul.f32 %v2809_v27, %v3632_v9 }
 0x408   :  { %v555_v31 = vpop.xlane.xlu0 %554  ;;  %v889_v39 = vadd.f32 %v2811_v34, %v2809_v27  ;;  %v892_v60 = vmul.f32 %v2811_v34, %v3635_v16 }
 0x409   :  { %v1307_v35 = vsub.f32 %v1298_v14, %v1306_v21  ;;  %v1310_v36 = vsub.f32 %v1305_v15, %v1306_v21  ;;  %v556_v38 = vmul.f32 0.25, %v555_v31  ;;  %2824 = vpow2.f32 %v1202_v28 }
 0x40a   :  { %v2813_v40 = vpop.eup %2812  ;;  %2826 = vpow2.f32 %v1205_v30  ;;  %v893_v3 = vadd.f32 %v892_v60, %v890_v59  ;;  %v1321_v59 = vld [vmem:[#allocation10 + $0x78] sm:$0xff] }
 0x40b   :  { %v1308_v41 = vmul.f32 1.442695, %v1307_v35  ;;  %v1311_v42 = vmul.f32 1.442695, %v1310_v36  ;;  %v557_v43 = vmax.f32 %v547_v37, %v556_v38  ;;  %v2815_v44 = vpop.eup %2814  ;;  %2828 = vrcp.f32 %v889_v39 }
 0x40c   :  { %v2817_v48 = vpop.eup %2816  ;;  %v995_v49 = vadd.f32 %v2815_v44, %v2813_v40  ;;  %v996_v24 = vmul.f32 %v2813_v40, %v3632_v9  ;;  %v998_v63 = vmul.f32 %v2815_v44, %v3635_v16  ;;  %v896_v44 = vld [vmem:[#allocation10 + $0x30] sm:$0xff] }
 0x40d   :  { %2830 = vpow2.f32 %v1308_v41  ;;  %v558_v50 = vsub.f32 %v547_v37, %v557_v43  ;;  %v561_v51 = vsub.f32 %v556_v38, %v557_v43  ;;  %v610_v52 = vmul.f32 %v2817_v48, %v608_v45  ;;  %v579_v41 = vld [vmem:[#allocation10] sm:$0xff] }
 0x40e   :  { %2832 = vpow2.f32 %v1311_v42  ;;  %v2819_v53 = vpop.eup %2818  ;;  %v999_v10 = vadd.f32 %v998_v63, %v996_v24  ;;  %v580_v42 = vld [vmem:[#allocation10 + $0x8] sm:$0xff] }
 0x40f   :  { %v559_v54 = vmul.f32 1.442695, %v558_v50  ;;  %v562_v22 = vmul.f32 1.442695, %v561_v51  ;;  %2834 = vrcp.f32 %v995_v49  ;;  %v2821_v55 = vpop.eup %2820  ;;  %614 = vrot.lane.b32.xlu1 %v610_v52, %s3223_s23  ;;  %v1102_v11 = vmul.f32 %v2819_v53, %v3632_v9  ;;  %v1108_v52 = vld [vmem:[#allocation10 + $0x50] sm:$0xff] }
 0x410   :  { %v2823_v57 = vpop.eup %2822  ;;  %v1101_v58 = vadd.f32 %v2821_v55, %v2819_v53  ;;  %v1104_v29 = vmul.f32 %v2821_v55, %v3635_v16  ;;  %v2574_v43 = vpack.c.bf16 %v580_v42, %v579_v41  ;;  %v2583_v50 = vpack.c.bf16 %v1003_v47, %v1002_v46  ;;  %v1109_v53 = vld [vmem:[#allocation10 + $0x58] sm:$0xff]  ;;  %v1215_v55 = vld [vmem:[#allocation10 + $0x68] sm:$0xff] }
 0x411   :  { %2836 = vpow2.f32 %v559_v54  ;;  %v789_v61 = vmul.f32 %v2823_v57, %v787_v56  ;;  %v2586_v54 = vpack.c.bf16 %v1109_v53, %v1108_v52  ;;  %v1439_v41 = vld [vmem:[#allocation15 + $0x28] sm:$0xff]  ;;  %v1441_v42 = vld [vmem:[#allocation15 + $0x38] sm:$0xff] }
 0x412   :  { %2838 = vpow2.f32 %v562_v22  ;;  %v1105_v18 = vadd.f32 %v1104_v29, %v1102_v11  ;;  %v1214_v22 = vld [vmem:[#allocation10 + $0x60] sm:$0xff] }
 0x413   :  { %2840 = vrcp.f32 %v1101_v58  ;;  %v2825_v62 = vpop.eup %2824  ;;  %793 = vrot.lane.b32.xlu0 %v789_v61, %s3222_s15  ;;  %v2589_v57 = vpack.c.bf16 %v1215_v55, %v1214_v22  ;;  %v1320_v58 = vld [vmem:[#allocation10 + $0x70] sm:$0xff]  ;;  %v1445_v46 = vld [vmem:[#allocation15 + $0x58] sm:$0xff] }
 0x414   :  { %v2827_v2 = vpop.eup %2826  ;;  %v1208_v27 = vmul.f32 %v2825_v62, %v3632_v9  ;;  %v2592_v61 = vpack.c.bf16 %v1321_v59, %v1320_v58  ;;  %v1447_v55 = vld [vmem:[#allocation15 + $0x68] sm:$0xff]  ;;  %v1446_v58 = vld [vmem:[#allocation15 + $0x60] sm:$0xff]  ;;  %v1448_v59 = vld [vmem:[#allocation15 + $0x70] sm:$0xff] }
 0x415   :  { %v2829_v4 = vpop.eup %2828  ;;  %v1207_v5 = vadd.f32 %v2827_v2, %v2825_v62  ;;  %v1210_v28 = vmul.f32 %v2827_v2, %v3635_v16 }
 0x416   :  { %v895_v7 = vmul.f32 %v2829_v4, %v893_v3 }
 0x417   :  { %v2831_v6 = vpop.eup %2830  ;;  %2842 = vrcp.f32 %v1207_v5  ;;  %v1211_v34 = vadd.f32 %v1210_v28, %v1208_v27 }
 0x418   :  { %v2833_v8 = vpop.eup %2832  ;;  %899 = vrot.lane.b32.xlu1 %v895_v7, %s3224_s9  ;;  %v1314_v32 = vmul.f32 %v2831_v6, %v3632_v9 }
 0x419   :  { %v2835_v12 = vpop.eup %2834  ;;  %v1313_v13 = vadd.f32 %v2833_v8, %v2831_v6  ;;  %v1316_v33 = vmul.f32 %v2833_v8, %v3635_v16 }
 0x41a   :  { %v1001_v14 = vmul.f32 %v2835_v12, %v999_v10 }
 0x41b   :  { %v2837_v15 = vpop.eup %2836  ;;  %2844 = vrcp.f32 %v1313_v13  ;;  %v1317_v37 = vadd.f32 %v1316_v33, %v1314_v32 }
 0x41c   :  { %v2839_v17 = vpop.eup %2838  ;;  %v569_v20 = vmul.f32 %v2837_v15, %v3632_v9  ;;  %1005 = vrot.lane.b32.xlu1 %v1001_v14, %s3225_s4  ;;  %v897_v9 = vld [vmem:[#allocation10 + $0x38] sm:$0xff] }
 0x41d   :  { %v2841_v21 = vpop.eup %2840  ;;  %v575_v26 = vmul.f32 %v2839_v17, %v3635_v16  ;;  %v564_v40 = vadd.f32 %v2839_v17, %v2837_v15  ;;  %v2580_v48 = vpack.c.bf16 %v897_v9, %v896_v44  ;;  %v2598_v44 = vpack.c.bf16 %v1441_v42, %v1439_v41  ;;  %v1438_v9 = vld [vmem:[#allocation15 + $0x20] sm:$0xff]  ;;  %v1572_v41 = vld [vmem:[#allocation18 + $0xa8] sm:$0xff] }
 0x41e   :  { %v1107_v30 = vmul.f32 %v2841_v21, %v1105_v18 }
 0x41f   :  { %v576_v31 = vadd.f32 %v575_v26, %v569_v20  ;;  %2846 = vrcp.f32 %v564_v40  ;;  %v1436_v40 = vld [vmem:[#allocation15 + $0x10] sm:$0xff] }
 0x420   :  { %1111 = vrot.lane.b32.xlu0 %v1107_v30, %s3226_s12  ;;  %v2111_v30 = vld [vmem:[#allocation12] ss:$0 sm:$0xff] }
 0x421   :  { %v2843_v35 = vpop.eup %2842 }
 0x422   :  { %v1213_v36 = vmul.f32 %v2843_v35, %v1211_v34 }
 0x424   :  { %1217 = vrot.lane.b32.xlu1 %v1213_v36, %s3227_s0  ;;  %v1435_v36 = vld [vmem:[#allocation15 + $0x8] sm:$0xff] }
 0x425   :  { %v2845_v38 = vpop.eup %2844 }
 0x426   :  { %v1319_v39 = vmul.f32 %v2845_v38, %v1317_v37  ;;  %v1437_v37 = vld [vmem:[#allocation15 + $0x18] sm:$0xff]  ;;  %v1434_v38 = vld [vmem:[#allocation15] sm:$0xff] }
 0x428   :  { %1323 = vrot.lane.b32.xlu0 %v1319_v39, %s3215_s1  ;;  %v2594_v39 = vpack.c.bf16 %v1437_v37, %v1435_v36 }
 0x429   :  { %v2847_v45 = vpop.eup %2846 }
 0x42a   :  { %v578_v49 = vmul.f32 %v2847_v45, %v576_v31  ;;  %v1440_v45 = vld [vmem:[#allocation15 + $0x30] sm:$0xff] }
 0x42b   :  { %v2600_v47 = vpack.c.bf16 %v1440_v45, %v1438_v9  ;;  %v1556_v9 = vld [vmem:[#allocation18 + $0x28] sm:$0xff]  ;;  %v1573_v45 = vld [vmem:[#allocation18 + $0xb0] sm:$0xff] }
 0x481   :  { %v615_v16 = vpop.permute.xlu1 %614 }
 0x482   :  { %2320 = vmatmul.mubr.msk.f32.vlgmr.msra.gmra.mrb[2].mxu1 %vm616_vm4, %v615_v16  ;;  %v1443_v16 = vld [vmem:[#allocation15 + $0x48] sm:$0xff] }
 0x483   :  { %2575 = vmatpush3.bf16.msra.mxu1 %v2574_v43  ;;  %2326 = vmatprep.mubr.msk.f32.mxu1 %vm3220_vm0, %v3221_v1  ;;  %v2596_v43 = vpack.c.bf16 %v1436_v40, %v1434_v38  ;;  %v1553_v38 = vld [vmem:[#allocation18 + $0x10] sm:$0xff]  ;;  %v1571_v40 = vld [vmem:[#allocation18 + $0xa0] sm:$0xff] }
 0x484   :  { %2579 = vmatprep.subr.bf16.mxu1 %v3219_v0 }
 0x485   :  { %v794_v51 = vpop.permute.xlu0 %793 }
 0x486   :  { %2327 = vmatmul.mubr.msk.f32.vlgmr.msra.gmra.mrb[4].mxu1 %vm616_vm4, %v578_v49  ;;  %2334 = vmatmul.mubr.msk.f32.vlgmr.msra.gmra.mrb[4].mxu0 %vm616_vm4, %v794_v51  ;;  %v1444_v49 = vld [vmem:[#allocation15 + $0x50] sm:$0xff] }
 0x487   :  { %2581 = vmatpush3.bf16.msra.mxu1 %v2580_v48  ;;  %2340 = vmatprep.mubr.msk.f32.mxu1 %vm3220_vm0, %v3221_v1  ;;  %v1442_v48 = vld [vmem:[#allocation15 + $0x40] sm:$0xff] }
 0x488   :  { %2584 = vmatpush3.bf16.msra.mxu0 %v2583_v50  ;;  %2347 = vmatprep.mubr.msk.f32.mxu0 %vm3220_vm0, %v3221_v1  ;;  %v2604_v50 = vpack.c.bf16 %v1444_v49, %v1442_v48  ;;  %v1558_v48 = vld [vmem:[#allocation18 + $0x38] sm:$0xff]  ;;  %v1575_v49 = vld [vmem:[#allocation18 + $0xc0] sm:$0xff] }
 0x489   :  { %2585 = vmatprep.subr.bf16.mxu1 %v3219_v0  ;;  %2588 = vmatprep.subr.bf16.mxu0 %v3219_v0 }
 0x48a   :  { %v900_v56 = vpop.permute.xlu1 %899 }
 0x48b   :  { %2341 = vmatmul.mubr.msk.f32.vlgmr.msra.gmra.mrb[6].mxu1 %vm616_vm4, %v900_v56  ;;  %v1449_v56 = vld [vmem:[#allocation15 + $0x78] sm:$0xff] }
 0x48c   :  { %2587 = vmatpush3.bf16.msra.mxu1 %v2586_v54  ;;  %2354 = vmatprep.mubr.msk.f32.mxu1 %vm3220_vm0, %v3221_v1 }
 0x48d   :  { %2591 = vmatprep.subr.bf16.mxu1 %v3219_v0 }
 0x48e   :  { %v1006_v60 = vpop.permute.xlu1 %1005 }
 0x48f   :  { %2348 = vmatmul.mubr.msk.f32.vlgmr.msra.gmra.mrb[6].mxu0 %vm616_vm4, %v1006_v60  ;;  %v2608_v60 = vpack.c.bf16 %v1448_v59, %v1446_v58  ;;  %v1561_v59 = vld [vmem:[#allocation18 + $0x50] sm:$0xff] }
 0x490   :  { %2590 = vmatpush3.bf16.msra.mxu0 %v2589_v57  ;;  %2361 = vmatprep.mubr.msk.f32.mxu0 %vm3220_vm0, %v3221_v1  ;;  %v2606_v57 = vpack.c.bf16 %v1449_v56, %v1447_v55  ;;  %v1577_v55 = vld [vmem:[#allocation18 + $0xd0] sm:$0xff]  ;;  %v1578_v56 = vld [vmem:[#allocation18 + $0xd8] sm:$0xff] }
 0x491   :  { %2595 = vmatprep.subr.bf16.mxu0 %v2594_v39  ;;  %v1554_v39 = vld [vmem:[#allocation18 + $0x18] sm:$0xff]  ;;  %v2646_v58 = vpack.c.bf16 %v1578_v56, %v1577_v55 }
 0x492   :  { %v1112_v62 = vpop.permute.xlu0 %1111  ;;  %v2632_v42 = vpack.c.bf16 %v1554_v39, %v1553_v38  ;;  %v1694_v55 = vld [vmem:[#allocation22 + $0x30] sm:$0xff]  ;;  %v1695_v56 = vld [vmem:[#allocation22 + $0x38] sm:$0xff] }
 0x493   :  { %2355 = vmatmul.mubr.msk.f32.vlgmr.msra.gmra.mrb[8].mxu1 %vm616_vm4, %v1112_v62  ;;  %v1453_v62 = vld [vmem:[#allocation15 + $0x98] sm:$0xff] }
 0x494   :  { %2593 = vmatpush3.bf16.msra.mxu1 %v2592_v61  ;;  %2368 = vmatprep.mubr.msk.f32.mxu1 %vm3220_vm0, %v3221_v1  ;;  %v1451_v61 = vld [vmem:[#allocation15 + $0x88] sm:$0xff] }
 0x496   :  { %v1218_v24 = vpop.permute.xlu1 %1217 }
 0x497   :  { %2362 = vmatmul.mubr.msk.f32.vlgmr.msra.gmra.mrb[8].mxu0 %vm616_vm4, %v1218_v24  ;;  %v2610_v24 = vpack.c.bf16 %v1453_v62, %v1451_v61  ;;  %v1579_v61 = vld [vmem:[#allocation18 + $0xe0] sm:$0xff]  ;;  %v1580_v62 = vld [vmem:[#allocation18 + $0xe8] sm:$0xff] }
 0x498   :  { %1542 = vmatprep.mubr.f32.mxu0 %v3221_v1  ;;  %2597 = vmatpush1.bf16.msra.mxu0 %v2596_v43  ;;  %v2634_v43 = vpack.c.bf16 %v1572_v41, %v1571_v40  ;;  %v1689_v41 = vld [vmem:[#allocation22 + $0x8] sm:$0xff] }
 0x499   :  { %2599 = vmatprep.subr.bf16.mxu0 %v2598_v44  ;;  %v1555_v44 = vld [vmem:[#allocation18 + $0x20] sm:$0xff] }
 0x49a   :  { %v1324_v63 = vpop.permute.xlu0 %1323 }
 0x49b   :  { %2369 = vmatmul.mubr.msk.f32.vlgmr.msra.gmra.mrb[10].mxu1 %vm616_vm4, %v1324_v63  ;;  %v1450_v63 = vld [vmem:[#allocation15 + $0x80] sm:$0xff] }
 0x49c   :  { %2601 = vmatpush1.bf16.msra.mxu0 %v2600_v47 }
 0x555   :  { %v685_v2 = vpop.f32.mrb[2].mxu1 }
 0x556   :  { %v2321_v3 = vpop.f32.mrb[3].mxu1 }
 0x557   :  { %v1455_v3 = vld [vmem:[#allocation15 + $0xa8] sm:$0xff] }
 0x559   :  { %v758_v4 = vpop.f32.mrb[4].mxu1  ;;  %v863_v5 = vpop.f32.mrb[4].mxu0 }
 0x55a   :  { %v759_v6 = vadd.f32 %v758_v4, %v685_v2  ;;  %v2328_v7 = vpop.f32.mrb[5].mxu1  ;;  %v2335_v8 = vpop.f32.mrb[5].mxu0  ;;  %v1452_v2 = vld [vmem:[#allocation15 + $0x90] sm:$0xff] }
 0x55b   :  { %v2612_v4 = vpack.c.bf16 %v1452_v2, %v1450_v63  ;;  %v1456_v7 = vld [vmem:[#allocation15 + $0xb0] sm:$0xff]  ;;  %v2650_v63 = vpack.c.bf16 %v1580_v62, %v1579_v61  ;;  %v1696_v61 = vld [vmem:[#allocation22 + $0x40] sm:$0xff] }
 0x55c   :  { %v867_v10 = vadd.f32 %v863_v5, %v759_v6  ;;  %v1457_v5 = vld [vmem:[#allocation15 + $0xb8] sm:$0xff]  ;;  %v1454_v6 = vld [vmem:[#allocation15 + $0xa0] sm:$0xff]  ;;  %v1697_v62 = vld [vmem:[#allocation22 + $0x48] sm:$0xff] }
 0x55d   :  { %v2614_v8 = vpack.c.bf16 %v1457_v5, %v1455_v3 }
 0x55e   :  { %v969_v11 = vpop.f32.mrb[6].mxu1 }
 0x55f   :  { %v973_v29 = vadd.f32 %v969_v11, %v867_v10  ;;  %v2342_v12 = vpop.f32.mrb[7].mxu1  ;;  %v1459_v10 = vld [vmem:[#allocation15 + $0xc8] sm:$0xff]  ;;  %v1461_v11 = vld [vmem:[#allocation15 + $0xd8] sm:$0xff] }
 0x560   :  { %v2618_v12 = vpack.c.bf16 %v1461_v11, %v1459_v10 }
 0x562   :  { %v1075_v13 = vpop.f32.mrb[6].mxu0 }
 0x563   :  { %v1079_v14 = vadd.f32 %v1075_v13, %v973_v29  ;;  %v2349_v15 = vpop.f32.mrb[7].mxu0  ;;  %v2616_v29 = vpack.c.bf16 %v1456_v7, %v1454_v6  ;;  %v1458_v13 = vld [vmem:[#allocation15 + $0xc0] sm:$0xff]  ;;  %v2112_v6 = vld [vmem:[#allocation13] ss:$0 sm:$0xff] }
 0x564   :  { %v1463_v15 = vld [vmem:[#allocation15 + $0xe8] sm:$0xff] }
 0x566   :  { %v1181_v17 = vpop.f32.mrb[8].mxu1 }
 0x567   :  { %v1185_v18 = vadd.f32 %v1181_v17, %v1079_v14  ;;  %v2356_v20 = vpop.f32.mrb[9].mxu1  ;;  %v1460_v14 = vld [vmem:[#allocation15 + $0xd0] sm:$0xff]  ;;  %v1465_v17 = vld [vmem:[#allocation15 + $0xf8] sm:$0xff] }
 0x568   :  { %v2622_v20 = vpack.c.bf16 %v1465_v17, %v1463_v15  ;;  %v1582_v15 = vld [vmem:[#allocation18 + $0xf8] sm:$0xff] }
 0x56a   :  { %v1287_v21 = vpop.f32.mrb[8].mxu0 }
 0x56b   :  { %v1291_v26 = vadd.f32 %v1287_v21, %v1185_v18  ;;  %v2363_v27 = vpop.f32.mrb[9].mxu0  ;;  %v2620_v18 = vpack.c.bf16 %v1460_v14, %v1458_v13  ;;  %v1462_v21 = vld [vmem:[#allocation15 + $0xe0] sm:$0xff]  ;;  %v1581_v14 = vld [vmem:[#allocation18 + $0xf0] sm:$0xff] }
 0x56c   :  { %v2654_v17 = vpack.c.bf16 %v1582_v15, %v1581_v14  ;;  %v1798_v14 = vld [vmem:[#allocation22 + $0xe8] sm:$0xff] }
 0x56e   :  { %v1393_v28 = vpop.f32.mrb[10].mxu1 }
 0x56f   :  { %v1397_v31 = vadd.f32 %v1393_v28, %v1291_v26  ;;  %v2370_v32 = vpop.f32.mrb[11].mxu1  ;;  %v1464_v26 = vld [vmem:[#allocation15 + $0xf0] sm:$0xff]  ;;  %v1567_v28 = vld [vmem:[#allocation18 + $0x80] sm:$0xff] }
 0x570   :  { %v2624_v27 = vpack.c.bf16 %v1464_v26, %v1462_v21  ;;  %v1466_v26 = vld [vmem:[#allocation16] sm:$0x3] }
 0x571   :  { %v1405_v33 = vadd.f32 %v2111_v30, %v1397_v31  ;;  %v1568_v30 = vld [vmem:[#allocation18 + $0x88] sm:$0xff]  ;;  %v1551_v31 = vld [vmem:[#allocation18] sm:$0xff] }
 0x572   :  { %v2626_v32 = vpack.c.bf16 %v1568_v30, %v1567_v28 }
 0x573   :  { %v1406_v34 = vadd.f32 %v1405_v33, %v3551_v19  ;;  %v2602_v19 = vpack.c.bf16 %v1445_v46, %v1443_v16  ;;  %v1552_v33 = vld [vmem:[#allocation18 + $0x8] sm:$0xff]  ;;  %v1574_v16 = vld [vmem:[#allocation18 + $0xb8] sm:$0xff]  ;;  %v2636_v46 = vpack.c.bf16 %v1556_v9, %v1555_v44 }
 0x574   :  { %v2628_v36 = vpack.c.bf16 %v1552_v33, %v1551_v31  ;;  %2627 = vmatprep.subr.bf16.mxu1 %v2626_v32  ;;  %v2638_v47 = vpack.c.bf16 %v1574_v16, %v1573_v45  ;;  %v1786_v44 = vld [vmem:[#allocation22 + $0x88] sm:$0xff]  ;;  %v1690_v9 = vld [vmem:[#allocation22 + $0x10] sm:$0xff]  ;;  %v1691_v45 = vld [vmem:[#allocation22 + $0x18] sm:$0xff] }
 0x575   :  { %v1410_v35 = vsel %vm1409_vm5, %v1406_v34, 0.0  ;;  %2603 = vmatprep.subr.bf16.mxu0 %v2602_v19  ;;  %v1557_v19 = vld [vmem:[#allocation18 + $0x30] sm:$0xff] }
 0x576   :  { %1411 = vadd.xlane.f32.xlu1 %v1410_v35  ;;  %2605 = vmatpush1.bf16.msra.mxu0 %v2604_v50  ;;  %v1570_v35 = vld [vmem:[#allocation18 + $0x98] sm:$0xff]  ;;  %v1576_v50 = vld [vmem:[#allocation18 + $0xc8] sm:$0xff] }
 0x577   :  { %2607 = vmatprep.subr.bf16.mxu0 %v2606_v57  ;;  %2629 = vmatpush3.bf16.msra.mxu1 %v2628_v36  ;;  %v2114_v36 = vld [vmem:[#allocation19] ss:$0 sm:$0xff] }
 0x57a   :  { %2609 = vmatpush1.bf16.msra.mxu0 %v2608_v60  ;;  %v1562_v60 = vld [vmem:[#allocation18 + $0x58] sm:$0xff] }
 0x57b   :  { %2611 = vmatprep.subr.bf16.mxu0 %v2610_v24  ;;  %v2648_v24 = vpack.c.bf16 %v1562_v60, %v1561_v59  ;;  %v2670_v59 = vpack.c.bf16 %v1695_v56, %v1694_v55  ;;  %v1891_v55 = vld [vmem:[#allocation22 + $0x148] sm:$0xff] }
 0x57e   :  { %2613 = vmatpush1.bf16.msra.mxu0 %v2612_v4 }
 0x57f   :  { %2615 = vmatprep.subr.bf16.mxu0 %v2614_v8  ;;  %v2113_v8 = vld [vmem:[#allocation13 + $0x1] ss:$0 sm:$0xff] }
 0x582   :  { %2617 = vmatpush1.bf16.msra.mxu0 %v2616_v29  ;;  %v1563_v29 = vld [vmem:[#allocation18 + $0x60] sm:$0xff] }
 0x583   :  { %2619 = vmatprep.subr.bf16.mxu0 %v2618_v12  ;;  %v1564_v12 = vld [vmem:[#allocation18 + $0x68] sm:$0xff] }
 0x584   :  { %v2652_v13 = vpack.c.bf16 %v1564_v12, %v1563_v29  ;;  %v1700_v29 = vld [vmem:[#allocation22 + $0x60] sm:$0xff]  ;;  %v1701_v12 = vld [vmem:[#allocation22 + $0x68] sm:$0xff] }
 0x585   :  { %v2682_v15 = vpack.c.bf16 %v1701_v12, %v1700_v29  ;;  %v1989_v29 = vld [vmem:[#allocation22 + $0x1f8] sm:$0xff] }
 0x586   :  { %2621 = vmatpush1.bf16.msra.mxu0 %v2620_v18  ;;  %v1565_v18 = vld [vmem:[#allocation18 + $0x70] sm:$0xff] }
 0x587   :  { %2623 = vmatprep.subr.bf16.mxu0 %v2622_v20  ;;  %v1566_v20 = vld [vmem:[#allocation18 + $0x78] sm:$0xff] }
 0x588   :  { %v2656_v21 = vpack.c.bf16 %v1566_v20, %v1565_v18  ;;  %v1702_v18 = vld [vmem:[#allocation22 + $0x70] sm:$0xff]  ;;  %v1703_v20 = vld [vmem:[#allocation22 + $0x78] sm:$0xff] }
 0x58a   :  { %2625 = vmatpush1.bf16.msra.mxu0 %v2624_v27  ;;  %v1471_v27 = vrot.slane %v1466_v26, %v3567_v25 }
 0x603   :  { %v1412_v51 = vpop.xlane.xlu1 %1411 }
 0x604   :  { %v1414_v52 = vmul.f32 0.0078125, %v1412_v51  ;;  %v2640_v51 = vpack.c.bf16 %v1558_v48, %v1557_v19  ;;  %v1788_v19 = vld [vmem:[#allocation22 + $0x98] sm:$0xff]  ;;  %v1692_v48 = vld [vmem:[#allocation22 + $0x20] sm:$0xff] }
 0x606   :  { %v3688_v53 = vsub.f32 %v1406_v34, %v1414_v52  ;;  %v1569_v34 = vld [vmem:[#allocation18 + $0x90] sm:$0xff]  ;;  %v2642_v52 = vpack.c.bf16 %v1576_v50, %v1575_v49 }
 0x607   :  { %v2630_v37 = vpack.c.bf16 %v1570_v35, %v1569_v34  ;;  %v1693_v50 = vld [vmem:[#allocation22 + $0x28] sm:$0xff] }
 0x608   :  { %v1416_v54 = vmul.f32 %v3688_v53, %v3688_v53 }
 0x609   :  { %2631 = vmatprep.subr.bf16.mxu1 %v2630_v37 }
 0x60a   :  { %v1417_v22 = vsel %vm1409_vm5, %v1416_v54, 0.0  ;;  %2633 = vmatpush3.bf16.msra.mxu1 %v2632_v42  ;;  %v1559_v54 = vld [vmem:[#allocation18 + $0x40] sm:$0xff] }
 0x60b   :  { %1418 = vadd.xlane.f32.xlu0 %v1417_v22  ;;  %2635 = vmatprep.subr.bf16.mxu1 %v2634_v43  ;;  %v1560_v22 = vld [vmem:[#allocation18 + $0x48] sm:$0xff] }
 0x60c   :  { %v2644_v57 = vpack.c.bf16 %v1560_v22, %v1559_v54  ;;  %v1785_v42 = vld [vmem:[#allocation22 + $0x80] sm:$0xff]  ;;  %v2666_v54 = vpack.c.bf16 %v1693_v50, %v1692_v48  ;;  %v1888_v48 = vld [vmem:[#allocation22 + $0x130] sm:$0xff] }
 0x60d   :  { %v2690_v16 = vpack.c.bf16 %v1786_v44, %v1785_v42  ;;  %v1887_v42 = vld [vmem:[#allocation22 + $0x128] sm:$0xff]  ;;  %v1980_v50 = vld [vmem:[#allocation22 + $0x1b0] sm:$0xff] }
 0x60e   :  { %2637 = vmatpush3.bf16.msra.mxu1 %v2636_v46  ;;  %v2662_v46 = vpack.c.bf16 %v1691_v45, %v1690_v9  ;;  %v1979_v44 = vld [vmem:[#allocation22 + $0x1a8] sm:$0xff] }
 0x60f   :  { %2639 = vmatprep.subr.bf16.mxu1 %v2638_v47  ;;  %v1787_v47 = vld [vmem:[#allocation22 + $0x90] sm:$0xff] }
 0x610   :  { %v2694_v49 = vpack.c.bf16 %v1788_v19, %v1787_v47 }
 0x612   :  { %2641 = vmatpush3.bf16.msra.mxu1 %v2640_v51  ;;  %v1789_v51 = vld [vmem:[#allocation22 + $0xa0] sm:$0xff] }
 0x613   :  { %2643 = vmatprep.subr.bf16.mxu1 %v2642_v52  ;;  %v1790_v52 = vld [vmem:[#allocation22 + $0xa8] sm:$0xff] }
 0x614   :  { %v2698_v22 = vpack.c.bf16 %v1790_v52, %v1789_v51  ;;  %v1981_v52 = vld [vmem:[#allocation22 + $0x1b8] sm:$0xff] }
 0x616   :  { %2645 = vmatpush3.bf16.msra.mxu1 %v2644_v57  ;;  %v1791_v57 = vld [vmem:[#allocation22 + $0xb0] sm:$0xff] }
 0x617   :  { %2647 = vmatprep.subr.bf16.mxu1 %v2646_v58  ;;  %v1792_v58 = vld [vmem:[#allocation22 + $0xb8] sm:$0xff] }
 0x618   :  { %v2702_v60 = vpack.c.bf16 %v1792_v58, %v1791_v57  ;;  %v1983_v57 = vld [vmem:[#allocation22 + $0x1c8] sm:$0xff]  ;;  %v1892_v58 = vld [vmem:[#allocation22 + $0x150] sm:$0xff] }
 0x61a   :  { %2649 = vmatpush3.bf16.msra.mxu1 %v2648_v24  ;;  %v1686_v24 = vld [vmem:[%s3797_s2] sm:$0xff] }
 0x61b   :  { %2651 = vmatprep.subr.bf16.mxu1 %v2650_v63  ;;  %v1793_v63 = vld [vmem:[#allocation22 + $0xc0] sm:$0xff] }
 0x61e   :  { %2653 = vmatpush3.bf16.msra.mxu1 %v2652_v13  ;;  %v1797_v13 = vld [vmem:[#allocation22 + $0xe0] sm:$0xff] }
 0x61f   :  { %2655 = vmatprep.subr.bf16.mxu1 %v2654_v17  ;;  %v2714_v17 = vpack.c.bf16 %v1798_v14, %v1797_v13  ;;  %v2117_v14 = vld [vmem:[#allocation24] ss:$0 sm:$0xff] }
 0x622   :  { %2657 = vmatpush3.bf16.msra.mxu1 %v2656_v21  ;;  %v1799_v21 = vld [vmem:[#allocation22 + $0xf0] sm:$0xff] }
 0x623   :  { %2691 = vmatprep.subr.bf16.mxu1 %v2690_v16 }
 0x698   :  { %v1419_v2 = vpop.xlane.xlu0 %1418 }
 0x699   :  { %v1420_v3 = vmul.f32 0.0078125, %v1419_v2  ;;  %v1794_v2 = vld [vmem:[#allocation22 + $0xc8] sm:$0xff] }
 0x69b   :  { %v1421_v4 = vadd.f32 1e-05, %v1420_v3  ;;  %v2674_v3 = vpack.c.bf16 %v1697_v62, %v1696_v61  ;;  %v1984_v61 = vld [vmem:[#allocation22 + $0x1d0] sm:$0xff]  ;;  %v1985_v62 = vld [vmem:[#allocation22 + $0x1d8] sm:$0xff] }
 0x69d   :  { %2848 = vrsqrt.f32 %v1421_v4  ;;  %v2706_v4 = vpack.c.bf16 %v1794_v2, %v1793_v63  ;;  %v2762_v63 = vpack.c.bf16 %v1985_v62, %v1984_v61  ;;  %v1894_v2 = vld [vmem:[#allocation22 + $0x160] sm:$0xff] }
 0x6a7   :  { %v2849_v5 = vpop.eup %2848 }
 0x6a8   :  { %v1423_v7 = vmul.f32 %v2849_v5, %v3688_v53  ;;  %v1475_v53 = vrot.slane %v1466_v26, %v3562_v23  ;;  %v1688_v23 = vld [vmem:[#allocation22] sm:$0xff]  ;;  %v1698_v5 = vld [vmem:[#allocation22 + $0x50] sm:$0xff]  ;;  %v1800_v26 = vld [vmem:[#allocation22 + $0xf8] sm:$0xff] }
 0x6a9   :  { %v2658_v43 = vpack.c.bf16 %v1689_v41, %v1688_v23  ;;  %v1886_v41 = vld [vmem:[#allocation22 + $0x120] sm:$0xff] }
 0x6aa   :  { %v1428_v10 = vmul.f32 %v2112_v6, %v1423_v7  ;;  %v1699_v6 = vld [vmem:[#allocation22 + $0x58] sm:$0xff]  ;;  %v1795_v7 = vld [vmem:[#allocation22 + $0xd0] sm:$0xff]  ;;  %v2729_v9 = vpack.c.bf16 %v1887_v42, %v1886_v41 }
 0x6ab   :  { %2659 = vmatprep.subr.bf16.mxu0 %v2658_v43 }
 0x6ac   :  { %v1433_v11 = vadd.f32 %v2113_v8, %v1428_v10  ;;  %v1796_v8 = vld [vmem:[#allocation22 + $0xd8] sm:$0xff]  ;;  %v2678_v10 = vpack.c.bf16 %v1699_v6, %v1698_v5  ;;  %v1987_v5 = vld [vmem:[#allocation22 + $0x1e8] sm:$0xff] }
 0x6ae   :  { %1543 = vmatmul.mubr.f32.vlgmr.msra.gmra.mrb[10].mxu0 %v1433_v11 }
 0x6af   :  { %2661 = vmatpush3.bf16.msra.mxu0 %v2658_v43  ;;  %2403 = vmatprep.mubr.f32.mxu0 %v1686_v24  ;;  %v1978_v43 = vld [vmem:[#allocation22 + $0x1a0] sm:$0xff] }
 0x6b0   :  { %2663 = vmatprep.subr.bf16.mxu0 %v2662_v46  ;;  %v2753_v45 = vpack.c.bf16 %v1979_v44, %v1978_v43 }
 0x6b3   :  { %2665 = vmatpush3.bf16.msra.mxu0 %v2662_v46 }
 0x6b4   :  { %2667 = vmatprep.subr.bf16.mxu0 %v2666_v54 }
 0x6b7   :  { %2669 = vmatpush3.bf16.msra.mxu0 %v2666_v54  ;;  %v2756_v54 = vpack.c.bf16 %v1981_v52, %v1980_v50 }
 0x6b8   :  { %2671 = vmatprep.subr.bf16.mxu0 %v2670_v59 }
 0x6bb   :  { %2673 = vmatpush3.bf16.msra.mxu0 %v2670_v59  ;;  %v1893_v59 = vld [vmem:[#allocation22 + $0x158] sm:$0xff] }
 0x6bc   :  { %2675 = vmatprep.subr.bf16.mxu0 %v2674_v3 }
 0x6bf   :  { %2677 = vmatpush3.bf16.msra.mxu0 %v2674_v3  ;;  %v1895_v3 = vld [vmem:[#allocation22 + $0x168] sm:$0xff] }
 0x6c0   :  { %2679 = vmatprep.subr.bf16.mxu0 %v2678_v10  ;;  %v2741_v6 = vpack.c.bf16 %v1895_v3, %v1894_v2 }
 0x6c3   :  { %2681 = vmatpush3.bf16.msra.mxu0 %v2678_v10  ;;  %v1897_v10 = vld [vmem:[#allocation22 + $0x178] sm:$0xff] }
 0x6c4   :  { %2683 = vmatprep.subr.bf16.mxu0 %v2682_v15 }
 0x6c7   :  { %2685 = vmatpush3.bf16.msra.mxu0 %v2682_v15  ;;  %v2118_v15 = vld [vmem:[#allocation24 + $0x1] ss:$0 sm:$0xff] }
 0x781   :  { %v1544_v28 = vpop.f32.mrb[10].mxu0 }
 0x782   :  { %v1545_v30 = vadd.f32 %v1544_v28, %v1471_v27  ;;  %v1546_v31 = vpop.f32.mrb[11].mxu0  ;;  %v2686_v27 = vpack.c.bf16 %v1703_v20, %v1702_v18  ;;  %v1882_v28 = vld [vmem:[#allocation22 + $0x100] sm:$0xff] }
 0x783   :  { %v1547_v32 = vadd.f32 %v1546_v31, %v1475_v53  ;;  %v2718_v53 = vpack.c.bf16 %v1800_v26, %v1799_v21  ;;  %v1974_v31 = vld [vmem:[#allocation22 + $0x180] sm:$0xff] }
 0x784   :  { %v1549_v34 = vmax.f32 %v1545_v30, 0.0  ;;  %2687 = vmatprep.subr.bf16.mxu0 %v2686_v27  ;;  %v1883_v30 = vld [vmem:[#allocation22 + $0x108] sm:$0xff] }
 0x785   :  { %v1550_v33 = vmax.f32 %v1547_v32, 0.0  ;;  %v1975_v32 = vld [vmem:[#allocation22 + $0x188] sm:$0xff]  ;;  %2689 = vmatpush3.bf16.msra.mxu0 %v2686_v27 }
 0x786   :  { %2722 = vmatprep.subr.bf16.mxu0 %v3219_v0 }
 0x787   :  { %1654 = vmatprep.mubr.f32.mxu1 %v1550_v33  ;;  %v1687_v33 = vld [vmem:[%s3797_s2 + $0x8] sm:$0xff] }
 0x788   :  { %1655 = vmatmul.mubr.f32.vlgmr.msra.gmra.mrb[12].mxu1 %v1549_v34  ;;  %v2723_v34 = vpack.c.bf16 %v1883_v30, %v1882_v28  ;;  %2404 = vmatmul.mubr.f32.vlgmr.msra.gmra.mrb[12].mxu0 %v1687_v33 }
 0x789   :  { %2693 = vmatpush3.bf16.msra.mxu1 %v2690_v16  ;;  %2438 = vmatprep.mubr.f32.mxu1 %v1686_v24  ;;  %v2738_v24 = vpack.c.bf16 %v1893_v59, %v1892_v58 }
 0x78a   :  { %2695 = vmatprep.subr.bf16.mxu1 %v2694_v49  ;;  %2724 = vmatpush3.bf16.msra.mxu0 %v2723_v34 }
 0x78b   :  { %2725 = vmatprep.subr.bf16.mxu0 %v3219_v0  ;;  %2473 = vmatprep.mubr.msk.f32.mxu0 %vm3220_vm0, %v3221_v1 }
 0x78d   :  { %2697 = vmatpush3.bf16.msra.mxu1 %v2694_v49  ;;  %v1889_v49 = vld [vmem:[#allocation22 + $0x138] sm:$0xff] }
 0x78e   :  { %2699 = vmatprep.subr.bf16.mxu1 %v2698_v22  ;;  %v2732_v51 = vpack.c.bf16 %v1889_v49, %v1888_v48 }
 0x791   :  { %2701 = vmatpush3.bf16.msra.mxu1 %v2698_v22  ;;  %v1890_v22 = vld [vmem:[#allocation22 + $0x140] sm:$0xff] }
 0x792   :  { %2703 = vmatprep.subr.bf16.mxu1 %v2702_v60  ;;  %v2735_v56 = vpack.c.bf16 %v1891_v55, %v1890_v22 }
 0x795   :  { %2705 = vmatpush3.bf16.msra.mxu1 %v2702_v60 }
 0x796   :  { %2707 = vmatprep.subr.bf16.mxu1 %v2706_v4 }
 0x799   :  { %2709 = vmatpush3.bf16.msra.mxu1 %v2706_v4  ;;  %v1986_v4 = vld [vmem:[#allocation22 + $0x1e0] sm:$0xff] }
 0x85b   :  { %v2198_v35 = vpop.f32.mrb[12].mxu1 }
 0x85c   :  { %v2199_v37 = vpop.f32.mrb[13].mxu1 }
 0x85d   :  { %v2200_v38 = vadd.f32 %v2199_v37, %v2198_v35  ;;  %v2747_v35 = vpack.c.bf16 %v1975_v32, %v1974_v31  ;;  %v1885_v37 = vld [vmem:[#allocation22 + $0x118] sm:$0xff] }
 0x85f   :  { %v1657_v39 = vadd.f32 %v2200_v38, %v2114_v36  ;;  %v1884_v36 = vld [vmem:[#allocation22 + $0x110] sm:$0xff] }
 0x860   :  { %v1976_v38 = vld [vmem:[#allocation22 + $0x190] sm:$0xff] }
 0x861   :  { %v3696_v40 = vadd.f32 %v1657_v39, %v1433_v11  ;;  %v2710_v11 = vpack.c.bf16 %v1796_v8, %v1795_v7  ;;  %v1977_v39 = vld [vmem:[#allocation22 + $0x198] sm:$0xff]  ;;  %v2765_v7 = vpack.c.bf16 %v1987_v5, %v1986_v4  ;;  %v1896_v8 = vld [vmem:[#allocation22 + $0x170] sm:$0xff] }
 0x862   :  { %v2750_v23 = vpack.c.bf16 %v1977_v39, %v1976_v38  ;;  %v2744_v12 = vpack.c.bf16 %v1897_v10, %v1896_v8  ;;  %v2119_v38 = vld [vmem:[#allocation24 + $0x2] ss:$0 sm:$0xff]  ;;  %v2120_v39 = vld [vmem:[#allocation24 + $0x3] ss:$0 sm:$0xff] }
 0x863   :  { %v1663_v25 = vsel %vm1409_vm5, %v3696_v40, 0.0  ;;  %2711 = vmatprep.subr.bf16.mxu1 %v2710_v11 }
 0x864   :  { %1664 = vadd.xlane.f32.xlu0 %v1663_v25  ;;  %2713 = vmatpush3.bf16.msra.mxu1 %v2710_v11  ;;  %v2726_v25 = vpack.c.bf16 %v1885_v37, %v1884_v36  ;;  %v1988_v11 = vld [vmem:[#allocation22 + $0x1f0] sm:$0xff] }
 0x865   :  { %2715 = vmatprep.subr.bf16.mxu1 %v2714_v17  ;;  %v2768_v13 = vpack.c.bf16 %v1989_v29, %v1988_v11 }
 0x866   :  { %2727 = vmatpush3.bf16.msra.mxu0 %v2726_v25 }
 0x867   :  { %2728 = vmatprep.subr.bf16.mxu0 %v3219_v0 }
 0x868   :  { %2717 = vmatpush3.bf16.msra.mxu1 %v2714_v17  ;;  %v2405_v17 = vpop.f32.mrb[12].mxu0 }
 0x869   :  { %2719 = vmatprep.subr.bf16.mxu1 %v2718_v53  ;;  %v1781_v18 = vadd.f32 %v2405_v17, %v2117_v14  ;;  %v1775_v21 = vpop.f32.mrb[13].mxu0 }
 0x86a   :  { %2730 = vmatpush3.bf16.msra.mxu0 %v2729_v9  ;;  %v1776_v27 = vadd.f32 %v2117_v14, %v1775_v21 }
 0x86b   :  { %2731 = vmatprep.subr.bf16.mxu0 %v3219_v0  ;;  %2067 = vst [vmem:[%s3771_s17 + $0x8] sm:$0xff] %v1781_v18 }
 0x86c   :  { %2721 = vmatpush3.bf16.msra.mxu1 %v2718_v53  ;;  %2066 = vst [vmem:[%s3771_s17] sm:$0xff] %v1776_v27 }
 0x86d   :  { %2746 = vmatprep.subr.bf16.mxu1 %v3219_v0 }
 0x86e   :  { %2733 = vmatpush3.bf16.msra.mxu0 %v2732_v51 }
 0x86f   :  { %2439 = vmatmul.mubr.f32.vlgmr.msra.gmra.mrb[14].mxu1 %v1687_v33  ;;  %2734 = vmatprep.subr.bf16.mxu0 %v3219_v0  ;;  %v2115_v33 = vld [vmem:[#allocation21] ss:$0 sm:$0xff] }
 0x870   :  { %2748 = vmatpush3.bf16.msra.mxu1 %v2747_v35  ;;  %2508 = vmatprep.mubr.msk.f32.mxu1 %vm3220_vm0, %v3221_v1  ;;  %v2116_v35 = vld [vmem:[#allocation21 + $0x1] ss:$0 sm:$0xff] }
 0x871   :  { %2749 = vmatprep.subr.bf16.mxu1 %v3219_v0 }
 0x872   :  { %2736 = vmatpush3.bf16.msra.mxu0 %v2735_v56 }
 0x873   :  { %2737 = vmatprep.subr.bf16.mxu0 %v3219_v0 }
 0x874   :  { %2751 = vmatpush3.bf16.msra.mxu1 %v2750_v23 }
 0x875   :  { %2752 = vmatprep.subr.bf16.mxu1 %v3219_v0 }
 0x876   :  { %2739 = vmatpush3.bf16.msra.mxu0 %v2738_v24 }
 0x877   :  { %2740 = vmatprep.subr.bf16.mxu0 %v3219_v0 }
 0x878   :  { %2754 = vmatpush3.bf16.msra.mxu1 %v2753_v45 }
 0x879   :  { %2755 = vmatprep.subr.bf16.mxu1 %v3219_v0 }
 0x87a   :  { %2742 = vmatpush3.bf16.msra.mxu0 %v2741_v6 }
 0x87b   :  { %2743 = vmatprep.subr.bf16.mxu0 %v3219_v0 }
 0x87c   :  { %2757 = vmatpush3.bf16.msra.mxu1 %v2756_v54 }
 0x87d   :  { %2758 = vmatprep.subr.bf16.mxu1 %v3219_v0 }
 0x87e   :  { %2745 = vmatpush3.bf16.msra.mxu0 %v2744_v12 }
 0x8f1   :  { %v1665_v16 = vpop.xlane.xlu0 %1664 }
 0x8f2   :  { %v1666_v46 = vmul.f32 0.0078125, %v1665_v16 }
 0x8f4   :  { %v3719_v47 = vsub.f32 %v3696_v40, %v1666_v46  ;;  %v1982_v40 = vld [vmem:[#allocation22 + $0x1c0] sm:$0xff] }
 0x8f5   :  { %v2759_v60 = vpack.c.bf16 %v1983_v57, %v1982_v40 }
 0x8f6   :  { %v1668_v1 = vmul.f32 %v3719_v47, %v3719_v47 }
 0x8f7   :  { %2760 = vmatpush3.bf16.msra.mxu1 %v2759_v60 }
 0x8f8   :  { %v1669_v19 = vsel %vm1409_vm5, %v1668_v1, 0.0  ;;  %2761 = vmatprep.subr.bf16.mxu1 %v3219_v0 }
 0x8f9   :  { %1670 = vadd.xlane.f32.xlu1 %v1669_v19 }
 0x8fb   :  { %2763 = vmatpush3.bf16.msra.mxu1 %v2762_v63 }
 0x8fc   :  { %2764 = vmatprep.subr.bf16.mxu1 %v3219_v0 }
 0x8ff   :  { %2766 = vmatpush3.bf16.msra.mxu1 %v2765_v7 }
 0x900   :  { %2767 = vmatprep.subr.bf16.mxu1 %v3219_v0 }
 0x903   :  { %2769 = vmatpush3.bf16.msra.mxu1 %v2768_v13 }
 0x942   :  { %v2440_v20 = vpop.f32.mrb[14].mxu1 }
 0x943   :  { %v1878_v26 = vadd.f32 %v2440_v20, %v2118_v15  ;;  %v1872_v53 = vpop.f32.mrb[15].mxu1 }
 0x944   :  { %v1873_v28 = vadd.f32 %v2118_v15, %v1872_v53 }
 0x945   :  { %2069 = vst [vmem:[%s3772_s18 + $0x8] sm:$0xff] %v1878_v26 }
 0x946   :  { %2068 = vst [vmem:[%s3772_s18] sm:$0xff] %v1873_v28 }
 0x986   :  { %v1671_v0 = vpop.xlane.xlu1 %1670 }
 0x987   :  { %v1672_v30 = vmul.f32 0.0078125, %v1671_v0 }
 0x989   :  { %v1673_v31 = vadd.f32 1e-05, %v1672_v30 }
 0x98b   :  { %2850 = vrsqrt.f32 %v1673_v31 }
 0x995   :  { %v2851_v32 = vpop.eup %2850 }
 0x996   :  { %v1675_v34 = vmul.f32 %v2851_v32, %v3719_v47 }
 0x998   :  { %v1680_v36 = vmul.f32 %v2115_v33, %v1675_v34 }
 0x99a   :  { %v1685_v37 = vadd.f32 %v2116_v35, %v1680_v36 }
 0x99c   :  { %2474 = vmatmul.mubr.f32.vlgmr.msra.gmra.mrb[14].mxu0 %v1685_v37  ;;  %2065 = vst [vmem:[%s3770_s16] sm:$0x3] %v1685_v37  ;;  %2509 = vmatmul.mubr.f32.vlgmr.msra.gmra.mrb[16].mxu1 %v1685_v37 }
 0xa6f   :  { %v1969_v25 = vpop.f32.mrb[14].mxu0  ;;  %v2061_v23 = vpop.f32.mrb[16].mxu1 }
 0xa70   :  { %v1970_v41 = vadd.f32 %v2119_v38, %v1969_v25  ;;  %v2062_v42 = vadd.f32 %v2120_v39, %v2061_v23  ;;  %v2475_v43 = vpop.f32.mrb[15].mxu0  ;;  %v2510_v44 = vpop.f32.mrb[17].mxu1 }
 0xa72   :  { %2070 = vst [vmem:[%s3798_s5] sm:$0x3] %v1970_v41  ;;  %2071 = vst [vmem:[%s3799_s28] sm:$0x3] %v2062_v42 }
 0xa73   :  { %2092 = vsyncpa [#allocation3], 1 }
 0xa74   :  { %2093 = vsyncpa [#allocation5], 1 }
 0xa75   :  { %2094 = vsyncpa [#allocation8], 1 }
 0xa76   :  { %2095 = vsyncpa [#allocation11], 1 }
 0xa77   :  { %2096 = vsyncpa [#allocation14], 1 }
 0xa78   :  { %2097 = vsyncpa [#allocation17], 1 }
 0xa79   :  { %2098 = vsyncpa [#allocation20], 1 }
 0xa7a   :  { %2099 = vsyncpa [#allocation23], 1 }

// kernel: patchnet_forward.3
= control target key start
LH: loop header
LB: loop body
LE: loop exit
PB: predicated region body
PF: predicated region fallthrough
CT: control target
= control target key end

     0   :  { %s11430_s0 = inlined_call_operand.vmem [shape: f32[2,1,8,16], index: 0, kind: input, shape index: {}]   ;;  %s11431_s1 = inlined_call_operand.vmem [shape: f32[2,8,8,16], index: 1, kind: input, shape index: {}]   ;;  %s11432_s2 = inlined_call_operand.vmem [shape: f32[2,8,8,16], index: 2, kind: input, shape index: {}]   ;;  %s11433_s3 = inlined_call_operand.vmem [shape: f32[2,8,8,16], index: 3, kind: input, shape index: {}]   ;;  %s11434_s4 = inlined_call_operand.vmem [shape: f32[2,1,8,16], index: 4, kind: input, shape index: {}]   ;;  %s11435_s5 = inlined_call_operand.vmem [shape: f32[2,1,8,16], index: 5, kind: input, shape index: {}]   ;;  %s11436_s6 = inlined_call_operand.vmem [shape: f32[128,128], index: 6, kind: input, shape index: {}]   ;;  %s11437_s7 = inlined_call_operand.vmem [shape: f32[1,128], index: 7, kind: input, shape index: {}]   ;;  %s11438_s8 = inlined_call_operand.vmem [shape: f32[16,128,128], index: 8, kind: input, shape index: {}]   ;;  %s11439_s9 = inlined_call_operand.vmem [shape: f32[1,128], index: 9, kind: input, shape index: {}]   ;;  %s11440_s10 = inlined_call_operand.vmem [shape: f32[128,4], index: 10, kind: input, shape index: {}]   ;;  %s11441_s11 = inlined_call_operand.vmem [shape: f32[1,4], index: 11, kind: input, shape index: {}]   ;;  %s11442_s12 = inlined_call_operand.hbm [shape: f32[2,1,4], index: 12, kind: output, shape index: {}]  }
   0x1   :  { %11549 = sst [smem:[#allocation93_spill]] %s11430_s0 }
   0x2   :  { %11550 = sst [smem:[#allocation94_spill]] %s11431_s1 }
   0x3   :  { %17 = vsyncpa [#allocation3], 0 }
   0x4   :  { %19 = vsyncpa [#allocation3 + $0x1], 0  ;;  %s8021_s21 = smov 0   ;;  %s8023_s22 = smov 0  }
   0x5   :  { %s8025_s23 = smov 0   ;;  %s8027_s24 = smov 0  }
   0x6 LB: > { %s8042_s25 = sadd.s32 4294967295, %s7950_s24   ;;  %s5722_s26 = sadd.s32 4294967294, %s7950_s24   ;;  %s7950_s24 = sphi %s8027_s24, %s11860_s24   ;;  %s7946_s23 = sphi %s8025_s23, %s11859_s23   ;;  %s7942_s22 = sphi %s8023_s22, %s11858_s22   ;;  %s7938_s21 = sphi %s8021_s21, %s11857_s21  }
   0x7   : > { %s8046_s27 = sadd.s32 1, %s7950_s24   ;;  %s314_s28 = sadd.s32 1, %s7946_s23 }
   0x8   : > { %s311_s29 = ssub.s32 %s7950_s24, %s8046_s27  ;;  %p324_p0 = scmp.ne.s32.totalorder %s7946_s23, %s7942_s22 }
   0x9   : > { %p312_p1 = scmp.eq.s32.totalorder %s311_s29, 0  ;;  %p325_p2 = scmp.eq.s32.totalorder %s8042_s25, 1 }
   0xa   : > { %p330_p3 = scmp.ne.s32.totalorder %s7942_s22, %s7938_s21  ;;  %p331_p4 = scmp.eq.s32.totalorder %s5722_s26, 1 }
   0xb   : > { %s8057_s30 = scalar_select %p312_p1, %s7946_s23, %s314_s28  }
   0xc   : > { %p8059_p5 = por %p325_p2, %p324_p0  ;;  %p8063_p6 = por %p331_p4, %p330_p3 }
   0xd   : > { %p5725_p7 = scmp.ge.s32.totalorder %s7950_s24, 1  ;;  %p412_p8 = scmp.lt.s32.totalorder %s7950_s24, 3 }
   0xf   : > { %p413_p9 = pnand %p5725_p7, %p412_p8 }
  0x11   : > { %416 = sbr.rel (%p413_p9) target bundleno = 1546 (0x60a), region = 68 }
  0x18   : > { %p475_p10 = scmp.lt.s32.totalorder %s8042_s25, 1  ;;  %v529_v0 = vlaneseq  ;;  %s11553_s0 = sld [smem:[#allocation93_spill]]  ;;  %vm569_vm0 = vcmask 130048   ;;  %vm7953_vm1 = vmmov 0   ;;  %vm2645_vm2 = vcmask 1041409  }
  0x19   : > { %s11554_s1 = sld [smem:[#allocation94_spill]]  ;;  %vm2648_vm3 = vcmask 1042434   ;;  %vm2651_vm4 = vcmask 1043459   ;;  %vm2654_vm5 = vcmask 1044484   ;;  %vm2657_vm6 = vcmask 1045509   ;;  %s5992_s28 = sshll.u32 %s8042_s25, 4 }
  0x1a   : > { %s476_s15 = scalar_select %p475_p10, %s8042_s25, 1  ;;  %v8071_v1 = vshrl.u32 %v529_v0, 7  ;;  %vm2660_vm7 = vcmask 1046534   ;;  %vm2663_vm8 = vcmask 1047559   ;;  %vm5592_vm9 = vcmask 24576  }
  0x1b   : > { %s7955_s25 = smov [#allocation2]  }
  0x1c   : > { %s8073_s16 = sshll.u32 %s476_s15, 3  ;;  %s8075_s17 = sshll.u32 %s476_s15, 6  ;;  %v8078_v2 = vsub.s32 0, %v8071_v1  ;;  %v8081_v3 = vsub.s32 1, %v8071_v1  ;;  %v8133_v23 = vsub.s32 2, %v8071_v1  ;;  %v8177_v50 = vsub.s32 3, %v8071_v1 }
  0x1d   : > { %s497_s19 = scalar_lea.vmem %s11434_s4, %s8073_s16  ;;  %s8190_s15 = scalar_lea.vmem %s11433_s3, %s8075_s17 }
  0x1e   : > { %s8087_s20 = scalar_lea.vmem %s11553_s0, %s8073_s16  ;;  %v8184_v55 = vld [vmem:[%s497_s19] sm:$0xff]  ;;  %v8206_v63 = vld [vmem:[%s8190_s15 + $0x8] sm:$0xff]  ;;  %s8984_s18 = scalar_lea.vmem %s11432_s2, %s8075_s17 }
  0x1f   : > { %s8093_s29 = scalar_lea.vmem %s11554_s1, %s8075_s17  ;;  %v8096_v4 = vld [vmem:[%s8087_s20] sm:$0xff]  ;;  %v8198_v60 = vrot.slane %v8184_v55, %v8078_v2  ;;  %s501_s26 = scalar_lea.vmem %s11435_s5, %s8073_s16 }
  0x20   : > { %v8099_v5 = vld [vmem:[%s8093_s29 + $0x10] sm:$0xff]  ;;  %v8102_v6 = vld [vmem:[%s8093_s29 + $0x8] sm:$0xff]  ;;  %v8113_v11 = vld [vmem:[%s8093_s29 + $0x18] sm:$0xff]  ;;  %s473_s1 = sand.u32 1, %s7942_s22  }
  0x21   : > { %v540_v7 = vrot.slane %v8099_v5, %v8078_v2  ;;  %v536_v8 = vrot.slane %v8102_v6, %v8078_v2  ;;  %v613_v9 = vrot.slane %v8099_v5, %v8081_v3  ;;  %v609_v10 = vrot.slane %v8102_v6, %v8081_v3  ;;  %v8116_v12 = vld [vmem:[%s8093_s29] sm:$0xff]  ;;  %v8159_v41 = vld [vmem:[%s8093_s29 + $0x28] sm:$0xff]  ;;  %v8203_v62 = vld [vmem:[%s8093_s29 + $0x30] sm:$0xff]  ;;  %s5595_s17 = scalar_lea.sflag [#allocation3], %s473_s1 }
  0x22   : > { %v544_v13 = vrot.slane %v8113_v11, %v8078_v2  ;;  %v532_v14 = vrot.slane %v8116_v12, %v8078_v2  ;;  %v617_v21 = vrot.slane %v8113_v11, %v8081_v3  ;;  %v605_v22 = vrot.slane %v8116_v12, %v8081_v3  ;;  %v8140_v28 = vld [vmem:[%s8093_s29 + $0x20] sm:$0xff] }
  0x23   : > { %v563_v15 = vmul.f32 %v540_v7, %v8096_v4  ;;  %v562_v16 = vmul.f32 %v536_v8, %v8096_v4  ;;  %v636_v17 = vmul.f32 %v613_v9, %v8096_v4  ;;  %v635_v18 = vmul.f32 %v609_v10, %v8096_v4 }
  0x24   : > { %v564_v26 = vmul.f32 %v544_v13, %v8096_v4  ;;  %v561_v27 = vmul.f32 %v532_v14, %v8096_v4  ;;  %v637_v29 = vmul.f32 %v617_v21, %v8096_v4  ;;  %v634_v30 = vmul.f32 %v605_v22, %v8096_v4 }
  0x25   : > { %v576_v19 = vsel %vm569_vm0, %v563_v15, 0.0  ;;  %v573_v20 = vsel %vm569_vm0, %v562_v16, 0.0  ;;  %v648_v24 = vsel %vm569_vm0, %v636_v17, 0.0  ;;  %v645_v25 = vsel %vm569_vm0, %v635_v18, 0.0 }
  0x26   : > { %577 = vadd.xlane.f32.xlu1 %v576_v19  ;;  %574 = vadd.xlane.f32.xlu0 %v573_v20  ;;  %v579_v31 = vsel %vm569_vm0, %v564_v26, 0.0  ;;  %v570_v32 = vsel %vm569_vm0, %v561_v27, 0.0  ;;  %v548_v33 = vrot.slane %v8140_v28, %v8078_v2  ;;  %v681_v34 = vrot.slane %v8102_v6, %v8133_v23  ;;  %v8235_v26 = vld [vmem:[%s8190_s15 + $0x10] sm:$0xff]  ;;  %v8238_v27 = vld [vmem:[%s8093_s29 + $0x38] sm:$0xff] }
  0x27   : > { %v651_v35 = vsel %vm569_vm0, %v637_v29, 0.0  ;;  %v642_v36 = vsel %vm569_vm0, %v634_v30, 0.0  ;;  %v685_v39 = vrot.slane %v8099_v5, %v8133_v23  ;;  %v621_v40 = vrot.slane %v8140_v28, %v8081_v3 }
  0x28   : > { %v565_v37 = vmul.f32 %v548_v33, %v8096_v4  ;;  %v707_v38 = vmul.f32 %v681_v34, %v8096_v4  ;;  %v625_v42 = vrot.slane %v8159_v41, %v8081_v3  ;;  %v552_v43 = vrot.slane %v8159_v41, %v8078_v2 }
  0x29   : > { %v708_v46 = vmul.f32 %v685_v39, %v8096_v4  ;;  %v638_v47 = vmul.f32 %v621_v40, %v8096_v4  ;;  %v689_v49 = vrot.slane %v8113_v11, %v8133_v23  ;;  %v677_v54 = vrot.slane %v8116_v12, %v8133_v23 }
  0x2a   : > { %649 = vadd.xlane.f32.xlu1 %v648_v24  ;;  %646 = vadd.xlane.f32.xlu0 %v645_v25  ;;  %v582_v44 = vsel %vm569_vm0, %v565_v37, 0.0  ;;  %v717_v45 = vsel %vm569_vm0, %v707_v38, 0.0  ;;  %v639_v48 = vmul.f32 %v625_v42, %v8096_v4  ;;  %v566_v53 = vmul.f32 %v552_v43, %v8096_v4 }
  0x2b   : > { %v720_v51 = vsel %vm569_vm0, %v708_v46, 0.0  ;;  %v654_v52 = vsel %vm569_vm0, %v638_v47, 0.0  ;;  %v709_v57 = vmul.f32 %v689_v49, %v8096_v4  ;;  %v706_v59 = vmul.f32 %v677_v54, %v8096_v4  ;;  %v8274_v54 = vld [vmem:[%s8190_s15] sm:$0xff] }
  0x2c   : > { %v657_v56 = vsel %vm569_vm0, %v639_v48, 0.0  ;;  %v585_v58 = vsel %vm569_vm0, %v566_v53, 0.0  ;;  %v753_v61 = vrot.slane %v8102_v6, %v8177_v50  ;;  %v556_v7 = vrot.slane %v8203_v62, %v8078_v2 }
  0x2d   : > { %v723_v0 = vsel %vm569_vm0, %v709_v57, 0.0  ;;  %v714_v8 = vsel %vm569_vm0, %v706_v59, 0.0  ;;  %v1807_v9 = vmul.f32 %v8198_v60, %v8206_v63  ;;  %v8217_v13 = vrot.slane %v8184_v55, %v8081_v3 }
  0x2e   : > { %580 = vadd.xlane.f32.xlu1 %v579_v31  ;;  %571 = vadd.xlane.f32.xlu0 %v570_v32  ;;  %v779_v10 = vmul.f32 %v753_v61, %v8096_v4  ;;  %v693_v14 = vrot.slane %v8140_v28, %v8133_v23  ;;  %v629_v15 = vrot.slane %v8203_v62, %v8081_v3  ;;  %v8261_v43 = vsub.s32 4, %v8071_v1  ;;  %v8282_v61 = vld [vmem:[%s8190_s15 + $0x18] sm:$0xff] }
  0x2f   : > { %v1817_v16 = vsel %vm569_vm0, %v1807_v9, 0.0  ;;  %v567_v18 = vmul.f32 %v556_v7, %v8096_v4  ;;  %v1851_v19 = vmul.f32 %v8217_v13, %v8206_v63  ;;  %v757_v20 = vrot.slane %v8099_v5, %v8177_v50 }
  0x30   : > { %v789_v17 = vsel %vm569_vm0, %v779_v10, 0.0  ;;  %v710_v24 = vmul.f32 %v693_v14, %v8096_v4  ;;  %v640_v25 = vmul.f32 %v629_v15, %v8096_v4  ;;  %v1808_v29 = vmul.f32 %v8198_v60, %v8235_v26 }
  0x31   : > { %v588_v21 = vsel %vm569_vm0, %v567_v18, 0.0  ;;  %v1861_v22 = vsel %vm569_vm0, %v1851_v19, 0.0  ;;  %v780_v30 = vmul.f32 %v757_v20, %v8096_v4  ;;  %v560_v33 = vrot.slane %v8238_v27, %v8078_v2 }
  0x32   : > { %652 = vadd.xlane.f32.xlu1 %v651_v35  ;;  %643 = vadd.xlane.f32.xlu0 %v642_v36  ;;  %v726_v31 = vsel %vm569_vm0, %v710_v24, 0.0  ;;  %v660_v32 = vsel %vm569_vm0, %v640_v25, 0.0  ;;  %v1820_v34 = vsel %vm569_vm0, %v1808_v29, 0.0  ;;  %v1852_v37 = vmul.f32 %v8217_v13, %v8235_v26  ;;  %v8311_v29 = vld [vmem:[%s8190_s15 + $0x20] sm:$0xff] }
  0x33   : > { %v792_v35 = vsel %vm569_vm0, %v780_v30, 0.0  ;;  %v568_v36 = vmul.f32 %v560_v33, %v8096_v4  ;;  %v697_v38 = vrot.slane %v8159_v41, %v8133_v23  ;;  %v633_v39 = vrot.slane %v8238_v27, %v8081_v3 }
  0x34   : > { %v761_v40 = vrot.slane %v8113_v11, %v8177_v50  ;;  %v749_v42 = vrot.slane %v8116_v12, %v8177_v50  ;;  %v825_v48 = vrot.slane %v8102_v6, %v8261_v43  ;;  %v1809_v9 = vmul.f32 %v8198_v60, %v8282_v61 }
  0x35   : > { %v711_v46 = vmul.f32 %v697_v38, %v8096_v4  ;;  %v641_v47 = vmul.f32 %v633_v39, %v8096_v4  ;;  %v8292_v10 = vrot.slane %v8184_v55, %v8133_v23  ;;  %v1853_v15 = vmul.f32 %v8217_v13, %v8282_v61 }
  0x36   : > { %583 = vadd.xlane.f32.xlu1 %v582_v44  ;;  %718 = vadd.xlane.f32.xlu0 %v717_v45  ;;  %v591_v44 = vsel %vm569_vm0, %v568_v36, 0.0  ;;  %v1864_v45 = vsel %vm569_vm0, %v1852_v37, 0.0  ;;  %v778_v53 = vmul.f32 %v749_v42, %v8096_v4  ;;  %v851_v59 = vmul.f32 %v825_v48, %v8096_v4 }
  0x37   : > { %v729_v49 = vsel %vm569_vm0, %v711_v46, 0.0  ;;  %v765_v18 = vrot.slane %v8140_v28, %v8177_v50  ;;  %v701_v19 = vrot.slane %v8203_v62, %v8133_v23  ;;  %v829_v20 = vrot.slane %v8099_v5, %v8261_v43 }
  0x38   : > { %v786_v57 = vsel %vm569_vm0, %v778_v53, 0.0  ;;  %v769_v38 = vrot.slane %v8159_v41, %v8177_v50  ;;  %v705_v39 = vrot.slane %v8238_v27, %v8133_v23  ;;  %v821_v48 = vrot.slane %v8116_v12, %v8261_v43 }
  0x39   : > { %v782_v24 = vmul.f32 %v765_v18, %v8096_v4  ;;  %v712_v25 = vmul.f32 %v701_v19, %v8096_v4  ;;  %v852_v33 = vmul.f32 %v829_v20, %v8096_v4  ;;  %v1897_v18 = vmul.f32 %v8292_v10, %v8282_v61 }
  0x3a   : > { %721 = vadd.xlane.f32.xlu1 %v720_v51  ;;  %655 = vadd.xlane.f32.xlu0 %v654_v52  ;;  %v663_v51 = vsel %vm569_vm0, %v641_v47, 0.0  ;;  %v781_v52 = vmul.f32 %v761_v40, %v8096_v4  ;;  %v713_v46 = vmul.f32 %v705_v39, %v8096_v4  ;;  %v833_v47 = vrot.slane %v8113_v11, %v8261_v43 }
  0x3b   : > { %v798_v30 = vsel %vm569_vm0, %v782_v24, 0.0  ;;  %v864_v37 = vsel %vm569_vm0, %v852_v33, 0.0  ;;  %v1911_v24 = vsel %vm569_vm0, %v1897_v18, 0.0  ;;  %v8380_v33 = vld [vmem:[%s8190_s15 + $0x30] sm:$0xff]  ;;  %v8420_v18 = vld [vmem:[%s8190_s15 + $0x38] sm:$0xff] }
  0x3c   : > { %v853_v53 = vmul.f32 %v833_v47, %v8096_v4 }
  0x3e   : > { %658 = vadd.xlane.f32.xlu1 %v657_v56  ;;  %586 = vadd.xlane.f32.xlu0 %v585_v58  ;;  %v795_v56 = vsel %vm569_vm0, %v781_v52, 0.0  ;;  %v1806_v58 = vmul.f32 %v8198_v60, %v8274_v54  ;;  %v735_v52 = vsel %vm569_vm0, %v713_v46, 0.0 }
  0x40   : > { %v1814_v7 = vsel %vm569_vm0, %v1806_v58, 0.0  ;;  %v867_v58 = vsel %vm569_vm0, %v853_v53, 0.0  ;;  %v841_v53 = vrot.slane %v8159_v41, %v8261_v43 }
  0x42   : > { %724 = vadd.xlane.f32.xlu1 %v723_v0  ;;  %715 = vadd.xlane.f32.xlu0 %v714_v8  ;;  %v1850_v0 = vmul.f32 %v8217_v13, %v8274_v54  ;;  %v861_v8 = vsel %vm569_vm0, %v851_v59, 0.0 }
  0x44   : > { %v1858_v14 = vsel %vm569_vm0, %v1850_v0, 0.0 }
  0x46   : > { %1818 = vadd.xlane.f32.xlu1 %v1817_v16  ;;  %790 = vadd.xlane.f32.xlu0 %v789_v17  ;;  %v1823_v16 = vsel %vm569_vm0, %v1809_v9, 0.0  ;;  %v1895_v17 = vmul.f32 %v8292_v10, %v8206_v63 }
  0x4a   : > { %589 = vadd.xlane.f32.xlu1 %v588_v21  ;;  %1862 = vadd.xlane.f32.xlu0 %v1861_v22  ;;  %v1905_v21 = vsel %vm569_vm0, %v1895_v17, 0.0  ;;  %v1867_v22 = vsel %vm569_vm0, %v1853_v15, 0.0 }
  0x4e   : > { %727 = vadd.xlane.f32.xlu1 %v726_v31  ;;  %661 = vadd.xlane.f32.xlu0 %v660_v32  ;;  %v732_v31 = vsel %vm569_vm0, %v712_v25, 0.0  ;;  %v1810_v32 = vmul.f32 %v8198_v60, %v8311_v29 }
  0x50   : > { %v1826_v36 = vsel %vm569_vm0, %v1810_v32, 0.0 }
  0x52   : > { %1821 = vadd.xlane.f32.xlu1 %v1820_v34  ;;  %793 = vadd.xlane.f32.xlu0 %v792_v35  ;;  %v1896_v34 = vmul.f32 %v8292_v10, %v8235_v26  ;;  %v1854_v35 = vmul.f32 %v8217_v13, %v8311_v29 }
  0x54   : > { %v1908_v40 = vsel %vm569_vm0, %v1896_v34, 0.0  ;;  %v1870_v42 = vsel %vm569_vm0, %v1854_v35, 0.0 }
  0x56   : > { %592 = vadd.xlane.f32.xlu1 %v591_v44  ;;  %1865 = vadd.xlane.f32.xlu0 %v1864_v45  ;;  %v8331_v44 = vsub.s32 5, %v8071_v1  ;;  %v783_v45 = vmul.f32 %v769_v38, %v8096_v4  ;;  %v1898_v38 = vmul.f32 %v8292_v10, %v8311_v29 }
  0x58   : > { %v901_v32 = vrot.slane %v8099_v5, %v8331_v44  ;;  %v1914_v46 = vsel %vm569_vm0, %v1898_v38, 0.0 }
  0x5a   : > { %730 = vadd.xlane.f32.xlu1 %v729_v49  ;;  %664 = vadd.xlane.f32.xlu0 %v663_v51  ;;  %v897_v49 = vrot.slane %v8102_v6, %v8331_v44  ;;  %v801_v51 = vsel %vm569_vm0, %v783_v45, 0.0  ;;  %v777_v45 = vrot.slane %v8238_v27, %v8177_v50 }
  0x5e   : > { %796 = vadd.xlane.f32.xlu1 %v795_v56  ;;  %787 = vadd.xlane.f32.xlu0 %v786_v57  ;;  %v850_v56 = vmul.f32 %v821_v48, %v8096_v4  ;;  %v8346_v57 = vld [vmem:[%s8190_s15 + $0x28] sm:$0xff]  ;;  %v8399_v48 = vsub.s32 6, %v8071_v1  ;;  %s474_s15 = scalar_lea.vmem [#allocation2], %s473_s1 }
  0x5f   : > { %v1811_v0 = vmul.f32 %v8198_v60, %v8346_v57  ;;  %v1855_v15 = vmul.f32 %v8217_v13, %v8346_v57  ;;  %s5607_s0 = sshll.u32 %s474_s15, 4  ;;  %s11390_s0 = int_to_ptr.vmem [resolvable:$true] %s5607_s0 }
  0x60   : > { %v858_v59 = vsel %vm569_vm0, %v850_v56, 0.0  ;;  %v973_v38 = vrot.slane %v8099_v5, %v8399_v48  ;;  %s7888_s19 = scalar_lea.vmem %s11390_s0, 16 }
  0x61   : > { %v1829_v9 = vsel %vm569_vm0, %v1811_v0, 0.0  ;;  %v1873_v19 = vsel %vm569_vm0, %v1855_v15, 0.0  ;;  %p7889_p11 = scmp.ne.s32.totalorder %s11390_s0, %s7888_s19 }
  0x62   : > { %1815 = vadd.xlane.f32.xlu1 %v1814_v7  ;;  %862 = vadd.xlane.f32.xlu0 %v861_v8  ;;  %v923_v7 = vmul.f32 %v897_v49, %v8096_v4  ;;  %v1894_v8 = vmul.f32 %v8292_v10, %v8274_v54 }
  0x63   : > { %p7890_p12 = pnand %p7889_p11, %p8059_p5 }
  0x64   : > { %v1902_v17 = vsel %vm569_vm0, %v1894_v8, 0.0  ;;  %v905_v8 = vrot.slane %v8113_v11, %v8331_v44 }
  0x65   : > { %p7891_p13 = pneg %p7890_p12 }
  0x66   : > { %1859 = vadd.xlane.f32.xlu1 %v1858_v14  ;;  %1824 = vadd.xlane.f32.xlu0 %v1823_v16  ;;  %v933_v14 = vsel %vm569_vm0, %v923_v7, 0.0  ;;  %v8361_v16 = vrot.slane %v8184_v55, %v8177_v50  ;;  %v855_v7 = vmul.f32 %v841_v53, %v8096_v4 }
  0x68   : > { %v1939_v20 = vmul.f32 %v8361_v16, %v8206_v63  ;;  %v1940_v47 = vmul.f32 %v8361_v16, %v8235_v26  ;;  %v1942_v53 = vmul.f32 %v8361_v16, %v8311_v29 }
  0x6a   : > { %1906 = vadd.xlane.f32.xlu1 %v1905_v21  ;;  %1868 = vadd.xlane.f32.xlu0 %v1867_v22  ;;  %v837_v21 = vrot.slane %v8140_v28, %v8261_v43  ;;  %v773_v22 = vrot.slane %v8203_v62, %v8177_v50  ;;  %v1949_v25 = vsel %vm569_vm0, %v1939_v20, 0.0  ;;  %v1952_v56 = vsel %vm569_vm0, %v1940_v47, 0.0 }
  0x6e   : > { %799 = vadd.xlane.f32.xlu1 %v798_v30  ;;  %733 = vadd.xlane.f32.xlu0 %v732_v31  ;;  %v854_v30 = vmul.f32 %v837_v21, %v8096_v4  ;;  %v784_v31 = vmul.f32 %v773_v22, %v8096_v4  ;;  %v1857_v21 = vmul.f32 %v8217_v13, %v8420_v18 }
  0x6f   : > { %v1813_v22 = vmul.f32 %v8198_v60, %v8420_v18 }
  0x70   : > { %v870_v34 = vsel %vm569_vm0, %v854_v30, 0.0  ;;  %v804_v35 = vsel %vm569_vm0, %v784_v31, 0.0  ;;  %v1879_v30 = vsel %vm569_vm0, %v1857_v21, 0.0 }
  0x71   : > { %v1835_v31 = vsel %vm569_vm0, %v1813_v22, 0.0  ;;  %v965_v22 = vrot.slane %v8116_v12, %v8399_v48 }
  0x72   : > { %1827 = vadd.xlane.f32.xlu1 %v1826_v36  ;;  %865 = vadd.xlane.f32.xlu0 %v864_v37  ;;  %v1812_v36 = vmul.f32 %v8198_v60, %v8380_v33  ;;  %v924_v37 = vmul.f32 %v901_v32, %v8096_v4  ;;  %v8436_v32 = vrot.slane %v8184_v55, %v8261_v43 }
  0x74   : > { %v1832_v39 = vsel %vm569_vm0, %v1812_v36, 0.0  ;;  %v909_v36 = vrot.slane %v8140_v28, %v8331_v44 }
  0x76   : > { %1909 = vadd.xlane.f32.xlu1 %v1908_v40  ;;  %1871 = vadd.xlane.f32.xlu0 %v1870_v42  ;;  %v936_v40 = vsel %vm569_vm0, %v924_v37, 0.0  ;;  %v1856_v42 = vmul.f32 %v8217_v13, %v8380_v33  ;;  %v845_v37 = vrot.slane %v8203_v62, %v8261_v43 }
  0x78   : > { %v1876_v49 = vsel %vm569_vm0, %v1856_v42, 0.0  ;;  %v926_v42 = vmul.f32 %v909_v36, %v8096_v4 }
  0x7a   : > { %802 = vadd.xlane.f32.xlu1 %v801_v51  ;;  %736 = vadd.xlane.f32.xlu0 %v735_v52  ;;  %v785_v51 = vmul.f32 %v777_v45, %v8096_v4  ;;  %v893_v52 = vrot.slane %v8116_v12, %v8331_v44  ;;  %v856_v45 = vmul.f32 %v845_v37, %v8096_v4 }
  0x7c   : > { %v922_v0 = vmul.f32 %v893_v52, %v8096_v4  ;;  %v876_v47 = vsel %vm569_vm0, %v856_v45, 0.0  ;;  %v1984_v52 = vmul.f32 %v8436_v32, %v8235_v26 }
  0x7e   : > { %868 = vadd.xlane.f32.xlu1 %v867_v58  ;;  %859 = vadd.xlane.f32.xlu0 %v858_v59  ;;  %v969_v58 = vrot.slane %v8102_v6, %v8399_v48  ;;  %v807_v59 = vsel %vm569_vm0, %v785_v51, 0.0  ;;  %v996_v51 = vmul.f32 %v973_v38, %v8096_v4 }
  0x80   : > { %v995_v15 = vmul.f32 %v969_v58, %v8096_v4 }
  0x82   : > { %1830 = vadd.xlane.f32.xlu1 %v1829_v9  ;;  %934 = vadd.xlane.f32.xlu0 %v933_v14  ;;  %v930_v9 = vsel %vm569_vm0, %v922_v0, 0.0  ;;  %v873_v14 = vsel %vm569_vm0, %v855_v7, 0.0  ;;  %v1008_v0 = vsel %vm569_vm0, %v996_v51, 0.0  ;;  %v913_v7 = vrot.slane %v8159_v41, %v8331_v44 }
  0x86   : > { %1903 = vadd.xlane.f32.xlu1 %v1902_v17  ;;  %1874 = vadd.xlane.f32.xlu0 %v1873_v19  ;;  %v925_v17 = vmul.f32 %v905_v8, %v8096_v4  ;;  %v1005_v19 = vsel %vm569_vm0, %v995_v15, 0.0  ;;  %v849_v8 = vrot.slane %v8238_v27, %v8261_v43  ;;  %v977_v15 = vrot.slane %v8113_v11, %v8399_v48 }
  0x88   : > { %v939_v20 = vsel %vm569_vm0, %v925_v17, 0.0  ;;  %v857_v21 = vmul.f32 %v849_v8, %v8096_v4 }
  0x8a   : > { %1950 = vadd.xlane.f32.xlu1 %v1949_v25  ;;  %1912 = vadd.xlane.f32.xlu0 %v1911_v24  ;;  %v1938_v24 = vmul.f32 %v8361_v16, %v8274_v54  ;;  %v1899_v25 = vmul.f32 %v8292_v10, %v8346_v57  ;;  %v879_v38 = vsel %vm569_vm0, %v857_v21, 0.0  ;;  %v1985_v21 = vmul.f32 %v8436_v32, %v8282_v61 }
  0x8c   : > { %v1946_v60 = vsel %vm569_vm0, %v1938_v24, 0.0  ;;  %v1917_v13 = vsel %vm569_vm0, %v1899_v25, 0.0  ;;  %v8478_v24 = vsub.s32 7, %v8071_v1 }
  0x8e   : > { %871 = vadd.xlane.f32.xlu1 %v870_v34  ;;  %805 = vadd.xlane.f32.xlu0 %v804_v35  ;;  %v1983_v34 = vmul.f32 %v8436_v32, %v8206_v63  ;;  %v1941_v35 = vmul.f32 %v8361_v16, %v8282_v61 }
  0x92   : > { %1833 = vadd.xlane.f32.xlu1 %v1832_v39  ;;  %937 = vadd.xlane.f32.xlu0 %v936_v40  ;;  %v1993_v39 = vsel %vm569_vm0, %v1983_v34, 0.0  ;;  %v1955_v40 = vsel %vm569_vm0, %v1941_v35, 0.0  ;;  %v997_v35 = vmul.f32 %v977_v15, %v8096_v4  ;;  %v8523_v15 = vrot.slane %v8184_v55, %v8331_v44 }
  0x96   : > { %1915 = vadd.xlane.f32.xlu1 %v1914_v46  ;;  %1877 = vadd.xlane.f32.xlu0 %v1876_v49  ;;  %v942_v46 = vsel %vm569_vm0, %v926_v42, 0.0  ;;  %v1900_v49 = vmul.f32 %v8292_v10, %v8380_v33 }
  0x9a   : > { %808 = vadd.xlane.f32.xlu1 %v807_v59  ;;  %1953 = vadd.xlane.f32.xlu0 %v1952_v56  ;;  %v1920_v59 = vsel %vm569_vm0, %v1900_v49, 0.0  ;;  %v1901_v49 = vmul.f32 %v8292_v10, %v8420_v18  ;;  %v1982_v10 = vmul.f32 %v8436_v32, %v8274_v54 }
  0x9c   : > { %v1923_v8 = vsel %vm569_vm0, %v1901_v49, 0.0 }
  0x9e   : > { %931 = vadd.xlane.f32.xlu1 %v930_v9  ;;  %874 = vadd.xlane.f32.xlu0 %v873_v14  ;;  %v1996_v9 = vsel %vm569_vm0, %v1984_v52, 0.0  ;;  %v1958_v14 = vsel %vm569_vm0, %v1942_v53, 0.0 }
  0xa2   : > { %1006 = vadd.xlane.f32.xlu1 %v1005_v19  ;;  %940 = vadd.xlane.f32.xlu0 %v939_v20  ;;  %v927_v20 = vmul.f32 %v913_v7, %v8096_v4 }
  0xa4   : > { %v945_v37 = vsel %vm569_vm0, %v927_v20, 0.0  ;;  %v1990_v20 = vsel %vm569_vm0, %v1982_v10, 0.0  ;;  %v1999_v10 = vsel %vm569_vm0, %v1985_v21, 0.0  ;;  %v1944_v21 = vmul.f32 %v8361_v16, %v8380_v33 }
  0xa6   : > { %1880 = vadd.xlane.f32.xlu1 %v1879_v30  ;;  %1836 = vadd.xlane.f32.xlu0 %v1835_v31 }
  0xaa   : > { %1947 = vadd.xlane.f32.xlu1 %v1946_v60  ;;  %1918 = vadd.xlane.f32.xlu0 %v1917_v13 }
  0xae   : > { %1994 = vadd.xlane.f32.xlu1 %v1993_v39  ;;  %1956 = vadd.xlane.f32.xlu0 %v1955_v40  ;;  %v994_v39 = vmul.f32 %v965_v22, %v8096_v4  ;;  %v1041_v40 = vrot.slane %v8102_v6, %v8478_v24 }
  0xb0   : > { %v1067_v51 = vmul.f32 %v1041_v40, %v8096_v4 }
  0xb2   : > { %943 = vadd.xlane.f32.xlu1 %v942_v46  ;;  %877 = vadd.xlane.f32.xlu0 %v876_v47  ;;  %v1011_v46 = vsel %vm569_vm0, %v997_v35, 0.0  ;;  %v1002_v47 = vsel %vm569_vm0, %v994_v39, 0.0 }
  0xb3   : > { %v578_v56 = vpop.xlane.xlu1 %577  ;;  %v575_v58 = vpop.xlane.xlu0 %574 }
  0xb4   : > { %v8480_v25 = vmul.f32 0.25, %v578_v56  ;;  %v8482_v30 = vmul.f32 0.25, %v575_v58 }
  0xb6   : > { %1921 = vadd.xlane.f32.xlu1 %v1920_v59  ;;  %1009 = vadd.xlane.f32.xlu0 %v1008_v0 }
  0xb7   : > { %v650_v17 = vpop.xlane.xlu1 %649  ;;  %v647_v19 = vpop.xlane.xlu0 %646 }
  0xb8   : > { %v8484_v31 = vmul.f32 0.25, %v650_v17  ;;  %v8486_v60 = vmul.f32 0.25, %v647_v19 }
  0xba   : > { %v1108_v13 = vmax.f32 %v8480_v25, %v8484_v31  ;;  %v1107_v34 = vmax.f32 %v8482_v30, %v8486_v60  ;;  %1997 = vadd.xlane.f32.xlu1 %v1996_v9  ;;  %1959 = vadd.xlane.f32.xlu0 %v1958_v14  ;;  %v1077_v9 = vsel %vm569_vm0, %v1067_v51, 0.0  ;;  %v1943_v14 = vmul.f32 %v8361_v16, %v8346_v57 }
  0xbb   : > { %v581_v1 = vpop.xlane.xlu1 %580  ;;  %v572_v36 = vpop.xlane.xlu0 %571 }
  0xbc   : > { %v8503_v52 = vmul.f32 0.25, %v581_v1  ;;  %v8505_v53 = vmul.f32 0.25, %v572_v36  ;;  %v1961_v1 = vsel %vm569_vm0, %v1943_v14, 0.0  ;;  %v2027_v36 = vmul.f32 %v8523_v15, %v8206_v63 }
  0xbe   : > { %946 = vadd.xlane.f32.xlu1 %v945_v37  ;;  %880 = vadd.xlane.f32.xlu0 %v879_v38  ;;  %11555 = vst [vmem:[#allocation5_spill] sm:$0xff] %v8503_v52  ;;  %11556 = vst [vmem:[#allocation6_spill] sm:$0xff] %v8505_v53  ;;  %v981_v37 = vrot.slane %v8140_v28, %v8399_v48  ;;  %v2037_v51 = vsel %vm569_vm0, %v2027_v36, 0.0 }
  0xbf   : > { %v653_v42 = vpop.xlane.xlu1 %652  ;;  %v644_v45 = vpop.xlane.xlu0 %643 }
  0xc0   : > { %v8507_v56 = vmul.f32 0.25, %v653_v42  ;;  %v8509_v6 = vmul.f32 0.25, %v644_v45 }
  0xc2   : > { %11557 = vst [vmem:[#allocation7_spill] sm:$0xff] %v8507_v56  ;;  %11558 = vst [vmem:[#allocation8_spill] sm:$0xff] %v8509_v6  ;;  %v1109_v58 = vmax.f32 %v8503_v52, %v8507_v56  ;;  %v1106_v59 = vmax.f32 %v8505_v53, %v8509_v6  ;;  %1012 = vadd.xlane.f32.xlu1 %v1011_v46  ;;  %1003 = vadd.xlane.f32.xlu0 %v1002_v47 }
  0xc3   : > { %v584_v0 = vpop.xlane.xlu1 %583  ;;  %v719_v7 = vpop.xlane.xlu0 %718  ;;  %v1045_v46 = vrot.slane %v8099_v5, %v8478_v24 }
  0xc4   : > { %v8525_v17 = vmul.f32 0.25, %v719_v7  ;;  %v8540_v38 = vmul.f32 0.25, %v584_v0  ;;  %v998_v0 = vmul.f32 %v981_v37, %v8096_v4  ;;  %v2028_v37 = vmul.f32 %v8523_v15, %v8235_v26 }
  0xc6   : > { %v8528_v19 = vmax.f32 %v1107_v34, %v8525_v17  ;;  %1924 = vadd.xlane.f32.xlu1 %v1923_v8  ;;  %1078 = vadd.xlane.f32.xlu0 %v1077_v9  ;;  %v917_v34 = vrot.slane %v8203_v62, %v8331_v44  ;;  %11559 = vst [vmem:[#allocation9_spill] sm:$0xff] %v8540_v38 }
  0xc7   : > { %v722_v22 = vpop.xlane.xlu1 %721  ;;  %v656_v35 = vpop.xlane.xlu0 %655 }
  0xc8   : > { %v8542_v39 = vmul.f32 0.25, %v722_v22  ;;  %v8544_v40 = vmul.f32 0.25, %v656_v35  ;;  %v928_v7 = vmul.f32 %v917_v34, %v8096_v4  ;;  %v1068_v35 = vmul.f32 %v1045_v46, %v8096_v4 }
  0xca   : > { %11560 = vst [vmem:[#allocation10_spill] sm:$0xff] %v8542_v39  ;;  %11561 = vst [vmem:[#allocation11_spill] sm:$0xff] %v8544_v40  ;;  %v8547_v42 = vmax.f32 %v1108_v13, %v8542_v39  ;;  %v1110_v45 = vmax.f32 %v8540_v38, %v8544_v40  ;;  %1991 = vadd.xlane.f32.xlu1 %v1990_v20  ;;  %1962 = vadd.xlane.f32.xlu0 %v1961_v1  ;;  %v1014_v20 = vsel %vm569_vm0, %v998_v0, 0.0 }
  0xcb   : > { %v659_v47 = vpop.xlane.xlu1 %658  ;;  %v587_v49 = vpop.xlane.xlu0 %586  ;;  %v948_v22 = vsel %vm569_vm0, %v928_v7, 0.0  ;;  %v1080_v0 = vsel %vm569_vm0, %v1068_v35, 0.0  ;;  %v985_v7 = vrot.slane %v8159_v41, %v8399_v48  ;;  %v1049_v40 = vrot.slane %v8113_v11, %v8478_v24 }
  0xcc   : > { %v8557_v13 = vmul.f32 0.25, %v659_v47  ;;  %v8559_v8 = vmul.f32 0.25, %v587_v49  ;;  %v1986_v49 = vmul.f32 %v8436_v32, %v8311_v29 }
  0xcd   : > { %v999_v35 = vmul.f32 %v985_v7, %v8096_v4  ;;  %v1069_v11 = vmul.f32 %v1049_v40, %v8096_v4  ;;  %v1945_v40 = vmul.f32 %v8361_v16, %v8420_v18  ;;  %v2029_v16 = vmul.f32 %v8523_v15, %v8282_v61 }
  0xce   : > { %11562 = vst [vmem:[#allocation12_spill] sm:$0xff] %v8557_v13  ;;  %11563 = vst [vmem:[#allocation13_spill] sm:$0xff] %v8559_v8  ;;  %2038 = vadd.xlane.f32.xlu1 %v2037_v51  ;;  %2000 = vadd.xlane.f32.xlu0 %v1999_v10  ;;  %v1964_v10 = vsel %vm569_vm0, %v1944_v21, 0.0 }
  0xcf   : > { %v725_v5 = vpop.xlane.xlu1 %724  ;;  %v716_v14 = vpop.xlane.xlu0 %715  ;;  %v1017_v7 = vsel %vm569_vm0, %v999_v35, 0.0 }
  0xd0   : > { %v8568_v1 = vmul.f32 0.25, %v725_v5  ;;  %v8570_v36 = vmul.f32 0.25, %v716_v14  ;;  %v2040_v14 = vsel %vm569_vm0, %v2028_v37, 0.0 }
  0xd2   : > { %11564 = vst [vmem:[#allocation14_spill] sm:$0xff] %v8568_v1  ;;  %11565 = vst [vmem:[#allocation15_spill] sm:$0xff] %v8570_v36  ;;  %v8575_v34 = vmax.f32 %v1109_v58, %v8568_v1  ;;  %v8578_v47 = vmax.f32 %v1106_v59, %v8570_v36  ;;  %1015 = vadd.xlane.f32.xlu1 %v1014_v20  ;;  %949 = vadd.xlane.f32.xlu0 %v948_v22  ;;  %v2002_v20 = vsel %vm569_vm0, %v1986_v49, 0.0 }
  0xd3   : > { %v1819_v51 = vpop.xlane.xlu1 %1818  ;;  %v791_v46 = vpop.xlane.xlu0 %790  ;;  %v921_v58 = vrot.slane %v8238_v27, %v8331_v44  ;;  %v2043_v36 = vsel %vm569_vm0, %v2029_v16, 0.0 }
  0xd4   : > { %v8588_v5 = vmul.f32 0.25, %v791_v46  ;;  %v1037_v46 = vrot.slane %v8116_v12, %v8478_v24  ;;  %v8600_v38 = vmul.f32 0.25, %v1819_v51 }
  0xd5   : > { %v929_v9 = vmul.f32 %v921_v58, %v8096_v4 }
  0xd6   : > { %1965 = vadd.xlane.f32.xlu1 %v1964_v10  ;;  %1081 = vadd.xlane.f32.xlu0 %v1080_v0  ;;  %11566 = vst [vmem:[#allocation16_spill] sm:$0xff] %v8600_v38  ;;  %v1066_v59 = vmul.f32 %v1037_v46, %v8096_v4  ;;  %v1083_v46 = vsel %vm569_vm0, %v1069_v11, 0.0  ;;  %v2026_v11 = vmul.f32 %v8523_v15, %v8274_v54 }
  0xd7   : > { %v590_v22 = vpop.xlane.xlu1 %589  ;;  %v1863_v21 = vpop.xlane.xlu0 %1862  ;;  %v951_v58 = vsel %vm569_vm0, %v929_v9, 0.0 }
  0xd8   : > { %v8602_v10 = vmul.f32 0.25, %v1863_v21  ;;  %v8610_v12 = vmul.f32 0.25, %v590_v22  ;;  %v2034_v6 = vsel %vm569_vm0, %v2026_v11, 0.0  ;;  %v993_v11 = vrot.slane %v8238_v27, %v8399_v48 }
  0xda   : > { %11567 = vst [vmem:[#allocation17_spill] sm:$0xff] %v8602_v10  ;;  %2041 = vadd.xlane.f32.xlu1 %v2040_v14  ;;  %2003 = vadd.xlane.f32.xlu0 %v2002_v20  ;;  %11568 = vst [vmem:[#allocation18_spill] sm:$0xff] %v8610_v12  ;;  %v1987_v14 = vmul.f32 %v8436_v32, %v8346_v57 }
  0xdb   : > { %v728_v49 = vpop.xlane.xlu1 %727  ;;  %v662_v0 = vpop.xlane.xlu0 %661 }
  0xdc   : > { %v8612_v51 = vmul.f32 0.25, %v728_v49  ;;  %v8614_v21 = vmul.f32 0.25, %v662_v0  ;;  %v1074_v49 = vsel %vm569_vm0, %v1066_v59, 0.0  ;;  %v2005_v35 = vsel %vm569_vm0, %v1987_v14, 0.0 }
  0xdd   : > { %v989_v59 = vrot.slane %v8203_v62, %v8399_v48 }
  0xde   : > { %11569 = vst [vmem:[#allocation19_spill] sm:$0xff] %v8612_v51  ;;  %11570 = vst [vmem:[#allocation20_spill] sm:$0xff] %v8614_v21  ;;  %v8619_v20 = vmax.f32 %v1110_v45, %v8612_v51  ;;  %1018 = vadd.xlane.f32.xlu1 %v1017_v7  ;;  %952 = vadd.xlane.f32.xlu0 %v951_v58  ;;  %v1967_v7 = vsel %vm569_vm0, %v1945_v40, 0.0 }
  0xdf   : > { %v1822_v9 = vpop.xlane.xlu1 %1821  ;;  %v794_v22 = vpop.xlane.xlu0 %793  ;;  %v1000_v53 = vmul.f32 %v989_v59, %v8096_v4 }
  0xe0   : > { %v8627_v0 = vmul.f32 0.25, %v794_v22  ;;  %v8641_v22 = vrot.slane %v8184_v55, %v8399_v48 }
  0xe2   : > { %1084 = vadd.xlane.f32.xlu1 %v1083_v46  ;;  %1075 = vadd.xlane.f32.xlu0 %v1074_v49  ;;  %v8643_v46 = vmul.f32 0.25, %v1822_v9  ;;  %v1053_v49 = vrot.slane %v8140_v28, %v8478_v24  ;;  %v1988_v28 = vmul.f32 %v8436_v32, %v8380_v33 }
  0xe3   : > { %v593_v58 = vpop.xlane.xlu1 %592  ;;  %v1866_v37 = vpop.xlane.xlu0 %1865 }
  0xe4   : > { %11571 = vst [vmem:[#allocation21_spill] sm:$0xff] %v8643_v46  ;;  %v8645_v14 = vmul.f32 0.25, %v1866_v37  ;;  %v2071_v37 = vmul.f32 %v8641_v22, %v8206_v63  ;;  %v8656_v9 = vmul.f32 0.25, %v593_v58  ;;  %v1070_v58 = vmul.f32 %v1053_v49, %v8096_v4 }
  0xe6   : > { %11572 = vst [vmem:[#allocation22_spill] sm:$0xff] %v8645_v14  ;;  %2006 = vadd.xlane.f32.xlu1 %v2005_v35  ;;  %1968 = vadd.xlane.f32.xlu0 %v1967_v7  ;;  %11573 = vst [vmem:[#allocation23_spill] sm:$0xff] %v8656_v9  ;;  %v11576_v7 = vmax.f32 %v8559_v8, %v8557_v13  ;;  %v2081_v40 = vsel %vm569_vm0, %v2071_v37, 0.0  ;;  %v2072_v37 = vmul.f32 %v8641_v22, %v8235_v26 }
  0xe7   : > { %v731_v45 = vpop.xlane.xlu1 %730  ;;  %v665_v51 = vpop.xlane.xlu0 %664  ;;  %v1001_v8 = vmul.f32 %v993_v11, %v8096_v4 }
  0xe8   : > { %v8658_v1 = vmul.f32 0.25, %v731_v45  ;;  %v8660_v35 = vmul.f32 0.25, %v665_v51  ;;  %v1020_v51 = vsel %vm569_vm0, %v1000_v53, 0.0 }
  0xea   : > { %11574 = vst [vmem:[#allocation24_spill] sm:$0xff] %v8658_v1  ;;  %11575 = vst [vmem:[#allocation25_spill] sm:$0xff] %v8660_v35  ;;  %v8668_v16 = vmax.f32 %v11576_v7, %v8658_v1  ;;  %2044 = vadd.xlane.f32.xlu1 %v2043_v36  ;;  %2035 = vadd.xlane.f32.xlu0 %v2034_v6  ;;  %v2008_v6 = vsel %vm569_vm0, %v1988_v28, 0.0  ;;  %v1086_v36 = vsel %vm569_vm0, %v1070_v58, 0.0  ;;  %v2084_v1 = vsel %vm569_vm0, %v2072_v37, 0.0 }
  0xeb   : > { %v797_v45 = vpop.xlane.xlu1 %796  ;;  %v788_v59 = vpop.xlane.xlu0 %787 }
  0xec   : > { %v8675_v56 = vmul.f32 0.25, %v797_v45  ;;  %v8677_v52 = vmul.f32 0.25, %v788_v59  ;;  %v2030_v45 = vmul.f32 %v8523_v15, %v8311_v29  ;;  %v1057_v59 = vrot.slane %v8159_v41, %v8478_v24 }
  0xee   : > { %1021 = vadd.xlane.f32.xlu1 %v1020_v51  ;;  %2082 = vadd.xlane.f32.xlu0 %v2081_v40  ;;  %v11577_v40 = vmax.f32 %v8528_v19, %v8588_v5  ;;  %v2046_v13 = vsel %vm569_vm0, %v2030_v45, 0.0  ;;  %v1071_v41 = vmul.f32 %v1057_v59, %v8096_v4  ;;  %v1023_v59 = vsel %vm569_vm0, %v1001_v8, 0.0  ;;  %v7887_v19 = vld [vmem:[%s8087_s20] sm:$0xff] }
  0xef   : > { %v1816_v49 = vpop.xlane.xlu1 %1815  ;;  %v863_v53 = vpop.xlane.xlu0 %862  ;;  %v1989_v4 = vmul.f32 %v8436_v32, %v8420_v18  ;;  %v1061_v8 = vrot.slane %v8203_v62, %v8478_v24 }
  0xf0   : > { %v8693_v51 = vmul.f32 0.25, %v863_v53  ;;  %v8705_v53 = vmul.f32 0.25, %v1816_v49  ;;  %v1089_v45 = vsel %vm569_vm0, %v1071_v41, 0.0 }
  0xf2   : > { %v8699_v28 = vmax.f32 %v11577_v40, %v8693_v51  ;;  %2009 = vadd.xlane.f32.xlu1 %v2008_v6  ;;  %1087 = vadd.xlane.f32.xlu0 %v1086_v36  ;;  %11578 = vst [vmem:[#allocation26_spill] sm:$0xff] %v8705_v53  ;;  %v2031_v6 = vmul.f32 %v8523_v15, %v8346_v57 }
  0xf3   : > { %v1860_v58 = vpop.xlane.xlu1 %1859  ;;  %v1825_v7 = vpop.xlane.xlu0 %1824 }
  0xf4   : > { %v8707_v39 = vmul.f32 0.25, %v1860_v58  ;;  %v8717_v11 = vmul.f32 0.25, %v1825_v7  ;;  %v2049_v32 = vsel %vm569_vm0, %v2031_v6, 0.0 }
  0xf6   : > { %11579 = vst [vmem:[#allocation27_spill] sm:$0xff] %v8707_v39  ;;  %2085 = vadd.xlane.f32.xlu1 %v2084_v1  ;;  %2047 = vadd.xlane.f32.xlu0 %v2046_v13  ;;  %11580 = vst [vmem:[#allocation28_spill] sm:$0xff] %v8717_v11  ;;  %v11583_v13 = vmax.f32 %v8600_v38, %v8602_v10 }
  0xf7   : > { %v1907_v36 = vpop.xlane.xlu1 %1906  ;;  %v1869_v37 = vpop.xlane.xlu0 %1868 }
  0xf8   : > { %v8719_v49 = vmul.f32 0.25, %v1907_v36  ;;  %v8721_v40 = vmul.f32 0.25, %v1869_v37  ;;  %v2011_v36 = vsel %vm569_vm0, %v1989_v4, 0.0  ;;  %v2073_v37 = vmul.f32 %v8641_v22, %v8282_v61 }
  0xf9   : > { %v11586_v4 = vmax.f32 %v8610_v12, %v8614_v21 }
  0xfa   : > { %11581 = vst [vmem:[#allocation29_spill] sm:$0xff] %v8719_v49  ;;  %11582 = vst [vmem:[#allocation30_spill] sm:$0xff] %v8721_v40  ;;  %v8727_v1 = vmax.f32 %v11583_v13, %v8719_v49  ;;  %1090 = vadd.xlane.f32.xlu1 %v1089_v45  ;;  %1024 = vadd.xlane.f32.xlu0 %v1023_v59  ;;  %v2070_v13 = vmul.f32 %v8641_v22, %v8274_v54 }
  0xfb   : > { %v800_v7 = vpop.xlane.xlu1 %799  ;;  %v734_v41 = vpop.xlane.xlu0 %733  ;;  %v8741_v45 = vrot.slane %v8184_v55, %v8478_v24  ;;  %v1072_v49 = vmul.f32 %v7887_v19, %v1061_v8 }
  0xfc   : > { %v8743_v59 = vmul.f32 0.25, %v800_v7  ;;  %v8745_v6 = vmul.f32 0.25, %v734_v41  ;;  %v2087_v7 = vsel %vm569_vm0, %v2073_v37, 0.0  ;;  %v2078_v41 = vsel %vm569_vm0, %v2070_v13, 0.0 }
  0xfd   : > { %v2115_v38 = vmul.f32 %v8741_v45, %v8206_v63  ;;  %v2074_v13 = vmul.f32 %v8641_v22, %v8311_v29  ;;  %v2032_v63 = vmul.f32 %v8523_v15, %v8380_v33 }
  0xfe   : > { %11584 = vst [vmem:[#allocation31_spill] sm:$0xff] %v8743_v59  ;;  %11585 = vst [vmem:[#allocation32_spill] sm:$0xff] %v8745_v6  ;;  %v8753_v58 = vmax.f32 %v11586_v4, %v8745_v6  ;;  %2050 = vadd.xlane.f32.xlu1 %v2049_v32  ;;  %2012 = vadd.xlane.f32.xlu0 %v2011_v36  ;;  %v11588_v4 = vmax.f32 %v8547_v42, %v8627_v0  ;;  %v1092_v32 = vsel %vm569_vm0, %v1072_v49, 0.0 }
  0xff   : > { %v1828_v10 = vpop.xlane.xlu1 %1827  ;;  %v866_v55 = vpop.xlane.xlu0 %865  ;;  %v2125_v37 = vsel %vm569_vm0, %v2115_v38, 0.0  ;;  %v11592_v49 = vmax.f32 %v8643_v46, %v8645_v14 }
 0x100   : > { %v8760_v62 = vmul.f32 0.25, %v866_v55  ;;  %v1065_v55 = vrot.slane %v8238_v27, %v8478_v24  ;;  %v8776_v42 = vmul.f32 0.25, %v1828_v10  ;;  %v2090_v27 = vsel %vm569_vm0, %v2074_v13, 0.0 }
 0x101   : > { %v2052_v10 = vsel %vm569_vm0, %v2032_v63, 0.0 }
 0x102   : > { %11587 = vst [vmem:[#allocation33_spill] sm:$0xff] %v8760_v62  ;;  %v8766_v6 = vmax.f32 %v11588_v4, %v8760_v62  ;;  %2088 = vadd.xlane.f32.xlu1 %v2087_v7  ;;  %2079 = vadd.xlane.f32.xlu0 %v2078_v41  ;;  %11589 = vst [vmem:[#allocation34_spill] sm:$0xff] %v8776_v42  ;;  %v2117_v41 = vmul.f32 %v8741_v45, %v8282_v61 }
 0x103   : > { %v1910_v8 = vpop.xlane.xlu1 %1909  ;;  %v1872_v36 = vpop.xlane.xlu0 %1871  ;;  %v2076_v61 = vmul.f32 %v8641_v22, %v8380_v33 }
 0x104   : > { %v8778_v4 = vmul.f32 0.25, %v1910_v8  ;;  %v8780_v7 = vmul.f32 0.25, %v1872_v36  ;;  %v1073_v8 = vmul.f32 %v7887_v19, %v1065_v55  ;;  %v2116_v36 = vmul.f32 %v8741_v45, %v8235_v26 }
 0x106   : > { %11590 = vst [vmem:[#allocation35_spill] sm:$0xff] %v8778_v4  ;;  %11591 = vst [vmem:[#allocation36_spill] sm:$0xff] %v8780_v7  ;;  %v8786_v38 = vmax.f32 %v11592_v49, %v8778_v4  ;;  %1093 = vadd.xlane.f32.xlu1 %v1092_v32  ;;  %2126 = vadd.xlane.f32.xlu0 %v2125_v37  ;;  %v11595_v32 = vmax.f32 %v8656_v9, %v8660_v35  ;;  %v1095_v63 = vsel %vm569_vm0, %v1073_v8, 0.0 }
 0x107   : > { %v803_v21 = vpop.xlane.xlu1 %802  ;;  %v737_v12 = vpop.xlane.xlu0 %736  ;;  %v2128_v26 = vsel %vm569_vm0, %v2116_v36, 0.0  ;;  %v11598_v8 = vmax.f32 %v8578_v47, %v8677_v52  ;;  %v2077_v47 = vmul.f32 %v8641_v22, %v8420_v18 }
 0x108   : > { %v8794_v62 = vmul.f32 0.25, %v803_v21  ;;  %v8796_v14 = vmul.f32 0.25, %v737_v12  ;;  %v2075_v12 = vmul.f32 %v8641_v22, %v8346_v57  ;;  %v2033_v21 = vmul.f32 %v8523_v15, %v8420_v18 }
 0x109   : > { %v2099_v22 = vsel %vm569_vm0, %v2077_v47, 0.0 }
 0x10a   : > { %11593 = vst [vmem:[#allocation37_spill] sm:$0xff] %v8794_v62  ;;  %11594 = vst [vmem:[#allocation38_spill] sm:$0xff] %v8796_v14  ;;  %v8804_v37 = vmax.f32 %v11595_v32, %v8796_v14  ;;  %2091 = vadd.xlane.f32.xlu1 %v2090_v27  ;;  %2053 = vadd.xlane.f32.xlu0 %v2052_v10  ;;  %v11597_v27 = vmax.f32 %v8575_v34, %v8675_v56 }
 0x10b   : > { %v869_v13 = vpop.xlane.xlu1 %868  ;;  %v860_v19 = vpop.xlane.xlu0 %859  ;;  %v2114_v34 = vmul.f32 %v8741_v45, %v8274_v54 }
 0x10c   : > { %v8812_v55 = vmul.f32 0.25, %v869_v13  ;;  %v8814_v49 = vmul.f32 0.25, %v860_v19  ;;  %v2093_v13 = vsel %vm569_vm0, %v2075_v12, 0.0  ;;  %v2055_v19 = vsel %vm569_vm0, %v2033_v21, 0.0 }
 0x10d   : > { %v2122_v12 = vsel %vm569_vm0, %v2114_v34, 0.0  ;;  %v2118_v21 = vmul.f32 %v8741_v45, %v8311_v29 }
 0x10e   : > { %11596 = vst [vmem:[#allocation39_spill] sm:$0xff] %v8814_v49  ;;  %v8820_v10 = vmax.f32 %v11597_v27, %v8812_v55  ;;  %v8826_v36 = vmax.f32 %v11598_v8, %v8814_v49  ;;  %1096 = vadd.xlane.f32.xlu1 %v1095_v63  ;;  %2129 = vadd.xlane.f32.xlu0 %v2128_v26  ;;  %v2131_v8 = vsel %vm569_vm0, %v2117_v41, 0.0 }
 0x10f   : > { %v1831_v32 = vpop.xlane.xlu1 %1830  ;;  %v935_v15 = vpop.xlane.xlu0 %934 }
 0x110   : > { %v8834_v27 = vmul.f32 0.25, %v935_v15  ;;  %v8844_v54 = vmul.f32 0.25, %v1831_v32  ;;  %v2134_v32 = vsel %vm569_vm0, %v2118_v21, 0.0 }
 0x112   : > { %2094 = vadd.xlane.f32.xlu1 %v2093_v13  ;;  %2056 = vadd.xlane.f32.xlu0 %v2055_v19  ;;  %11599 = vst [vmem:[#allocation40_spill] sm:$0xff] %v8844_v54  ;;  %v11602_v13 = vmax.f32 %v8705_v53, %v8707_v39 }
 0x113   : > { %v1904_v63 = vpop.xlane.xlu1 %1903  ;;  %v1875_v26 = vpop.xlane.xlu0 %1874 }
 0x114   : > { %v8846_v15 = vmul.f32 0.25, %v1904_v63  ;;  %v8848_v4 = vmul.f32 0.25, %v1875_v26  ;;  %v2096_v63 = vsel %vm569_vm0, %v2076_v61, 0.0  ;;  %v2119_v26 = vmul.f32 %v8741_v45, %v8346_v57 }
 0x116   : > { %11600 = vst [vmem:[#allocation41_spill] sm:$0xff] %v8846_v15  ;;  %11601 = vst [vmem:[#allocation42_spill] sm:$0xff] %v8848_v4  ;;  %v8854_v19 = vmax.f32 %v11602_v13, %v8846_v15  ;;  %2132 = vadd.xlane.f32.xlu1 %v2131_v8  ;;  %2123 = vadd.xlane.f32.xlu0 %v2122_v12  ;;  %v11605_v12 = vmax.f32 %v8717_v11, %v8721_v40  ;;  %v2137_v41 = vsel %vm569_vm0, %v2119_v26, 0.0 }
 0x117   : > { %v1951_v29 = vpop.xlane.xlu1 %1950  ;;  %v1913_v34 = vpop.xlane.xlu0 %1912 }
 0x118   : > { %v8864_v39 = vmul.f32 0.25, %v1951_v29  ;;  %v8866_v13 = vmul.f32 0.25, %v1913_v34  ;;  %v2121_v29 = vmul.f32 %v8741_v45, %v8420_v18  ;;  %v2120_v34 = vmul.f32 %v8741_v45, %v8380_v33 }
 0x11a   : > { %11603 = vst [vmem:[#allocation43_spill] sm:$0xff] %v8864_v39  ;;  %11604 = vst [vmem:[#allocation44_spill] sm:$0xff] %v8866_v13  ;;  %v8874_v21 = vmax.f32 %v11605_v12, %v8866_v13  ;;  %2135 = vadd.xlane.f32.xlu1 %v2134_v32  ;;  %2097 = vadd.xlane.f32.xlu0 %v2096_v63  ;;  %v11608_v32 = vmax.f32 %v8619_v20, %v8743_v59  ;;  %v2143_v12 = vsel %vm569_vm0, %v2121_v29, 0.0 }
 0x11b   : > { %v872_v61 = vpop.xlane.xlu1 %871  ;;  %v806_v57 = vpop.xlane.xlu0 %805  ;;  %v2140_v33 = vsel %vm569_vm0, %v2120_v34, 0.0 }
 0x11c   : > { %v8882_v8 = vmul.f32 0.25, %v872_v61  ;;  %v8884_v15 = vmul.f32 0.25, %v806_v57 }
 0x11e   : > { %11606 = vst [vmem:[#allocation45_spill] sm:$0xff] %v8882_v8  ;;  %11607 = vst [vmem:[#allocation46_spill] sm:$0xff] %v8884_v15  ;;  %v8890_v63 = vmax.f32 %v11608_v32, %v8882_v8  ;;  %v1128_v26 = vmax.f32 %v8753_v58, %v8884_v15  ;;  %2138 = vadd.xlane.f32.xlu1 %v2137_v41  ;;  %2100 = vadd.xlane.f32.xlu0 %v2099_v22  ;;  %v9118_v8 = vld [vmem:[%s8984_s18 + $0x28] sm:$0xff] }
 0x11f   : > { %v1834_v47 = vpop.xlane.xlu1 %1833  ;;  %v938_v18 = vpop.xlane.xlu0 %937  ;;  %v11612_v22 = vmax.f32 %v8776_v42, %v8780_v7  ;;  %11642 = vst [vmem:[#allocation72_spill] sm:$0xff] %v9118_v8 }
 0x120   : > { %v8896_v45 = vmul.f32 0.25, %v938_v18  ;;  %v8900_v32 = vmul.f32 0.25, %v1834_v47 }
 0x122   : > { %v1140_v61 = vmax.f32 %v8766_v6, %v8896_v45  ;;  %2144 = vadd.xlane.f32.xlu1 %v2143_v12  ;;  %2141 = vadd.xlane.f32.xlu0 %v2140_v33  ;;  %11609 = vst [vmem:[#allocation47_spill] sm:$0xff] %v8900_v32 }
 0x123   : > { %v1916_v20 = vpop.xlane.xlu1 %1915  ;;  %v1878_v57 = vpop.xlane.xlu0 %1877 }
 0x124   : > { %v8902_v58 = vmul.f32 0.25, %v1916_v20  ;;  %v8904_v41 = vmul.f32 0.25, %v1878_v57 }
 0x126   : > { %11610 = vst [vmem:[#allocation48_spill] sm:$0xff] %v8902_v58  ;;  %11611 = vst [vmem:[#allocation49_spill] sm:$0xff] %v8904_v41  ;;  %v8910_v29 = vmax.f32 %v11612_v22, %v8902_v58  ;;  %v2160_v34 = vmax.f32 %v8900_v32, %v8904_v41 }
 0x127   : > { %v809_v6 = vpop.xlane.xlu1 %808  ;;  %v1954_v18 = vpop.xlane.xlu0 %1953 }
 0x128   : > { %v8914_v12 = vmul.f32 0.25, %v809_v6  ;;  %v8916_v33 = vmul.f32 0.25, %v1954_v18  ;;  %v11617_v6 = vmax.f32 %v8668_v16, %v8794_v62 }
 0x12a   : > { %11613 = vst [vmem:[#allocation50_spill] sm:$0xff] %v8914_v12  ;;  %11614 = vst [vmem:[#allocation51_spill] sm:$0xff] %v8916_v33  ;;  %v2172_v20 = vmax.f32 %v8786_v38, %v8916_v33 }
 0x12b   : > { %v932_v57 = vpop.xlane.xlu1 %931  ;;  %v875_v53 = vpop.xlane.xlu0 %874 }
 0x12c   : > { %v8922_v7 = vmul.f32 0.25, %v932_v57  ;;  %v8924_v22 = vmul.f32 0.25, %v875_v53  ;;  %v11618_v53 = vmax.f32 %v8699_v28, %v8834_v27 }
 0x12e   : > { %11615 = vst [vmem:[#allocation52_spill] sm:$0xff] %v8922_v7  ;;  %11616 = vst [vmem:[#allocation53_spill] sm:$0xff] %v8924_v22  ;;  %v8932_v18 = vmax.f32 %v11617_v6, %v8924_v22  ;;  %v11637_v22 = vmax.f32 %v8804_v37, %v8914_v12  ;;  %v9091_v12 = vld [vmem:[%s8984_s18 + $0x20] sm:$0xff]  ;;  %v11641_v62 = vmax.f32 %v8826_v36, %v8922_v7 }
 0x12f   : > { %v1007_v32 = vpop.xlane.xlu1 %1006  ;;  %v941_v47 = vpop.xlane.xlu0 %940  ;;  %11639 = vst [vmem:[#allocation71_spill] sm:$0xff] %v9091_v12 }
 0x130   : > { %v8934_v58 = vmul.f32 0.25, %v1007_v32  ;;  %v8936_v38 = vmul.f32 0.25, %v941_v47 }
 0x132   : > { %v8942_v57 = vmax.f32 %v11618_v53, %v8934_v58 }
 0x133   : > { %v1881_v42 = vpop.xlane.xlu1 %1880  ;;  %v1837_v13 = vpop.xlane.xlu0 %1836 }
 0x134   : > { %v8946_v16 = vmul.f32 0.25, %v1881_v42  ;;  %v8948_v6 = vmul.f32 0.25, %v1837_v13  ;;  %v11623_v42 = vmax.f32 %v8844_v54, %v8848_v4 }
 0x136   : > { %11619 = vst [vmem:[#allocation54_spill] sm:$0xff] %v8946_v16  ;;  %11620 = vst [vmem:[#allocation55_spill] sm:$0xff] %v8948_v6 }
 0x137   : > { %v1948_v47 = vpop.xlane.xlu1 %1947  ;;  %v1919_v40 = vpop.xlane.xlu0 %1918 }
 0x138   : > { %v8952_v11 = vmul.f32 0.25, %v1948_v47  ;;  %v8954_v28 = vmul.f32 0.25, %v1919_v40  ;;  %v11626_v40 = vmax.f32 %v8727_v1, %v8864_v39  ;;  %v9013_v39 = vld [vmem:[%s8984_s18 + $0x10] sm:$0xff] }
 0x13a   : > { %11621 = vst [vmem:[#allocation56_spill] sm:$0xff] %v8952_v11  ;;  %11622 = vst [vmem:[#allocation57_spill] sm:$0xff] %v8954_v28  ;;  %v8962_v41 = vmax.f32 %v11623_v42, %v8954_v28 }
 0x13b   : > { %v1995_v13 = vpop.xlane.xlu1 %1994  ;;  %v1957_v33 = vpop.xlane.xlu0 %1956 }
 0x13c   : > { %v8964_v46 = vmul.f32 0.25, %v1995_v13  ;;  %v8966_v32 = vmul.f32 0.25, %v1957_v33 }
 0x13e   : > { %11624 = vst [vmem:[#allocation58_spill] sm:$0xff] %v8964_v46  ;;  %11625 = vst [vmem:[#allocation59_spill] sm:$0xff] %v8966_v32  ;;  %v8972_v47 = vmax.f32 %v11626_v40, %v8964_v46 }
 0x13f   : > { %v944_v14 = vpop.xlane.xlu1 %943  ;;  %v878_v35 = vpop.xlane.xlu0 %877 }
 0x140   : > { %11627 = vst [vmem:[#allocation60_spill] sm:$0xff] %v8972_v47  ;;  %v8976_v4 = vmul.f32 0.25, %v944_v14  ;;  %v8978_v42 = vmul.f32 0.25, %v878_v35  ;;  %v8996_v35 = vld [vmem:[%s8984_s18 + $0x8] sm:$0xff] }
 0x142   : > { %11628 = vst [vmem:[#allocation61_spill] sm:$0xff] %v8976_v4  ;;  %11629 = vst [vmem:[#allocation62_spill] sm:$0xff] %v8978_v42  ;;  %v8989_v33 = vmax.f32 %v1128_v26, %v8978_v42 }
 0x143   : > { %v1922_v13 = vpop.xlane.xlu1 %1921  ;;  %v1010_v40 = vpop.xlane.xlu0 %1009 }
 0x144   : > { %v8991_v53 = vmul.f32 0.25, %v1922_v13  ;;  %v8993_v14 = vmul.f32 0.25, %v1010_v40  ;;  %v11640_v40 = vmax.f32 %v8820_v10, %v8936_v38 }
 0x146   : > { %11630 = vst [vmem:[#allocation63_spill] sm:$0xff] %v8991_v53  ;;  %v8999_v28 = vmax.f32 %v2160_v34, %v8991_v53  ;;  %v9002_v54 = vmax.f32 %v1140_v61, %v8993_v14  ;;  %v9033_v61 = vld [vmem:[%s8984_s18 + $0x18] sm:$0xff] }
 0x147   : > { %v1998_v9 = vpop.xlane.xlu1 %1997  ;;  %v1960_v1 = vpop.xlane.xlu0 %1959  ;;  %11634 = vst [vmem:[#allocation67_spill] sm:$0xff] %v9033_v61 }
 0x148   : > { %11631 = vst [vmem:[#allocation64_spill] sm:$0xff] %v8999_v28  ;;  %v9004_v46 = vmul.f32 0.25, %v1998_v9  ;;  %v9006_v26 = vmul.f32 0.25, %v1960_v1 }
 0x14a   : > { %11632 = vst [vmem:[#allocation65_spill] sm:$0xff] %v9004_v46  ;;  %11633 = vst [vmem:[#allocation66_spill] sm:$0xff] %v9006_v26  ;;  %v9024_v53 = vmax.f32 %v2172_v20, %v9004_v46 }
 0x14b   : > { %v947_v42 = vpop.xlane.xlu1 %946  ;;  %v881_v9 = vpop.xlane.xlu0 %880 }
 0x14c   : > { %v9043_v46 = vmul.f32 0.25, %v947_v42  ;;  %v9045_v34 = vmul.f32 0.25, %v881_v9  ;;  %v9060_v9 = vld [vmem:[%s8984_s18] sm:$0xff] }
 0x14d   : > { %11636 = vst [vmem:[#allocation69_spill] sm:$0xff] %v9060_v9 }
 0x14e   : > { %11635 = vst [vmem:[#allocation68_spill] sm:$0xff] %v9045_v34  ;;  %v9068_v1 = vmax.f32 %v11637_v22, %v9045_v34 }
 0x14f   : > { %v1013_v13 = vpop.xlane.xlu1 %1012  ;;  %v1004_v42 = vpop.xlane.xlu0 %1003 }
 0x150   : > { %v9082_v34 = vmul.f32 0.25, %v1013_v13  ;;  %v9084_v20 = vmul.f32 0.25, %v1004_v42 }
 0x152   : > { %11638 = vst [vmem:[#allocation70_spill] sm:$0xff] %v9084_v20  ;;  %v9105_v22 = vmax.f32 %v11640_v40, %v9082_v34  ;;  %v9111_v15 = vmax.f32 %v11641_v62, %v9084_v20 }
 0x153   : > { %v1925_v42 = vpop.xlane.xlu1 %1924  ;;  %v1079_v59 = vpop.xlane.xlu0 %1078 }
 0x154   : > { %v9128_v37 = vmul.f32 0.25, %v1925_v42  ;;  %v1099_v61 = vmul.f32 0.25, %v1079_v59  ;;  %v11644_v59 = vmax.f32 %v8948_v6, %v8946_v16 }
 0x156   : > { %11643 = vst [vmem:[#allocation73_spill] sm:$0xff] %v9128_v37  ;;  %v9146_v13 = vmax.f32 %v11644_v59, %v9128_v37  ;;  %v1155_v9 = vmax.f32 %v8942_v57, %v1099_v61  ;;  %v9162_v37 = vld [vmem:[%s8984_s18 + $0x30] sm:$0xff] }
 0x157   : > { %v1992_v36 = vpop.xlane.xlu1 %1991  ;;  %v1963_v12 = vpop.xlane.xlu0 %1962  ;;  %11645 = vst [vmem:[#allocation74_spill] sm:$0xff] %v9162_v37 }
 0x158   : > { %v1163_v10 = vsub.f32 %v8482_v30, %v1155_v9  ;;  %v1187_v40 = vsub.f32 %v8486_v60, %v1155_v9  ;;  %v1211_v16 = vsub.f32 %v8525_v17, %v1155_v9  ;;  %v1235_v62 = vsub.f32 %v8588_v5, %v1155_v9 }
 0x159   : > { %v1259_v6 = vsub.f32 %v8693_v51, %v1155_v9  ;;  %v1283_v42 = vsub.f32 %v8834_v27, %v1155_v9  ;;  %v1307_v20 = vsub.f32 %v8934_v58, %v1155_v9  ;;  %v1331_v59 = vsub.f32 %v1099_v61, %v1155_v9 }
 0x15a   : > { %v1172_v7 = vmul.f32 1.442695, %v1163_v10  ;;  %v1196_v49 = vmul.f32 1.442695, %v1187_v40  ;;  %v1220_v57 = vmul.f32 1.442695, %v1211_v16  ;;  %v11650_v27 = vmax.f32 %v8854_v19, %v8952_v11 }
 0x15b   : > { %v1244_v30 = vmul.f32 1.442695, %v1235_v62  ;;  %v2039_v60 = vpop.xlane.xlu1 %2038  ;;  %v2001_v17 = vpop.xlane.xlu0 %2000  ;;  %v1268_v58 = vmul.f32 1.442695, %v1259_v6  ;;  %v1292_v16 = vmul.f32 1.442695, %v1283_v42  ;;  %v11651_v6 = vmax.f32 %v8874_v21, %v8966_v32 }
 0x15c   : > { %7599 = vpow2.f32 %v1172_v7  ;;  %v9183_v61 = vmul.f32 0.25, %v1992_v36  ;;  %v9185_v9 = vmul.f32 0.25, %v1963_v12  ;;  %v9187_v10 = vmul.f32 0.25, %v2039_v60  ;;  %v528_v62 = vld [vmem:[%s501_s26] sm:$0xff]  ;;  %s7892_s26 = sshll.u32 %s7955_s25, 4  ;;  %s7893_s26 = int_to_ptr.vmem [resolvable:$false] %s7892_s26 }
 0x15d   : > { %7601 = vpow2.f32 %v1196_v49  ;;  %v9189_v40 = vmul.f32 0.25, %v2001_v17  ;;  %v1316_v5 = vmul.f32 1.442695, %v1307_v20  ;;  %v1340_v8 = vmul.f32 1.442695, %v1331_v59  ;;  %v9222_v17 = vld [vmem:[%s8984_s18 + $0x38] sm:$0xff]  ;;  %s11388_s18 = scalar_lea.hbm %s11442_s12, %s5992_s28  ;;  %p7895_p0 = scmp.lt.s32.totalorder %s11390_s0, %s7893_s26 }
 0x15e   : > { %11646 = vst [vmem:[#allocation75_spill] sm:$0xff] %v9183_v61  ;;  %11647 = vst [vmem:[#allocation76_spill] sm:$0xff] %v9185_v9  ;;  %7603 = vpow2.f32 %v1220_v57  ;;  %v9195_v7 = vmax.f32 %v11650_v27, %v9183_v61  ;;  %v9216_v21 = vrot.slane %v528_v62, %v8078_v2  ;;  %v9219_v60 = vrot.slane %v528_v62, %v8081_v3  ;;  %s7894_s16 = scalar_lea.vmem %s7893_s26, 32 }
 0x15f   : > { %11648 = vst [vmem:[#allocation77_spill] sm:$0xff] %v9187_v10  ;;  %11649 = vst [vmem:[#allocation78_spill] sm:$0xff] %v9189_v40  ;;  %7605 = vpow2.f32 %v1244_v30  ;;  %v9205_v20 = vmax.f32 %v11651_v6, %v9189_v40  ;;  %v1016_v36 = vpop.xlane.xlu1 %1015  ;;  %v950_v42 = vpop.xlane.xlu0 %949  ;;  %v9225_v27 = vrot.slane %v528_v62, %v8133_v23  ;;  %v9236_v59 = vrot.slane %v528_v62, %v8331_v44  ;;  %p7896_p1 = scmp.lt.s32.totalorder %s7894_s16, %s7888_s19 }
 0x160   : > { %7607 = vpow2.f32 %v1268_v58  ;;  %11652 = vst [vmem:[#allocation79_spill] sm:$0xff] %v9216_v21  ;;  %11653 = vst [vmem:[#allocation80_spill] sm:$0xff] %v9219_v60  ;;  %v9228_v58 = vrot.slane %v528_v62, %v8177_v50  ;;  %v9233_v6 = vmul.f32 0.25, %v1016_v36  ;;  %v9239_v19 = vrot.slane %v528_v62, %v8399_v48 }
 0x161   : > { %7609 = vpow2.f32 %v1292_v16  ;;  %11654 = vst [vmem:[#allocation81_spill] sm:$0xff] %v9222_v17  ;;  %11655 = vst [vmem:[#allocation82_spill] sm:$0xff] %v9225_v27  ;;  %v9231_v16 = vrot.slane %v528_v62, %v8261_v43  ;;  %v9246_v12 = vrot.slane %v528_v62, %v8478_v24  ;;  %v11663_v61 = vrot.slane %v8996_v35, %v8078_v2  ;;  %v11668_v27 = vld [vmem:[#allocation10_spill] sm:$0xff]  ;;  %p7897_p2 = por %p7896_p1, %p7895_p0 }
 0x162   : > { %7611 = vpow2.f32 %v1316_v5  ;;  %11656 = vst [vmem:[#allocation83_spill] sm:$0xff] %v9228_v58  ;;  %11658 = vst [vmem:[#allocation85_spill] sm:$0xff] %v9233_v6  ;;  %v9275_v62 = vmul.f32 0.25, %v950_v42  ;;  %v11667_v42 = vrot.slane %v8996_v35, %v8133_v23 }
 0x163   : > { %11657 = vst [vmem:[#allocation84_spill] sm:$0xff] %v9231_v16  ;;  %7613 = vpow2.f32 %v1340_v8  ;;  %v1966_v30 = vpop.xlane.xlu1 %1965  ;;  %v1082_v57 = vpop.xlane.xlu0 %1081  ;;  %11659 = vst [vmem:[#allocation86_spill] sm:$0xff] %v9236_v59  ;;  %v11666_v59 = vrot.slane %v8996_v35, %v8081_v3  ;;  %v11669_v8 = vld [vmem:[#allocation33_spill] sm:$0xff]  ;;  %p7898_p3 = pnand %p7897_p2, %p7891_p13 }
 0x164   : > { %11660 = vst [vmem:[#allocation87_spill] sm:$0xff] %v9239_v19  ;;  %v9241_v5 = vmul.f32 0.25, %v1966_v30  ;;  %v9243_v51 = vmul.f32 0.25, %v1082_v57  ;;  %11662 = vst [vmem:[#allocation89_spill] sm:$0xff] %v9246_v12  ;;  %v11664_v30 = vmax.f32 %v8890_v63, %v8976_v4  ;;  %v11671_v4 = vrot.slane %v8996_v35, %v8261_v43 }
 0x166   : > { %11661 = vst [vmem:[#allocation88_spill] sm:$0xff] %v9241_v5  ;;  %v7600_v57 = vpop.eup %7599  ;;  %v1156_v11 = vmax.f32 %v9002_v54, %v9243_v51  ;;  %v9273_v32 = vmax.f32 %v11664_v30, %v9233_v6 }
 0x167   : > { %v7602_v49 = vpop.eup %7601  ;;  %v1443_v40 = vmul.f32 %v7600_v57, %v11663_v61  ;;  %v2042_v54 = vpop.xlane.xlu1 %2041 }
 0x168   : > { %11665 = vst [vmem:[#allocation90_spill] sm:$0xff] %v9273_v32  ;;  %v2004_v12 = vpop.xlane.xlu0 %2003  ;;  %v7604_v19 = vpop.eup %7603  ;;  %v1355_v36 = vadd.f32 %v7602_v49, %v7600_v57  ;;  %v1483_v16 = vmul.f32 %v7602_v49, %v11666_v59  ;;  %v1164_v61 = vsub.f32 %v8480_v25, %v1156_v11  ;;  %v1188_v58 = vsub.f32 %v8484_v31, %v1156_v11 }
 0x169   : > { %v7606_v63 = vpop.eup %7605  ;;  %v1531_v30 = vmul.f32 %v7604_v19, %v11667_v42  ;;  %v1212_v60 = vsub.f32 %v11668_v27, %v1156_v11  ;;  %v1236_v21 = vsub.f32 %v8627_v0, %v1156_v11  ;;  %v1260_v17 = vsub.f32 %v11669_v8, %v1156_v11 }
 0x16a   : > { %v7608_v57 = vpop.eup %7607  ;;  %v1363_v37 = vadd.f32 %v7604_v19, %v1355_v36  ;;  %v1491_v6 = vadd.f32 %v1483_v16, %v1443_v40  ;;  %v11670_v49 = vrot.slane %v8996_v35, %v8177_v50  ;;  %v1174_v59 = vmul.f32 1.442695, %v1164_v61 }
 0x16b   : > { %v7610_v31 = vpop.eup %7609  ;;  %v1627_v32 = vmul.f32 %v7608_v57, %v11671_v4  ;;  %v1198_v42 = vmul.f32 1.442695, %v1188_v58  ;;  %v1222_v5 = vmul.f32 1.442695, %v1212_v60  ;;  %v1246_v27 = vmul.f32 1.442695, %v1236_v21  ;;  %v1019_v28 = vpop.xlane.xlu1 %1018 }
 0x16c   : > { %v1579_v25 = vmul.f32 %v7606_v63, %v11670_v49  ;;  %v953_v0 = vpop.xlane.xlu0 %952  ;;  %v7612_v10 = vpop.eup %7611  ;;  %v1371_v8 = vadd.f32 %v7606_v63, %v1363_v37  ;;  %v1539_v47 = vadd.f32 %v1531_v30, %v1491_v6  ;;  %v11672_v40 = vrot.slane %v8996_v35, %v8331_v44 }
 0x16d   : > { %7615 = vpow2.f32 %v1174_v59  ;;  %v7614_v16 = vpop.eup %7613  ;;  %v11673_v36 = vrot.slane %v8996_v35, %v8399_v48  ;;  %v1270_v4 = vmul.f32 1.442695, %v1260_v17  ;;  %v1284_v60 = vsub.f32 %v8896_v45, %v1156_v11 }
 0x16e   : > { %v1675_v19 = vmul.f32 %v7610_v31, %v11672_v40  ;;  %7617 = vpow2.f32 %v1198_v42  ;;  %v1379_v21 = vadd.f32 %v7608_v57, %v1371_v8  ;;  %v1587_v58 = vadd.f32 %v1579_v25, %v1539_v47 }
 0x16f   : > { %v1723_v61 = vmul.f32 %v7612_v10, %v11673_v36  ;;  %v11674_v37 = vrot.slane %v8996_v35, %v8478_v24  ;;  %7619 = vpow2.f32 %v1222_v5  ;;  %v1294_v63 = vmul.f32 1.442695, %v1284_v60  ;;  %v1085_v59 = vpop.xlane.xlu1 %1084 }
 0x170   : > { %7621 = vpow2.f32 %v1246_v27  ;;  %v1308_v30 = vsub.f32 %v8993_v14, %v1156_v11  ;;  %v1332_v49 = vsub.f32 %v9243_v51, %v1156_v11  ;;  %v1076_v40 = vpop.xlane.xlu0 %1075  ;;  %v1387_v36 = vadd.f32 %v7610_v31, %v1379_v21 }
 0x171   : > { %v1771_v6 = vmul.f32 %v7614_v16, %v11674_v37  ;;  %v1635_v42 = vadd.f32 %v1627_v32, %v1587_v58  ;;  %7623 = vpow2.f32 %v1270_v4  ;;  %v9308_v17 = vmul.f32 0.25, %v2042_v54 }
 0x172   : > { %7625 = vpow2.f32 %v1294_v63  ;;  %v1318_v45 = vmul.f32 1.442695, %v1308_v30  ;;  %v1342_v47 = vmul.f32 1.442695, %v1332_v49  ;;  %v9310_v57 = vmul.f32 0.25, %v2004_v12  ;;  %v11682_v63 = vld [vmem:[#allocation5_spill] sm:$0xff] }
 0x173   : > { %11675 = vst [vmem:[#allocation10_spill] sm:$0xff] %v9308_v17  ;;  %v1395_v35 = vadd.f32 %v7612_v10, %v1387_v36  ;;  %v1683_v5 = vadd.f32 %v1675_v19, %v1635_v42  ;;  %v1144_v25 = vmax.f32 %v8989_v33, %v9275_v62  ;;  %v9314_v14 = vmul.f32 0.25, %v1019_v28  ;;  %v2007_v31 = vpop.xlane.xlu1 %2006  ;;  %v11683_v49 = vld [vmem:[#allocation7_spill] sm:$0xff]  ;;  %v11684_v36 = vld [vmem:[#allocation14_spill] sm:$0xff]  ;;  %v11716_v33 = vld [vmem:[#allocation88_spill] sm:$0xff] }
 0x174   : > { %11676 = vst [vmem:[#allocation33_spill] sm:$0xff] %v9310_v57  ;;  %7627 = vpow2.f32 %v1318_v45  ;;  %v11677_v11 = vmax.f32 %v8910_v29, %v9006_v26  ;;  %v9322_v51 = vmul.f32 0.25, %v953_v0  ;;  %v1101_v54 = vmul.f32 0.25, %v1085_v59  ;;  %v1969_v12 = vpop.xlane.xlu0 %1968 }
 0x175   : > { %v1403_v27 = vadd.f32 %v7614_v16, %v1395_v35  ;;  %v1731_v10 = vadd.f32 %v1723_v61, %v1683_v5  ;;  %7629 = vpow2.f32 %v1342_v47  ;;  %v11678_v28 = vmax.f32 %v8932_v18, %v9043_v46 }
 0x176   : > { %v9320_v32 = vmax.f32 %v11677_v11, %v9310_v57  ;;  %v1157_v0 = vmax.f32 %v9105_v22, %v1101_v54  ;;  %v9335_v4 = vmul.f32 0.25, %v1076_v40  ;;  %v9337_v61 = vmul.f32 0.25, %v2007_v31 }
 0x177   : > { %v9330_v19 = vmax.f32 %v11678_v28, %v9314_v14  ;;  %v7616_v60 = vpop.eup %7615  ;;  %v1779_v16 = vadd.f32 %v1771_v6, %v1731_v10  ;;  %7631 = vrcp.f32 %v1403_v27  ;;  %v9339_v21 = vmul.f32 0.25, %v1969_v12  ;;  %v9347_v40 = vpop.xlane.xlu1 %2044 }
 0x178   : > { %11679 = vst [vmem:[#allocation91_spill] sm:$0xff] %v9337_v61  ;;  %v7618_v58 = vpop.eup %7617  ;;  %v11681_v18 = vrot.slane %v9013_v39, %v8078_v2  ;;  %v1165_v30 = vsub.f32 %v11682_v63, %v1157_v0  ;;  %v1189_v59 = vsub.f32 %v11683_v49, %v1157_v0  ;;  %v1213_v22 = vsub.f32 %v11684_v36, %v1157_v0 }
 0x179   : > { %11680 = vst [vmem:[#allocation92_spill] sm:$0xff] %v9339_v21  ;;  %v7620_v42 = vpop.eup %7619  ;;  %v1356_v6 = vadd.f32 %v7618_v58, %v7616_v60  ;;  %v11685_v45 = vrot.slane %v9013_v39, %v8081_v3  ;;  %v1237_v35 = vsub.f32 %v8675_v56, %v1157_v0  ;;  %v1261_v5 = vsub.f32 %v8812_v55, %v1157_v0 }
 0x17a   : > { %v1444_v37 = vmul.f32 %v7616_v60, %v11681_v18  ;;  %v7622_v11 = vpop.eup %7621  ;;  %v11686_v31 = vrot.slane %v9013_v39, %v8133_v23  ;;  %v1176_v27 = vmul.f32 1.442695, %v1165_v30  ;;  %v1200_v10 = vmul.f32 1.442695, %v1189_v59  ;;  %v9364_v30 = vpop.xlane.xlu0 %2035 }
 0x17b   : > { %v1484_v47 = vmul.f32 %v7618_v58, %v11685_v45  ;;  %v1224_v28 = vmul.f32 1.442695, %v1213_v22  ;;  %v7624_v18 = vpop.eup %7623  ;;  %v1364_v63 = vadd.f32 %v7620_v42, %v1356_v6  ;;  %v11687_v60 = vrot.slane %v9013_v39, %v8177_v50  ;;  %v9369_v6 = vpop.xlane.xlu1 %1021 }
 0x17c   : > { %v1532_v12 = vmul.f32 %v7620_v42, %v11686_v31  ;;  %v1248_v58 = vmul.f32 1.442695, %v1237_v35  ;;  %v7626_v45 = vpop.eup %7625  ;;  %v11688_v56 = vrot.slane %v9013_v39, %v8261_v43  ;;  %7633 = vpow2.f32 %v1176_v27 }
 0x17d   : > { %v1492_v49 = vadd.f32 %v1484_v47, %v1444_v37  ;;  %v1580_v36 = vmul.f32 %v7622_v11, %v11687_v60  ;;  %v1272_v29 = vmul.f32 1.442695, %v1261_v5  ;;  %v1285_v31 = vsub.f32 %v8936_v38, %v1157_v0 }
 0x17e   : > { %v1628_v55 = vmul.f32 %v7624_v18, %v11688_v56  ;;  %v1372_v59 = vadd.f32 %v7622_v11, %v1364_v63  ;;  %v11689_v37 = vrot.slane %v9013_v39, %v8331_v44  ;;  %7635 = vpow2.f32 %v1200_v10  ;;  %v7628_v47 = vpop.eup %7627 }
 0x17f   : > { %v1540_v22 = vadd.f32 %v1532_v12, %v1492_v49  ;;  %7637 = vpow2.f32 %v1224_v28  ;;  %v1296_v35 = vmul.f32 1.442695, %v1285_v31  ;;  %v1309_v60 = vsub.f32 %v9082_v34, %v1157_v0  ;;  %v7630_v5 = vpop.eup %7629 }
 0x180   : > { %v1676_v42 = vmul.f32 %v7626_v45, %v11689_v37  ;;  %v1333_v27 = vsub.f32 %v1101_v54, %v1157_v0  ;;  %v1380_v56 = vadd.f32 %v7624_v18, %v1372_v59  ;;  %v11690_v11 = vrot.slane %v9013_v39, %v8399_v48 }
 0x181   : > { %v1588_v38 = vadd.f32 %v1580_v36, %v1540_v22  ;;  %7639 = vpow2.f32 %v1248_v58  ;;  %v11691_v63 = vrot.slane %v9013_v39, %v8478_v24  ;;  %v1320_v49 = vmul.f32 1.442695, %v1309_v60  ;;  %v7632_v28 = vpop.eup %7631  ;;  %v11696_v22 = vld [vmem:[#allocation15_spill] sm:$0xff] }
 0x182   : > { %v1724_v12 = vmul.f32 %v7628_v47, %v11690_v11  ;;  %7641 = vpow2.f32 %v1272_v29  ;;  %v1344_v37 = vmul.f32 1.442695, %v1333_v27  ;;  %v1388_v31 = vadd.f32 %v7626_v45, %v1380_v56  ;;  %v9390_v29 = vpop.xlane.xlu0 %2082  ;;  %v11694_v45 = vld [vmem:[#allocation6_spill] sm:$0xff]  ;;  %v11697_v60 = vld [vmem:[#allocation39_spill] sm:$0xff] }
 0x183   : > { %v1772_v10 = vmul.f32 %v7630_v5, %v11691_v63  ;;  %v1636_v8 = vadd.f32 %v1628_v55, %v1588_v38  ;;  %7643 = vpow2.f32 %v1296_v35  ;;  %v1154_v34 = vmax.f32 %v9111_v15, %v9335_v4  ;;  %v9393_v15 = vpop.xlane.xlu1 %2009  ;;  %v11698_v63 = vld [vmem:[#allocation52_spill] sm:$0xff] }
 0x184   : > { %v9380_v54 = vmul.f32 %v7632_v28, %v1779_v16  ;;  %7645 = vpow2.f32 %v1320_v49  ;;  %v11693_v0 = vmax.f32 %v8962_v41, %v9185_v9  ;;  %v1396_v36 = vadd.f32 %v7628_v47, %v1388_v31  ;;  %v11695_v16 = vld [vmem:[#allocation8_spill] sm:$0xff]  ;;  %v11699_v28 = vld [vmem:[#allocation70_spill] sm:$0xff] }
 0x185   : > { %v1684_v58 = vadd.f32 %v1676_v42, %v1636_v8  ;;  %7647 = vpow2.f32 %v1344_v37  ;;  %v1162_v55 = vsub.f32 %v11694_v45, %v1154_v34  ;;  %v1186_v59 = vsub.f32 %v11695_v16, %v1154_v34  ;;  %v11700_v16 = vld [vmem:[#allocation67_spill] sm:$0xff] }
 0x186   : > { %11692 = vst [vmem:[#allocation5_spill] sm:$0xff] %v9380_v54  ;;  %v9386_v18 = vmax.f32 %v11693_v0, %v9337_v61  ;;  %v1210_v35 = vsub.f32 %v11696_v22, %v1154_v34  ;;  %v1234_v41 = vsub.f32 %v8677_v52, %v1154_v34  ;;  %v1258_v27 = vsub.f32 %v11697_v60, %v1154_v34  ;;  %v7634_v47 = vpop.eup %7633  ;;  %v11726_v54 = vld [vmem:[#allocation11_spill] sm:$0xff] }
 0x187   : > { %v1404_v56 = vadd.f32 %v7630_v5, %v1396_v36  ;;  %v1732_v38 = vadd.f32 %v1724_v12, %v1684_v58  ;;  %v1170_v11 = vmul.f32 1.442695, %v1162_v55  ;;  %v1282_v49 = vsub.f32 %v11698_v63, %v1154_v34  ;;  %v1088_v55 = vpop.xlane.xlu0 %1087 }
 0x188   : > { %v1194_v8 = vmul.f32 1.442695, %v1186_v59  ;;  %v1218_v42 = vmul.f32 1.442695, %v1210_v35  ;;  %v1242_v37 = vmul.f32 1.442695, %v1234_v41  ;;  %v1306_v31 = vsub.f32 %v11699_v28, %v1154_v34  ;;  %v7636_v0 = vpop.eup %7635 }
 0x189   : > { %v1780_v45 = vadd.f32 %v1772_v10, %v1732_v38  ;;  %7649 = vrcp.f32 %v1404_v56  ;;  %v11701_v22 = vrot.slane %v11700_v16, %v8078_v2  ;;  %v1266_v39 = vmul.f32 1.442695, %v1258_v27  ;;  %v7638_v60 = vpop.eup %7637  ;;  %v2086_v38 = vpop.xlane.xlu1 %2085 }
 0x18a   : > { %v1357_v5 = vadd.f32 %v7636_v0, %v7634_v47  ;;  %v11702_v12 = vrot.slane %v11700_v16, %v8081_v3  ;;  %7651 = vpow2.f32 %v1170_v11  ;;  %v1290_v58 = vmul.f32 1.442695, %v1282_v49 }
 0x18b   : > { %v1445_v52 = vmul.f32 %v7634_v47, %v11701_v22  ;;  %v7640_v59 = vpop.eup %7639  ;;  %v11703_v35 = vrot.slane %v11700_v16, %v8133_v23  ;;  %7653 = vpow2.f32 %v1194_v8  ;;  %v1314_v41 = vmul.f32 1.442695, %v1306_v31 }
 0x18c   : > { %v1485_v36 = vmul.f32 %v7636_v0, %v11702_v12  ;;  %v1330_v56 = vsub.f32 %v9335_v4, %v1154_v34  ;;  %v7642_v27 = vpop.eup %7641  ;;  %v1365_v63 = vadd.f32 %v7638_v60, %v1357_v5  ;;  %v11704_v28 = vrot.slane %v11700_v16, %v8177_v50 }
 0x18d   : > { %v1533_v10 = vmul.f32 %v7638_v60, %v11703_v35  ;;  %7655 = vpow2.f32 %v1218_v42  ;;  %v7644_v11 = vpop.eup %7643  ;;  %v11705_v49 = vrot.slane %v11700_v16, %v8261_v43  ;;  %v9418_v8 = vmul.f32 0.25, %v9347_v40 }
 0x18e   : > { %v1493_v47 = vadd.f32 %v1485_v36, %v1445_v52  ;;  %v1581_v0 = vmul.f32 %v7640_v59, %v11704_v28  ;;  %7657 = vpow2.f32 %v1242_v37  ;;  %v1338_v12 = vmul.f32 1.442695, %v1330_v56  ;;  %v7646_v4 = vpop.eup %7645 }
 0x18f   : > { %v1629_v22 = vmul.f32 %v7642_v27, %v11705_v49  ;;  %v1373_v34 = vadd.f32 %v7640_v59, %v1365_v63  ;;  %v11706_v52 = vrot.slane %v11700_v16, %v8331_v44  ;;  %7659 = vpow2.f32 %v1266_v39  ;;  %v7648_v5 = vpop.eup %7647  ;;  %v2048_v39 = vpop.xlane.xlu0 %2047 }
 0x190   : > { %v1541_v31 = vadd.f32 %v1533_v10, %v1493_v47  ;;  %v11707_v42 = vrot.slane %v11700_v16, %v8399_v48  ;;  %7661 = vpow2.f32 %v1290_v58  ;;  %v9429_v40 = vmul.f32 0.25, %v9364_v30  ;;  %v9442_v30 = vpop.xlane.xlu1 %1090 }
 0x191   : > { %v1677_v60 = vmul.f32 %v7644_v11, %v11706_v52  ;;  %v1381_v35 = vadd.f32 %v7642_v27, %v1373_v34  ;;  %v11708_v10 = vrot.slane %v11700_v16, %v8478_v24  ;;  %7663 = vpow2.f32 %v1314_v41 }
 0x192   : > { %v1725_v36 = vmul.f32 %v7646_v4, %v11707_v42  ;;  %v1589_v59 = vadd.f32 %v1581_v0, %v1541_v31  ;;  %7665 = vpow2.f32 %v1338_v12  ;;  %v9437_v58 = vmul.f32 0.25, %v9369_v6  ;;  %v11710_v6 = vld [vmem:[#allocation60_spill] sm:$0xff] }
 0x193   : > { %v1773_v56 = vmul.f32 %v7648_v5, %v11708_v10  ;;  %v9440_v47 = vmul.f32 0.25, %v9390_v29  ;;  %v1389_v27 = vadd.f32 %v7644_v11, %v1381_v35  ;;  %v9445_v0 = vmul.f32 0.25, %v9393_v15  ;;  %v7650_v41 = vpop.eup %7649  ;;  %v11711_v29 = vld [vmem:[#allocation77_spill] sm:$0xff]  ;;  %v11715_v42 = vld [vmem:[#allocation64_spill] sm:$0xff]  ;;  %v1025_v63 = vpop.xlane.xlu0 %1024 }
 0x194   : > { %v1637_v28 = vadd.f32 %v1629_v22, %v1589_v59  ;;  %v9447_v16 = vmul.f32 0.25, %v1088_v55  ;;  %v9453_v49 = vmax.f32 %v1144_v25, %v9437_v58  ;;  %v11712_v12 = vmax.f32 %v11710_v6, %v11711_v29  ;;  %v7652_v15 = vpop.eup %7651  ;;  %v11718_v10 = vld [vmem:[#allocation69_spill] sm:$0xff]  ;;  %v2051_v61 = vpop.xlane.xlu1 %2050 }
 0x195   : > { %11709 = vst [vmem:[#allocation7_spill] sm:$0xff] %v9445_v0  ;;  %v9461_v11 = vmul.f32 0.25, %v2086_v38  ;;  %v9463_v22 = vmul.f32 0.25, %v2048_v39  ;;  %v9465_v55 = vmul.f32 %v7650_v41, %v1780_v45  ;;  %v1397_v31 = vadd.f32 %v7646_v4, %v1389_v27  ;;  %v7654_v59 = vpop.eup %7653  ;;  %v11720_v38 = vld [vmem:[#allocation90_spill] sm:$0xff] }
 0x196   : > { %v9459_v34 = vmax.f32 %v11712_v12, %v9440_v47  ;;  %v1685_v52 = vadd.f32 %v1677_v60, %v1637_v28  ;;  %v11717_v25 = vmax.f32 %v11715_v42, %v11716_v33  ;;  %v11719_v6 = vrot.slane %v11718_v10, %v8078_v2  ;;  %v11727_v33 = vld [vmem:[#allocation19_spill] sm:$0xff] }
 0x197   : > { %11713 = vst [vmem:[#allocation14_spill] sm:$0xff] %v9461_v11  ;;  %11714 = vst [vmem:[#allocation6_spill] sm:$0xff] %v9465_v55  ;;  %v1158_v39 = vmax.f32 %v11720_v38, %v9447_v16  ;;  %v11721_v45 = vmax.f32 %v9024_v53, %v9308_v17  ;;  %v7656_v27 = vpop.eup %7655  ;;  %v1405_v28 = vadd.f32 %v7648_v5, %v1397_v31  ;;  %v11725_v53 = vld [vmem:[#allocation9_spill] sm:$0xff] }
 0x198   : > { %v9471_v35 = vmax.f32 %v11717_v25, %v9445_v0  ;;  %v1442_v12 = vmul.f32 %v7652_v15, %v11719_v6  ;;  %v1733_v41 = vadd.f32 %v1725_v36, %v1685_v52  ;;  %v1354_v42 = vadd.f32 %v7654_v59, %v7652_v15  ;;  %v7658_v37 = vpop.eup %7657 }
 0x199   : > { %v9482_v4 = vmax.f32 %v11721_v45, %v9461_v11  ;;  %v11723_v25 = vrot.slane %v11718_v10, %v8081_v3  ;;  %v11724_v38 = vrot.slane %v11718_v10, %v8133_v23  ;;  %v1166_v45 = vsub.f32 %v11725_v53, %v1158_v39  ;;  %v7660_v5 = vpop.eup %7659  ;;  %v11733_v11 = vld [vmem:[#allocation45_spill] sm:$0xff] }
 0x19a   : > { %v1190_v0 = vsub.f32 %v11726_v54, %v1158_v39  ;;  %v1214_v60 = vsub.f32 %v11727_v33, %v1158_v39  ;;  %v1781_v36 = vadd.f32 %v1773_v56, %v1733_v41  ;;  %7667 = vrcp.f32 %v1405_v28  ;;  %v7662_v52 = vpop.eup %7661 }
 0x19b   : > { %11722 = vst [vmem:[#allocation8_spill] sm:$0xff] %v9482_v4  ;;  %v1482_v6 = vmul.f32 %v7654_v59, %v11723_v25  ;;  %v1530_v55 = vmul.f32 %v7656_v27, %v11724_v38  ;;  %v1362_v15 = vadd.f32 %v7656_v27, %v1354_v42  ;;  %v11728_v59 = vrot.slane %v11718_v10, %v8177_v50  ;;  %v7664_v54 = vpop.eup %7663  ;;  %v11736_v4 = vld [vmem:[#allocation85_spill] sm:$0xff] }
 0x19c   : > { %v11729_v38 = vrot.slane %v11718_v10, %v8261_v43  ;;  %v1178_v53 = vmul.f32 1.442695, %v1166_v45  ;;  %v1202_v57 = vmul.f32 1.442695, %v1190_v0  ;;  %v11730_v56 = vrot.slane %v11718_v10, %v8331_v44 }
 0x19d   : > { %v1490_v31 = vadd.f32 %v1482_v6, %v1442_v12  ;;  %v1578_v25 = vmul.f32 %v7658_v37, %v11728_v59  ;;  %v1370_v26 = vadd.f32 %v7658_v37, %v1362_v15  ;;  %v1226_v27 = vmul.f32 1.442695, %v1214_v60  ;;  %v7666_v12 = vpop.eup %7665  ;;  %v11732_v6 = vld [vmem:[#allocation31_spill] sm:$0xff]  ;;  %v9512_v15 = vpop.xlane.xlu0 %2012 }
 0x19e   : > { %v1626_v9 = vmul.f32 %v7660_v5, %v11729_v38  ;;  %v1674_v28 = vmul.f32 %v7662_v52, %v11730_v56  ;;  %v11731_v41 = vrot.slane %v11718_v10, %v8399_v48  ;;  %7669 = vpow2.f32 %v1178_v53  ;;  %v11735_v56 = vld [vmem:[#allocation61_spill] sm:$0xff] }
 0x19f   : > { %v1538_v33 = vadd.f32 %v1530_v55, %v1490_v31  ;;  %v1238_v59 = vsub.f32 %v11732_v6, %v1158_v39  ;;  %v1262_v38 = vsub.f32 %v11733_v11, %v1158_v39  ;;  %v1378_v45 = vadd.f32 %v7660_v5, %v1370_v26 }
 0x1a0   : > { %v1722_v42 = vmul.f32 %v7664_v54, %v11731_v41  ;;  %v11734_v37 = vrot.slane %v11718_v10, %v8478_v24  ;;  %7671 = vpow2.f32 %v1202_v57  ;;  %v1286_v17 = vsub.f32 %v11735_v56, %v1158_v39  ;;  %v9515_v41 = vpop.xlane.xlu1 %2088 }
 0x1a1   : > { %v1586_v0 = vadd.f32 %v1578_v25, %v1538_v33  ;;  %7673 = vpow2.f32 %v1226_v27  ;;  %v1250_v60 = vmul.f32 1.442695, %v1238_v59  ;;  %v1274_v31 = vmul.f32 1.442695, %v1262_v38 }
 0x1a2   : > { %v1770_v55 = vmul.f32 %v7666_v12, %v11734_v37  ;;  %v1386_v53 = vadd.f32 %v7662_v52, %v1378_v45  ;;  %v1310_v11 = vsub.f32 %v11736_v4, %v1158_v39  ;;  %v1334_v26 = vsub.f32 %v9447_v16, %v1158_v39  ;;  %v2080_v52 = vpop.xlane.xlu0 %2079  ;;  %v11740_v45 = vld [vmem:[#allocation12_spill] sm:$0xff] }
 0x1a3   : > { %v1634_v6 = vadd.f32 %v1626_v9, %v1586_v0  ;;  %7675 = vpow2.f32 %v1250_v60  ;;  %v1298_v5 = vmul.f32 1.442695, %v1286_v17  ;;  %v9520_v10 = vmul.f32 0.25, %v9442_v30 }
 0x1a4   : > { %v9522_v57 = vmul.f32 0.25, %v1025_v63  ;;  %v1394_v25 = vadd.f32 %v7664_v54, %v1386_v53  ;;  %7677 = vpow2.f32 %v1274_v31  ;;  %v1322_v27 = vmul.f32 1.442695, %v1310_v11  ;;  %v7668_v17 = vpop.eup %7667  ;;  %v1094_v0 = vpop.xlane.xlu1 %1093  ;;  %v11742_v31 = vld [vmem:[#allocation37_spill] sm:$0xff] }
 0x1a5   : > { %v1682_v33 = vadd.f32 %v1674_v28, %v1634_v6  ;;  %7679 = vpow2.f32 %v1298_v5  ;;  %v1346_v59 = vmul.f32 1.442695, %v1334_v26  ;;  %v1159_v9 = vmax.f32 %v9330_v19, %v9520_v10  ;;  %v11739_v28 = vld [vmem:[#allocation13_spill] sm:$0xff]  ;;  %v11744_v26 = vld [vmem:[#allocation71_spill] sm:$0xff] }
 0x1a6   : > { %v11737_v16 = vmax.f32 %v9068_v1, %v9322_v51  ;;  %v1402_v30 = vadd.f32 %v7666_v12, %v1394_v25  ;;  %7681 = vpow2.f32 %v1322_v27  ;;  %v9532_v63 = vmul.f32 0.25, %v2051_v61  ;;  %v11741_v1 = vld [vmem:[#allocation24_spill] sm:$0xff]  ;;  %v11743_v61 = vld [vmem:[#allocation53_spill] sm:$0xff] }
 0x1a7   : > { %v1730_v4 = vadd.f32 %v1722_v42, %v1682_v33  ;;  %v9534_v54 = vmul.f32 %v7668_v17, %v1781_v36  ;;  %7683 = vpow2.f32 %v1346_v59  ;;  %v1167_v38 = vsub.f32 %v11739_v28, %v1159_v9 }
 0x1a8   : > { %v9530_v39 = vmax.f32 %v11737_v16, %v9522_v57  ;;  %v1191_v19 = vsub.f32 %v11740_v45, %v1159_v9  ;;  %7685 = vrcp.f32 %v1402_v30  ;;  %v1215_v60 = vsub.f32 %v11741_v1, %v1159_v9  ;;  %v7670_v12 = vpop.eup %7669 }
 0x1a9   : > { %11738 = vst [vmem:[#allocation15_spill] sm:$0xff] %v9534_v54  ;;  %v1778_v37 = vadd.f32 %v1770_v55, %v1730_v4  ;;  %v1239_v56 = vsub.f32 %v11742_v31, %v1159_v9  ;;  %v1180_v42 = vmul.f32 1.442695, %v1167_v38  ;;  %v1263_v6 = vsub.f32 %v11743_v61, %v1159_v9 }
 0x1aa   : > { %v1204_v53 = vmul.f32 1.442695, %v1191_v19  ;;  %v1287_v36 = vsub.f32 %v9043_v46, %v1159_v9  ;;  %v7672_v11 = vpop.eup %7671  ;;  %v11745_v5 = vrot.slane %v11744_v26, %v8078_v2  ;;  %v1228_v33 = vmul.f32 1.442695, %v1215_v60  ;;  %v2127_v19 = vpop.xlane.xlu0 %2126 }
 0x1ab   : > { %v1252_v27 = vmul.f32 1.442695, %v1239_v56  ;;  %v1311_v55 = vsub.f32 %v9314_v14, %v1159_v9  ;;  %v7674_v59 = vpop.eup %7673  ;;  %v1358_v16 = vadd.f32 %v7672_v11, %v7670_v12  ;;  %v11746_v17 = vrot.slane %v11744_v26, %v8081_v3  ;;  %v2092_v56 = vpop.xlane.xlu1 %2091 }
 0x1ac   : > { %v1446_v25 = vmul.f32 %v7670_v12, %v11745_v5  ;;  %7687 = vpow2.f32 %v1180_v42  ;;  %v1276_v4 = vmul.f32 1.442695, %v1263_v6  ;;  %v11747_v46 = vrot.slane %v11744_v26, %v8133_v23 }
 0x1ad   : > { %v1486_v30 = vmul.f32 %v7672_v11, %v11746_v17  ;;  %7689 = vpow2.f32 %v1204_v53  ;;  %v1300_v38 = vmul.f32 1.442695, %v1287_v36  ;;  %v1324_v45 = vmul.f32 1.442695, %v1311_v55  ;;  %v7676_v1 = vpop.eup %7675 }
 0x1ae   : > { %v1534_v28 = vmul.f32 %v7674_v59, %v11747_v46  ;;  %v1366_v60 = vadd.f32 %v7674_v59, %v1358_v16  ;;  %7691 = vpow2.f32 %v1228_v33  ;;  %v1335_v14 = vsub.f32 %v9520_v10, %v1159_v9  ;;  %v7678_v12 = vpop.eup %7677 }
 0x1af   : > { %v1494_v31 = vadd.f32 %v1486_v30, %v1446_v25  ;;  %v11748_v42 = vrot.slane %v11744_v26, %v8177_v50  ;;  %7693 = vpow2.f32 %v1252_v27  ;;  %v9559_v53 = vmul.f32 0.25, %v9512_v15  ;;  %v7680_v36 = vpop.eup %7679 }
 0x1b0   : > { %v1374_v11 = vadd.f32 %v7676_v1, %v1366_v60  ;;  %v11750_v25 = vrot.slane %v11744_v26, %v8261_v43  ;;  %7695 = vpow2.f32 %v1276_v4  ;;  %v7682_v9 = vpop.eup %7681  ;;  %v11751_v33 = vrot.slane %v11744_v26, %v8331_v44 }
 0x1b1   : > { %v1582_v61 = vmul.f32 %v7676_v1, %v11748_v42  ;;  %11749 = vst [vmem:[#allocation39_spill] sm:$0xff] %v9559_v53  ;;  %v1542_v5 = vadd.f32 %v1534_v28, %v1494_v31  ;;  %7697 = vpow2.f32 %v1300_v38  ;;  %v1348_v27 = vmul.f32 1.442695, %v1335_v14  ;;  %v7684_v16 = vpop.eup %7683  ;;  %v2054_v31 = vpop.xlane.xlu0 %2053 }
 0x1b2   : > { %v1630_v10 = vmul.f32 %v7678_v12, %v11750_v25  ;;  %v1678_v55 = vmul.f32 %v7680_v36, %v11751_v33  ;;  %v11752_v15 = vmax.f32 %v9146_v13, %v9339_v21  ;;  %v1382_v17 = vadd.f32 %v7678_v12, %v1374_v11  ;;  %v7686_v28 = vpop.eup %7685  ;;  %v1097_v11 = vpop.xlane.xlu1 %1096  ;;  %v11800_v21 = vld [vmem:[#allocation87_spill] sm:$0xff] }
 0x1b3   : > { %v1590_v30 = vadd.f32 %v1582_v61, %v1542_v5  ;;  %v11753_v46 = vrot.slane %v11744_v26, %v8399_v48  ;;  %7699 = vpow2.f32 %v1324_v45  ;;  %v11754_v1 = vrot.slane %v11744_v26, %v8478_v24 }
 0x1b4   : > { %v9571_v59 = vmax.f32 %v11752_v15, %v9559_v53  ;;  %7701 = vpow2.f32 %v1348_v27  ;;  %v9580_v60 = vmul.f32 0.25, %v9515_v41  ;;  %v9582_v13 = vmul.f32 0.25, %v2080_v52  ;;  %v11758_v27 = vld [vmem:[#allocation72_spill] sm:$0xff] }
 0x1b5   : > { %v1726_v4 = vmul.f32 %v7682_v9, %v11753_v46  ;;  %v1774_v38 = vmul.f32 %v7684_v16, %v11754_v1  ;;  %v9584_v14 = vmul.f32 %v7686_v28, %v1778_v37  ;;  %v1390_v12 = vadd.f32 %v7680_v36, %v1382_v17 }
 0x1b6   : > { %v1638_v42 = vadd.f32 %v1630_v10, %v1590_v30  ;;  %v9586_v61 = vmul.f32 0.25, %v1094_v0  ;;  %v11756_v45 = vmax.f32 %v9205_v20, %v9418_v8  ;;  %v11757_v41 = vmax.f32 %v9195_v7, %v9429_v40  ;;  %v7688_v36 = vpop.eup %7687 }
 0x1b7   : > { %11755 = vst [vmem:[#allocation52_spill] sm:$0xff] %v9584_v14  ;;  %v9600_v5 = vmul.f32 0.25, %v2127_v19  ;;  %v9602_v37 = vmul.f32 0.25, %v2092_v56  ;;  %v1398_v0 = vadd.f32 %v7682_v9, %v1390_v12  ;;  %v9606_v33 = vmul.f32 0.25, %v2054_v31  ;;  %v7690_v20 = vpop.eup %7689 }
 0x1b8   : > { %v9592_v26 = vmax.f32 %v11756_v45, %v9580_v60  ;;  %v9598_v52 = vmax.f32 %v11757_v41, %v9582_v13  ;;  %v1686_v25 = vadd.f32 %v1678_v55, %v1638_v42  ;;  %v1160_v10 = vmax.f32 %v9453_v49, %v9586_v61  ;;  %v7692_v49 = vpop.eup %7691  ;;  %v11763_v42 = vld [vmem:[#allocation18_spill] sm:$0xff] }
 0x1b9   : > { %v11759_v15 = vrot.slane %v11758_v27, %v8078_v2  ;;  %v9613_v7 = vmax.f32 %v9459_v34, %v9600_v5  ;;  %v11760_v19 = vmax.f32 %v9320_v32, %v9463_v22  ;;  %v9621_v9 = vmul.f32 0.25, %v1097_v11  ;;  %v7694_v31 = vpop.eup %7693  ;;  %v11764_v32 = vld [vmem:[#allocation20_spill] sm:$0xff] }
 0x1ba   : > { %v1406_v55 = vadd.f32 %v7684_v16, %v1398_v0  ;;  %v1734_v30 = vadd.f32 %v1726_v4, %v1686_v25  ;;  %v1359_v46 = vadd.f32 %v7690_v20, %v7688_v36  ;;  %v11761_v28 = vrot.slane %v11758_v27, %v8081_v3 }
 0x1bb   : > { %v1447_v17 = vmul.f32 %v7688_v36, %v11759_v15  ;;  %v9619_v56 = vmax.f32 %v11760_v19, %v9602_v37  ;;  %v11762_v34 = vrot.slane %v11758_v27, %v8133_v23  ;;  %v1168_v45 = vsub.f32 %v11763_v42, %v1160_v10  ;;  %v11765_v15 = vld [vmem:[#allocation32_spill] sm:$0xff]  ;;  %v7696_v19 = vpop.eup %7695 }
 0x1bc   : > { %v1487_v1 = vmul.f32 %v7690_v20, %v11761_v28  ;;  %v1192_v41 = vsub.f32 %v11764_v32, %v1160_v10  ;;  %v1216_v11 = vsub.f32 %v11765_v15, %v1160_v10  ;;  %v1782_v6 = vadd.f32 %v1774_v38, %v1734_v30  ;;  %v7698_v36 = vpop.eup %7697 }
 0x1bd   : > { %v1535_v12 = vmul.f32 %v7692_v49, %v11762_v34  ;;  %7703 = vrcp.f32 %v1406_v55  ;;  %v1367_v16 = vadd.f32 %v7692_v49, %v1359_v46  ;;  %v11766_v0 = vrot.slane %v11758_v27, %v8177_v50  ;;  %v7700_v54 = vpop.eup %7699 }
 0x1be   : > { %v1495_v4 = vadd.f32 %v1487_v1, %v1447_v17  ;;  %v11767_v20 = vrot.slane %v11758_v27, %v8261_v43  ;;  %v1182_v34 = vmul.f32 1.442695, %v1168_v45  ;;  %v1206_v42 = vmul.f32 1.442695, %v1192_v41  ;;  %v7702_v17 = vpop.eup %7701  ;;  %v11770_v1 = vld [vmem:[#allocation46_spill] sm:$0xff] }
 0x1bf   : > { %v1583_v25 = vmul.f32 %v7694_v31, %v11766_v0  ;;  %v1375_v32 = vadd.f32 %v7694_v31, %v1367_v16  ;;  %v11768_v38 = vrot.slane %v11758_v27, %v8331_v44  ;;  %v1230_v49 = vmul.f32 1.442695, %v1216_v11  ;;  %v11771_v0 = vld [vmem:[#allocation62_spill] sm:$0xff] }
 0x1c0   : > { %v1631_v28 = vmul.f32 %v7696_v19, %v11767_v20  ;;  %v1543_v14 = vadd.f32 %v1535_v12, %v1495_v4  ;;  %v11769_v30 = vrot.slane %v11758_v27, %v8399_v48  ;;  %7705 = vpow2.f32 %v1182_v34 }
 0x1c1   : > { %v1679_v55 = vmul.f32 %v7698_v36, %v11768_v38  ;;  %v1240_v15 = vsub.f32 %v11770_v1, %v1160_v10  ;;  %v1264_v20 = vsub.f32 %v11771_v0, %v1160_v10  ;;  %v1383_v45 = vadd.f32 %v7696_v19, %v1375_v32 }
 0x1c2   : > { %v1727_v46 = vmul.f32 %v7700_v54, %v11769_v30  ;;  %v1591_v41 = vadd.f32 %v1583_v25, %v1543_v14  ;;  %v11772_v31 = vrot.slane %v11758_v27, %v8478_v24  ;;  %7707 = vpow2.f32 %v1206_v42  ;;  %v11773_v14 = vld [vmem:[#allocation16_spill] sm:$0xff]  ;;  %v11774_v27 = vld [vmem:[#allocation17_spill] sm:$0xff] }
 0x1c3   : > { %7709 = vpow2.f32 %v1230_v49  ;;  %v1254_v16 = vmul.f32 1.442695, %v1240_v15  ;;  %v1278_v11 = vmul.f32 1.442695, %v1264_v20  ;;  %v1288_v4 = vsub.f32 %v9275_v62, %v1160_v10 }
 0x1c4   : > { %v1775_v12 = vmul.f32 %v7702_v17, %v11772_v31  ;;  %v1391_v38 = vadd.f32 %v7698_v36, %v1383_v45  ;;  %v1639_v53 = vadd.f32 %v1631_v28, %v1591_v41  ;;  %v1312_v34 = vsub.f32 %v9437_v58, %v1160_v10  ;;  %v11777_v45 = vld [vmem:[#allocation43_spill] sm:$0xff] }
 0x1c5   : > { %v1336_v30 = vsub.f32 %v9586_v61, %v1160_v10  ;;  %7711 = vpow2.f32 %v1254_v16  ;;  %v1302_v1 = vmul.f32 1.442695, %v1288_v4  ;;  %v2211_v19 = vsub.f32 %v11773_v14, %v9613_v7  ;;  %v11775_v61 = vld [vmem:[#allocation29_spill] sm:$0xff] }
 0x1c6   : > { %v2235_v25 = vsub.f32 %v11774_v27, %v9613_v7  ;;  %v1399_v42 = vadd.f32 %v7700_v54, %v1391_v38  ;;  %v1687_v32 = vadd.f32 %v1679_v55, %v1639_v53  ;;  %7713 = vpow2.f32 %v1278_v11  ;;  %v11778_v53 = vld [vmem:[#allocation58_spill] sm:$0xff] }
 0x1c7   : > { %v1326_v49 = vmul.f32 1.442695, %v1312_v34  ;;  %7715 = vpow2.f32 %v1302_v1  ;;  %v1350_v62 = vmul.f32 1.442695, %v1336_v30  ;;  %v2220_v36 = vmul.f32 1.442695, %v2211_v19  ;;  %v7704_v15 = vpop.eup %7703 }
 0x1c8   : > { %v2244_v28 = vmul.f32 1.442695, %v2235_v25  ;;  %v1407_v58 = vadd.f32 %v7702_v17, %v1399_v42  ;;  %v1735_v0 = vadd.f32 %v1727_v46, %v1687_v32  ;;  %v2259_v10 = vsub.f32 %v11775_v61, %v9613_v7  ;;  %v11779_v38 = vld [vmem:[#allocation74_spill] sm:$0xff]  ;;  %v2130_v42 = vpop.xlane.xlu0 %2129 }
 0x1c9   : > { %7717 = vpow2.f32 %v1326_v49  ;;  %v9658_v20 = vmul.f32 %v7704_v15, %v1782_v6  ;;  %v2283_v54 = vsub.f32 %v11777_v45, %v9613_v7  ;;  %v2307_v55 = vsub.f32 %v11778_v53, %v9613_v7 }
 0x1ca   : > { %7719 = vpow2.f32 %v1350_v62  ;;  %v1783_v41 = vadd.f32 %v1775_v12, %v1735_v0  ;;  %v2268_v31 = vmul.f32 1.442695, %v2259_v10  ;;  %v2331_v17 = vsub.f32 %v11711_v29, %v9613_v7  ;;  %v7706_v46 = vpop.eup %7705 }
 0x1cb   : > { %11776 = vst [vmem:[#allocation70_spill] sm:$0xff] %v9658_v20  ;;  %7721 = vrcp.f32 %v1407_v58  ;;  %v2292_v16 = vmul.f32 1.442695, %v2283_v54  ;;  %v2316_v11 = vmul.f32 1.442695, %v2307_v55  ;;  %v2355_v6 = vsub.f32 %v9440_v47, %v9613_v7  ;;  %v2095_v47 = vpop.xlane.xlu1 %2094  ;;  %v11799_v20 = vld [vmem:[#allocation86_spill] sm:$0xff] }
 0x1cc   : > { %7723 = vpow2.f32 %v2220_v36  ;;  %v7708_v4 = vpop.eup %7707  ;;  %v11780_v34 = vrot.slane %v11779_v38, %v8078_v2  ;;  %v2340_v1 = vmul.f32 1.442695, %v2331_v17  ;;  %v2379_v12 = vsub.f32 %v9600_v5, %v9613_v7  ;;  %v11797_v36 = vld [vmem:[#allocation83_spill] sm:$0xff] }
 0x1cd   : > { %7725 = vpow2.f32 %v2244_v28  ;;  %v7710_v14 = vpop.eup %7709  ;;  %v1360_v19 = vadd.f32 %v7708_v4, %v7706_v46  ;;  %v11781_v29 = vrot.slane %v11779_v38, %v8081_v3  ;;  %v2364_v25 = vmul.f32 1.442695, %v2355_v6 }
 0x1ce   : > { %v1448_v30 = vmul.f32 %v7706_v46, %v11780_v34  ;;  %7727 = vpow2.f32 %v2268_v31  ;;  %v11782_v32 = vrot.slane %v11779_v38, %v8133_v23  ;;  %v2388_v62 = vmul.f32 1.442695, %v2379_v12 }
 0x1cf   : > { %v1488_v27 = vmul.f32 %v7708_v4, %v11781_v29  ;;  %7729 = vpow2.f32 %v2292_v16  ;;  %v7712_v5 = vpop.eup %7711  ;;  %v1368_v7 = vadd.f32 %v7710_v14, %v1360_v19  ;;  %v9683_v15 = vmax.f32 %v9530_v39, %v9621_v9  ;;  %v11787_v4 = vld [vmem:[#allocation25_spill] sm:$0xff]  ;;  %v11789_v29 = vld [vmem:[#allocation38_spill] sm:$0xff] }
 0x1d0   : > { %v1536_v49 = vmul.f32 %v7710_v14, %v11782_v32  ;;  %7731 = vpow2.f32 %v2316_v11  ;;  %v7714_v58 = vpop.eup %7713  ;;  %v11783_v0 = vrot.slane %v11779_v38, %v8177_v50  ;;  %v9688_v10 = vmul.f32 0.25, %v2130_v42  ;;  %v11786_v11 = vld [vmem:[#allocation23_spill] sm:$0xff] }
 0x1d1   : > { %v1496_v28 = vadd.f32 %v1488_v27, %v1448_v30  ;;  %7733 = vpow2.f32 %v2340_v1  ;;  %v9690_v45 = vmul.f32 0.25, %v2095_v47  ;;  %v7716_v54 = vpop.eup %7715  ;;  %v1376_v53 = vadd.f32 %v7712_v5, %v1368_v7 }
 0x1d2   : > { %v1584_v61 = vmul.f32 %v7712_v5, %v11783_v0  ;;  %v11784_v31 = vrot.slane %v11779_v38, %v8261_v43  ;;  %7735 = vpow2.f32 %v2364_v25  ;;  %v11785_v46 = vrot.slane %v11779_v38, %v8331_v44 }
 0x1d3   : > { %v1544_v55 = vadd.f32 %v1536_v49, %v1496_v28  ;;  %v7718_v39 = vpop.eup %7717  ;;  %7737 = vpow2.f32 %v2388_v62  ;;  %v1169_v6 = vsub.f32 %v11786_v11, %v9683_v15  ;;  %v1193_v34 = vsub.f32 %v11787_v4, %v9683_v15  ;;  %v11791_v62 = vld [vmem:[#allocation50_spill] sm:$0xff]  ;;  %v11794_v11 = vld [vmem:[#allocation68_spill] sm:$0xff] }
 0x1d4   : > { %v1632_v17 = vmul.f32 %v7714_v58, %v11784_v31  ;;  %v1680_v16 = vmul.f32 %v7716_v54, %v11785_v46  ;;  %v7720_v30 = vpop.eup %7719  ;;  %v1384_v1 = vadd.f32 %v7714_v58, %v1376_v53  ;;  %v11788_v14 = vrot.slane %v11779_v38, %v8399_v48 }
 0x1d5   : > { %v1592_v12 = vadd.f32 %v1584_v61, %v1544_v55  ;;  %v1217_v27 = vsub.f32 %v11789_v29, %v9683_v15  ;;  %v7722_v25 = vpop.eup %7721  ;;  %v11790_v42 = vrot.slane %v11779_v38, %v8478_v24  ;;  %v1184_v32 = vmul.f32 1.442695, %v1169_v6  ;;  %v11793_v55 = vld [vmem:[#allocation79_spill] sm:$0xff]  ;;  %v11795_v29 = vld [vmem:[#allocation80_spill] sm:$0xff] }
 0x1d6   : > { %v1728_v19 = vmul.f32 %v7718_v39, %v11788_v14  ;;  %v1208_v49 = vmul.f32 1.442695, %v1193_v34  ;;  %v1241_v5 = vsub.f32 %v11791_v62, %v9683_v15  ;;  %v7724_v7 = vpop.eup %7723  ;;  %v9712_v28 = vmul.f32 %v7722_v25, %v1783_v41  ;;  %v11796_v41 = vld [vmem:[#allocation82_spill] sm:$0xff] }
 0x1d7   : > { %v1776_v47 = vmul.f32 %v7720_v30, %v11790_v42  ;;  %v1392_v58 = vadd.f32 %v7716_v54, %v1384_v1  ;;  %v1640_v0 = vadd.f32 %v1632_v17, %v1592_v12  ;;  %v1232_v61 = vmul.f32 1.442695, %v1217_v27  ;;  %v7726_v53 = vpop.eup %7725 }
 0x1d8   : > { %11792 = vst [vmem:[#allocation67_spill] sm:$0xff] %v9712_v28  ;;  %v2463_v31 = vmul.f32 %v7724_v7, %v11793_v55  ;;  %7739 = vpow2.f32 %v1184_v32  ;;  %v1256_v46 = vmul.f32 1.442695, %v1241_v5  ;;  %v1265_v38 = vsub.f32 %v11794_v11, %v9683_v15  ;;  %v7728_v4 = vpop.eup %7727 }
 0x1d9   : > { %v1400_v6 = vadd.f32 %v7718_v39, %v1392_v58  ;;  %v1688_v34 = vadd.f32 %v1680_v16, %v1640_v0  ;;  %v2403_v14 = vadd.f32 %v7726_v53, %v7724_v7  ;;  %v2475_v42 = vmul.f32 %v7726_v53, %v11795_v29  ;;  %v7730_v62 = vpop.eup %7729  ;;  %v11798_v16 = vld [vmem:[#allocation84_spill] sm:$0xff] }
 0x1da   : > { %v2495_v25 = vmul.f32 %v7728_v4, %v11796_v41  ;;  %7741 = vpow2.f32 %v1208_v49  ;;  %v1280_v54 = vmul.f32 1.442695, %v1265_v38  ;;  %v1289_v17 = vsub.f32 %v9322_v51, %v9683_v15  ;;  %v7732_v1 = vpop.eup %7731 }
 0x1db   : > { %v1408_v12 = vadd.f32 %v7720_v30, %v1400_v6  ;;  %v1736_v27 = vadd.f32 %v1728_v19, %v1688_v34  ;;  %v2411_v32 = vadd.f32 %v7728_v4, %v2403_v14  ;;  %v2483_v5 = vadd.f32 %v2475_v42, %v2463_v31  ;;  %v7734_v11 = vpop.eup %7733  ;;  %v2057_v31 = vpop.xlane.xlu0 %2056  ;;  %v11801_v34 = vld [vmem:[#allocation89_spill] sm:$0xff]  ;;  %v11802_v42 = vld [vmem:[#allocation8_spill] sm:$0xff] }
 0x1dc   : > { %v2515_v39 = vmul.f32 %v7730_v62, %v11797_v36  ;;  %v2535_v7 = vmul.f32 %v7732_v1, %v11798_v16  ;;  %7743 = vpow2.f32 %v1232_v61  ;;  %v1304_v58 = vmul.f32 1.442695, %v1289_v17  ;;  %v7736_v0 = vpop.eup %7735 }
 0x1dd   : > { %v1784_v53 = vadd.f32 %v1776_v47, %v1736_v27  ;;  %7745 = vrcp.f32 %v1408_v12  ;;  %v2419_v49 = vadd.f32 %v7730_v62, %v2411_v32  ;;  %v2503_v38 = vadd.f32 %v2495_v25, %v2483_v5  ;;  %v7738_v28 = vpop.eup %7737  ;;  %v11804_v27 = vld [vmem:[#allocation21_spill] sm:$0xff] }
 0x1de   : > { %v2555_v51 = vmul.f32 %v7734_v11, %v11799_v20  ;;  %v2575_v30 = vmul.f32 %v7736_v0, %v11800_v21  ;;  %7747 = vpow2.f32 %v1256_v46  ;;  %v1313_v19 = vsub.f32 %v9522_v57, %v9683_v15 }
 0x1df   : > { %v2427_v4 = vadd.f32 %v7732_v1, %v2419_v49  ;;  %v2523_v6 = vadd.f32 %v2515_v39, %v2503_v38  ;;  %v2595_v61 = vmul.f32 %v7738_v28, %v11801_v34  ;;  %7749 = vpow2.f32 %v1280_v54  ;;  %v11806_v39 = vld [vmem:[#allocation81_spill] sm:$0xff] }
 0x1e0   : > { %7751 = vpow2.f32 %v1304_v58  ;;  %v1328_v47 = vmul.f32 1.442695, %v1313_v19  ;;  %v1337_v14 = vsub.f32 %v9621_v9, %v9683_v15  ;;  %v9732_v62 = vmax.f32 %v11802_v42, %v9688_v10  ;;  %v11805_v15 = vld [vmem:[#allocation22_spill] sm:$0xff] }
 0x1e1   : > { %v2435_v25 = vadd.f32 %v7734_v11, %v2427_v4  ;;  %v2543_v46 = vadd.f32 %v2535_v7, %v2523_v6  ;;  %v11803_v57 = vmax.f32 %v9386_v18, %v9532_v63  ;;  %v9740_v1 = vmul.f32 0.25, %v2057_v31  ;;  %v11808_v18 = vld [vmem:[#allocation35_spill] sm:$0xff] }
 0x1e2   : > { %v7740_v54 = vpop.eup %7739  ;;  %7753 = vpow2.f32 %v1328_v47  ;;  %v1352_v12 = vmul.f32 1.442695, %v1337_v14  ;;  %v2212_v9 = vsub.f32 %v11804_v27, %v9732_v62  ;;  %v2236_v32 = vsub.f32 %v11805_v15, %v9732_v62  ;;  %v11809_v4 = vld [vmem:[#allocation51_spill] sm:$0xff] }
 0x1e3   : > { %v9738_v17 = vmax.f32 %v11803_v57, %v9690_v45  ;;  %v2443_v5 = vadd.f32 %v7736_v0, %v2435_v25  ;;  %v2563_v11 = vadd.f32 %v2555_v51, %v2543_v46  ;;  %v11807_v7 = vrot.slane %v11806_v39, %v8078_v2  ;;  %v11811_v57 = vld [vmem:[#allocation65_spill] sm:$0xff] }
 0x1e4   : > { %v2260_v49 = vsub.f32 %v11808_v18, %v9732_v62  ;;  %v7742_v38 = vpop.eup %7741  ;;  %7755 = vpow2.f32 %v1352_v12  ;;  %v2222_v19 = vmul.f32 1.442695, %v2212_v9  ;;  %v2246_v31 = vmul.f32 1.442695, %v2236_v32  ;;  %v2133_v12 = vpop.xlane.xlu1 %2132 }
 0x1e5   : > { %v1449_v58 = vmul.f32 %v7740_v54, %v11807_v7  ;;  %v2284_v6 = vsub.f32 %v11809_v4, %v9732_v62  ;;  %v2451_v47 = vadd.f32 %v7738_v28, %v2443_v5  ;;  %v2583_v14 = vadd.f32 %v2575_v30, %v2563_v11  ;;  %v2124_v28 = vpop.xlane.xlu0 %2123 }
 0x1e6   : > { %v1361_v42 = vadd.f32 %v7742_v38, %v7740_v54  ;;  %v11810_v0 = vrot.slane %v11806_v39, %v8081_v3  ;;  %v7744_v25 = vpop.eup %7743  ;;  %7757 = vpow2.f32 %v2222_v19  ;;  %v2270_v2 = vmul.f32 1.442695, %v2260_v49 }
 0x1e7   : > { %v2294_v46 = vmul.f32 1.442695, %v2284_v6  ;;  %v2308_v27 = vsub.f32 %v11811_v57, %v9732_v62  ;;  %v7746_v9 = vpop.eup %7745  ;;  %v2603_v15 = vadd.f32 %v2595_v61, %v2583_v14  ;;  %7759 = vrcp.f32 %v2451_v47  ;;  %v11814_v61 = vld [vmem:[#allocation10_spill] sm:$0xff] }
 0x1e8   : > { %v1489_v51 = vmul.f32 %v7742_v38, %v11810_v0  ;;  %v1369_v32 = vadd.f32 %v7744_v25, %v1361_v42  ;;  %v7748_v30 = vpop.eup %7747  ;;  %v9758_v54 = vmul.f32 %v7746_v9, %v1784_v53  ;;  %v11812_v3 = vrot.slane %v11806_v39, %v8133_v23  ;;  %v11816_v23 = vld [vmem:[#allocation14_spill] sm:$0xff] }
 0x1e9   : > { %7761 = vpow2.f32 %v2246_v31  ;;  %v2318_v11 = vmul.f32 1.442695, %v2308_v27  ;;  %v7750_v18 = vpop.eup %7749  ;;  %v11813_v38 = vrot.slane %v11806_v39, %v8177_v50  ;;  %v11815_v53 = vrot.slane %v11806_v39, %v8261_v43 }
 0x1ea   : > { %v1497_v7 = vadd.f32 %v1489_v51, %v1449_v58  ;;  %v1537_v5 = vmul.f32 %v7744_v25, %v11812_v3  ;;  %v1377_v49 = vadd.f32 %v7748_v30, %v1369_v32  ;;  %7763 = vpow2.f32 %v2270_v2  ;;  %v7752_v4 = vpop.eup %7751 }
 0x1eb   : > { %v1585_v19 = vmul.f32 %v7748_v30, %v11813_v38  ;;  %v2332_v58 = vsub.f32 %v11814_v61, %v9732_v62  ;;  %v1633_v47 = vmul.f32 %v7750_v18, %v11815_v53  ;;  %7765 = vpow2.f32 %v2294_v46  ;;  %v2136_v46 = vpop.xlane.xlu1 %2135 }
 0x1ec   : > { %v1545_v6 = vadd.f32 %v1537_v5, %v1497_v7  ;;  %v2356_v31 = vsub.f32 %v11816_v23, %v9732_v62  ;;  %v1385_v14 = vadd.f32 %v7750_v18, %v1377_v49  ;;  %v11817_v42 = vrot.slane %v11806_v39, %v8331_v44  ;;  %v7754_v51 = vpop.eup %7753  ;;  %v2098_v7 = vpop.xlane.xlu0 %2097 }
 0x1ed   : > { %7767 = vpow2.f32 %v2318_v11  ;;  %v2342_v0 = vmul.f32 1.442695, %v2332_v58  ;;  %v2380_v57 = vsub.f32 %v9688_v10, %v9732_v62  ;;  %v2193_v43 = vmax.f32 %v9571_v59, %v9740_v1 }
 0x1ee   : > { %v1681_v50 = vmul.f32 %v7752_v4, %v11817_v42  ;;  %v1593_v25 = vadd.f32 %v1585_v19, %v1545_v6  ;;  %v2366_v2 = vmul.f32 1.442695, %v2356_v31  ;;  %v1393_v27 = vadd.f32 %v7752_v4, %v1385_v14  ;;  %v7756_v30 = vpop.eup %7755  ;;  %v11821_v6 = vld [vmem:[#allocation30_spill] sm:$0xff]  ;;  %v11822_v31 = vld [vmem:[#allocation44_spill] sm:$0xff]  ;;  %v11823_v42 = vld [vmem:[#allocation59_spill] sm:$0xff] }
 0x1ef   : > { %v11818_v9 = vrot.slane %v11806_v39, %v8399_v48  ;;  %7769 = vpow2.f32 %v2342_v0  ;;  %v9783_v44 = vmul.f32 0.25, %v2133_v12  ;;  %v2390_v5 = vmul.f32 1.442695, %v2380_v57 }
 0x1f0   : > { %v1641_v3 = vadd.f32 %v1633_v47, %v1593_v25  ;;  %7771 = vpow2.f32 %v2366_v2  ;;  %v9785_v11 = vmul.f32 0.25, %v2124_v28  ;;  %v1401_v10 = vadd.f32 %v7754_v51, %v1393_v27  ;;  %v7758_v38 = vpop.eup %7757 }
 0x1f1   : > { %v1729_v32 = vmul.f32 %v7754_v51, %v11818_v9  ;;  %v11819_v62 = vrot.slane %v11806_v39, %v8478_v24  ;;  %v2205_v49 = vmax.f32 %v9592_v26, %v9783_v44  ;;  %v9792_v48 = vmul.f32 0.25, %v2136_v46  ;;  %v7760_v28 = vpop.eup %7759  ;;  %v11820_v24 = vld [vmem:[#allocation28_spill] sm:$0xff] }
 0x1f2   : > { %v1689_v12 = vadd.f32 %v1681_v50, %v1641_v3  ;;  %7773 = vpow2.f32 %v2390_v5  ;;  %v9796_v19 = vmax.f32 %v9598_v52, %v9785_v11  ;;  %v9798_v61 = vmul.f32 0.25, %v2098_v7 }
 0x1f3   : > { %v1777_v18 = vmul.f32 %v7756_v30, %v11819_v62  ;;  %v1409_v58 = vadd.f32 %v7756_v30, %v1401_v10  ;;  %v2464_v4 = vmul.f32 %v7758_v38, %v11793_v55  ;;  %v2213_v39 = vsub.f32 %v11820_v24, %v2205_v49  ;;  %v7762_v26 = vpop.eup %7761  ;;  %v11824_v10 = vld [vmem:[#allocation78_spill] sm:$0xff] }
 0x1f4   : > { %v2237_v53 = vsub.f32 %v11821_v6, %v2205_v49  ;;  %v9803_v47 = vmul.f32 %v7760_v28, %v2603_v15  ;;  %v1737_v23 = vadd.f32 %v1729_v32, %v1689_v12  ;;  %v2261_v14 = vsub.f32 %v11822_v31, %v2205_v49  ;;  %v7764_v52 = vpop.eup %7763 }
 0x1f5   : > { %v2285_v50 = vsub.f32 %v11823_v42, %v2205_v49  ;;  %7775 = vrcp.f32 %v1409_v58  ;;  %v2404_v0 = vadd.f32 %v7762_v26, %v7758_v38  ;;  %v2476_v51 = vmul.f32 %v7762_v26, %v11795_v29  ;;  %v7766_v2 = vpop.eup %7765 }
 0x1f6   : > { %v2224_v25 = vmul.f32 1.442695, %v2213_v39  ;;  %v1785_v57 = vadd.f32 %v1777_v18, %v1737_v23  ;;  %v2496_v46 = vmul.f32 %v7764_v52, %v11796_v41  ;;  %v2248_v27 = vmul.f32 1.442695, %v2237_v53 }
 0x1f7   : > { %v2272_v9 = vmul.f32 1.442695, %v2261_v14  ;;  %v7768_v7 = vpop.eup %7767  ;;  %v2412_v15 = vadd.f32 %v7764_v52, %v2404_v0  ;;  %v2484_v30 = vadd.f32 %v2476_v51, %v2464_v4  ;;  %v2516_v32 = vmul.f32 %v7766_v2, %v11797_v36 }
 0x1f8   : > { %7777 = vpow2.f32 %v2224_v25  ;;  %v2536_v3 = vmul.f32 %v7768_v7, %v11798_v16  ;;  %v2296_v5 = vmul.f32 1.442695, %v2285_v50  ;;  %v2309_v62 = vsub.f32 %v11824_v10, %v2205_v49  ;;  %v11825_v50 = vld [vmem:[#allocation26_spill] sm:$0xff] }
 0x1f9   : > { %7779 = vpow2.f32 %v2248_v27  ;;  %v7770_v38 = vpop.eup %7769  ;;  %v2420_v12 = vadd.f32 %v7766_v2, %v2412_v15  ;;  %v2504_v28 = vadd.f32 %v2496_v46, %v2484_v30  ;;  %v2333_v18 = vsub.f32 %v9418_v8, %v2205_v49  ;;  %v11826_v2 = vld [vmem:[#allocation27_spill] sm:$0xff]  ;;  %v11827_v15 = vld [vmem:[#allocation41_spill] sm:$0xff] }
 0x1fa   : > { %7781 = vpow2.f32 %v2272_v9  ;;  %v7772_v58 = vpop.eup %7771  ;;  %v2556_v24 = vmul.f32 %v7770_v38, %v11799_v20  ;;  %v2320_v4 = vmul.f32 1.442695, %v2309_v62  ;;  %v2357_v39 = vsub.f32 %v9580_v60, %v2205_v49 }
 0x1fb   : > { %7783 = vpow2.f32 %v2296_v5  ;;  %v2428_v6 = vadd.f32 %v7768_v7, %v2420_v12  ;;  %v2524_v53 = vadd.f32 %v2516_v32, %v2504_v28  ;;  %v2576_v26 = vmul.f32 %v7772_v58, %v11800_v21  ;;  %v11829_v5 = vld [vmem:[#allocation75_spill] sm:$0xff] }
 0x1fc   : > { %v2344_v23 = vmul.f32 1.442695, %v2333_v18  ;;  %v7774_v31 = vpop.eup %7773  ;;  %7785 = vpow2.f32 %v2320_v4  ;;  %v2368_v14 = vmul.f32 1.442695, %v2357_v39  ;;  %v2381_v42 = vsub.f32 %v9783_v44, %v2205_v49  ;;  %v11828_v49 = vld [vmem:[#allocation56_spill] sm:$0xff] }
 0x1fd   : > { %v2210_v8 = vsub.f32 %v11825_v50, %v9796_v19  ;;  %v2436_v52 = vadd.f32 %v7770_v38, %v2428_v6  ;;  %v2544_v0 = vadd.f32 %v2536_v3, %v2524_v53  ;;  %v2596_v51 = vmul.f32 %v7774_v31, %v11801_v34 }
 0x1fe   : > { %7787 = vpow2.f32 %v2344_v23  ;;  %v2392_v60 = vmul.f32 1.442695, %v2381_v42  ;;  %v2234_v46 = vsub.f32 %v11826_v2, %v9796_v19  ;;  %v2258_v44 = vsub.f32 %v11827_v15, %v9796_v19 }
 0x1ff   : > { %7789 = vpow2.f32 %v2368_v14  ;;  %v2218_v25 = vmul.f32 1.442695, %v2210_v8  ;;  %v7776_v27 = vpop.eup %7775  ;;  %v2444_v9 = vadd.f32 %v7772_v58, %v2436_v52  ;;  %v2564_v7 = vadd.f32 %v2556_v24, %v2544_v0 }
 0x200   : > { %v2282_v30 = vsub.f32 %v11828_v49, %v9796_v19  ;;  %v9826_v32 = vmul.f32 %v7776_v27, %v1785_v57  ;;  %7791 = vpow2.f32 %v2392_v60  ;;  %v2242_v3 = vmul.f32 1.442695, %v2234_v46 }
 0x201   : > { %v2306_v10 = vsub.f32 %v11829_v5, %v9796_v19  ;;  %v2452_v38 = vadd.f32 %v7774_v31, %v2444_v9  ;;  %v2584_v12 = vadd.f32 %v2576_v26, %v2564_v7  ;;  %7793 = vpow2.f32 %v2218_v25  ;;  %v11832_v5 = vld [vmem:[#allocation36_spill] sm:$0xff] }
 0x202   : > { %v7778_v62 = vpop.eup %7777  ;;  %v2266_v28 = vmul.f32 1.442695, %v2258_v44  ;;  %7795 = vpow2.f32 %v2242_v3  ;;  %v2290_v24 = vmul.f32 1.442695, %v2282_v30  ;;  %v2330_v26 = vsub.f32 %v9429_v40, %v9796_v19 }
 0x203   : > { %v7780_v18 = vpop.eup %7779  ;;  %v2465_v58 = vmul.f32 %v7778_v62, %v11793_v55  ;;  %v2314_v4 = vmul.f32 1.442695, %v2306_v10  ;;  %v2604_v6 = vadd.f32 %v2596_v51, %v2584_v12  ;;  %7797 = vrcp.f32 %v2452_v38 }
 0x204   : > { %v7782_v39 = vpop.eup %7781  ;;  %v2405_v57 = vadd.f32 %v7780_v18, %v7778_v62  ;;  %v2477_v53 = vmul.f32 %v7780_v18, %v11795_v29  ;;  %7799 = vpow2.f32 %v2266_v28  ;;  %v2354_v31 = vsub.f32 %v9582_v13, %v9796_v19  ;;  %v11833_v62 = vld [vmem:[#allocation48_spill] sm:$0xff] }
 0x205   : > { %v7784_v23 = vpop.eup %7783  ;;  %v2497_v14 = vmul.f32 %v7782_v39, %v11796_v41  ;;  %7801 = vpow2.f32 %v2290_v24  ;;  %v2338_v0 = vmul.f32 1.442695, %v2330_v26  ;;  %v2378_v60 = vsub.f32 %v9785_v11, %v9796_v19 }
 0x206   : > { %v2413_v42 = vadd.f32 %v7782_v39, %v2405_v57  ;;  %v2485_v50 = vadd.f32 %v2477_v53, %v2465_v58  ;;  %v2517_v8 = vmul.f32 %v7784_v23, %v11797_v36  ;;  %v7786_v52 = vpop.eup %7785  ;;  %7803 = vpow2.f32 %v2314_v4  ;;  %v11834_v58 = vld [vmem:[#allocation66_spill] sm:$0xff] }
 0x207   : > { %v2362_v51 = vmul.f32 1.442695, %v2354_v31  ;;  %v2537_v40 = vmul.f32 %v7786_v52, %v11798_v16  ;;  %v9843_v13 = vmax.f32 %v9619_v56, %v9792_v48  ;;  %7805 = vpow2.f32 %v2338_v0  ;;  %v11831_v56 = vld [vmem:[#allocation34_spill] sm:$0xff] }
 0x208   : > { %v7788_v25 = vpop.eup %7787  ;;  %v2421_v2 = vadd.f32 %v7784_v23, %v2413_v42  ;;  %v2505_v46 = vadd.f32 %v2497_v14, %v2485_v50  ;;  %v2386_v7 = vmul.f32 1.442695, %v2378_v60  ;;  %v11830_v15 = vmax.f32 %v9471_v35, %v9606_v33 }
 0x209   : > { %v7790_v27 = vpop.eup %7789  ;;  %v2557_v9 = vmul.f32 %v7788_v25, %v11799_v20  ;;  %7807 = vpow2.f32 %v2362_v51  ;;  %v2214_v3 = vsub.f32 %v11831_v56, %v9843_v13  ;;  %v2238_v10 = vsub.f32 %v11832_v5, %v9843_v13  ;;  %v11835_v51 = vld [vmem:[#allocation33_spill] sm:$0xff] }
 0x20a   : > { %v9850_v44 = vmax.f32 %v11830_v15, %v9798_v61  ;;  %v2429_v11 = vadd.f32 %v7786_v52, %v2421_v2  ;;  %v2525_v19 = vadd.f32 %v2517_v8, %v2505_v46  ;;  %v2577_v49 = vmul.f32 %v7790_v27, %v11800_v21  ;;  %v7792_v30 = vpop.eup %7791  ;;  %v2101_v2 = vpop.xlane.xlu0 %2100 }
 0x20b   : > { %7809 = vpow2.f32 %v2386_v7  ;;  %v2262_v38 = vsub.f32 %v11833_v62, %v9843_v13  ;;  %v7794_v12 = vpop.eup %7793  ;;  %v2597_v18 = vmul.f32 %v7792_v30, %v11801_v34  ;;  %v2286_v24 = vsub.f32 %v11834_v58, %v9843_v13 }
 0x20c   : > { %v2437_v35 = vadd.f32 %v7788_v25, %v2429_v11  ;;  %v2545_v28 = vadd.f32 %v2537_v40, %v2525_v19  ;;  %v7796_v4 = vpop.eup %7795  ;;  %v2462_v39 = vmul.f32 %v7794_v12, %v11793_v55  ;;  %v2226_v57 = vmul.f32 1.442695, %v2214_v3  ;;  %v2139_v25 = vpop.xlane.xlu1 %2138 }
 0x20d   : > { %v2250_v53 = vmul.f32 1.442695, %v2238_v10  ;;  %v2274_v23 = vmul.f32 1.442695, %v2262_v38  ;;  %v7798_v14 = vpop.eup %7797  ;;  %v2402_v42 = vadd.f32 %v7796_v4, %v7794_v12  ;;  %v2474_v50 = vmul.f32 %v7796_v4, %v11795_v29 }
 0x20e   : > { %v2445_v26 = vadd.f32 %v7790_v27, %v2437_v35  ;;  %v2565_v31 = vadd.f32 %v2557_v9, %v2545_v28  ;;  %v7800_v8 = vpop.eup %7799  ;;  %v9864_v52 = vmul.f32 %v7798_v14, %v2604_v6  ;;  %7811 = vpow2.f32 %v2226_v57  ;;  %v2142_v57 = vpop.xlane.xlu0 %2141 }
 0x20f   : > { %v2298_v0 = vmul.f32 1.442695, %v2286_v24  ;;  %v2310_v60 = vsub.f32 %v11835_v51, %v9843_v13  ;;  %v7802_v46 = vpop.eup %7801  ;;  %v2410_v15 = vadd.f32 %v7800_v8, %v2402_v42  ;;  %v2482_v11 = vadd.f32 %v2474_v50, %v2462_v39 }
 0x210   : > { %v2453_v40 = vadd.f32 %v7792_v30, %v2445_v26  ;;  %v2585_v7 = vadd.f32 %v2577_v49, %v2565_v31  ;;  %v7804_v27 = vpop.eup %7803  ;;  %v2494_v9 = vmul.f32 %v7800_v8, %v11796_v41  ;;  %v2514_v19 = vmul.f32 %v7802_v46, %v11797_v36  ;;  %v2145_v39 = vpop.xlane.xlu1 %2144 }
 0x211   : > { %7813 = vpow2.f32 %v2250_v53  ;;  %v2322_v6 = vmul.f32 1.442695, %v2310_v60  ;;  %v2418_v3 = vadd.f32 %v7802_v46, %v2410_v15  ;;  %v2534_v5 = vmul.f32 %v7804_v27, %v11798_v16  ;;  %v7806_v10 = vpop.eup %7805 }
 0x212   : > { %v2605_v56 = vadd.f32 %v2597_v18, %v2585_v7  ;;  %7815 = vrcp.f32 %v2453_v40  ;;  %v2502_v62 = vadd.f32 %v2494_v9, %v2482_v11  ;;  %v2334_v49 = vsub.f32 %v9463_v22, %v9843_v13  ;;  %v11836_v7 = vld [vmem:[#allocation40_spill] sm:$0xff] }
 0x213   : > { %7817 = vpow2.f32 %v2274_v23  ;;  %v2358_v30 = vsub.f32 %v9602_v37, %v9843_v13  ;;  %v7808_v38 = vpop.eup %7807  ;;  %v2426_v12 = vadd.f32 %v7804_v27, %v2418_v3  ;;  %v2554_v35 = vmul.f32 %v7806_v10, %v11799_v20  ;;  %v11838_v27 = vld [vmem:[#allocation57_spill] sm:$0xff] }
 0x214   : > { %7819 = vpow2.f32 %v2298_v0  ;;  %v2382_v28 = vsub.f32 %v9792_v48, %v9843_v13  ;;  %v2522_v58 = vadd.f32 %v2514_v19, %v2502_v62  ;;  %v2574_v24 = vmul.f32 %v7808_v38, %v11800_v21 }
 0x215   : > { %v7810_v18 = vpop.eup %7809  ;;  %7821 = vpow2.f32 %v2322_v6  ;;  %v2346_v4 = vmul.f32 1.442695, %v2334_v49  ;;  %v2434_v22 = vadd.f32 %v7806_v10, %v2426_v12  ;;  %v2370_v37 = vmul.f32 1.442695, %v2358_v30  ;;  %v11839_v6 = vld [vmem:[#allocation76_spill] sm:$0xff] }
 0x216   : > { %v2594_v53 = vmul.f32 %v7810_v18, %v11801_v34  ;;  %v2394_v23 = vmul.f32 1.442695, %v2382_v28  ;;  %v2542_v14 = vadd.f32 %v2534_v5, %v2522_v58  ;;  %v9880_v26 = vmul.f32 0.25, %v2139_v25 }
 0x217   : > { %7823 = vpow2.f32 %v2346_v4  ;;  %v9882_v31 = vmul.f32 0.25, %v2101_v2  ;;  %v2442_v48 = vadd.f32 %v7808_v38, %v2434_v22  ;;  %v9884_v13 = vmul.f32 0.25, %v2145_v39  ;;  %v11840_v39 = vld [vmem:[#allocation91_spill] sm:$0xff] }
 0x218   : > { %7825 = vpow2.f32 %v2370_v37  ;;  %v9886_v42 = vmul.f32 0.25, %v2142_v57  ;;  %v7812_v50 = vpop.eup %7811  ;;  %v2562_v8 = vadd.f32 %v2554_v35, %v2542_v14  ;;  %v9890_v0 = vmax.f32 %v9738_v17, %v9880_v26  ;;  %v11837_v17 = vld [vmem:[#allocation42_spill] sm:$0xff] }
 0x219   : > { %7827 = vpow2.f32 %v2394_v23  ;;  %v2201_v51 = vmax.f32 %v2193_v43, %v9882_v31  ;;  %v2450_v60 = vadd.f32 %v7810_v18, %v2442_v48  ;;  %v2466_v25 = vmul.f32 %v7812_v50, %v11793_v55 }
 0x21a   : > { %v9899_v2 = vmax.f32 %v9850_v44, %v9886_v42  ;;  %v2582_v40 = vadd.f32 %v2574_v24, %v2562_v8  ;;  %v2215_v15 = vsub.f32 %v11836_v7, %v9890_v0  ;;  %v2239_v11 = vsub.f32 %v11837_v17, %v9890_v0 }
 0x21b   : > { %v7814_v46 = vpop.eup %7813  ;;  %v2263_v9 = vsub.f32 %v11838_v27, %v9890_v0  ;;  %v7952_v59 = vmov 0.0|0.0   ;;  %7829 = vrcp.f32 %v2450_v60  ;;  %v2287_v3 = vsub.f32 %v11839_v6, %v9890_v0 }
 0x21c   : > { %7042 = vmatprep.subr.bf16.mxu1 %v7952_v59  ;;  %v7816_v43 = vpop.eup %7815  ;;  %v2406_v19 = vadd.f32 %v7814_v46, %v7812_v50  ;;  %v2478_v44 = vmul.f32 %v7814_v46, %v11795_v29  ;;  %7066 = vmatprep.subr.bf16.mxu0 %v7952_v59  ;;  %v2602_v62 = vadd.f32 %v2594_v53, %v2582_v40  ;;  %v2228_v49 = vmul.f32 1.442695, %v2215_v15 }
 0x21d   : > { %v7818_v5 = vpop.eup %7817  ;;  %v9912_v10 = vmul.f32 %v7816_v43, %v2605_v56  ;;  %v2252_v30 = vmul.f32 1.442695, %v2239_v11  ;;  %v2276_v18 = vmul.f32 1.442695, %v2263_v9  ;;  %v2300_v4 = vmul.f32 1.442695, %v2287_v3 }
 0x21e   : > { %v7820_v38 = vpop.eup %7819  ;;  %v2414_v12 = vadd.f32 %v7818_v5, %v2406_v19  ;;  %v2486_v35 = vadd.f32 %v2478_v44, %v2466_v25  ;;  %v2498_v28 = vmul.f32 %v7818_v5, %v11796_v41  ;;  %7831 = vpow2.f32 %v2228_v49  ;;  %v11841_v9 = vld [vmem:[#allocation47_spill] sm:$0xff]  ;;  %v11842_v19 = vld [vmem:[#allocation49_spill] sm:$0xff] }
 0x21f   : > { %v7822_v58 = vpop.eup %7821  ;;  %v2518_v24 = vmul.f32 %v7820_v38, %v11797_v36  ;;  %v2311_v57 = vsub.f32 %v11840_v39, %v9890_v0  ;;  %7833 = vpow2.f32 %v2252_v30  ;;  %v2335_v14 = vsub.f32 %v9532_v63, %v9890_v0 }
 0x220   : > { %v2422_v22 = vadd.f32 %v7820_v38, %v2414_v12  ;;  %v2506_v56 = vadd.f32 %v2498_v28, %v2486_v35  ;;  %v2538_v53 = vmul.f32 %v7822_v58, %v11798_v16  ;;  %7835 = vpow2.f32 %v2276_v18  ;;  %v11843_v38 = vld [vmem:[#allocation55_spill] sm:$0xff]  ;;  %v11844_v35 = vld [vmem:[#allocation54_spill] sm:$0xff] }
 0x221   : > { %v7824_v37 = vpop.eup %7823  ;;  %v2324_v23 = vmul.f32 1.442695, %v2311_v57  ;;  %v2359_v48 = vsub.f32 %v9690_v45, %v9890_v0  ;;  %7837 = vpow2.f32 %v2300_v4  ;;  %v2348_v7 = vmul.f32 1.442695, %v2335_v14 }
 0x222   : > { %v7826_v50 = vpop.eup %7825  ;;  %v2430_v8 = vadd.f32 %v7822_v58, %v2422_v22  ;;  %v2526_v60 = vadd.f32 %v2518_v24, %v2506_v56  ;;  %v2558_v25 = vmul.f32 %v7824_v37, %v11799_v20  ;;  %v2383_v63 = vsub.f32 %v9880_v26, %v9890_v0  ;;  %v11845_v0 = vld [vmem:[#allocation73_spill] sm:$0xff]  ;;  %v11846_v58 = vld [vmem:[#allocation92_spill] sm:$0xff]  ;;  %v11847_v56 = vld [vmem:[#allocation39_spill] sm:$0xff] }
 0x223   : > { %v7828_v46 = vpop.eup %7827  ;;  %v2578_v40 = vmul.f32 %v7826_v50, %v11800_v21  ;;  %7839 = vpow2.f32 %v2324_v23  ;;  %v2372_v15 = vmul.f32 1.442695, %v2359_v48  ;;  %v2209_v45 = vmax.f32 %v2201_v51, %v9884_v13 }
 0x224   : > { %v2438_v17 = vadd.f32 %v7824_v37, %v2430_v8  ;;  %v2546_v11 = vadd.f32 %v2538_v53, %v2526_v60  ;;  %v2598_v27 = vmul.f32 %v7828_v46, %v11801_v34  ;;  %7841 = vpow2.f32 %v2348_v7 }
 0x225   : > { %v2216_v43 = vsub.f32 %v11841_v9, %v9899_v2  ;;  %v2240_v44 = vsub.f32 %v11842_v19, %v9899_v2  ;;  %v7830_v6 = vpop.eup %7829  ;;  %7843 = vpow2.f32 %v2372_v15  ;;  %v2396_v49 = vmul.f32 1.442695, %v2383_v63 }
 0x226   : > { %v2446_v3 = vadd.f32 %v7826_v50, %v2438_v17  ;;  %v2566_v5 = vadd.f32 %v2558_v25, %v2546_v11  ;;  %v9933_v30 = vmul.f32 %v7830_v6, %v2602_v62  ;;  %v2217_v12 = vsub.f32 %v11843_v38, %v2209_v45 }
 0x227   : > { %v2241_v26 = vsub.f32 %v11844_v35, %v2209_v45  ;;  %v2265_v28 = vsub.f32 %v11845_v0, %v2209_v45  ;;  %7845 = vpow2.f32 %v2396_v49  ;;  %v2289_v24 = vsub.f32 %v11846_v58, %v2209_v45 }
 0x228   : > { %v2454_v51 = vadd.f32 %v7828_v46, %v2446_v3  ;;  %v2586_v18 = vadd.f32 %v2578_v40, %v2566_v5  ;;  %v7832_v4 = vpop.eup %7831  ;;  %v2232_v39 = vmul.f32 1.442695, %v2217_v12  ;;  %v2313_v53 = vsub.f32 %v11847_v56, %v2209_v45 }
 0x229   : > { %v2256_v57 = vmul.f32 1.442695, %v2241_v26  ;;  %v2280_v22 = vmul.f32 1.442695, %v2265_v28  ;;  %v7834_v37 = vpop.eup %7833  ;;  %v2467_v23 = vmul.f32 %v7832_v4, %v11793_v55  ;;  %v2304_v14 = vmul.f32 1.442695, %v2289_v24 }
 0x22a   : > { %v2606_v62 = vadd.f32 %v2598_v27, %v2586_v18  ;;  %7847 = vrcp.f32 %v2454_v51  ;;  %v7836_v48 = vpop.eup %7835  ;;  %v2407_v50 = vadd.f32 %v7834_v37, %v7832_v4  ;;  %v2479_v8 = vmul.f32 %v7834_v37, %v11795_v29  ;;  %v11848_v18 = vld [vmem:[#allocation63_spill] sm:$0xff]  ;;  %v11849_v24 = vld [vmem:[#allocation88_spill] sm:$0xff] }
 0x22b   : > { %7849 = vpow2.f32 %v2232_v39  ;;  %v2328_v60 = vmul.f32 1.442695, %v2313_v53  ;;  %v7838_v25 = vpop.eup %7837  ;;  %v2499_v46 = vmul.f32 %v7836_v48, %v11796_v41  ;;  %v2337_v40 = vsub.f32 %v9740_v1, %v2209_v45 }
 0x22c   : > { %7851 = vpow2.f32 %v2256_v57  ;;  %v2361_v7 = vsub.f32 %v9882_v31, %v2209_v45  ;;  %v2415_v17 = vadd.f32 %v7836_v48, %v2407_v50  ;;  %v2487_v11 = vadd.f32 %v2479_v8, %v2467_v23 }
 0x22d   : > { %v7840_v15 = vpop.eup %7839  ;;  %v2519_v27 = vmul.f32 %v7838_v25, %v11797_v36  ;;  %7853 = vpow2.f32 %v2280_v22  ;;  %v2352_v9 = vmul.f32 1.442695, %v2337_v40  ;;  %v2385_v49 = vsub.f32 %v9884_v13, %v2209_v45  ;;  %v11850_v22 = vld [vmem:[#allocation7_spill] sm:$0xff] }
 0x22e   : > { %v2539_v63 = vmul.f32 %v7840_v15, %v11798_v16  ;;  %7855 = vpow2.f32 %v2304_v14  ;;  %v2376_v19 = vmul.f32 1.442695, %v2361_v7  ;;  %v7842_v6 = vpop.eup %7841  ;;  %v2423_v3 = vadd.f32 %v7838_v25, %v2415_v17 }
 0x22f   : > { %v2507_v5 = vadd.f32 %v2499_v46, %v2487_v11  ;;  %7857 = vpow2.f32 %v2328_v60  ;;  %v7844_v1 = vpop.eup %7843  ;;  %v2559_v31 = vmul.f32 %v7842_v6, %v11799_v20  ;;  %v2230_v38 = vmul.f32 1.442695, %v2216_v43 }
 0x230   : > { %7859 = vpow2.f32 %v2352_v9  ;;  %v2254_v12 = vmul.f32 1.442695, %v2240_v44  ;;  %v2431_v35 = vadd.f32 %v7840_v15, %v2423_v3  ;;  %v2579_v0 = vmul.f32 %v7844_v1, %v11800_v21  ;;  %v2635_v3 = vld [vmem:[%s11436_s6 + $0x8] sm:$0xff] }
 0x231   : > { %v2527_v26 = vadd.f32 %v2519_v27, %v2507_v5  ;;  %7861 = vpow2.f32 %v2376_v19  ;;  %v7846_v28 = vpop.eup %7845  ;;  %v2400_v51 = vmul.f32 1.442695, %v2385_v49  ;;  %v2264_v58 = vsub.f32 %v11848_v18, %v9899_v2 }
 0x232   : > { %7863 = vpow2.f32 %v2230_v38  ;;  %v2288_v13 = vsub.f32 %v11849_v24, %v9899_v2  ;;  %v2439_v45 = vadd.f32 %v7842_v6, %v2431_v35  ;;  %v2599_v39 = vmul.f32 %v7846_v28, %v11801_v34  ;;  %v3361_v38 = vld [vmem:[%s11436_s6 + $0x40] sm:$0xff] }
 0x233   : > { %v2547_v4 = vadd.f32 %v2539_v63, %v2527_v26  ;;  %7865 = vpow2.f32 %v2254_v12  ;;  %v2278_v44 = vmul.f32 1.442695, %v2264_v58  ;;  %v2312_v56 = vsub.f32 %v11850_v22, %v9899_v2  ;;  %v3362_v12 = vld [vmem:[%s11436_s6 + $0x48] sm:$0xff] }
 0x234   : > { %v7848_v43 = vpop.eup %7847  ;;  %7867 = vpow2.f32 %v2400_v51  ;;  %v2302_v57 = vmul.f32 1.442695, %v2288_v13  ;;  %v2447_v23 = vadd.f32 %v7844_v1, %v2439_v45  ;;  %v2336_v48 = vsub.f32 %v9606_v33, %v9899_v2 }
 0x235   : > { %v7850_v53 = vpop.eup %7849  ;;  %v9957_v37 = vmul.f32 %v7848_v43, %v2606_v62  ;;  %v2567_v14 = vadd.f32 %v2559_v31, %v2547_v4  ;;  %7869 = vpow2.f32 %v2278_v44  ;;  %v2326_v60 = vmul.f32 1.442695, %v2312_v56 }
 0x236   : > { %v7852_v50 = vpop.eup %7851  ;;  %v2469_v8 = vmul.f32 %v7850_v53, %v11793_v55  ;;  %v2360_v25 = vsub.f32 %v9798_v61, %v9899_v2  ;;  %v2455_v40 = vadd.f32 %v7846_v28, %v2447_v23  ;;  %7871 = vpow2.f32 %v2302_v57  ;;  %v2634_v61 = vld [vmem:[%s11436_s6] sm:$0xff] }
 0x237   : > { %v7854_v46 = vpop.eup %7853  ;;  %v2587_v7 = vadd.f32 %v2579_v0, %v2567_v14  ;;  %v2409_v15 = vadd.f32 %v7852_v50, %v7850_v53  ;;  %v2481_v62 = vmul.f32 %v7852_v50, %v11795_v29  ;;  %v2350_v27 = vmul.f32 1.442695, %v2336_v48  ;;  %v11852_v48 = vld [vmem:[#allocation6_spill] sm:$0xff] }
 0x238   : > { %v7856_v17 = vpop.eup %7855  ;;  %v2501_v11 = vmul.f32 %v7854_v46, %v11796_v41  ;;  %v2374_v33 = vmul.f32 1.442695, %v2360_v25  ;;  %7873 = vrcp.f32 %v2455_v40  ;;  %v2384_v31 = vsub.f32 %v9886_v42, %v9899_v2 }
 0x239   : > { %v7858_v63 = vpop.eup %7857  ;;  %v9966_v9 = vadd.f32 %v2599_v39, %v2587_v7  ;;  %v2417_v19 = vadd.f32 %v7854_v46, %v2409_v15  ;;  %v2489_v6 = vadd.f32 %v2481_v62, %v2469_v8  ;;  %v2521_v49 = vmul.f32 %v7856_v17, %v11797_v36  ;;  %v11853_v7 = vld [vmem:[#allocation52_spill] sm:$0xff]  ;;  %v11854_v62 = vld [vmem:[#allocation15_spill] sm:$0xff] }
 0x23a   : > { %v7860_v5 = vpop.eup %7859  ;;  %v2541_v1 = vmul.f32 %v7858_v63, %v11798_v16  ;;  %7875 = vpow2.f32 %v2326_v60  ;;  %v2398_v58 = vmul.f32 1.442695, %v2384_v31  ;;  %v9986_v42 = vpack.c.bf16 %v2635_v3, %v2634_v61 }
 0x23b   : > { %v7862_v35 = vpop.eup %7861  ;;  %v2425_v26 = vadd.f32 %v7856_v17, %v2417_v19  ;;  %v2509_v0 = vadd.f32 %v2501_v11, %v2489_v6  ;;  %v2561_v28 = vmul.f32 %v7860_v5, %v11799_v20  ;;  %7877 = vpow2.f32 %v2350_v27 }
 0x23c   : > { %v7864_v51 = vpop.eup %7863  ;;  %v2581_v18 = vmul.f32 %v7862_v35, %v11800_v21  ;;  %7879 = vpow2.f32 %v2374_v33  ;;  %v9989_v4 = vpack.c.bf16 %v3362_v12, %v3361_v38  ;;  %7044 = vmatpush3.bf16.msra.mxu1 %v9986_v42  ;;  %v2647_v50 = vrot.slane %v11852_v48, 6 }
 0x23d   : > { %v7866_v2 = vpop.eup %7865  ;;  %v2433_v24 = vadd.f32 %v7858_v63, %v2425_v26  ;;  %v2529_v13 = vadd.f32 %v2521_v49, %v2509_v0  ;;  %v2468_v45 = vmul.f32 %v7864_v51, %v11793_v55  ;;  %7881 = vpow2.f32 %v2398_v58  ;;  %7045 = vmatprep.subr.bf16.mxu1 %v7952_v59 }
 0x23e   : > { %v7868_v39 = vpop.eup %7867  ;;  %v2408_v43 = vadd.f32 %v7866_v2, %v7864_v51  ;;  %v2480_v44 = vmul.f32 %v7866_v2, %v11795_v29  ;;  %7068 = vmatpush3.bf16.msra.mxu0 %v9989_v4  ;;  %v7954_v55 = vmov 0.0   ;;  %v11851_v29 = vld [vmem:[#allocation5_spill] sm:$0xff]  ;;  %v2650_v17 = vrot.slane %v11854_v62, 5 }
 0x23f   : > { %v2441_v57 = vadd.f32 %v7860_v5, %v2433_v24  ;;  %v2549_v22 = vadd.f32 %v2541_v1, %v2529_v13  ;;  %v2601_v56 = vmul.f32 %v7868_v39, %v11801_v34  ;;  %v7870_v53 = vpop.eup %7869  ;;  %6339 = vmatprep.mubr.msk.f32.mxu1 %vm7953_vm1, %v7954_v55  ;;  %6395 = vmatprep.mubr.msk.f32.mxu0 %vm7953_vm1, %v7954_v55  ;;  %v2644_v14 = vrot.slane %v11851_v29, 7  ;;  %v11855_v5 = vld [vmem:[#allocation70_spill] sm:$0xff] }
 0x240   : > { %v2488_v23 = vadd.f32 %v2480_v44, %v2468_v45  ;;  %v2416_v25 = vadd.f32 %v7870_v53, %v2408_v43  ;;  %v2500_v46 = vmul.f32 %v7870_v53, %v11796_v41  ;;  %7072 = vmatprep.subr.bf16.mxu0 %v7952_v59  ;;  %v7872_v40 = vpop.eup %7871  ;;  %v2653_v49 = vrot.slane %v11855_v5, 4 }
 0x241   : > { %v2449_v8 = vadd.f32 %v7862_v35, %v2441_v57  ;;  %v2569_v60 = vadd.f32 %v2561_v28, %v2549_v22  ;;  %v2646_v15 = vsel %vm2645_vm2, %v2644_v14, %v11853_v7  ;;  %v2520_v41 = vmul.f32 %v7872_v40, %v11797_v36  ;;  %v3537_v57 = vld [vmem:[%s11436_s6 + $0x50] sm:$0xff]  ;;  %v3538_v22 = vld [vmem:[%s11436_s6 + $0x58] sm:$0xff] }
 0x242   : > { %v7874_v11 = vpop.eup %7873  ;;  %v2424_v63 = vadd.f32 %v7872_v40, %v2416_v25  ;;  %v2508_v19 = vadd.f32 %v2500_v46, %v2488_v23  ;;  %v2649_v3 = vsel %vm2648_vm3, %v2647_v50, %v2646_v15  ;;  %v2659_v13 = vrot.slane %v9758_v54, 2 }
 0x243   : > { %v2457_v27 = vadd.f32 %v7868_v39, %v2449_v8  ;;  %v2589_v33 = vadd.f32 %v2581_v18, %v2569_v60  ;;  %v10008_v61 = vmul.f32 %v7874_v11, %v9966_v9  ;;  %v2652_v28 = vsel %vm2651_vm4, %v2650_v17, %v2649_v3  ;;  %v11856_v18 = vld [vmem:[#allocation67_spill] sm:$0xff] }
 0x244   : > { %v7876_v6 = vpop.eup %7875  ;;  %v2528_v26 = vadd.f32 %v2520_v41, %v2508_v19  ;;  %v2655_v51 = vsel %vm2654_vm5, %v2653_v49, %v2652_v28  ;;  %v2656_v58 = vrot.slane %v11856_v18, 3  ;;  %v2662_v39 = vrot.slane %v9826_v32, 1 }
 0x245   : > { %v7878_v1 = vpop.eup %7877  ;;  %v2609_v31 = vadd.f32 %v2601_v56, %v2589_v33  ;;  %7883 = vrcp.f32 %v2457_v27  ;;  %v2432_v38 = vadd.f32 %v7876_v6, %v2424_v63  ;;  %v2540_v12 = vmul.f32 %v7876_v6, %v11798_v16  ;;  %v3713_v33 = vld [vmem:[%s11436_s6 + $0x60] sm:$0xff]  ;;  %v3714_v63 = vld [vmem:[%s11436_s6 + $0x68] sm:$0xff] }
 0x246   : > { %v7880_v35 = vpop.eup %7879  ;;  %v2560_v0 = vmul.f32 %v7878_v1, %v11799_v20  ;;  %v2658_v20 = vsel %vm2657_vm6, %v2656_v58, %v2655_v51  ;;  %v3363_v44 = vrot.slane %v11853_v7, 4  ;;  %v3364_v53 = vrot.slane %v11851_v29, 3 }
 0x247   : > { %v2440_v9 = vadd.f32 %v7878_v1, %v2432_v38  ;;  %v2580_v36 = vmul.f32 %v7880_v35, %v11800_v21  ;;  %v7882_v2 = vpop.eup %7881  ;;  %v2548_v24 = vadd.f32 %v2540_v12, %v2528_v26  ;;  %v2661_v21 = vsel %vm2660_vm7, %v2659_v13, %v2658_v20 }
 0x248   : > { %v2600_v45 = vmul.f32 %v7882_v2, %v11801_v34  ;;  %v2664_v34 = vsel %vm2663_vm8, %v2662_v39, %v2661_v21  ;;  %v3366_v23 = vrot.slane %v11852_v48, 2  ;;  %v3368_v50 = vrot.slane %v11854_v62, 1 }
 0x249   : > { %v2448_v16 = vadd.f32 %v7880_v35, %v2440_v9  ;;  %v2568_v43 = vadd.f32 %v2560_v0, %v2548_v24  ;;  %6340 = vmatmul.mubr.msk.f32.vlgmr.msra.gmra.mrb[0].mxu1 %vm569_vm0, %v2664_v34  ;;  %v3371_v8 = vrot.slane %v11856_v18, 7  ;;  %v3373_v60 = vrot.slane %v9758_v54, 6 }
 0x24a   : > { %v3365_v25 = vsel %vm2645_vm2, %v3364_v53, %v3363_v44  ;;  %v3375_v46 = vrot.slane %v9826_v32, 5  ;;  %v10040_v40 = vpack.c.bf16 %v3538_v22, %v3537_v57  ;;  %7047 = vmatpush3.bf16.msra.mxu1 %v9986_v42  ;;  %6346 = vmatprep.mubr.msk.f32.mxu1 %vm7953_vm1, %v7954_v55  ;;  %v3539_v11 = vrot.slane %v11853_v7, 5  ;;  %v2833_v22 = vld [vmem:[%s11436_s6 + $0x10] sm:$0xff] }
 0x24b   : > { %v2456_v56 = vadd.f32 %v7882_v2, %v2448_v16  ;;  %v2588_v14 = vadd.f32 %v2580_v36, %v2568_v43  ;;  %v3367_v17 = vsel %vm2648_vm3, %v3366_v23, %v3365_v25  ;;  %v3540_v27 = vrot.slane %v11851_v29, 4  ;;  %7048 = vmatprep.subr.bf16.mxu1 %v7952_v59 }
 0x24c   : > { %v3369_v19 = vsel %vm2651_vm4, %v3368_v50, %v3367_v17  ;;  %v3542_v6 = vrot.slane %v11852_v48, 3  ;;  %v3544_v41 = vrot.slane %v11854_v62, 2  ;;  %v3546_v3 = vrot.slane %v11855_v5, 1  ;;  %v3889_v50 = vld [vmem:[%s11436_s6 + $0x70] sm:$0xff] }
 0x24d   : > { %7885 = vrcp.f32 %v2456_v56  ;;  %v2608_v15 = vadd.f32 %v2600_v45, %v2588_v14  ;;  %v3370_v1 = vsel %vm2654_vm5, %v11855_v5, %v3369_v19  ;;  %v3541_v38 = vsel %vm2645_vm2, %v3540_v27, %v3539_v11  ;;  %v2834_v14 = vld [vmem:[%s11436_s6 + $0x18] sm:$0xff] }
 0x24e   : > { %v3549_v12 = vrot.slane %v9758_v54, 7  ;;  %v3372_v35 = vsel %vm2657_vm6, %v3371_v8, %v3370_v1  ;;  %v3543_v26 = vsel %vm2648_vm3, %v3542_v6, %v3541_v38  ;;  %v3551_v0 = vrot.slane %v9826_v32, 6  ;;  %v3890_v8 = vld [vmem:[%s11436_s6 + $0x78] sm:$0xff] }
 0x24f   : > { %v7884_v42 = vpop.eup %7883  ;;  %v10068_v28 = vpack.c.bf16 %v3714_v63, %v3713_v33  ;;  %v3374_v9 = vsel %vm2660_vm7, %v3373_v60, %v3372_v35  ;;  %v3715_v36 = vrot.slane %v11853_v7, 6  ;;  %v3716_v51 = vrot.slane %v11851_v29, 5 }
 0x250   : > { %v10059_v49 = vmul.f32 %v7884_v42, %v2609_v31  ;;  %v3545_v31 = vsel %vm2651_vm4, %v3544_v41, %v3543_v26  ;;  %v3376_v58 = vsel %vm2663_vm8, %v3375_v46, %v3374_v9  ;;  %v3718_v24 = vrot.slane %v11852_v48, 4 }
 0x251   : > { %v3547_v2 = vsel %vm2654_vm5, %v3546_v3, %v3545_v31  ;;  %v3720_v13 = vrot.slane %v11854_v62, 3  ;;  %6396 = vmatmul.mubr.msk.f32.vlgmr.msra.gmra.mrb[0].mxu0 %vm569_vm0, %v3376_v58  ;;  %v3717_v45 = vsel %vm2645_vm2, %v3716_v51, %v3715_v36  ;;  %v3722_v20 = vrot.slane %v11855_v5, 2 }
 0x252   : > { %v3548_v16 = vsel %vm2657_vm6, %v11856_v18, %v3547_v2  ;;  %v3724_v39 = vrot.slane %v11856_v18, 1  ;;  %7074 = vmatpush3.bf16.msra.mxu0 %v10040_v40  ;;  %6409 = vmatprep.mubr.msk.f32.mxu0 %vm7953_vm1, %v7954_v55  ;;  %v3719_v21 = vsel %vm2648_vm3, %v3718_v24, %v3717_v45  ;;  %v3727_v44 = vrot.slane %v9826_v32, 7 }
 0x253   : > { %v3550_v43 = vsel %vm2660_vm7, %v3549_v12, %v3548_v16  ;;  %v2746_v57 = vrot.slane %v9803_v47, 7  ;;  %7078 = vmatprep.subr.bf16.mxu0 %v7952_v59  ;;  %v3721_v34 = vsel %vm2651_vm4, %v3720_v13, %v3719_v21  ;;  %v2748_v53 = vrot.slane %v9864_v52, 6 }
 0x254   : > { %v3552_v56 = vsel %vm2663_vm8, %v3551_v0, %v3550_v43  ;;  %v2750_v23 = vrot.slane %v9912_v10, 5  ;;  %v3723_v25 = vsel %vm2654_vm5, %v3722_v20, %v3721_v34  ;;  %v2752_v17 = vrot.slane %v9957_v37, 4 }
 0x255   : > { %v2747_v46 = vsel %vm2645_vm2, %v2746_v57, %v9933_v30  ;;  %v2754_v11 = vrot.slane %v10008_v61, 3  ;;  %v3725_v33 = vsel %vm2657_vm6, %v3724_v39, %v3723_v25  ;;  %v2758_v42 = vrot.slane %v10059_v49, 1  ;;  %v3009_v25 = vld [vmem:[%s11436_s6 + $0x20] sm:$0xff] }
 0x256   : > { %v2749_v63 = vsel %vm2648_vm3, %v2748_v53, %v2747_v46  ;;  %v3726_v19 = vsel %vm2660_vm7, %v9758_v54, %v3725_v33  ;;  %v10121_v41 = vpack.c.bf16 %v2834_v14, %v2833_v22  ;;  %v10123_v3 = vpack.c.bf16 %v3890_v8, %v3889_v50  ;;  %v3010_v46 = vld [vmem:[%s11436_s6 + $0x28] sm:$0xff] }
 0x257   : > { %v7886_v60 = vpop.eup %7885  ;;  %v2751_v6 = vsel %vm2651_vm4, %v2750_v23, %v2749_v63  ;;  %v3728_v1 = vsel %vm2663_vm8, %v3727_v44, %v3726_v19  ;;  %v3891_v12 = vrot.slane %v11853_v7, 7  ;;  %v3892_v26 = vrot.slane %v11851_v29, 6 }
 0x258   : > { %v10113_v27 = vmul.f32 %v7886_v60, %v2608_v15  ;;  %v2753_v15 = vsel %vm2654_vm5, %v2752_v17, %v2751_v6  ;;  %v3894_v0 = vrot.slane %v11852_v48, 5  ;;  %v3896_v9 = vrot.slane %v11854_v62, 4 }
 0x259   : > { %v2755_v35 = vsel %vm2657_vm6, %v2754_v11, %v2753_v15  ;;  %6410 = vmatmul.mubr.msk.f32.vlgmr.msra.gmra.mrb[0].mxu0 %vm569_vm0, %v3552_v56  ;;  %v3898_v36 = vrot.slane %v11855_v5, 3  ;;  %v3900_v51 = vrot.slane %v11856_v18, 2  ;;  %v3902_v58 = vrot.slane %v9758_v54, 1 }
 0x25a   : > { %v2756_v38 = vrot.slane %v10113_v27, 2  ;;  %7080 = vmatpush3.bf16.msra.mxu0 %v10068_v28  ;;  %6423 = vmatprep.mubr.msk.f32.mxu0 %vm7953_vm1, %v7954_v55  ;;  %v3893_v24 = vsel %vm2645_vm2, %v3892_v26, %v3891_v12  ;;  %v2835_v13 = vrot.slane %v11853_v7, 1  ;;  %v2837_v16 = vrot.slane %v11852_v48, 7 }
 0x25b   : > { %7084 = vmatprep.subr.bf16.mxu0 %v7952_v59  ;;  %v3895_v45 = vsel %vm2648_vm3, %v3894_v0, %v3893_v24  ;;  %v2839_v20 = vrot.slane %v11854_v62, 6  ;;  %v2841_v39 = vrot.slane %v11855_v5, 5  ;;  %v2843_v43 = vrot.slane %v11856_v18, 4 }
 0x25c   : > { %v2757_v31 = vsel %vm2660_vm7, %v2756_v38, %v2755_v35  ;;  %v3897_v21 = vsel %vm2651_vm4, %v3896_v9, %v3895_v45  ;;  %v2836_v44 = vsel %vm2645_vm2, %v11851_v29, %v2835_v13  ;;  %v2845_v57 = vrot.slane %v9758_v54, 3 }
 0x25d   : > { %v2759_v2 = vsel %vm2663_vm8, %v2758_v42, %v2757_v31  ;;  %v2847_v22 = vrot.slane %v9826_v32, 2  ;;  %v3899_v56 = vsel %vm2654_vm5, %v3898_v36, %v3897_v21  ;;  %v2838_v34 = vsel %vm2648_vm3, %v2837_v16, %v2836_v44  ;;  %v3185_v21 = vld [vmem:[%s11436_s6 + $0x30] sm:$0xff]  ;;  %v3186_v44 = vld [vmem:[%s11436_s6 + $0x38] sm:$0xff] }
 0x25e   : > { %6347 = vmatmul.mubr.msk.f32.vlgmr.msra.gmra.mrb[2].mxu1 %vm569_vm0, %v2759_v2  ;;  %v2922_v53 = vrot.slane %v9933_v30, 1  ;;  %v2924_v23 = vrot.slane %v9864_v52, 7  ;;  %v3901_v14 = vsel %vm2657_vm6, %v3900_v51, %v3899_v56  ;;  %v2840_v50 = vsel %vm2651_vm4, %v2839_v20, %v2838_v34 }
 0x25f   : > { %7050 = vmatpush3.bf16.msra.mxu1 %v10121_v41  ;;  %6353 = vmatprep.mubr.msk.f32.mxu1 %vm7953_vm1, %v7954_v55  ;;  %v2926_v8 = vrot.slane %v9912_v10, 6  ;;  %v2928_v60 = vrot.slane %v9957_v37, 5  ;;  %v3903_v17 = vsel %vm2660_vm7, %v3902_v58, %v3901_v14  ;;  %v2842_v11 = vsel %vm2654_vm5, %v2841_v39, %v2840_v50 }
 0x260   : > { %7051 = vmatprep.subr.bf16.mxu1 %v7952_v59  ;;  %v2923_v33 = vsel %vm2645_vm2, %v9803_v47, %v2922_v53  ;;  %v2930_v63 = vrot.slane %v10008_v61, 4  ;;  %v3904_v42 = vsel %vm2663_vm8, %v9826_v32, %v3903_v17  ;;  %v2844_v19 = vsel %vm2657_vm6, %v2843_v43, %v2842_v11 }
 0x261   : > { %v2925_v6 = vsel %vm2648_vm3, %v2924_v23, %v2923_v33  ;;  %v2932_v15 = vrot.slane %v10113_v27, 3  ;;  %6424 = vmatmul.mubr.msk.f32.vlgmr.msra.gmra.mrb[0].mxu0 %vm569_vm0, %v3728_v1  ;;  %v2846_v38 = vsel %vm2660_vm7, %v2845_v57, %v2844_v19  ;;  %v2934_v35 = vrot.slane %v10059_v49, 2 }
 0x262   : > { %v2927_v12 = vsel %vm2651_vm4, %v2926_v8, %v2925_v6  ;;  %v7055_v26 = vpack.c.bf16 %v3010_v46, %v3009_v25  ;;  %7086 = vmatpush3.bf16.msra.mxu0 %v10123_v3  ;;  %6437 = vmatprep.mubr.msk.f32.mxu0 %vm7953_vm1, %v7954_v55  ;;  %v2848_v0 = vsel %vm2663_vm8, %v2847_v22, %v2846_v38  ;;  %v3011_v31 = vrot.slane %v11853_v7, 2 }
 0x263   : > { %v2929_v9 = vsel %vm2654_vm5, %v2928_v60, %v2927_v12  ;;  %v3012_v1 = vrot.slane %v11851_v29, 1  ;;  %6354 = vmatmul.mubr.msk.f32.vlgmr.msra.gmra.mrb[0].mxu1 %vm569_vm0, %v2848_v0  ;;  %v3015_v51 = vrot.slane %v11854_v62, 7  ;;  %v3017_v58 = vrot.slane %v11855_v5, 6  ;;  %7258 = vmatprep.subr.bf16.mxu0 %v7952_v59 }
 0x264   : > { %v2931_v36 = vsel %vm2657_vm6, %v2930_v63, %v2929_v9  ;;  %v3019_v2 = vrot.slane %v11856_v18, 5  ;;  %7053 = vmatpush3.bf16.msra.mxu1 %v10121_v41  ;;  %6360 = vmatprep.mubr.msk.f32.mxu1 %vm7953_vm1, %v7954_v55  ;;  %v3021_v16 = vrot.slane %v9758_v54, 4  ;;  %v3023_v45 = vrot.slane %v9826_v32, 3 }
 0x265   : > { %v2933_v24 = vsel %vm2660_vm7, %v2932_v15, %v2931_v36  ;;  %v3013_v13 = vsel %vm2645_vm2, %v3012_v1, %v3011_v31  ;;  %7054 = vmatprep.subr.bf16.mxu1 %v7952_v59  ;;  %v3098_v41 = vrot.slane %v9933_v30, 2  ;;  %v3099_v43 = vrot.slane %v9803_v47, 1 }
 0x266   : > { %v2935_v20 = vsel %vm2663_vm8, %v2934_v35, %v2933_v24  ;;  %v3014_v39 = vsel %vm2648_vm3, %v11852_v48, %v3013_v13  ;;  %v3102_v22 = vrot.slane %v9912_v10, 7  ;;  %v3104_v56 = vrot.slane %v9957_v37, 6 }
 0x267   : > { %v3016_v57 = vsel %vm2651_vm4, %v3015_v51, %v3014_v39  ;;  %v3106_v34 = vrot.slane %v10008_v61, 5  ;;  %6361 = vmatmul.mubr.msk.f32.vlgmr.msra.gmra.mrb[2].mxu1 %vm569_vm0, %v2935_v20  ;;  %v3100_v23 = vsel %vm2645_vm2, %v3099_v43, %v3098_v41  ;;  %v3108_v14 = vrot.slane %v10113_v27, 4 }
 0x268   : > { %v3018_v53 = vsel %vm2654_vm5, %v3017_v58, %v3016_v57  ;;  %v3110_v50 = vrot.slane %v10059_v49, 3  ;;  %7056 = vmatpush3.bf16.msra.mxu1 %v7055_v26  ;;  %6367 = vmatprep.mubr.msk.f32.mxu1 %vm7953_vm1, %v7954_v55  ;;  %v3101_v60 = vsel %vm2648_vm3, %v9864_v52, %v3100_v23  ;;  %v7061_v25 = vpack.c.bf16 %v3186_v44, %v3185_v21 }
 0x269   : > { %v3020_v8 = vsel %vm2657_vm6, %v3019_v2, %v3018_v53  ;;  %v3187_v46 = vrot.slane %v11853_v7, 3  ;;  %6438 = vmatmul.mubr.msk.f32.vlgmr.msra.gmra.mrb[0].mxu0 %vm569_vm0, %v3904_v42  ;;  %7057 = vmatprep.subr.bf16.mxu1 %v7952_v59  ;;  %v3103_v11 = vsel %vm2651_vm4, %v3102_v22, %v3101_v60  ;;  %v3188_v33 = vrot.slane %v11851_v29, 2 }
 0x26a   : > { %v3022_v17 = vsel %vm2660_vm7, %v3021_v16, %v3020_v8  ;;  %v3190_v63 = vrot.slane %v11852_v48, 1  ;;  %v3105_v6 = vsel %vm2654_vm5, %v3104_v56, %v3103_v11  ;;  %v3193_v15 = vrot.slane %v11855_v5, 7  ;;  %6724 = vmatprep.mubr.msk.f32.mxu0 %vm7953_vm1, %v7954_v55 }
 0x26b   : > { %v3024_v19 = vsel %vm2663_vm8, %v3023_v45, %v3022_v17  ;;  %v3195_v7 = vrot.slane %v11856_v18, 6  ;;  %v3107_v42 = vsel %vm2657_vm6, %v3106_v34, %v3105_v6  ;;  %v3189_v38 = vsel %vm2645_vm2, %v3188_v33, %v3187_v46 }
 0x26c   : > { %6368 = vmatmul.mubr.msk.f32.vlgmr.msra.gmra.mrb[0].mxu1 %vm569_vm0, %v3024_v19  ;;  %v3197_v29 = vrot.slane %v9758_v54, 5  ;;  %v3199_v48 = vrot.slane %v9826_v32, 4  ;;  %v3109_v5 = vsel %vm2660_vm7, %v3108_v14, %v3107_v42  ;;  %v3191_v18 = vsel %vm2648_vm3, %v3190_v63, %v3189_v38 }
 0x26d   : > { %7059 = vmatpush3.bf16.msra.mxu1 %v7055_v26  ;;  %6374 = vmatprep.mubr.msk.f32.mxu1 %vm7953_vm1, %v7954_v55  ;;  %v3274_v12 = vrot.slane %v9933_v30, 3  ;;  %v3275_v35 = vrot.slane %v9803_v47, 2  ;;  %v3111_v0 = vsel %vm2663_vm8, %v3110_v50, %v3109_v5  ;;  %v3192_v54 = vsel %vm2651_vm4, %v11854_v62, %v3191_v18 }
 0x26e   : > { %7060 = vmatprep.subr.bf16.mxu1 %v7952_v59  ;;  %v3277_v32 = vrot.slane %v9864_v52, 1  ;;  %v3280_v26 = vrot.slane %v9957_v37, 7  ;;  %v3194_v9 = vsel %vm2654_vm5, %v3193_v15, %v3192_v54  ;;  %v3282_v1 = vrot.slane %v10008_v61, 6 }
 0x26f   : > { %v3276_v31 = vsel %vm2645_vm2, %v3275_v35, %v3274_v12  ;;  %v3284_v36 = vrot.slane %v10113_v27, 5  ;;  %v3196_v51 = vsel %vm2657_vm6, %v3195_v7, %v3194_v9  ;;  %v3286_v62 = vrot.slane %v10059_v49, 4 }
 0x270   : > { %6375 = vmatmul.mubr.msk.f32.vlgmr.msra.gmra.mrb[2].mxu1 %vm569_vm0, %v3111_v0  ;;  %v3278_v58 = vsel %vm2648_vm3, %v3277_v32, %v3276_v31  ;;  %v3450_v2 = vrot.slane %v9933_v30, 4  ;;  %v3198_v24 = vsel %vm2660_vm7, %v3197_v29, %v3196_v51  ;;  %v3451_v16 = vrot.slane %v9803_v47, 3 }
 0x271   : > { %7062 = vmatpush3.bf16.msra.mxu1 %v7061_v25  ;;  %6381 = vmatprep.mubr.msk.f32.mxu1 %vm7953_vm1, %v7954_v55  ;;  %v3279_v13 = vsel %vm2651_vm4, %v9912_v10, %v3278_v58  ;;  %v3453_v45 = vrot.slane %v9864_v52, 2  ;;  %v3200_v20 = vsel %vm2663_vm8, %v3199_v48, %v3198_v24  ;;  %v3455_v41 = vrot.slane %v9912_v10, 1  ;;  %v5848_v58 = vld [vmem:[%s11438_s8 + $0x380] sm:$0xff] }
 0x272   : > { %7063 = vmatprep.subr.bf16.mxu1 %v7952_v59  ;;  %v3281_v39 = vsel %vm2654_vm5, %v3280_v26, %v3279_v13  ;;  %v3458_v43 = vrot.slane %v10008_v61, 7  ;;  %v3452_v44 = vsel %vm2645_vm2, %v3451_v16, %v3450_v2  ;;  %v3460_v57 = vrot.slane %v10113_v27, 6 }
 0x273   : > { %v3283_v21 = vsel %vm2657_vm6, %v3282_v1, %v3281_v39  ;;  %v3462_v22 = vrot.slane %v10059_v49, 5  ;;  %v3454_v34 = vsel %vm2648_vm3, %v3453_v45, %v3452_v44  ;;  %v3626_v53 = vrot.slane %v9933_v30, 5  ;;  %v5850_v39 = vld [vmem:[%s11438_s8 + $0x390] sm:$0xff] }
 0x274   : > { %6382 = vmatmul.mubr.msk.f32.vlgmr.msra.gmra.mrb[0].mxu1 %vm569_vm0, %v3200_v20  ;;  %v3285_v56 = vsel %vm2660_vm7, %v3284_v36, %v3283_v21  ;;  %v3627_v23 = vrot.slane %v9803_v47, 4  ;;  %v3456_v50 = vsel %vm2651_vm4, %v3455_v41, %v3454_v34  ;;  %v3629_v8 = vrot.slane %v9864_v52, 3  ;;  %v4072_v34 = vld [vmem:[%s11438_s8 + $0x28] sm:$0xff] }
 0x275   : > { %7065 = vmatpush3.bf16.msra.mxu1 %v7061_v25  ;;  %6388 = vmatprep.mubr.msk.f32.mxu1 %vm7953_vm1, %v7954_v55  ;;  %v3287_v14 = vsel %vm2663_vm8, %v3286_v62, %v3285_v56  ;;  %v3631_v60 = vrot.slane %v9912_v10, 2  ;;  %v3457_v46 = vsel %vm2654_vm5, %v9957_v37, %v3456_v50  ;;  %v3633_v25 = vrot.slane %v9957_v37, 1  ;;  %v5849_v62 = vld [vmem:[%s11438_s8 + $0x388] sm:$0xff]  ;;  %v4071_v56 = vld [vmem:[%s11438_s8 + $0x20] sm:$0xff] }
 0x276   : > { %7069 = vmatprep.subr.bf16.mxu1 %v7952_v59  ;;  %v3628_v17 = vsel %vm2645_vm2, %v3627_v23, %v3626_v53  ;;  %v3636_v11 = vrot.slane %v10113_v27, 7  ;;  %v3459_v33 = vsel %vm2657_vm6, %v3458_v43, %v3457_v46  ;;  %v3638_v19 = vrot.slane %v10059_v49, 6  ;;  %v5852_v23 = vld [vmem:[%s11438_s8 + $0x3a0] sm:$0xff]  ;;  %v5854_v46 = vld [vmem:[%s11438_s8 + $0x3b0] sm:$0xff] }
 0x277   : > { %v3630_v63 = vsel %vm2648_vm3, %v3629_v8, %v3628_v17  ;;  %v3802_v6 = vrot.slane %v9933_v30, 6  ;;  %v3461_v15 = vsel %vm2660_vm7, %v3460_v57, %v3459_v33  ;;  %v3803_v42 = vrot.slane %v9803_v47, 5  ;;  %v4069_v57 = vld [vmem:[%s11438_s8 + $0x10] sm:$0xff]  ;;  %v4076_v33 = vld [vmem:[%s11438_s8 + $0x48] sm:$0xff] }
 0x278   : > { %6389 = vmatmul.mubr.msk.f32.vlgmr.msra.gmra.mrb[2].mxu1 %vm569_vm0, %v3287_v14  ;;  %v3632_v7 = vsel %vm2651_vm4, %v3631_v60, %v3630_v63  ;;  %v3805_v38 = vrot.slane %v9864_v52, 4  ;;  %v3463_v29 = vsel %vm2663_vm8, %v3462_v22, %v3461_v15  ;;  %v3807_v5 = vrot.slane %v9912_v10, 3  ;;  %v5853_v14 = vld [vmem:[%s11438_s8 + $0x3a8] sm:$0xff]  ;;  %v4073_v8 = vld [vmem:[%s11438_s8 + $0x30] sm:$0xff]  ;;  %v4074_v60 = vld [vmem:[%s11438_s8 + $0x38] sm:$0xff] }
 0x279   : > { %7071 = vmatpush3.bf16.msra.mxu1 %v9989_v4  ;;  %6402 = vmatprep.mubr.msk.f32.mxu1 %vm7953_vm1, %v7954_v55  ;;  %v3634_v48 = vsel %vm2654_vm5, %v3633_v25, %v3632_v7  ;;  %v3809_v18 = vrot.slane %v9957_v37, 2  ;;  %v3804_v35 = vsel %vm2645_vm2, %v3803_v42, %v3802_v6  ;;  %v3811_v4 = vrot.slane %v10008_v61, 1  ;;  %v5855_v25 = vld [vmem:[%s11438_s8 + $0x3b8] sm:$0xff]  ;;  %v5856_v6 = vld [vmem:[%s11438_s8 + $0x3c0] sm:$0xff]  ;;  %v5857_v15 = vld [vmem:[%s11438_s8 + $0x3c8] sm:$0xff] }
 0x27a   : > { %7075 = vmatprep.subr.bf16.mxu1 %v7952_v59  ;;  %v3635_v12 = vsel %vm2657_vm6, %v10008_v61, %v3634_v48  ;;  %v3814_v0 = vrot.slane %v10059_v49, 7  ;;  %v3806_v32 = vsel %vm2648_vm3, %v3805_v38, %v3804_v35  ;;  %v3978_v26 = vrot.slane %v9933_v30, 7  ;;  %v4077_v7 = vld [vmem:[%s11438_s8 + $0x50] sm:$0xff]  ;;  %v4078_v42 = vld [vmem:[%s11438_s8 + $0x58] sm:$0xff] }
 0x27b   : > { %v3637_v54 = vsel %vm2660_vm7, %v3636_v11, %v3635_v12  ;;  %v3979_v9 = vrot.slane %v9803_v47, 6  ;;  %v3808_v1 = vsel %vm2651_vm4, %v3807_v5, %v3806_v32  ;;  %v3981_v36 = vrot.slane %v9864_v52, 5  ;;  %v4075_v11 = vld [vmem:[%s11438_s8 + $0x40] sm:$0xff]  ;;  %v5858_v48 = vld [vmem:[%s11438_s8 + $0x3d0] sm:$0xff]  ;;  %v5859_v5 = vld [vmem:[%s11438_s8 + $0x3d8] sm:$0xff] }
 0x27c   : > { %v3639_v31 = vsel %vm2663_vm8, %v3638_v19, %v3637_v54  ;;  %v3983_v51 = vrot.slane %v9912_v10, 4  ;;  %v3810_v30 = vsel %vm2654_vm5, %v3809_v18, %v3808_v1  ;;  %v3985_v2 = vrot.slane %v9957_v37, 3  ;;  %v5851_v37 = vld [vmem:[%s11438_s8 + $0x398] sm:$0xff]  ;;  %v4079_v18 = vld [vmem:[%s11438_s8 + $0x60] sm:$0xff]  ;;  %v4080_v12 = vld [vmem:[%s11438_s8 + $0x68] sm:$0xff] }
 0x27d   : > { %v3980_v47 = vsel %vm2645_vm2, %v3979_v9, %v3978_v26  ;;  %v3987_v24 = vrot.slane %v10008_v61, 2  ;;  %v3812_v52 = vsel %vm2657_vm6, %v3811_v4, %v3810_v30  ;;  %v3989_v13 = vrot.slane %v10113_v27, 1  ;;  %v5861_v54 = vld [vmem:[%s11438_s8 + $0x3e8] sm:$0xff]  ;;  %v4081_v32 = vld [vmem:[%s11438_s8 + $0x70] sm:$0xff]  ;;  %v4082_v26 = vld [vmem:[%s11438_s8 + $0x78] sm:$0xff] }
 0x27e   : > { %v3982_v10 = vsel %vm2648_vm3, %v3981_v36, %v3980_v47  ;;  %v3813_v16 = vsel %vm2660_vm7, %v10113_v27, %v3812_v52  ;;  %v7259_v20 = vpack.c.bf16 %v5849_v62, %v5848_v58  ;;  %v7262_v21 = vpack.c.bf16 %v5851_v37, %v5850_v39  ;;  %v5862_v1 = vld [vmem:[%s11438_s8 + $0x3f0] sm:$0xff]  ;;  %v5863_v36 = vld [vmem:[%s11438_s8 + $0x3f8] sm:$0xff]  ;;  %v10485_v30 = vld [vmem:[%s11437_s7] ss:$0 sm:$0xff] }
 0x27f   : > { %v3984_v45 = vsel %vm2651_vm4, %v3983_v51, %v3982_v10  ;;  %v3815_v61 = vsel %vm2663_vm8, %v3814_v0, %v3813_v16  ;;  %v7097_v53 = vpack.c.bf16 %v4072_v34, %v4071_v56  ;;  %v7265_v50 = vpack.c.bf16 %v5853_v14, %v5852_v23  ;;  %v5860_v0 = vld [vmem:[%s11438_s8 + $0x3e0] sm:$0xff]  ;;  %v5865_v16 = vld [vmem:[%s11438_s8 + $0x408] sm:$0xff]  ;;  %v5754_v39 = vld [vmem:[%s11438_s8 + $0x90] sm:$0xff] }
 0x280   : > { %6403 = vmatmul.mubr.msk.f32.vlgmr.msra.gmra.mrb[2].mxu1 %vm569_vm0, %v3463_v29  ;;  %v3986_v41 = vsel %vm2654_vm5, %v3985_v2, %v3984_v45  ;;  %7260 = vmatpush3.bf16.msra.mxu0 %v7259_v20  ;;  %v7100_v17 = vpack.c.bf16 %v4074_v60, %v4073_v8  ;;  %v7268_v63 = vpack.c.bf16 %v5855_v25, %v5854_v46  ;;  %v5752_v47 = vld [vmem:[%s11438_s8 + $0x80] sm:$0xff]  ;;  %v5753_v2 = vld [vmem:[%s11438_s8 + $0x88] sm:$0xff]  ;;  %v5755_v37 = vld [vmem:[%s11438_s8 + $0x98] sm:$0xff] }
 0x281   : > { %7077 = vmatpush3.bf16.msra.mxu1 %v10040_v40  ;;  %6416 = vmatprep.mubr.msk.f32.mxu1 %vm7953_vm1, %v7954_v55  ;;  %v3988_v27 = vsel %vm2657_vm6, %v3987_v24, %v3986_v41  ;;  %v4067_v40 = vld [vmem:[%s11438_s8] sm:$0xff]  ;;  %v7103_v19 = vpack.c.bf16 %v4076_v33, %v4075_v11  ;;  %v7271_v38 = vpack.c.bf16 %v5857_v15, %v5856_v6  ;;  %v5759_v56 = vld [vmem:[%s11438_s8 + $0xb8] sm:$0xff]  ;;  %v5761_v8 = vld [vmem:[%s11438_s8 + $0xc8] sm:$0xff] }
 0x282   : > { %7081 = vmatprep.subr.bf16.mxu1 %v7952_v59  ;;  %v3990_v43 = vsel %vm2660_vm7, %v3989_v13, %v3988_v27  ;;  %7261 = vmatprep.subr.bf16.mxu0 %v7952_v59  ;;  %v7106_v29 = vpack.c.bf16 %v4078_v42, %v4077_v7  ;;  %v7274_v35 = vpack.c.bf16 %v5859_v5, %v5858_v48  ;;  %v5864_v13 = vld [vmem:[%s11438_s8 + $0x400] sm:$0xff]  ;;  %v5866_v27 = vld [vmem:[%s11438_s8 + $0x410] sm:$0xff]  ;;  %v5871_v23 = vld [vmem:[%s11438_s8 + $0x438] sm:$0xff] }
 0x283   : > { %v3991_v44 = vsel %vm2663_vm8, %v10059_v49, %v3990_v43  ;;  %v4068_v49 = vld [vmem:[%s11438_s8 + $0x8] sm:$0xff]  ;;  %v7109_v4 = vpack.c.bf16 %v4080_v12, %v4079_v18  ;;  %v7277_v9 = vpack.c.bf16 %v5861_v54, %v5860_v0  ;;  %v7280_v51 = vpack.c.bf16 %v5863_v36, %v5862_v1  ;;  %v5867_v43 = vld [vmem:[%s11438_s8 + $0x418] sm:$0xff]  ;;  %v5872_v46 = vld [vmem:[%s11438_s8 + $0x440] sm:$0xff] }
 0x284   : > { %7263 = vmatpush3.bf16.msra.mxu0 %v7262_v21  ;;  %v7115_v45 = vpack.c.bf16 %v5753_v2, %v5752_v47  ;;  %v7118_v21 = vpack.c.bf16 %v5755_v37, %v5754_v39  ;;  %v5762_v11 = vld [vmem:[%s11438_s8 + $0xd0] sm:$0xff]  ;;  %v5763_v33 = vld [vmem:[%s11438_s8 + $0xd8] sm:$0xff]  ;;  %v5764_v7 = vld [vmem:[%s11438_s8 + $0xe0] sm:$0xff] }
 0x285   : > { %7264 = vmatprep.subr.bf16.mxu0 %v7952_v59  ;;  %v5875_v6 = vld [vmem:[%s11438_s8 + $0x458] sm:$0xff]  ;;  %v7130_v15 = vpack.c.bf16 %v5763_v33, %v5762_v11  ;;  %v5765_v42 = vld [vmem:[%s11438_s8 + $0xe8] sm:$0xff]  ;;  %v5766_v18 = vld [vmem:[%s11438_s8 + $0xf0] sm:$0xff] }
 0x286   : > { %v5877_v48 = vld [vmem:[%s11438_s8 + $0x468] sm:$0xff]  ;;  %v7133_v5 = vpack.c.bf16 %v5765_v42, %v5764_v7  ;;  %v5767_v12 = vld [vmem:[%s11438_s8 + $0xf8] sm:$0xff]  ;;  %v5884_v37 = vld [vmem:[%s11438_s8 + $0x4a0] sm:$0xff] }
 0x287   : > { %v5879_v0 = vld [vmem:[%s11438_s8 + $0x478] sm:$0xff]  ;;  %v7136_v54 = vpack.c.bf16 %v5767_v12, %v5766_v18  ;;  %v5881_v1 = vld [vmem:[%s11438_s8 + $0x488] sm:$0xff]  ;;  %v5892_v11 = vld [vmem:[%s11438_s8 + $0x4e0] sm:$0xff] }
 0x288   : > { %6417 = vmatmul.mubr.msk.f32.vlgmr.msra.gmra.mrb[2].mxu1 %vm569_vm0, %v3639_v31  ;;  %7266 = vmatpush3.bf16.msra.mxu0 %v7265_v50  ;;  %v7112_v31 = vpack.c.bf16 %v4082_v26, %v4081_v32  ;;  %v5760_v50 = vld [vmem:[%s11438_s8 + $0xc0] sm:$0xff]  ;;  %v5769_v26 = vld [vmem:[%s11438_s8 + $0x108] sm:$0xff]  ;;  %v5894_v7 = vld [vmem:[%s11438_s8 + $0x4f0] sm:$0xff] }
 0x289   : > { %7083 = vmatpush3.bf16.msra.mxu1 %v10068_v28  ;;  %6430 = vmatprep.mubr.msk.f32.mxu1 %vm7953_vm1, %v7954_v55  ;;  %v7091_v28 = vpack.c.bf16 %v4068_v49, %v4067_v40  ;;  %v5757_v40 = vld [vmem:[%s11438_s8 + $0xa8] sm:$0xff]  ;;  %v7286_v49 = vpack.c.bf16 %v5867_v43, %v5866_v27  ;;  %v7127_v25 = vpack.c.bf16 %v5761_v8, %v5760_v50  ;;  %v5768_v32 = vld [vmem:[%s11438_s8 + $0x100] sm:$0xff]  ;;  %v5774_v27 = vld [vmem:[%s11438_s8 + $0x130] sm:$0xff] }
 0x28a   : > { %7087 = vmatprep.subr.bf16.mxu1 %v7952_v59  ;;  %7267 = vmatprep.subr.bf16.mxu0 %v7952_v59  ;;  %v7139_v36 = vpack.c.bf16 %v5769_v26, %v5768_v32  ;;  %v5775_v43 = vld [vmem:[%s11438_s8 + $0x138] sm:$0xff]  ;;  %v5890_v50 = vld [vmem:[%s11438_s8 + $0x4d0] sm:$0xff]  ;;  %v5893_v33 = vld [vmem:[%s11438_s8 + $0x4e8] sm:$0xff] }
 0x28b   : > { %v5891_v8 = vld [vmem:[%s11438_s8 + $0x4d8] sm:$0xff]  ;;  %v5896_v18 = vld [vmem:[%s11438_s8 + $0x500] sm:$0xff]  ;;  %v5897_v12 = vld [vmem:[%s11438_s8 + $0x508] sm:$0xff] }
 0x28c   : > { %7269 = vmatpush3.bf16.msra.mxu0 %v7268_v63  ;;  %v5895_v42 = vld [vmem:[%s11438_s8 + $0x4f8] sm:$0xff]  ;;  %v7331_v32 = vpack.c.bf16 %v5897_v12, %v5896_v18  ;;  %v5804_v12 = vld [vmem:[%s11438_s8 + $0x220] sm:$0xff] }
 0x28d   : > { %7270 = vmatprep.subr.bf16.mxu0 %v7952_v59 }
 0x290   : > { %6431 = vmatmul.mubr.msk.f32.vlgmr.msra.gmra.mrb[2].mxu1 %vm569_vm0, %v3815_v61  ;;  %7272 = vmatpush3.bf16.msra.mxu0 %v7271_v38  ;;  %v7283_v61 = vpack.c.bf16 %v5865_v16, %v5864_v13  ;;  %v5883_v13 = vld [vmem:[%s11438_s8 + $0x498] sm:$0xff] }
 0x291   : > { %7089 = vmatpush3.bf16.msra.mxu1 %v10123_v3  ;;  %6444 = vmatprep.mubr.msk.f32.mxu1 %vm7953_vm1, %v7954_v55  ;;  %v4070_v3 = vld [vmem:[%s11438_s8 + $0x18] sm:$0xff] }
 0x292   : > { %7090 = vmatprep.subr.bf16.mxu1 %v7952_v59  ;;  %v7094_v22 = vpack.c.bf16 %v4070_v3, %v4069_v57  ;;  %7273 = vmatprep.subr.bf16.mxu0 %v7952_v59  ;;  %v5869_v57 = vld [vmem:[%s11438_s8 + $0x428] sm:$0xff] }
 0x294   : > { %7275 = vmatpush3.bf16.msra.mxu0 %v7274_v35 }
 0x295   : > { %7276 = vmatprep.subr.bf16.mxu0 %v7952_v59 }
 0x298   : > { %6445 = vmatmul.mubr.msk.f32.vlgmr.msra.gmra.mrb[2].mxu1 %vm569_vm0, %v3991_v44  ;;  %7278 = vmatpush3.bf16.msra.mxu0 %v7277_v9  ;;  %v5756_v44 = vld [vmem:[%s11438_s8 + $0xa0] sm:$0xff] }
 0x299   : > { %7092 = vmatpush3.bf16.msra.mxu1 %v7091_v28  ;;  %6479 = vmatprep.mubr.msk.f32.mxu1 %vm7953_vm1, %v7954_v55  ;;  %v5868_v28 = vld [vmem:[%s11438_s8 + $0x420] sm:$0xff]  ;;  %v7121_v3 = vpack.c.bf16 %v5757_v40, %v5756_v44  ;;  %v5886_v44 = vld [vmem:[%s11438_s8 + $0x4b0] sm:$0xff]  ;;  %v5887_v40 = vld [vmem:[%s11438_s8 + $0x4b8] sm:$0xff] }
 0x29a   : > { %7093 = vmatprep.subr.bf16.mxu1 %v7952_v59  ;;  %7279 = vmatprep.subr.bf16.mxu0 %v7952_v59  ;;  %v7289_v34 = vpack.c.bf16 %v5869_v57, %v5868_v28  ;;  %v5776_v28 = vld [vmem:[%s11438_s8 + $0x140] sm:$0xff]  ;;  %v5777_v57 = vld [vmem:[%s11438_s8 + $0x148] sm:$0xff] }
 0x29c   : > { %7281 = vmatpush3.bf16.msra.mxu0 %v7280_v51 }
 0x29d   : > { %7095 = vmatpush3.bf16.msra.mxu1 %v7094_v22  ;;  %7282 = vmatprep.subr.bf16.mxu0 %v7952_v59  ;;  %v5758_v22 = vld [vmem:[%s11438_s8 + $0xb0] sm:$0xff] }
 0x29e   : > { %7096 = vmatprep.subr.bf16.mxu1 %v7952_v59  ;;  %v7124_v14 = vpack.c.bf16 %v5759_v56, %v5758_v22  ;;  %v5888_v22 = vld [vmem:[%s11438_s8 + $0x4c0] sm:$0xff]  ;;  %v5889_v56 = vld [vmem:[%s11438_s8 + $0x4c8] sm:$0xff] }
 0x2a1   : > { %7098 = vmatpush3.bf16.msra.mxu1 %v7097_v53  ;;  %v5870_v53 = vld [vmem:[%s11438_s8 + $0x430] sm:$0xff] }
 0x2a2   : > { %7099 = vmatprep.subr.bf16.mxu1 %v7952_v59  ;;  %v7292_v60 = vpack.c.bf16 %v5871_v23, %v5870_v53  ;;  %v5778_v53 = vld [vmem:[%s11438_s8 + $0x150] sm:$0xff]  ;;  %v5779_v23 = vld [vmem:[%s11438_s8 + $0x158] sm:$0xff] }
 0x2a5   : > { %7101 = vmatpush3.bf16.msra.mxu1 %v7100_v17  ;;  %v5873_v17 = vld [vmem:[%s11438_s8 + $0x448] sm:$0xff] }
 0x2a6   : > { %7102 = vmatprep.subr.bf16.mxu1 %v7952_v59  ;;  %v7295_v63 = vpack.c.bf16 %v5873_v17, %v5872_v46  ;;  %v5780_v46 = vld [vmem:[%s11438_s8 + $0x160] sm:$0xff]  ;;  %v5781_v17 = vld [vmem:[%s11438_s8 + $0x168] sm:$0xff] }
 0x2a9   : > { %7104 = vmatpush3.bf16.msra.mxu1 %v7103_v19  ;;  %v5874_v19 = vld [vmem:[%s11438_s8 + $0x450] sm:$0xff] }
 0x2aa   : > { %7105 = vmatprep.subr.bf16.mxu1 %v7952_v59  ;;  %v7298_v38 = vpack.c.bf16 %v5875_v6, %v5874_v19  ;;  %v5782_v19 = vld [vmem:[%s11438_s8 + $0x170] sm:$0xff]  ;;  %v5783_v6 = vld [vmem:[%s11438_s8 + $0x178] sm:$0xff] }
 0x2ad   : > { %7107 = vmatpush3.bf16.msra.mxu1 %v7106_v29  ;;  %v5876_v29 = vld [vmem:[%s11438_s8 + $0x460] sm:$0xff] }
 0x2ae   : > { %7108 = vmatprep.subr.bf16.mxu1 %v7952_v59  ;;  %v7301_v35 = vpack.c.bf16 %v5877_v48, %v5876_v29  ;;  %v5784_v29 = vld [vmem:[%s11438_s8 + $0x180] sm:$0xff]  ;;  %v5785_v48 = vld [vmem:[%s11438_s8 + $0x188] sm:$0xff] }
 0x2b1   : > { %7110 = vmatpush3.bf16.msra.mxu1 %v7109_v4  ;;  %v5878_v4 = vld [vmem:[%s11438_s8 + $0x470] sm:$0xff] }
 0x2b2   : > { %7111 = vmatprep.subr.bf16.mxu1 %v7952_v59  ;;  %v7304_v9 = vpack.c.bf16 %v5879_v0, %v5878_v4  ;;  %v5786_v0 = vld [vmem:[%s11438_s8 + $0x190] sm:$0xff] }
 0x2b5   : > { %7113 = vmatpush3.bf16.msra.mxu1 %v7112_v31  ;;  %v5880_v31 = vld [vmem:[%s11438_s8 + $0x480] sm:$0xff] }
 0x2b6   : > { %7114 = vmatprep.subr.bf16.mxu1 %v7952_v59  ;;  %v7307_v2 = vpack.c.bf16 %v5881_v1, %v5880_v31  ;;  %v5899_v31 = vld [vmem:[%s11438_s8 + $0x518] sm:$0xff] }
 0x33c   : > { %v3973_v58 = vpop.f32.mrb[0].mxu0 }
 0x33d   : > { %v6439_v62 = vpop.f32.mrb[1].mxu0 }
 0x33e   : > { %v5771_v62 = vld [vmem:[%s11438_s8 + $0x118] sm:$0xff] }
 0x347   : > { %v3269_v24 = vpop.f32.mrb[0].mxu1 }
 0x348   : > { %v7498_v52 = vadd.f32 %v10485_v30, %v3269_v24  ;;  %v6383_v10 = vpop.f32.mrb[1].mxu1 }
 0x349   : > { %v5882_v10 = vld [vmem:[%s11438_s8 + $0x490] sm:$0xff] }
 0x34a   : > { %v10500_v20 = vadd.f32 %v7498_v52, %v3973_v58  ;;  %v5770_v58 = vld [vmem:[%s11438_s8 + $0x110] sm:$0xff]  ;;  %v7310_v39 = vpack.c.bf16 %v5883_v13, %v5882_v10  ;;  %v5791_v10 = vld [vmem:[%s11438_s8 + $0x1b8] sm:$0xff] }
 0x34b   : > { %v7142_v16 = vpack.c.bf16 %v5771_v62, %v5770_v58  ;;  %v5900_v62 = vld [vmem:[%s11438_s8 + $0x520] sm:$0xff] }
 0x34c   : > { %6480 = vmatmul.mubr.f32.vlgmr.msra.gmra.mrb[4].mxu1 %v10500_v20  ;;  %v4712_v41 = vrot.slane %v10500_v20, 7  ;;  %v4172_v51 = vrot.slane %v10500_v20, 1  ;;  %v4262_v4 = vrot.slane %v10500_v20, 2 }
 0x34d   : > { %7116 = vmatpush3.bf16.msra.mxu1 %v7115_v45  ;;  %6514 = vmatprep.mubr.msk.f32.mxu1 %vm7953_vm1, %v7954_v55  ;;  %v5773_v45 = vld [vmem:[%s11438_s8 + $0x128] sm:$0xff] }
 0x34e   : > { %6725 = vmatmul.mubr.f32.vlgmr.msra.gmra.mrb[2].mxu0 %v4712_v41  ;;  %7117 = vmatprep.subr.bf16.mxu1 %v7952_v59 }
 0x34f   : > { %7284 = vmatpush3.bf16.msra.mxu0 %v7283_v61  ;;  %6759 = vmatprep.mubr.msk.f32.mxu0 %vm7953_vm1, %v7954_v55  ;;  %v5885_v61 = vld [vmem:[%s11438_s8 + $0x4a8] sm:$0xff] }
 0x350   : > { %7285 = vmatprep.subr.bf16.mxu0 %v7952_v59 }
 0x351   : > { %7119 = vmatpush3.bf16.msra.mxu1 %v7118_v21  ;;  %v7313_v21 = vpack.c.bf16 %v5885_v61, %v5884_v37  ;;  %v5793_v37 = vld [vmem:[%s11438_s8 + $0x1c8] sm:$0xff] }
 0x352   : > { %7120 = vmatprep.subr.bf16.mxu1 %v7952_v59 }
 0x353   : > { %7287 = vmatpush3.bf16.msra.mxu0 %v7286_v49  ;;  %v7148_v49 = vpack.c.bf16 %v5775_v43, %v5774_v27  ;;  %v5905_v27 = vld [vmem:[%s11438_s8 + $0x548] sm:$0xff] }
 0x354   : > { %7288 = vmatprep.subr.bf16.mxu0 %v7952_v59 }
 0x355   : > { %7122 = vmatpush3.bf16.msra.mxu1 %v7121_v3  ;;  %v7316_v3 = vpack.c.bf16 %v5887_v40, %v5886_v44  ;;  %v5795_v44 = vld [vmem:[%s11438_s8 + $0x1d8] sm:$0xff] }
 0x356   : > { %7123 = vmatprep.subr.bf16.mxu1 %v7952_v59 }
 0x357   : > { %7290 = vmatpush3.bf16.msra.mxu0 %v7289_v34  ;;  %v7151_v34 = vpack.c.bf16 %v5777_v57, %v5776_v28  ;;  %v5907_v28 = vld [vmem:[%s11438_s8 + $0x558] sm:$0xff] }
 0x358   : > { %7291 = vmatprep.subr.bf16.mxu0 %v7952_v59 }
 0x359   : > { %7125 = vmatpush3.bf16.msra.mxu1 %v7124_v14  ;;  %v7319_v14 = vpack.c.bf16 %v5889_v56, %v5888_v22  ;;  %v5797_v22 = vld [vmem:[%s11438_s8 + $0x1e8] sm:$0xff] }
 0x35a   : > { %7126 = vmatprep.subr.bf16.mxu1 %v7952_v59 }
 0x35b   : > { %7293 = vmatpush3.bf16.msra.mxu0 %v7292_v60  ;;  %v7154_v60 = vpack.c.bf16 %v5779_v23, %v5778_v53  ;;  %v5909_v53 = vld [vmem:[%s11438_s8 + $0x568] sm:$0xff] }
 0x35c   : > { %7294 = vmatprep.subr.bf16.mxu0 %v7952_v59 }
 0x35d   : > { %7128 = vmatpush3.bf16.msra.mxu1 %v7127_v25  ;;  %v7322_v25 = vpack.c.bf16 %v5891_v8, %v5890_v50  ;;  %v5799_v50 = vld [vmem:[%s11438_s8 + $0x1f8] sm:$0xff] }
 0x35e   : > { %7129 = vmatprep.subr.bf16.mxu1 %v7952_v59 }
 0x35f   : > { %7296 = vmatpush3.bf16.msra.mxu0 %v7295_v63  ;;  %v7157_v63 = vpack.c.bf16 %v5781_v17, %v5780_v46  ;;  %v5911_v46 = vld [vmem:[%s11438_s8 + $0x578] sm:$0xff] }
 0x360   : > { %7297 = vmatprep.subr.bf16.mxu0 %v7952_v59 }
 0x361   : > { %7131 = vmatpush3.bf16.msra.mxu1 %v7130_v15  ;;  %v7325_v15 = vpack.c.bf16 %v5893_v33, %v5892_v11  ;;  %v5801_v11 = vld [vmem:[%s11438_s8 + $0x208] sm:$0xff] }
 0x362   : > { %7132 = vmatprep.subr.bf16.mxu1 %v7952_v59 }
 0x363   : > { %7299 = vmatpush3.bf16.msra.mxu0 %v7298_v38  ;;  %v7160_v38 = vpack.c.bf16 %v5783_v6, %v5782_v19  ;;  %v5913_v19 = vld [vmem:[%s11438_s8 + $0x588] sm:$0xff] }
 0x364   : > { %7300 = vmatprep.subr.bf16.mxu0 %v7952_v59 }
 0x365   : > { %7134 = vmatpush3.bf16.msra.mxu1 %v7133_v5  ;;  %v7328_v5 = vpack.c.bf16 %v5895_v42, %v5894_v7  ;;  %v5802_v7 = vld [vmem:[%s11438_s8 + $0x210] sm:$0xff]  ;;  %v5803_v42 = vld [vmem:[%s11438_s8 + $0x218] sm:$0xff] }
 0x366   : > { %7135 = vmatprep.subr.bf16.mxu1 %v7952_v59  ;;  %v7190_v18 = vpack.c.bf16 %v5803_v42, %v5802_v7  ;;  %v5932_v7 = vld [vmem:[%s11438_s8 + $0x620] sm:$0xff]  ;;  %v5933_v42 = vld [vmem:[%s11438_s8 + $0x628] sm:$0xff] }
 0x367   : > { %7302 = vmatpush3.bf16.msra.mxu0 %v7301_v35  ;;  %v7163_v35 = vpack.c.bf16 %v5785_v48, %v5784_v29  ;;  %v5914_v48 = vld [vmem:[%s11438_s8 + $0x590] sm:$0xff] }
 0x368   : > { %7303 = vmatprep.subr.bf16.mxu0 %v7952_v59 }
 0x369   : > { %7137 = vmatpush3.bf16.msra.mxu1 %v7136_v54  ;;  %v5787_v54 = vld [vmem:[%s11438_s8 + $0x198] sm:$0xff] }
 0x36a   : > { %7138 = vmatprep.subr.bf16.mxu1 %v7952_v59  ;;  %v7166_v1 = vpack.c.bf16 %v5787_v54, %v5786_v0  ;;  %v5916_v0 = vld [vmem:[%s11438_s8 + $0x5a0] sm:$0xff]  ;;  %v5917_v54 = vld [vmem:[%s11438_s8 + $0x5a8] sm:$0xff] }
 0x36b   : > { %7305 = vmatpush3.bf16.msra.mxu0 %v7304_v9  ;;  %v4060_v47 = vpop.f32.mrb[2].mxu1  ;;  %v5898_v9 = vld [vmem:[%s11438_s8 + $0x510] sm:$0xff] }
 0x36c   : > { %v10627_v24 = vadd.f32 %v10485_v30, %v4060_v47  ;;  %6515 = vmatmul.mubr.f32.vlgmr.msra.gmra.mrb[4].mxu1 %v4172_v51  ;;  %v6446_v52 = vpop.f32.mrb[3].mxu1  ;;  %7306 = vmatprep.subr.bf16.mxu0 %v7952_v59  ;;  %v5772_v30 = vld [vmem:[%s11438_s8 + $0x120] sm:$0xff]  ;;  %v5789_v51 = vld [vmem:[%s11438_s8 + $0x1a8] sm:$0xff]  ;;  %v7334_v58 = vpack.c.bf16 %v5899_v31, %v5898_v9  ;;  %v5807_v9 = vld [vmem:[%s11438_s8 + $0x238] sm:$0xff]  ;;  %v7361_v31 = vpack.c.bf16 %v5917_v54, %v5916_v0 }
 0x36d   : > { %7140 = vmatpush3.bf16.msra.mxu1 %v7139_v36  ;;  %6549 = vmatprep.mubr.msk.f32.mxu1 %vm7953_vm1, %v7954_v55  ;;  %v7145_v41 = vpack.c.bf16 %v5773_v45, %v5772_v30  ;;  %v5788_v36 = vld [vmem:[%s11438_s8 + $0x1a0] sm:$0xff]  ;;  %v5901_v47 = vld [vmem:[%s11438_s8 + $0x528] sm:$0xff]  ;;  %v5790_v52 = vld [vmem:[%s11438_s8 + $0x1b0] sm:$0xff] }
 0x36e   : > { %6760 = vmatmul.mubr.f32.vlgmr.msra.gmra.mrb[2].mxu0 %v10627_v24  ;;  %7141 = vmatprep.subr.bf16.mxu1 %v7952_v59  ;;  %v4891_v26 = vrot.slane %v10627_v24, 1  ;;  %v7337_v13 = vpack.c.bf16 %v5901_v47, %v5900_v62  ;;  %v5903_v30 = vld [vmem:[%s11438_s8 + $0x538] sm:$0xff]  ;;  %v7172_v45 = vpack.c.bf16 %v5791_v10, %v5790_v52  ;;  %v4981_v29 = vrot.slane %v10627_v24, 2  ;;  %v5809_v62 = vld [vmem:[%s11438_s8 + $0x248] sm:$0xff] }
 0x36f   : > { %7308 = vmatpush3.bf16.msra.mxu0 %v7307_v2  ;;  %6794 = vmatprep.mubr.msk.f32.mxu0 %vm7953_vm1, %v7954_v55  ;;  %v7169_v2 = vpack.c.bf16 %v5789_v51, %v5788_v36  ;;  %v5919_v36 = vld [vmem:[%s11438_s8 + $0x5b8] sm:$0xff]  ;;  %v5921_v52 = vld [vmem:[%s11438_s8 + $0x5c8] sm:$0xff] }
 0x370   : > { %7309 = vmatprep.subr.bf16.mxu0 %v7952_v59  ;;  %v5825_v0 = vld [vmem:[%s11438_s8 + $0x2c8] sm:$0xff] }
 0x371   : > { %7143 = vmatpush3.bf16.msra.mxu1 %v7142_v16  ;;  %v5902_v16 = vld [vmem:[%s11438_s8 + $0x530] sm:$0xff] }
 0x372   : > { %7144 = vmatprep.subr.bf16.mxu1 %v7952_v59  ;;  %v7340_v61 = vpack.c.bf16 %v5903_v30, %v5902_v16  ;;  %v5811_v16 = vld [vmem:[%s11438_s8 + $0x258] sm:$0xff] }
 0x373   : > { %7311 = vmatpush3.bf16.msra.mxu0 %v7310_v39  ;;  %v5792_v39 = vld [vmem:[%s11438_s8 + $0x1c0] sm:$0xff] }
 0x374   : > { %7312 = vmatprep.subr.bf16.mxu0 %v7952_v59  ;;  %v7175_v43 = vpack.c.bf16 %v5793_v37, %v5792_v39  ;;  %v5923_v39 = vld [vmem:[%s11438_s8 + $0x5d8] sm:$0xff] }
 0x375   : > { %7146 = vmatpush3.bf16.msra.mxu1 %v7145_v41  ;;  %v5904_v41 = vld [vmem:[%s11438_s8 + $0x540] sm:$0xff] }
 0x376   : > { %7147 = vmatprep.subr.bf16.mxu1 %v7952_v59  ;;  %v7343_v40 = vpack.c.bf16 %v5905_v27, %v5904_v41  ;;  %v5813_v41 = vld [vmem:[%s11438_s8 + $0x268] sm:$0xff] }
 0x377   : > { %7314 = vmatpush3.bf16.msra.mxu0 %v7313_v21  ;;  %v5794_v21 = vld [vmem:[%s11438_s8 + $0x1d0] sm:$0xff] }
 0x378   : > { %7315 = vmatprep.subr.bf16.mxu0 %v7952_v59  ;;  %v7178_v57 = vpack.c.bf16 %v5795_v44, %v5794_v21  ;;  %v5925_v21 = vld [vmem:[%s11438_s8 + $0x5e8] sm:$0xff] }
 0x379   : > { %7149 = vmatpush3.bf16.msra.mxu1 %v7148_v49  ;;  %v5906_v49 = vld [vmem:[%s11438_s8 + $0x550] sm:$0xff] }
 0x37a   : > { %7150 = vmatprep.subr.bf16.mxu1 %v7952_v59  ;;  %v7346_v56 = vpack.c.bf16 %v5907_v28, %v5906_v49  ;;  %v5815_v49 = vld [vmem:[%s11438_s8 + $0x278] sm:$0xff] }
 0x37b   : > { %7317 = vmatpush3.bf16.msra.mxu0 %v7316_v3  ;;  %v5796_v3 = vld [vmem:[%s11438_s8 + $0x1e0] sm:$0xff] }
 0x37c   : > { %7318 = vmatprep.subr.bf16.mxu0 %v7952_v59  ;;  %v7181_v23 = vpack.c.bf16 %v5797_v22, %v5796_v3  ;;  %v5927_v3 = vld [vmem:[%s11438_s8 + $0x5f8] sm:$0xff] }
 0x37d   : > { %7152 = vmatpush3.bf16.msra.mxu1 %v7151_v34  ;;  %v5908_v34 = vld [vmem:[%s11438_s8 + $0x560] sm:$0xff] }
 0x37e   : > { %7153 = vmatprep.subr.bf16.mxu1 %v7952_v59  ;;  %v7349_v8 = vpack.c.bf16 %v5909_v53, %v5908_v34  ;;  %v5817_v34 = vld [vmem:[%s11438_s8 + $0x288] sm:$0xff] }
 0x37f   : > { %7320 = vmatpush3.bf16.msra.mxu0 %v7319_v14  ;;  %v5798_v14 = vld [vmem:[%s11438_s8 + $0x1f0] sm:$0xff] }
 0x380   : > { %7321 = vmatprep.subr.bf16.mxu0 %v7952_v59  ;;  %v7184_v17 = vpack.c.bf16 %v5799_v50, %v5798_v14  ;;  %v5929_v14 = vld [vmem:[%s11438_s8 + $0x608] sm:$0xff] }
 0x381   : > { %7155 = vmatpush3.bf16.msra.mxu1 %v7154_v60  ;;  %v5910_v60 = vld [vmem:[%s11438_s8 + $0x570] sm:$0xff] }
 0x382   : > { %7156 = vmatprep.subr.bf16.mxu1 %v7952_v59  ;;  %v7352_v33 = vpack.c.bf16 %v5911_v46, %v5910_v60  ;;  %v5818_v60 = vld [vmem:[%s11438_s8 + $0x290] sm:$0xff]  ;;  %v5819_v46 = vld [vmem:[%s11438_s8 + $0x298] sm:$0xff] }
 0x383   : > { %7323 = vmatpush3.bf16.msra.mxu0 %v7322_v25  ;;  %v5800_v25 = vld [vmem:[%s11438_s8 + $0x200] sm:$0xff] }
 0x384   : > { %7324 = vmatprep.subr.bf16.mxu0 %v7952_v59  ;;  %v7187_v6 = vpack.c.bf16 %v5801_v11, %v5800_v25  ;;  %v5071_v25 = vrot.slane %v10627_v24, 3  ;;  %v5930_v11 = vld [vmem:[%s11438_s8 + $0x610] sm:$0xff] }
 0x385   : > { %7158 = vmatpush3.bf16.msra.mxu1 %v7157_v63  ;;  %v5912_v63 = vld [vmem:[%s11438_s8 + $0x580] sm:$0xff] }
 0x386   : > { %7159 = vmatprep.subr.bf16.mxu1 %v7952_v59 }
 0x387   : > { %7326 = vmatpush3.bf16.msra.mxu0 %v7325_v15  ;;  %v4352_v15 = vrot.slane %v10500_v20, 3 }
 0x388   : > { %7327 = vmatprep.subr.bf16.mxu0 %v7952_v59 }
 0x389   : > { %7161 = vmatpush3.bf16.msra.mxu1 %v7160_v38  ;;  %v7355_v38 = vpack.c.bf16 %v5913_v19, %v5912_v63  ;;  %v7214_v63 = vpack.c.bf16 %v5819_v46, %v5818_v60  ;;  %v5820_v19 = vld [vmem:[%s11438_s8 + $0x2a0] sm:$0xff]  ;;  %v5949_v46 = vld [vmem:[%s11438_s8 + $0x6a8] sm:$0xff] }
 0x38a   : > { %7162 = vmatprep.subr.bf16.mxu1 %v7952_v59  ;;  %v5948_v60 = vld [vmem:[%s11438_s8 + $0x6a0] sm:$0xff] }
 0x38b   : > { %7329 = vmatpush3.bf16.msra.mxu0 %v7328_v5  ;;  %v5915_v5 = vld [vmem:[%s11438_s8 + $0x598] sm:$0xff] }
 0x38c   : > { %6550 = vmatmul.mubr.f32.vlgmr.msra.gmra.mrb[4].mxu1 %v4262_v4  ;;  %7330 = vmatprep.subr.bf16.mxu0 %v7952_v59  ;;  %v7358_v4 = vpack.c.bf16 %v5915_v5, %v5914_v48  ;;  %v5823_v48 = vld [vmem:[%s11438_s8 + $0x2b8] sm:$0xff]  ;;  %v7385_v5 = vpack.c.bf16 %v5933_v42, %v5932_v7  ;;  %v5841_v7 = vld [vmem:[%s11438_s8 + $0x348] sm:$0xff] }
 0x38d   : > { %7164 = vmatpush3.bf16.msra.mxu1 %v7163_v35  ;;  %6584 = vmatprep.mubr.msk.f32.mxu1 %vm7953_vm1, %v7954_v55  ;;  %v5805_v35 = vld [vmem:[%s11438_s8 + $0x228] sm:$0xff] }
 0x38e   : > { %6795 = vmatmul.mubr.f32.vlgmr.msra.gmra.mrb[2].mxu0 %v4891_v26  ;;  %7165 = vmatprep.subr.bf16.mxu1 %v7952_v59  ;;  %v5806_v26 = vld [vmem:[%s11438_s8 + $0x230] sm:$0xff] }
 0x38f   : > { %7332 = vmatpush3.bf16.msra.mxu0 %v7331_v32  ;;  %6829 = vmatprep.mubr.msk.f32.mxu0 %vm7953_vm1, %v7954_v55  ;;  %v7193_v32 = vpack.c.bf16 %v5805_v35, %v5804_v12  ;;  %v7196_v51 = vpack.c.bf16 %v5807_v9, %v5806_v26  ;;  %v5935_v12 = vld [vmem:[%s11438_s8 + $0x638] sm:$0xff]  ;;  %v5937_v26 = vld [vmem:[%s11438_s8 + $0x648] sm:$0xff] }
 0x390   : > { %7333 = vmatprep.subr.bf16.mxu0 %v7952_v59 }
 0x391   : > { %7167 = vmatpush3.bf16.msra.mxu1 %v7166_v1  ;;  %v5918_v1 = vld [vmem:[%s11438_s8 + $0x5b0] sm:$0xff] }
 0x392   : > { %7168 = vmatprep.subr.bf16.mxu1 %v7952_v59  ;;  %v7364_v47 = vpack.c.bf16 %v5919_v36, %v5918_v1  ;;  %v5827_v1 = vld [vmem:[%s11438_s8 + $0x2d8] sm:$0xff] }
 0x393   : > { %7335 = vmatpush3.bf16.msra.mxu0 %v7334_v58  ;;  %v5808_v58 = vld [vmem:[%s11438_s8 + $0x240] sm:$0xff] }
 0x394   : > { %7336 = vmatprep.subr.bf16.mxu0 %v7952_v59  ;;  %v7199_v10 = vpack.c.bf16 %v5809_v62, %v5808_v58  ;;  %v5939_v58 = vld [vmem:[%s11438_s8 + $0x658] sm:$0xff] }
 0x395   : > { %7170 = vmatpush3.bf16.msra.mxu1 %v7169_v2  ;;  %v5920_v2 = vld [vmem:[%s11438_s8 + $0x5c0] sm:$0xff] }
 0x396   : > { %7171 = vmatprep.subr.bf16.mxu1 %v7952_v59  ;;  %v7367_v30 = vpack.c.bf16 %v5921_v52, %v5920_v2  ;;  %v5829_v2 = vld [vmem:[%s11438_s8 + $0x2e8] sm:$0xff] }
 0x397   : > { %7338 = vmatpush3.bf16.msra.mxu0 %v7337_v13  ;;  %v5810_v13 = vld [vmem:[%s11438_s8 + $0x250] sm:$0xff] }
 0x398   : > { %7339 = vmatprep.subr.bf16.mxu0 %v7952_v59  ;;  %v7202_v37 = vpack.c.bf16 %v5811_v16, %v5810_v13  ;;  %v5941_v13 = vld [vmem:[%s11438_s8 + $0x668] sm:$0xff] }
 0x399   : > { %7173 = vmatpush3.bf16.msra.mxu1 %v7172_v45  ;;  %v5922_v45 = vld [vmem:[%s11438_s8 + $0x5d0] sm:$0xff] }
 0x39a   : > { %7174 = vmatprep.subr.bf16.mxu1 %v7952_v59  ;;  %v7370_v27 = vpack.c.bf16 %v5923_v39, %v5922_v45  ;;  %v5831_v45 = vld [vmem:[%s11438_s8 + $0x2f8] sm:$0xff] }
 0x39b   : > { %7341 = vmatpush3.bf16.msra.mxu0 %v7340_v61  ;;  %v5812_v61 = vld [vmem:[%s11438_s8 + $0x260] sm:$0xff] }
 0x39c   : > { %7342 = vmatprep.subr.bf16.mxu0 %v7952_v59  ;;  %v7205_v44 = vpack.c.bf16 %v5813_v41, %v5812_v61  ;;  %v5943_v61 = vld [vmem:[%s11438_s8 + $0x678] sm:$0xff] }
 0x39d   : > { %7176 = vmatpush3.bf16.msra.mxu1 %v7175_v43  ;;  %v5924_v43 = vld [vmem:[%s11438_s8 + $0x5e0] sm:$0xff] }
 0x39e   : > { %7177 = vmatprep.subr.bf16.mxu1 %v7952_v59  ;;  %v7373_v28 = vpack.c.bf16 %v5925_v21, %v5924_v43  ;;  %v5833_v43 = vld [vmem:[%s11438_s8 + $0x308] sm:$0xff] }
 0x39f   : > { %7344 = vmatpush3.bf16.msra.mxu0 %v7343_v40  ;;  %v5814_v40 = vld [vmem:[%s11438_s8 + $0x270] sm:$0xff] }
 0x3a0   : > { %7345 = vmatprep.subr.bf16.mxu0 %v7952_v59  ;;  %v7208_v22 = vpack.c.bf16 %v5815_v49, %v5814_v40  ;;  %v5945_v40 = vld [vmem:[%s11438_s8 + $0x688] sm:$0xff] }
 0x3a1   : > { %7179 = vmatpush3.bf16.msra.mxu1 %v7178_v57  ;;  %v5926_v57 = vld [vmem:[%s11438_s8 + $0x5f0] sm:$0xff] }
 0x3a2   : > { %7180 = vmatprep.subr.bf16.mxu1 %v7952_v59  ;;  %v7376_v53 = vpack.c.bf16 %v5927_v3, %v5926_v57  ;;  %v5834_v57 = vld [vmem:[%s11438_s8 + $0x310] sm:$0xff]  ;;  %v5835_v3 = vld [vmem:[%s11438_s8 + $0x318] sm:$0xff] }
 0x3a3   : > { %7347 = vmatpush3.bf16.msra.mxu0 %v7346_v56  ;;  %v5816_v56 = vld [vmem:[%s11438_s8 + $0x280] sm:$0xff] }
 0x3a4   : > { %7348 = vmatprep.subr.bf16.mxu0 %v7952_v59  ;;  %v7211_v50 = vpack.c.bf16 %v5817_v34, %v5816_v56  ;;  %v5161_v56 = vrot.slane %v10627_v24, 4  ;;  %v5946_v34 = vld [vmem:[%s11438_s8 + $0x690] sm:$0xff] }
 0x3a5   : > { %7182 = vmatpush3.bf16.msra.mxu1 %v7181_v23  ;;  %v5928_v23 = vld [vmem:[%s11438_s8 + $0x600] sm:$0xff] }
 0x3a6   : > { %7183 = vmatprep.subr.bf16.mxu1 %v7952_v59 }
 0x3a7   : > { %7350 = vmatpush3.bf16.msra.mxu0 %v7349_v8  ;;  %v4442_v8 = vrot.slane %v10500_v20, 4 }
 0x3a8   : > { %7351 = vmatprep.subr.bf16.mxu0 %v7952_v59 }
 0x3a9   : > { %7185 = vmatpush3.bf16.msra.mxu1 %v7184_v17  ;;  %v7379_v17 = vpack.c.bf16 %v5929_v14, %v5928_v23  ;;  %v7238_v23 = vpack.c.bf16 %v5835_v3, %v5834_v57  ;;  %v5836_v14 = vld [vmem:[%s11438_s8 + $0x320] sm:$0xff]  ;;  %v5970_v57 = vld [vmem:[%s11438_s8 + $0x750] sm:$0xff]  ;;  %v5971_v3 = vld [vmem:[%s11438_s8 + $0x758] sm:$0xff] }
 0x3aa   : > { %7186 = vmatprep.subr.bf16.mxu1 %v7952_v59 }
 0x3ab   : > { %7353 = vmatpush3.bf16.msra.mxu0 %v7352_v33  ;;  %v5931_v33 = vld [vmem:[%s11438_s8 + $0x618] sm:$0xff] }
 0x3ac   : > { %6585 = vmatmul.mubr.f32.vlgmr.msra.gmra.mrb[4].mxu1 %v4352_v15  ;;  %7354 = vmatprep.subr.bf16.mxu0 %v7952_v59  ;;  %v7382_v15 = vpack.c.bf16 %v5931_v33, %v5930_v11  ;;  %v5839_v11 = vld [vmem:[%s11438_s8 + $0x338] sm:$0xff]  ;;  %v7409_v33 = vpack.c.bf16 %v5949_v46, %v5948_v60  ;;  %v5977_v60 = vld [vmem:[%s11438_s8 + $0x788] sm:$0xff] }
 0x3ad   : > { %7188 = vmatpush3.bf16.msra.mxu1 %v7187_v6  ;;  %6619 = vmatprep.mubr.msk.f32.mxu1 %vm7953_vm1, %v7954_v55  ;;  %v5821_v6 = vld [vmem:[%s11438_s8 + $0x2a8] sm:$0xff] }
 0x3ae   : > { %6830 = vmatmul.mubr.f32.vlgmr.msra.gmra.mrb[2].mxu0 %v4981_v29  ;;  %7189 = vmatprep.subr.bf16.mxu1 %v7952_v59  ;;  %v5822_v29 = vld [vmem:[%s11438_s8 + $0x2b0] sm:$0xff] }
 0x3af   : > { %7356 = vmatpush3.bf16.msra.mxu0 %v7355_v38  ;;  %6864 = vmatprep.mubr.msk.f32.mxu0 %vm7953_vm1, %v7954_v55  ;;  %v7217_v38 = vpack.c.bf16 %v5821_v6, %v5820_v19  ;;  %v7220_v35 = vpack.c.bf16 %v5823_v48, %v5822_v29  ;;  %v5951_v19 = vld [vmem:[%s11438_s8 + $0x6b8] sm:$0xff]  ;;  %v5953_v29 = vld [vmem:[%s11438_s8 + $0x6c8] sm:$0xff] }
 0x3b0   : > { %7357 = vmatprep.subr.bf16.mxu0 %v7952_v59 }
 0x3b1   : > { %7191 = vmatpush3.bf16.msra.mxu1 %v7190_v18  ;;  %v5934_v18 = vld [vmem:[%s11438_s8 + $0x630] sm:$0xff] }
 0x3b2   : > { %7192 = vmatprep.subr.bf16.mxu1 %v7952_v59  ;;  %v7388_v54 = vpack.c.bf16 %v5935_v12, %v5934_v18  ;;  %v5843_v18 = vld [vmem:[%s11438_s8 + $0x358] sm:$0xff] }
 0x3b3   : > { %7359 = vmatpush3.bf16.msra.mxu0 %v7358_v4  ;;  %v5824_v4 = vld [vmem:[%s11438_s8 + $0x2c0] sm:$0xff] }
 0x3b4   : > { %7360 = vmatprep.subr.bf16.mxu0 %v7952_v59  ;;  %v7223_v9 = vpack.c.bf16 %v5825_v0, %v5824_v4  ;;  %v5955_v4 = vld [vmem:[%s11438_s8 + $0x6d8] sm:$0xff] }
 0x3b5   : > { %7194 = vmatpush3.bf16.msra.mxu1 %v7193_v32  ;;  %v5936_v32 = vld [vmem:[%s11438_s8 + $0x640] sm:$0xff] }
 0x3b6   : > { %7195 = vmatprep.subr.bf16.mxu1 %v7952_v59  ;;  %v7391_v36 = vpack.c.bf16 %v5937_v26, %v5936_v32  ;;  %v5845_v32 = vld [vmem:[%s11438_s8 + $0x368] sm:$0xff] }
 0x3b7   : > { %7362 = vmatpush3.bf16.msra.mxu0 %v7361_v31  ;;  %v5826_v31 = vld [vmem:[%s11438_s8 + $0x2d0] sm:$0xff] }
 0x3b8   : > { %7363 = vmatprep.subr.bf16.mxu0 %v7952_v59  ;;  %v7226_v62 = vpack.c.bf16 %v5827_v1, %v5826_v31  ;;  %v5957_v31 = vld [vmem:[%s11438_s8 + $0x6e8] sm:$0xff] }
 0x3b9   : > { %7197 = vmatpush3.bf16.msra.mxu1 %v7196_v51  ;;  %v5938_v51 = vld [vmem:[%s11438_s8 + $0x650] sm:$0xff] }
 0x3ba   : > { %7198 = vmatprep.subr.bf16.mxu1 %v7952_v59  ;;  %v7394_v52 = vpack.c.bf16 %v5939_v58, %v5938_v51  ;;  %v5847_v51 = vld [vmem:[%s11438_s8 + $0x378] sm:$0xff] }
 0x3bb   : > { %7365 = vmatpush3.bf16.msra.mxu0 %v7364_v47  ;;  %v5828_v47 = vld [vmem:[%s11438_s8 + $0x2e0] sm:$0xff] }
 0x3bc   : > { %7366 = vmatprep.subr.bf16.mxu0 %v7952_v59  ;;  %v7229_v16 = vpack.c.bf16 %v5829_v2, %v5828_v47  ;;  %v5959_v47 = vld [vmem:[%s11438_s8 + $0x6f8] sm:$0xff] }
 0x3bd   : > { %7200 = vmatpush3.bf16.msra.mxu1 %v7199_v10  ;;  %v5940_v10 = vld [vmem:[%s11438_s8 + $0x660] sm:$0xff] }
 0x3be   : > { %7201 = vmatprep.subr.bf16.mxu1 %v7952_v59  ;;  %v7397_v39 = vpack.c.bf16 %v5941_v13, %v5940_v10  ;;  %v5960_v10 = vld [vmem:[%s11438_s8 + $0x700] sm:$0xff]  ;;  %v5961_v13 = vld [vmem:[%s11438_s8 + $0x708] sm:$0xff] }
 0x3bf   : > { %7368 = vmatpush3.bf16.msra.mxu0 %v7367_v30  ;;  %v5830_v30 = vld [vmem:[%s11438_s8 + $0x2f0] sm:$0xff] }
 0x3c0   : > { %7369 = vmatprep.subr.bf16.mxu0 %v7952_v59  ;;  %v7232_v41 = vpack.c.bf16 %v5831_v45, %v5830_v30  ;;  %v7427_v30 = vpack.c.bf16 %v5961_v13, %v5960_v10  ;;  %v5251_v45 = vrot.slane %v10627_v24, 5  ;;  %v5513_v13 = vld [vmem:[%s11440_s10 + $0x40] sm:$0xff] }
 0x3c1   : > { %7203 = vmatpush3.bf16.msra.mxu1 %v7202_v37  ;;  %v5942_v37 = vld [vmem:[%s11438_s8 + $0x670] sm:$0xff] }
 0x3c2   : > { %7204 = vmatprep.subr.bf16.mxu1 %v7952_v59  ;;  %v7400_v21 = vpack.c.bf16 %v5943_v61, %v5942_v37  ;;  %v5963_v37 = vld [vmem:[%s11438_s8 + $0x718] sm:$0xff]  ;;  %v5964_v61 = vld [vmem:[%s11438_s8 + $0x720] sm:$0xff] }
 0x3c3   : > { %7371 = vmatpush3.bf16.msra.mxu0 %v7370_v27  ;;  %v5832_v27 = vld [vmem:[%s11438_s8 + $0x300] sm:$0xff] }
 0x3c4   : > { %7372 = vmatprep.subr.bf16.mxu0 %v7952_v59  ;;  %v7235_v49 = vpack.c.bf16 %v5833_v43, %v5832_v27  ;;  %v5966_v43 = vld [vmem:[%s11438_s8 + $0x730] sm:$0xff] }
 0x3c5   : > { %7206 = vmatpush3.bf16.msra.mxu1 %v7205_v44  ;;  %v5944_v44 = vld [vmem:[%s11438_s8 + $0x680] sm:$0xff] }
 0x3c6   : > { %7207 = vmatprep.subr.bf16.mxu1 %v7952_v59 }
 0x3c7   : > { %7374 = vmatpush3.bf16.msra.mxu0 %v7373_v28  ;;  %v4532_v28 = vrot.slane %v10500_v20, 5 }
 0x3c8   : > { %7375 = vmatprep.subr.bf16.mxu0 %v7952_v59 }
 0x3c9   : > { %7209 = vmatpush3.bf16.msra.mxu1 %v7208_v22  ;;  %v7403_v22 = vpack.c.bf16 %v5945_v40, %v5944_v44  ;;  %v5968_v40 = vld [vmem:[%s11438_s8 + $0x740] sm:$0xff] }
 0x3ca   : > { %7210 = vmatprep.subr.bf16.mxu1 %v7952_v59 }
 0x3cb   : > { %7377 = vmatpush3.bf16.msra.mxu0 %v7376_v53  ;;  %v5947_v53 = vld [vmem:[%s11438_s8 + $0x698] sm:$0xff] }
 0x3cc   : > { %6620 = vmatmul.mubr.f32.vlgmr.msra.gmra.mrb[4].mxu1 %v4442_v8  ;;  %7378 = vmatprep.subr.bf16.mxu0 %v7952_v59  ;;  %v7406_v8 = vpack.c.bf16 %v5947_v53, %v5946_v34  ;;  %v5973_v34 = vld [vmem:[%s11438_s8 + $0x768] sm:$0xff] }
 0x3cd   : > { %7212 = vmatpush3.bf16.msra.mxu1 %v7211_v50  ;;  %6654 = vmatprep.mubr.msk.f32.mxu1 %vm7953_vm1, %v7954_v55  ;;  %v5837_v50 = vld [vmem:[%s11438_s8 + $0x328] sm:$0xff] }
 0x3ce   : > { %6865 = vmatmul.mubr.f32.vlgmr.msra.gmra.mrb[2].mxu0 %v5071_v25  ;;  %7213 = vmatprep.subr.bf16.mxu1 %v7952_v59  ;;  %v5838_v25 = vld [vmem:[%s11438_s8 + $0x330] sm:$0xff] }
 0x3cf   : > { %7380 = vmatpush3.bf16.msra.mxu0 %v7379_v17  ;;  %6899 = vmatprep.mubr.msk.f32.mxu0 %vm7953_vm1, %v7954_v55  ;;  %v7241_v17 = vpack.c.bf16 %v5837_v50, %v5836_v14  ;;  %v7244_v6 = vpack.c.bf16 %v5839_v11, %v5838_v25  ;;  %v5975_v14 = vld [vmem:[%s11438_s8 + $0x778] sm:$0xff]  ;;  %v5978_v25 = vld [vmem:[%s11438_s8 + $0x790] sm:$0xff] }
 0x3d0   : > { %7381 = vmatprep.subr.bf16.mxu0 %v7952_v59  ;;  %v5979_v11 = vld [vmem:[%s11438_s8 + $0x798] sm:$0xff] }
 0x3d1   : > { %7215 = vmatpush3.bf16.msra.mxu1 %v7214_v63  ;;  %v5950_v63 = vld [vmem:[%s11438_s8 + $0x6b0] sm:$0xff] }
 0x3d2   : > { %7216 = vmatprep.subr.bf16.mxu1 %v7952_v59  ;;  %v7412_v42 = vpack.c.bf16 %v5951_v19, %v5950_v63  ;;  %v5980_v63 = vld [vmem:[%s11438_s8 + $0x7a0] sm:$0xff]  ;;  %v5981_v19 = vld [vmem:[%s11438_s8 + $0x7a8] sm:$0xff] }
 0x3d3   : > { %7383 = vmatpush3.bf16.msra.mxu0 %v7382_v15  ;;  %v5840_v15 = vld [vmem:[%s11438_s8 + $0x340] sm:$0xff] }
 0x3d4   : > { %7384 = vmatprep.subr.bf16.mxu0 %v7952_v59  ;;  %v7247_v48 = vpack.c.bf16 %v5841_v7, %v5840_v15  ;;  %v5982_v15 = vld [vmem:[%s11438_s8 + $0x7b0] sm:$0xff] }
 0x3d5   : > { %7218 = vmatpush3.bf16.msra.mxu1 %v7217_v38  ;;  %v5952_v38 = vld [vmem:[%s11438_s8 + $0x6c0] sm:$0xff] }
 0x3d6   : > { %7219 = vmatprep.subr.bf16.mxu1 %v7952_v59  ;;  %v7415_v12 = vpack.c.bf16 %v5953_v29, %v5952_v38  ;;  %v5985_v38 = vld [vmem:[%s11438_s8 + $0x7c8] sm:$0xff] }
 0x3d7   : > { %7386 = vmatpush3.bf16.msra.mxu0 %v7385_v5  ;;  %v5842_v5 = vld [vmem:[%s11438_s8 + $0x350] sm:$0xff] }
 0x3d8   : > { %7387 = vmatprep.subr.bf16.mxu0 %v7952_v59  ;;  %v7250_v0 = vpack.c.bf16 %v5843_v18, %v5842_v5  ;;  %v5987_v5 = vld [vmem:[%s11438_s8 + $0x7d8] sm:$0xff] }
 0x3d9   : > { %7221 = vmatpush3.bf16.msra.mxu1 %v7220_v35  ;;  %v5954_v35 = vld [vmem:[%s11438_s8 + $0x6d0] sm:$0xff] }
 0x3da   : > { %7222 = vmatprep.subr.bf16.mxu1 %v7952_v59  ;;  %v7418_v26 = vpack.c.bf16 %v5955_v4, %v5954_v35  ;;  %v5989_v35 = vld [vmem:[%s11438_s8 + $0x7e8] sm:$0xff] }
 0x3db   : > { %7389 = vmatpush3.bf16.msra.mxu0 %v7388_v54  ;;  %v5844_v54 = vld [vmem:[%s11438_s8 + $0x360] sm:$0xff] }
 0x3dc   : > { %7390 = vmatprep.subr.bf16.mxu0 %v7952_v59  ;;  %v7253_v1 = vpack.c.bf16 %v5845_v32, %v5844_v54  ;;  %v5991_v54 = vld [vmem:[%s11438_s8 + $0x7f8] sm:$0xff] }
 0x3dd   : > { %7224 = vmatpush3.bf16.msra.mxu1 %v7223_v9  ;;  %v5956_v9 = vld [vmem:[%s11438_s8 + $0x6e0] sm:$0xff] }
 0x3de   : > { %7225 = vmatprep.subr.bf16.mxu1 %v7952_v59  ;;  %v7421_v58 = vpack.c.bf16 %v5957_v31, %v5956_v9  ;;  %v5505_v9 = vld [vmem:[%s11440_s10] sm:$0xff]  ;;  %v5506_v31 = vld [vmem:[%s11440_s10 + $0x8] sm:$0xff] }
 0x3df   : > { %7392 = vmatpush3.bf16.msra.mxu0 %v7391_v36  ;;  %v5846_v36 = vld [vmem:[%s11438_s8 + $0x370] sm:$0xff] }
 0x3e0   : > { %7393 = vmatprep.subr.bf16.mxu0 %v7952_v59  ;;  %v7256_v2 = vpack.c.bf16 %v5847_v51, %v5846_v36  ;;  %v7475_v36 = vpack.c.bf16 %v5506_v31, %v5505_v9  ;;  %v5508_v51 = vld [vmem:[%s11440_s10 + $0x18] sm:$0xff] }
 0x3e1   : > { %7227 = vmatpush3.bf16.msra.mxu1 %v7226_v62  ;;  %v5958_v62 = vld [vmem:[%s11438_s8 + $0x6f0] sm:$0xff] }
 0x3e2   : > { %7228 = vmatprep.subr.bf16.mxu1 %v7952_v59 }
 0x3e3   : > { %7395 = vmatpush3.bf16.msra.mxu0 %v7394_v52  ;;  %v7424_v52 = vpack.c.bf16 %v5959_v47, %v5958_v62  ;;  %v5510_v62 = vld [vmem:[%s11440_s10 + $0x28] sm:$0xff] }
 0x3e4   : > { %7396 = vmatprep.subr.bf16.mxu0 %v7952_v59 }
 0x3e5   : > { %7230 = vmatpush3.bf16.msra.mxu1 %v7229_v16  ;;  %v4622_v16 = vrot.slane %v10500_v20, 6 }
 0x3e6   : > { %7231 = vmatprep.subr.bf16.mxu1 %v7952_v59 }
 0x3e7   : > { %7398 = vmatpush3.bf16.msra.mxu0 %v7397_v39  ;;  %v5962_v39 = vld [vmem:[%s11438_s8 + $0x710] sm:$0xff] }
 0x3e8   : > { %7399 = vmatprep.subr.bf16.mxu0 %v7952_v59  ;;  %v7430_v20 = vpack.c.bf16 %v5963_v37, %v5962_v39  ;;  %v5516_v39 = vld [vmem:[%s11440_s10 + $0x58] sm:$0xff] }
 0x3e9   : > { %7233 = vmatpush3.bf16.msra.mxu1 %v7232_v41  ;;  %v5965_v41 = vld [vmem:[%s11438_s8 + $0x728] sm:$0xff] }
 0x3ea   : > { %7234 = vmatprep.subr.bf16.mxu1 %v7952_v59  ;;  %v7433_v27 = vpack.c.bf16 %v5965_v41, %v5964_v61  ;;  %v5518_v61 = vld [vmem:[%s11440_s10 + $0x68] sm:$0xff] }
 0x3eb   : > { %7401 = vmatpush3.bf16.msra.mxu0 %v7400_v21  ;;  %v5967_v21 = vld [vmem:[%s11438_s8 + $0x738] sm:$0xff] }
 0x3ec   : > { %6655 = vmatmul.mubr.f32.vlgmr.msra.gmra.mrb[4].mxu1 %v4532_v28  ;;  %7402 = vmatprep.subr.bf16.mxu0 %v7952_v59  ;;  %v7436_v44 = vpack.c.bf16 %v5967_v21, %v5966_v43  ;;  %v5520_v43 = vld [vmem:[%s11440_s10 + $0x78] sm:$0xff] }
 0x3ed   : > { %7236 = vmatpush3.bf16.msra.mxu1 %v7235_v49  ;;  %6689 = vmatprep.mubr.msk.f32.mxu1 %vm7953_vm1, %v7954_v55  ;;  %v5969_v49 = vld [vmem:[%s11438_s8 + $0x748] sm:$0xff] }
 0x3ee   : > { %6900 = vmatmul.mubr.f32.vlgmr.msra.gmra.mrb[2].mxu0 %v5161_v56  ;;  %7237 = vmatprep.subr.bf16.mxu1 %v7952_v59  ;;  %v7439_v28 = vpack.c.bf16 %v5969_v49, %v5968_v40  ;;  %v5972_v56 = vld [vmem:[%s11438_s8 + $0x760] sm:$0xff] }
 0x3ef   : > { %7404 = vmatpush3.bf16.msra.mxu0 %v7403_v22  ;;  %6934 = vmatprep.mubr.msk.f32.mxu0 %vm7953_vm1, %v7954_v55  ;;  %v7442_v22 = vpack.c.bf16 %v5971_v3, %v5970_v57  ;;  %v7445_v53 = vpack.c.bf16 %v5973_v34, %v5972_v56  ;;  %v4065_v49 = vld [vmem:[%s11439_s9] sm:$0x1] }
 0x3f0   : > { %7405 = vmatprep.subr.bf16.mxu0 %v7952_v59  ;;  %v5521_v56 = vld [vmem:[%s11441_s11] sm:$0x1] }
 0x3f1   : > { %7239 = vmatpush3.bf16.msra.mxu1 %v7238_v23  ;;  %v5974_v23 = vld [vmem:[%s11438_s8 + $0x770] sm:$0xff] }
 0x3f2   : > { %7240 = vmatprep.subr.bf16.mxu1 %v7952_v59  ;;  %v7448_v50 = vpack.c.bf16 %v5975_v14, %v5974_v23 }
 0x3f3   : > { %7407 = vmatpush3.bf16.msra.mxu0 %v7406_v8  ;;  %v5976_v8 = vld [vmem:[%s11438_s8 + $0x780] sm:$0xff] }
 0x3f4   : > { %7408 = vmatprep.subr.bf16.mxu0 %v7952_v59  ;;  %v7451_v46 = vpack.c.bf16 %v5977_v60, %v5976_v8 }
 0x3f5   : > { %7242 = vmatpush3.bf16.msra.mxu1 %v7241_v17  ;;  %v5341_v17 = vrot.slane %v10627_v24, 6 }
 0x3f6   : > { %7243 = vmatprep.subr.bf16.mxu1 %v7952_v59 }
 0x3f7   : > { %7410 = vmatpush3.bf16.msra.mxu0 %v7409_v33  ;;  %v7454_v33 = vpack.c.bf16 %v5979_v11, %v5978_v25 }
 0x3f8   : > { %7411 = vmatprep.subr.bf16.mxu0 %v7952_v59 }
 0x3f9   : > { %7245 = vmatpush3.bf16.msra.mxu1 %v7244_v6  ;;  %v7457_v6 = vpack.c.bf16 %v5981_v19, %v5980_v63 }
 0x3fa   : > { %7246 = vmatprep.subr.bf16.mxu1 %v7952_v59 }
 0x3fb   : > { %7413 = vmatpush3.bf16.msra.mxu0 %v7412_v42  ;;  %v5984_v42 = vld [vmem:[%s11438_s8 + $0x7c0] sm:$0xff] }
 0x3fc   : > { %7414 = vmatprep.subr.bf16.mxu0 %v7952_v59  ;;  %v7463_v29 = vpack.c.bf16 %v5985_v38, %v5984_v42 }
 0x3fd   : > { %7248 = vmatpush3.bf16.msra.mxu1 %v7247_v48  ;;  %v5986_v48 = vld [vmem:[%s11438_s8 + $0x7d0] sm:$0xff] }
 0x3fe   : > { %7249 = vmatprep.subr.bf16.mxu1 %v7952_v59  ;;  %v7466_v18 = vpack.c.bf16 %v5987_v5, %v5986_v48 }
 0x3ff   : > { %7416 = vmatpush3.bf16.msra.mxu0 %v7415_v12  ;;  %v5988_v12 = vld [vmem:[%s11438_s8 + $0x7e0] sm:$0xff] }
 0x400   : > { %7417 = vmatprep.subr.bf16.mxu0 %v7952_v59  ;;  %v7469_v4 = vpack.c.bf16 %v5989_v35, %v5988_v12 }
 0x401   : > { %7251 = vmatpush3.bf16.msra.mxu1 %v7250_v0  ;;  %v5990_v0 = vld [vmem:[%s11438_s8 + $0x7f0] sm:$0xff] }
 0x402   : > { %7252 = vmatprep.subr.bf16.mxu1 %v7952_v59  ;;  %v7472_v32 = vpack.c.bf16 %v5991_v54, %v5990_v0 }
 0x403   : > { %7419 = vmatpush3.bf16.msra.mxu0 %v7418_v26  ;;  %v5431_v26 = vrot.slane %v10627_v24, 7 }
 0x404   : > { %7420 = vmatprep.subr.bf16.mxu0 %v7952_v59 }
 0x405   : > { %7254 = vmatpush3.bf16.msra.mxu1 %v7253_v1  ;;  %v5507_v1 = vld [vmem:[%s11440_s10 + $0x10] sm:$0xff] }
 0x406   : > { %7255 = vmatprep.subr.bf16.mxu1 %v7952_v59  ;;  %v7478_v24 = vpack.c.bf16 %v5508_v51, %v5507_v1 }
 0x407   : > { %7422 = vmatpush3.bf16.msra.mxu0 %v7421_v58  ;;  %v5509_v58 = vld [vmem:[%s11440_s10 + $0x20] sm:$0xff] }
 0x408   : > { %7423 = vmatprep.subr.bf16.mxu0 %v7952_v59  ;;  %v7481_v47 = vpack.c.bf16 %v5510_v62, %v5509_v58 }
 0x409   : > { %7257 = vmatpush3.bf16.msra.mxu1 %v7256_v2  ;;  %v5511_v2 = vld [vmem:[%s11440_s10 + $0x30] sm:$0xff] }
 0x40a   : > { %7474 = vmatprep.subr.bf16.mxu1 %v7952_v59 }
 0x40b   : > { %7425 = vmatpush3.bf16.msra.mxu0 %v7424_v52  ;;  %v5512_v52 = vld [vmem:[%s11440_s10 + $0x38] sm:$0xff] }
 0x40c   : > { %6690 = vmatmul.mubr.f32.vlgmr.msra.gmra.mrb[4].mxu1 %v4622_v16  ;;  %7426 = vmatprep.subr.bf16.mxu0 %v7952_v59  ;;  %v7484_v10 = vpack.c.bf16 %v5512_v52, %v5511_v2  ;;  %v5514_v16 = vld [vmem:[%s11440_s10 + $0x48] sm:$0xff] }
 0x40d   : > { %7039 = vmatprep.mubr.msk.f32.mxu1 %vm7953_vm1, %v7954_v55  ;;  %7476 = vmatpush3.bf16.msra.mxu1 %v7475_v36 }
 0x40e   : > { %6935 = vmatmul.mubr.f32.vlgmr.msra.gmra.mrb[2].mxu0 %v5251_v45  ;;  %7477 = vmatprep.subr.bf16.mxu1 %v7952_v59  ;;  %v5515_v45 = vld [vmem:[%s11440_s10 + $0x50] sm:$0xff] }
 0x40f   : > { %7428 = vmatpush3.bf16.msra.mxu0 %v7427_v30  ;;  %6969 = vmatprep.mubr.msk.f32.mxu0 %vm7953_vm1, %v7954_v55  ;;  %v7487_v30 = vpack.c.bf16 %v5514_v16, %v5513_v13  ;;  %v7490_v37 = vpack.c.bf16 %v5516_v39, %v5515_v45 }
 0x410   : > { %7429 = vmatprep.subr.bf16.mxu0 %v7952_v59 }
 0x411   : > { %7479 = vmatpush3.bf16.msra.mxu1 %v7478_v24 }
 0x412   : > { %7480 = vmatprep.subr.bf16.mxu1 %v7952_v59 }
 0x413   : > { %7431 = vmatpush3.bf16.msra.mxu0 %v7430_v20  ;;  %v5517_v20 = vld [vmem:[%s11440_s10 + $0x60] sm:$0xff] }
 0x414   : > { %7432 = vmatprep.subr.bf16.mxu0 %v7952_v59  ;;  %v7493_v41 = vpack.c.bf16 %v5518_v61, %v5517_v20 }
 0x415   : > { %7482 = vmatpush3.bf16.msra.mxu1 %v7481_v47 }
 0x416   : > { %7483 = vmatprep.subr.bf16.mxu1 %v7952_v59 }
 0x417   : > { %7434 = vmatpush3.bf16.msra.mxu0 %v7433_v27  ;;  %v5519_v27 = vld [vmem:[%s11440_s10 + $0x70] sm:$0xff] }
 0x418   : > { %7435 = vmatprep.subr.bf16.mxu0 %v7952_v59  ;;  %v7496_v21 = vpack.c.bf16 %v5520_v43, %v5519_v27 }
 0x419   : > { %7485 = vmatpush3.bf16.msra.mxu1 %v7484_v10 }
 0x41a   : > { %7486 = vmatprep.subr.bf16.mxu1 %v7952_v59 }
 0x41b   : > { %7437 = vmatpush3.bf16.msra.mxu0 %v7436_v44 }
 0x41c   : > { %7438 = vmatprep.subr.bf16.mxu0 %v7952_v59 }
 0x41d   : > { %7488 = vmatpush3.bf16.msra.mxu1 %v7487_v30 }
 0x41e   : > { %7489 = vmatprep.subr.bf16.mxu1 %v7952_v59 }
 0x41f   : > { %7440 = vmatpush3.bf16.msra.mxu0 %v7439_v28 }
 0x420   : > { %7441 = vmatprep.subr.bf16.mxu0 %v7952_v59 }
 0x421   : > { %7491 = vmatpush3.bf16.msra.mxu1 %v7490_v37 }
 0x422   : > { %7492 = vmatprep.subr.bf16.mxu1 %v7952_v59 }
 0x423   : > { %7443 = vmatpush3.bf16.msra.mxu0 %v7442_v22 }
 0x424   : > { %7444 = vmatprep.subr.bf16.mxu0 %v7952_v59 }
 0x425   : > { %7494 = vmatpush3.bf16.msra.mxu1 %v7493_v41 }
 0x426   : > { %7495 = vmatprep.subr.bf16.mxu1 %v7952_v59 }
 0x427   : > { %7446 = vmatpush3.bf16.msra.mxu0 %v7445_v53 }
 0x428   : > { %7447 = vmatprep.subr.bf16.mxu0 %v7952_v59 }
 0x429   : > { %7497 = vmatpush3.bf16.msra.mxu1 %v7496_v21 }
 0x42b   : > { %7449 = vmatpush3.bf16.msra.mxu0 %v7448_v50 }
 0x42c   : > { %7450 = vmatprep.subr.bf16.mxu0 %v7952_v59 }
 0x42e   : > { %6970 = vmatmul.mubr.f32.vlgmr.msra.gmra.mrb[2].mxu0 %v5341_v17 }
 0x42f   : > { %7452 = vmatpush3.bf16.msra.mxu0 %v7451_v46  ;;  %7004 = vmatprep.mubr.msk.f32.mxu0 %vm7953_vm1, %v7954_v55  ;;  %v5983_v55 = vld [vmem:[%s11438_s8 + $0x7b8] sm:$0xff] }
 0x430   : > { %7453 = vmatprep.subr.bf16.mxu0 %v7952_v59  ;;  %v7460_v7 = vpack.c.bf16 %v5983_v55, %v5982_v15 }
 0x433   : > { %7455 = vmatpush3.bf16.msra.mxu0 %v7454_v33 }
 0x434   : > { %7456 = vmatprep.subr.bf16.mxu0 %v7952_v59 }
 0x437   : > { %7458 = vmatpush3.bf16.msra.mxu0 %v7457_v6 }
 0x438   : > { %7459 = vmatprep.subr.bf16.mxu0 %v7952_v59 }
 0x43b   : > { %7461 = vmatpush3.bf16.msra.mxu0 %v7460_v7 }
 0x43c   : > { %7462 = vmatprep.subr.bf16.mxu0 %v7952_v59 }
 0x43f   : > { %7464 = vmatpush3.bf16.msra.mxu0 %v7463_v29 }
 0x440   : > { %7465 = vmatprep.subr.bf16.mxu0 %v7952_v59 }
 0x443   : > { %7467 = vmatpush3.bf16.msra.mxu0 %v7466_v18 }
 0x444   : > { %7468 = vmatprep.subr.bf16.mxu0 %v7952_v59 }
 0x447   : > { %7470 = vmatpush3.bf16.msra.mxu0 %v7469_v4 }
 0x448   : > { %7471 = vmatprep.subr.bf16.mxu0 %v7952_v59 }
 0x44b   : > { %7473 = vmatpush3.bf16.msra.mxu0 %v7472_v32 }
 0x44e   : > { %7005 = vmatmul.mubr.f32.vlgmr.msra.gmra.mrb[2].mxu0 %v5431_v26 }
 0x4df   : > { %v4690_v44 = vpop.f32.mrb[4].mxu1 }
 0x4e0   : > { %v6691_v40 = vpop.f32.mrb[5].mxu1  ;;  %v7501_v28 = vadd.f32 %v4690_v44, %v4065_v49 }
 0x521   : > { %v5499_v57 = vpop.f32.mrb[2].mxu0 }
 0x522   : > { %v7502_v59 = vadd.f32 %v7501_v28, %v5499_v57  ;;  %v7006_v3 = vpop.f32.mrb[3].mxu0 }
 0x524   : > { %v5504_v22 = vmax.f32 %v7502_v59, 0.0 }
 0x526   : > { %7040 = vmatmul.mubr.f32.vlgmr.msra.gmra.mrb[6].mxu1 %v5504_v22 }
 0x5f9   : > { %v5588_v34 = vpop.f32.mrb[6].mxu1 }
 0x5fa   : > { %v5589_v53 = vadd.f32 %v5588_v34, %v5521_v56  ;;  %v7041_v23 = vpop.f32.mrb[7].mxu1 }
 0x5fc   : > { %5593 = vst.msk [vmem:[%s474_s15] sm:$0x1] %vm5592_vm9, %v5589_v53 }
 0x5fd   : > { %7901 = shalt.err (!%p7898_p3)
}
 0x5fe   : > { %s7902_s1 = scalar_lea.hbm %s11388_s18, 16  ;;  %s7906_s20 = scalar_lea.hbm %s11442_s12, 32 }
 0x5ff   : > { %p7903_p4 = scmp.ne.s32.totalorder %s11388_s18, %s7902_s1  ;;  %p7907_p9 = scmp.lt.u32.totalorder %s11388_s18, %s11442_s12 }
 0x600   : > { %p7908_p10 = scmp.lt.u32.totalorder %s7906_s20, %s7902_s1  ;;  %p7910_p12 = scmp.lt.u32.totalorder %s7902_s1, %s11388_s18 }
 0x601   : > { %p7904_p7 = pnand %p7903_p4, %p8059_p5 }
 0x602   : > { %p7909_p11 = por %p7908_p10, %p7907_p9 }
 0x603   : > { %p7905_p8 = pneg %p7904_p7 }
 0x604   : > { %p7911_p13 = por %p7910_p12, %p7909_p11 }
 0x606   : > { %p7912_p0 = pnand %p7911_p13, %p7905_p8 }
 0x608   : > { %7915 = shalt.err (!%p7912_p0)
}
 0x609   : > { %7557 = dma.vmem_to_hbm [thread:$0]  (%p8059_p5), %s11390_s0, 16, %s11388_s18, %s5595_s17  }
 0x60a PF: > { %p7563_p1 = scmp.ge.s32.totalorder %s7950_s24, 2  ;;  %s5619_s19 = sand.u32 1, %s7938_s21  }
 0x60b   : > { %s5620_s26 = scalar_lea.sflag [#allocation3], %s5619_s19 }
 0x60c   : > { %p7560_p2 = pnand %p7563_p1, %p8063_p6 }
 0x60e   : > { %7933 = dma.done.wait (!%p7560_p2), %s5620_s26, 16  }
 0x60f   : > { %7935 = vsyncadd (!%p7560_p2), %s5620_s26, 4294967280  ;;  %p22_p3 = scmp.ge.s32.totalorder %s8046_s27, 4   ;;  %s11857_s21 = smov %s7942_s22 }
 0x610   : > { %s11858_s22 = smov %s7946_s23  ;;  %s11859_s23 = smov %s8057_s30 }
 0x611   : > { %s11860_s24 = smov %s8046_s27  ;;  %24 = sbr.rel (!%p22_p3) target bundleno = 6 (0x6), region = 133 }
 0x618   :  { %5624 = vsyncpa [#allocation3], 1 }
 0x619   :  { %5626 = vsyncpa [#allocation3 + $0x1], 1 }

</bundles_post_ra>
